<compile_context>
chip_gen: v7x
topology: tpu7x:2x2x1
jax: 0.10.0
libtpu: 0.0.40
codegen_flags: <defaults>
</compile_context>

<pallas_src>
import jax
import jax.numpy as jnp
from jax.experimental import pallas as pl
from jax.experimental.pallas import tpu as pltpu


# ----------------------------- fused Pallas kernel ---------------------------

def make_fused_kernel(num_layers, seq_len, b_tile, hidden_dim, time_chunk,
                      mm_dtype):
    """Kernel closure over the static configuration.

    Ref layout (per grid step = one batch tile):
      refs[0]                 : x2d tile      (T*B_TILE, D_in)
      refs[1 : 1+3L]          : per layer (w_ih (D,4H), w_hh (H,4H), b (1,4H))
                                gate order already permuted to [i, f, o, g]
      refs[1+3L], refs[2+3L]  : fc_w (H, P), fc_b (1, P)
      refs[3+3L]              : out tile (B_TILE, P)
      refs[4+3L:]             : 0..2 VMEM ping-pong buffers (T*B_TILE, 4H)
                                holding the NEXT layer's input projection.
    """
    L, T, B, H, C = num_layers, seq_len, b_tile, hidden_dim, time_chunk
    H4 = 4 * H

    def _sigmoid(x):
        # sigmoid(x) == 0.5 * (tanh(x/2) + 1): one EUP push per vreg instead of
        # a possible exp + reciprocal pair.
        return 0.5 * jnp.tanh(0.5 * x) + 0.5

    def kernel(*refs):
        x_ref = refs[0]
        w_refs = refs[1:1 + 3 * L]
        fc_w_ref = refs[1 + 3 * L]
        fc_b_ref = refs[2 + 3 * L]
        out_ref = refs[3 + 3 * L]
        xw_scr = refs[4 + 3 * L:]

        def w_ih(l):
            return w_refs[3 * l][...]

        def w_hh(l):
            return w_refs[3 * l + 1][...]

        def bias(l):
            return w_refs[3 * l + 2][...]

        def lstm_step(xw_row, h, c, whh, nxt):
            """One timestep. xw_row already contains x_t@W_ih + b (f32).
            nxt = (w_ih_next, b_next, dst_ref, t): interleave the next layer's
            input projection (independent of the serial h-chain -> MXU filler
            during this step's EUP/VALU tail)."""
            gates = xw_row + jnp.dot(h.astype(mm_dtype), whh,
                                     preferred_element_type=jnp.float32)
            # Reordered gate layout: [i, f, o, g].
            sig = _sigmoid(gates[:, 0:3 * H])          # sigmoid on 3H lanes only
            g_g = jnp.tanh(gates[:, 3 * H:H4])         # tanh on H lanes only
            c = sig[:, H:2 * H] * c + sig[:, 0:H] * g_g
            h = sig[:, 2 * H:3 * H] * jnp.tanh(c)
            if nxt is not None:
                w_n, b_n, dst, t = nxt
                dst[t * B:(t + 1) * B, :] = (
                    jnp.dot(h.astype(mm_dtype), w_n,
                            preferred_element_type=jnp.float32) + b_n)
            return h, c

        h = None
        for layer in range(L):
            whh = w_hh(layer)
            last = layer == L - 1
            if not last:
                nxt_w, nxt_b = w_ih(layer + 1), bias(layer + 1)
                nxt_dst = xw_scr[layer % 2]
            h = jnp.zeros((B, H), jnp.float32)
            c = jnp.zeros((B, H), jnp.float32)

            if layer == 0:
                wih0, b0 = w_ih(0), bias(0)
                # Hoisted input projection, computed in bounded time-chunks so
                # the live (C*B, 4H) value stays small (v7x 64 MiB VMEM / v5e
                # 16 MiB scoped-default friendly).
                for t0 in range(0, T, C):
                    tc = min(C, T - t0)
                    xw = jnp.dot(x_ref[t0 * B:(t0 + tc) * B, :], wih0,
                                 preferred_element_type=jnp.float32) + b0
                    for dt in range(tc):   # static unroll; T is tiny here
                        t = t0 + dt
                        nxt = None if last else (nxt_w, nxt_b, nxt_dst, t)
                        h, c = lstm_step(xw[dt * B:(dt + 1) * B, :],
                                         h, c, whh, nxt)
            else:
                src = xw_scr[(layer - 1) % 2]
                # TODO(synk): for large T switch these static loops to
                # lax.fori_loop(..., unroll=4..8) with pl.ds indexing so vreg
                # live ranges stay bounded.
                for t in range(T):
                    nxt = None if last else (nxt_w, nxt_b, nxt_dst, t)
                    h, c = lstm_step(src[t * B:(t + 1) * B, :], h, c, whh, nxt)

        # Final Linear on the last timestep's hidden state only.
        out_ref[...] = (jnp.dot(h.astype(mm_dtype), fc_w_ref[...],
                                preferred_element_type=jnp.float32)
                        + fc_b_ref[...])

    return kernel


# ------------------------------ weight prep ----------------------------------

def prep_params(params, mm_dtype):
    """Reorder gate columns torch [i,f,g,o] -> [i,f,o,g]; cast matmul operands
    to mm_dtype (biases stay f32 since they are added after the MXU)."""
    def reorder(w):
        H = w.shape[-1] // 4
        return jnp.concatenate(
            [w[..., 0:H], w[..., H:2 * H], w[..., 3 * H:4 * H],
             w[..., 2 * H:3 * H]], axis=-1)

    lstm = []
    for (w_ih, w_hh, b) in params["lstm"]:
        lstm.append((reorder(w_ih).astype(mm_dtype),
                     reorder(w_hh).astype(mm_dtype),
                     reorder(b).astype(jnp.float32)))
    return lstm, params["fc_w"].astype(mm_dtype), params["fc_b"].astype(jnp.float32)


# --------------------------------- wrapper -----------------------------------

def stock_predictor_forward(x, params, *, b_tile=128, time_chunk=None,
                            mm_dtype=jnp.float32):
    """x: (B, T, input_dim), batch_first like the PyTorch module.

    b_tile: per-core batch tile (MXU height). 128 is safe on all generations;
    use 256 on v6e/v7x for best MXU row utilization at real batch sizes.
    mm_dtype: matmul operand dtype (bf16 recommended on v6e/v7x; gate math and
    the c/h state always stay f32)."""
    B, T, D = x.shape
    H = params["lstm"][0][1].shape[0]
    P = params["fc_w"].shape[1]
    L = len(params["lstm"])
    assert b_tile % 8 == 0

    if time_chunk is None:
        # keep the live layer-0 projection chunk around ~2 MiB
        time_chunk = max(1, min(T, (2 << 20) // (b_tile * 4 * H * 4)))

    lstm_w, fc_w, fc_b = prep_params(params, mm_dtype)

    n_tiles = pl.cdiv(B, b_tile)
    b_padded = n_tiles * b_tile
    x_p = jnp.zeros((b_padded, T, D), jnp.float32).at[:B].set(
        x.astype(jnp.float32))
    # Per-batch-tile, time-major, flattened: row ((tile*T + t)*b_tile + b).
    x2d = (x_p.reshape(n_tiles, b_tile, T, D)
               .transpose(0, 2, 1, 3)
               .reshape(n_tiles * T * b_tile, D)
               .astype(mm_dtype))

    flat_w = []
    for (w_ih, w_hh, b) in lstm_w:
        flat_w += [w_ih, w_hh, b]

    n_scr = min(2, max(0, L - 1))
    scratch = [pltpu.VMEM((T * b_tile, 4 * H), jnp.float32)
               for _ in range(n_scr)]

    # Explicit VMEM budget (v5e scoped default is 16 MiB; v7x physical 64 MiB).
    mm_bytes = jnp.dtype(mm_dtype).itemsize
    weight_bytes = sum(int(w.size) * w.dtype.itemsize
                       for w in flat_w + [fc_w, fc_b])
    need = (n_scr * T * b_tile * 4 * H * 4        # ping-pong xw scratch
            + 2 * T * b_tile * D * mm_bytes       # double-buffered x tile
            + 2 * b_tile * P * 4                  # double-buffered out tile
            + time_chunk * b_tile * 4 * H * 4     # live layer-0 xw chunk
            + weight_bytes)
    vmem_limit = int(min(64 << 20, max(2 * need + (4 << 20), 16 << 20)))

    grid_spec = pltpu.PrefetchScalarGridSpec(
        num_scalar_prefetch=0,
        grid=(n_tiles,),
        in_specs=(
            [pl.BlockSpec((T * b_tile, D), lambda i: (i, 0))]
            + [pl.BlockSpec(w.shape, lambda i: (0, 0))
               for w in flat_w + [fc_w, fc_b]]),
        out_specs=pl.BlockSpec((b_tile, P), lambda i: (i, 0)),
        scratch_shapes=scratch,
    )

    out = pl.pallas_call(
        make_fused_kernel(L, T, b_tile, H, time_chunk, mm_dtype),
        out_shape=jax.ShapeDtypeStruct((b_padded, P), jnp.float32),
        grid_spec=grid_spec,
        compiler_params=pltpu.CompilerParams(
            dimension_semantics=("parallel",),   # batch tiles -> both v7x TCs
            vmem_limit_bytes=vmem_limit),
    )(x2d, *flat_w, fc_w, fc_b)
    return out[:B]                               # drop padded batch rows


# --------------------------- parameter init ----------------------------------

def init_params(key, input_dim, hidden_dim, num_layers, prediction_window):
    """Uniform(-1/sqrt(H), 1/sqrt(H)) init like torch defaults.
    LSTM weights stored pre-transposed (D_in, 4H)/(H, 4H), torch gate order
    [i, f, g, o]; b_ih + b_hh fused; fc weight stored as (H, P)."""
    scale = 1.0 / jnp.sqrt(jnp.float32(hidden_dim))
    params = {"lstm": []}
    for layer in range(num_layers):
        d_in = input_dim if layer == 0 else hidden_dim
        key, k1, k2, k3, k4 = jax.random.split(key, 5)
        w_ih = jax.random.uniform(k1, (d_in, 4 * hidden_dim), jnp.float32,
                                  -scale, scale)
        w_hh = jax.random.uniform(k2, (hidden_dim, 4 * hidden_dim), jnp.float32,
                                  -scale, scale)
        b_ih = jax.random.uniform(k3, (4 * hidden_dim,), jnp.float32, -scale, scale)
        b_hh = jax.random.uniform(k4, (4 * hidden_dim,), jnp.float32, -scale, scale)
        params["lstm"].append((w_ih, w_hh, (b_ih + b_hh).reshape(1, 4 * hidden_dim)))
    key, k5, k6 = jax.random.split(key, 3)
    params["fc_w"] = jax.random.uniform(
        k5, (hidden_dim, prediction_window), jnp.float32, -scale, scale)
    params["fc_b"] = jax.random.uniform(
        k6, (1, prediction_window), jnp.float32, -scale, scale)
    return params


# ------------------------- pure-JAX reference --------------------------------

def reference_forward(x, params):
    B = x.shape[0]
    h_seq = jnp.transpose(x, (1, 0, 2))
    for (w_ih, w_hh, b) in params["lstm"]:
        H = w_hh.shape[0]
        h = jnp.zeros((B, H), jnp.float32)
        c = jnp.zeros((B, H), jnp.float32)
        outs = []
        for t in range(h_seq.shape[0]):
            gates = h_seq[t] @ w_ih + h @ w_hh + b
            i_g = jax.nn.sigmoid(gates[:, 0:H])
            f_g = jax.nn.sigmoid(gates[:, H:2 * H])
            g_g = jnp.tanh(gates[:, 2 * H:3 * H])
            o_g = jax.nn.sigmoid(gates[:, 3 * H:4 * H])
            c = f_g * c + i_g * g_g
            h = o_g * jnp.tanh(c)
            outs.append(h)
        h_seq = jnp.stack(outs, axis=0)
    return h_seq[-1] @ params["fc_w"] + params["fc_b"]


# --------------------------------- main ---------------------------------------

if __name__ == "__main__":
    batch = 2
    seq_len = 8
    input_dim = 8
    hidden_dim = 32
    num_layers = 2
    prediction_window = 4

    key = jax.random.PRNGKey(0)
    key, xkey, pkey = jax.random.split(key, 3)
    x = jax.random.normal(xkey, (batch, seq_len, input_dim), jnp.float32)
    params = init_params(pkey, input_dim, hidden_dim, num_layers,
                         prediction_window)

    ref = reference_forward(x, params)

    # f32 MXU-operand path (matches the pure-JAX reference tightly).
    out = jax.block_until_ready(stock_predictor_forward(x, params))
    assert out.shape == (batch, prediction_window)
    assert jnp.allclose(out, ref, atol=1e-4, rtol=1e-4), (out, ref)

    # bf16 MXU-operand path (v6e/v7x production setting; gate math stays f32).
    out_bf16 = jax.block_until_ready(
        stock_predictor_forward(x, params, mm_dtype=jnp.bfloat16))
    assert out_bf16.shape == (batch, prediction_window)
    assert jnp.allclose(out_bf16, ref, atol=5e-2, rtol=5e-2), (out_bf16, ref)

    print("KERNEL_OK")
</pallas_src>

<mosaic_0001>
module attributes {stable_mosaic.version = 11 : i64} {
  func.func @kernel(%arg0: i32, %arg1: memref<1024x8xf32, #tpu.memory_space<vmem>>, %arg2: memref<8x128xf32, #tpu.memory_space<vmem>>, %arg3: memref<32x128xf32, #tpu.memory_space<vmem>>, %arg4: memref<1x128xf32, #tpu.memory_space<vmem>>, %arg5: memref<32x128xf32, #tpu.memory_space<vmem>>, %arg6: memref<32x128xf32, #tpu.memory_space<vmem>>, %arg7: memref<1x128xf32, #tpu.memory_space<vmem>>, %arg8: memref<32x4xf32, #tpu.memory_space<vmem>>, %arg9: memref<1x4xf32, #tpu.memory_space<vmem>>, %arg10: memref<128x4xf32, #tpu.memory_space<vmem>>, %arg11: memref<1024x128xf32, #tpu.memory_space<vmem>>) attributes {dimension_semantics = [#tpu.dimension_semantics<parallel>], iteration_bounds = array<i64: 1>, scalar_prefetch = 0 : i64, scratch_operands = 1 : i64, tpu.core_type = #tpu.core_type<tc>, window_params = [{transform_indices = @transform_0, window_bounds = array<i64: 1024, 8>}, {pipeline_mode = #tpu.pipeline_mode<synchronous>, transform_indices = @transform_1, window_bounds = array<i64: 8, 128>}, {pipeline_mode = #tpu.pipeline_mode<synchronous>, transform_indices = @transform_2, window_bounds = array<i64: 32, 128>}, {pipeline_mode = #tpu.pipeline_mode<synchronous>, transform_indices = @transform_3, window_bounds = array<i64: 1, 128>}, {pipeline_mode = #tpu.pipeline_mode<synchronous>, transform_indices = @transform_4, window_bounds = array<i64: 32, 128>}, {pipeline_mode = #tpu.pipeline_mode<synchronous>, transform_indices = @transform_5, window_bounds = array<i64: 32, 128>}, {pipeline_mode = #tpu.pipeline_mode<synchronous>, transform_indices = @transform_6, window_bounds = array<i64: 1, 128>}, {pipeline_mode = #tpu.pipeline_mode<synchronous>, transform_indices = @transform_7, window_bounds = array<i64: 32, 4>}, {pipeline_mode = #tpu.pipeline_mode<synchronous>, transform_indices = @transform_8, window_bounds = array<i64: 1, 4>}, {transform_indices = @transform_9, window_bounds = array<i64: 128, 4>}]} {
    %c0 = arith.constant 0 : index
    %c0_0 = arith.constant 0 : index
    %0 = vector.load %arg3[%c0, %c0_0] : memref<32x128xf32, #tpu.memory_space<vmem>>, vector<32x128xf32>
    %c0_1 = arith.constant 0 : index
    %c0_2 = arith.constant 0 : index
    %1 = vector.load %arg5[%c0_1, %c0_2] : memref<32x128xf32, #tpu.memory_space<vmem>>, vector<32x128xf32>
    %c0_3 = arith.constant 0 : index
    %c0_4 = arith.constant 0 : index
    %2 = vector.load %arg7[%c0_3, %c0_4] : memref<1x128xf32, #tpu.memory_space<vmem>>, vector<1x128xf32>
    %cst = arith.constant 0.000000e+00 : f32
    %3 = vector.broadcast %cst : f32 to vector<128x32xf32>
    %cst_5 = arith.constant 0.000000e+00 : f32
    %4 = vector.broadcast %cst_5 : f32 to vector<128x32xf32>
    %c0_6 = arith.constant 0 : index
    %c0_7 = arith.constant 0 : index
    %5 = vector.load %arg2[%c0_6, %c0_7] : memref<8x128xf32, #tpu.memory_space<vmem>>, vector<8x128xf32>
    %c0_8 = arith.constant 0 : index
    %c0_9 = arith.constant 0 : index
    %6 = vector.load %arg4[%c0_8, %c0_9] : memref<1x128xf32, #tpu.memory_space<vmem>>, vector<1x128xf32>
    %c0_10 = arith.constant 0 : index
    %c0_11 = arith.constant 0 : index
    %7 = vector.load %arg1[%c0_10, %c0_11] : memref<1024x8xf32, #tpu.memory_space<vmem>>, vector<1024x8xf32>
    %cst_12 = arith.constant dense<0.000000e+00> : vector<1024x128xf32>
    %8 = tpu.matmul %7, %5, %cst_12 {dimension_numbers = #tpu.dot_dimension_numbers<[1], [0], [0], [1], [0, 0, 1, 1], [], []>} : vector<1024x8xf32>, vector<8x128xf32>, vector<1024x128xf32> -> vector<1024x128xf32>
    %9 = vector.broadcast %6 : vector<1x128xf32> to vector<1024x128xf32>
    %10 = arith.addf %8, %9 : vector<1024x128xf32>
    %11 = vector.extract_strided_slice %10 {offsets = [0, 0], sizes = [128, 128], strides = [1, 1]} : vector<1024x128xf32> to vector<128x128xf32>
    %cst_13 = arith.constant dense<0.000000e+00> : vector<128x128xf32>
    %12 = tpu.matmul %3, %0, %cst_13 {dimension_numbers = #tpu.dot_dimension_numbers<[1], [0], [0], [1], [0, 0, 1, 1], [], []>} : vector<128x32xf32>, vector<32x128xf32>, vector<128x128xf32> -> vector<128x128xf32>
    %13 = arith.addf %11, %12 : vector<128x128xf32>
    %14 = vector.extract_strided_slice %13 {offsets = [0, 0], sizes = [128, 96], strides = [1, 1]} : vector<128x128xf32> to vector<128x96xf32>
    %cst_14 = arith.constant 5.000000e-01 : f32
    %15 = vector.broadcast %cst_14 : f32 to vector<128x96xf32>
    %16 = arith.mulf %15, %14 : vector<128x96xf32>
    %17 = math.tanh %16 : vector<128x96xf32>
    %cst_15 = arith.constant 5.000000e-01 : f32
    %18 = vector.broadcast %cst_15 : f32 to vector<128x96xf32>
    %19 = arith.mulf %18, %17 : vector<128x96xf32>
    %cst_16 = arith.constant 5.000000e-01 : f32
    %20 = vector.broadcast %cst_16 : f32 to vector<128x96xf32>
    %21 = arith.addf %19, %20 : vector<128x96xf32>
    %22 = vector.extract_strided_slice %13 {offsets = [0, 96], sizes = [128, 32], strides = [1, 1]} : vector<128x128xf32> to vector<128x32xf32>
    %23 = math.tanh %22 : vector<128x32xf32>
    %24 = vector.extract_strided_slice %21 {offsets = [0, 32], sizes = [128, 32], strides = [1, 1]} : vector<128x96xf32> to vector<128x32xf32>
    %25 = arith.mulf %24, %4 : vector<128x32xf32>
    %26 = vector.extract_strided_slice %21 {offsets = [0, 0], sizes = [128, 32], strides = [1, 1]} : vector<128x96xf32> to vector<128x32xf32>
    %27 = arith.mulf %26, %23 : vector<128x32xf32>
    %28 = arith.addf %25, %27 : vector<128x32xf32>
    %29 = vector.extract_strided_slice %21 {offsets = [0, 64], sizes = [128, 32], strides = [1, 1]} : vector<128x96xf32> to vector<128x32xf32>
    %30 = math.tanh %28 : vector<128x32xf32>
    %31 = arith.mulf %29, %30 : vector<128x32xf32>
    %cst_17 = arith.constant dense<0.000000e+00> : vector<128x128xf32>
    %32 = tpu.matmul %31, %1, %cst_17 {dimension_numbers = #tpu.dot_dimension_numbers<[1], [0], [0], [1], [0, 0, 1, 1], [], []>} : vector<128x32xf32>, vector<32x128xf32>, vector<128x128xf32> -> vector<128x128xf32>
    %33 = vector.broadcast %2 : vector<1x128xf32> to vector<128x128xf32>
    %34 = arith.addf %32, %33 : vector<128x128xf32>
    %c0_18 = arith.constant 0 : index
    %c0_19 = arith.constant 0 : index
    %35 = vector.load %arg11[%c0_18, %c0_19] : memref<1024x128xf32, #tpu.memory_space<vmem>>, vector<128x128xf32>
    tpu.vector_store %arg11[%c0_18, %c0_19], %34 {strides = array<i32>} : memref<1024x128xf32, #tpu.memory_space<vmem>>, vector<128x128xf32>,
    %36 = vector.extract_strided_slice %10 {offsets = [128, 0], sizes = [128, 128], strides = [1, 1]} : vector<1024x128xf32> to vector<128x128xf32>
    %cst_20 = arith.constant dense<0.000000e+00> : vector<128x128xf32>
    %37 = tpu.matmul %31, %0, %cst_20 {dimension_numbers = #tpu.dot_dimension_numbers<[1], [0], [0], [1], [0, 0, 1, 1], [], []>} : vector<128x32xf32>, vector<32x128xf32>, vector<128x128xf32> -> vector<128x128xf32>
    %38 = arith.addf %36, %37 : vector<128x128xf32>
    %39 = vector.extract_strided_slice %38 {offsets = [0, 0], sizes = [128, 96], strides = [1, 1]} : vector<128x128xf32> to vector<128x96xf32>
    %cst_21 = arith.constant 5.000000e-01 : f32
    %40 = vector.broadcast %cst_21 : f32 to vector<128x96xf32>
    %41 = arith.mulf %40, %39 : vector<128x96xf32>
    %42 = math.tanh %41 : vector<128x96xf32>
    %cst_22 = arith.constant 5.000000e-01 : f32
    %43 = vector.broadcast %cst_22 : f32 to vector<128x96xf32>
    %44 = arith.mulf %43, %42 : vector<128x96xf32>
    %cst_23 = arith.constant 5.000000e-01 : f32
    %45 = vector.broadcast %cst_23 : f32 to vector<128x96xf32>
    %46 = arith.addf %44, %45 : vector<128x96xf32>
    %47 = vector.extract_strided_slice %38 {offsets = [0, 96], sizes = [128, 32], strides = [1, 1]} : vector<128x128xf32> to vector<128x32xf32>
    %48 = math.tanh %47 : vector<128x32xf32>
    %49 = vector.extract_strided_slice %46 {offsets = [0, 32], sizes = [128, 32], strides = [1, 1]} : vector<128x96xf32> to vector<128x32xf32>
    %50 = arith.mulf %49, %28 : vector<128x32xf32>
    %51 = vector.extract_strided_slice %46 {offsets = [0, 0], sizes = [128, 32], strides = [1, 1]} : vector<128x96xf32> to vector<128x32xf32>
    %52 = arith.mulf %51, %48 : vector<128x32xf32>
    %53 = arith.addf %50, %52 : vector<128x32xf32>
    %54 = vector.extract_strided_slice %46 {offsets = [0, 64], sizes = [128, 32], strides = [1, 1]} : vector<128x96xf32> to vector<128x32xf32>
    %55 = math.tanh %53 : vector<128x32xf32>
    %56 = arith.mulf %54, %55 : vector<128x32xf32>
    %cst_24 = arith.constant dense<0.000000e+00> : vector<128x128xf32>
    %57 = tpu.matmul %56, %1, %cst_24 {dimension_numbers = #tpu.dot_dimension_numbers<[1], [0], [0], [1], [0, 0, 1, 1], [], []>} : vector<128x32xf32>, vector<32x128xf32>, vector<128x128xf32> -> vector<128x128xf32>
    %58 = vector.broadcast %2 : vector<1x128xf32> to vector<128x128xf32>
    %59 = arith.addf %57, %58 : vector<128x128xf32>
    %c128 = arith.constant 128 : index
    %c0_25 = arith.constant 0 : index
    %60 = vector.load %arg11[%c128, %c0_25] : memref<1024x128xf32, #tpu.memory_space<vmem>>, vector<128x128xf32>
    tpu.vector_store %arg11[%c128, %c0_25], %59 {strides = array<i32>} : memref<1024x128xf32, #tpu.memory_space<vmem>>, vector<128x128xf32>,
    %61 = vector.extract_strided_slice %10 {offsets = [256, 0], sizes = [128, 128], strides = [1, 1]} : vector<1024x128xf32> to vector<128x128xf32>
    %cst_26 = arith.constant dense<0.000000e+00> : vector<128x128xf32>
    %62 = tpu.matmul %56, %0, %cst_26 {dimension_numbers = #tpu.dot_dimension_numbers<[1], [0], [0], [1], [0, 0, 1, 1], [], []>} : vector<128x32xf32>, vector<32x128xf32>, vector<128x128xf32> -> vector<128x128xf32>
    %63 = arith.addf %61, %62 : vector<128x128xf32>
    %64 = vector.extract_strided_slice %63 {offsets = [0, 0], sizes = [128, 96], strides = [1, 1]} : vector<128x128xf32> to vector<128x96xf32>
    %cst_27 = arith.constant 5.000000e-01 : f32
    %65 = vector.broadcast %cst_27 : f32 to vector<128x96xf32>
    %66 = arith.mulf %65, %64 : vector<128x96xf32>
    %67 = math.tanh %66 : vector<128x96xf32>
    %cst_28 = arith.constant 5.000000e-01 : f32
    %68 = vector.broadcast %cst_28 : f32 to vector<128x96xf32>
    %69 = arith.mulf %68, %67 : vector<128x96xf32>
    %cst_29 = arith.constant 5.000000e-01 : f32
    %70 = vector.broadcast %cst_29 : f32 to vector<128x96xf32>
    %71 = arith.addf %69, %70 : vector<128x96xf32>
    %72 = vector.extract_strided_slice %63 {offsets = [0, 96], sizes = [128, 32], strides = [1, 1]} : vector<128x128xf32> to vector<128x32xf32>
    %73 = math.tanh %72 : vector<128x32xf32>
    %74 = vector.extract_strided_slice %71 {offsets = [0, 32], sizes = [128, 32], strides = [1, 1]} : vector<128x96xf32> to vector<128x32xf32>
    %75 = arith.mulf %74, %53 : vector<128x32xf32>
    %76 = vector.extract_strided_slice %71 {offsets = [0, 0], sizes = [128, 32], strides = [1, 1]} : vector<128x96xf32> to vector<128x32xf32>
    %77 = arith.mulf %76, %73 : vector<128x32xf32>
    %78 = arith.addf %75, %77 : vector<128x32xf32>
    %79 = vector.extract_strided_slice %71 {offsets = [0, 64], sizes = [128, 32], strides = [1, 1]} : vector<128x96xf32> to vector<128x32xf32>
    %80 = math.tanh %78 : vector<128x32xf32>
    %81 = arith.mulf %79, %80 : vector<128x32xf32>
    %cst_30 = arith.constant dense<0.000000e+00> : vector<128x128xf32>
    %82 = tpu.matmul %81, %1, %cst_30 {dimension_numbers = #tpu.dot_dimension_numbers<[1], [0], [0], [1], [0, 0, 1, 1], [], []>} : vector<128x32xf32>, vector<32x128xf32>, vector<128x128xf32> -> vector<128x128xf32>
    %83 = vector.broadcast %2 : vector<1x128xf32> to vector<128x128xf32>
    %84 = arith.addf %82, %83 : vector<128x128xf32>
    %c256 = arith.constant 256 : index
    %c0_31 = arith.constant 0 : index
    %85 = vector.load %arg11[%c256, %c0_31] : memref<1024x128xf32, #tpu.memory_space<vmem>>, vector<128x128xf32>
    tpu.vector_store %arg11[%c256, %c0_31], %84 {strides = array<i32>} : memref<1024x128xf32, #tpu.memory_space<vmem>>, vector<128x128xf32>,
    %86 = vector.extract_strided_slice %10 {offsets = [384, 0], sizes = [128, 128], strides = [1, 1]} : vector<1024x128xf32> to vector<128x128xf32>
    %cst_32 = arith.constant dense<0.000000e+00> : vector<128x128xf32>
    %87 = tpu.matmul %81, %0, %cst_32 {dimension_numbers = #tpu.dot_dimension_numbers<[1], [0], [0], [1], [0, 0, 1, 1], [], []>} : vector<128x32xf32>, vector<32x128xf32>, vector<128x128xf32> -> vector<128x128xf32>
    %88 = arith.addf %86, %87 : vector<128x128xf32>
    %89 = vector.extract_strided_slice %88 {offsets = [0, 0], sizes = [128, 96], strides = [1, 1]} : vector<128x128xf32> to vector<128x96xf32>
    %cst_33 = arith.constant 5.000000e-01 : f32
    %90 = vector.broadcast %cst_33 : f32 to vector<128x96xf32>
    %91 = arith.mulf %90, %89 : vector<128x96xf32>
    %92 = math.tanh %91 : vector<128x96xf32>
    %cst_34 = arith.constant 5.000000e-01 : f32
    %93 = vector.broadcast %cst_34 : f32 to vector<128x96xf32>
    %94 = arith.mulf %93, %92 : vector<128x96xf32>
    %cst_35 = arith.constant 5.000000e-01 : f32
    %95 = vector.broadcast %cst_35 : f32 to vector<128x96xf32>
    %96 = arith.addf %94, %95 : vector<128x96xf32>
    %97 = vector.extract_strided_slice %88 {offsets = [0, 96], sizes = [128, 32], strides = [1, 1]} : vector<128x128xf32> to vector<128x32xf32>
    %98 = math.tanh %97 : vector<128x32xf32>
    %99 = vector.extract_strided_slice %96 {offsets = [0, 32], sizes = [128, 32], strides = [1, 1]} : vector<128x96xf32> to vector<128x32xf32>
    %100 = arith.mulf %99, %78 : vector<128x32xf32>
    %101 = vector.extract_strided_slice %96 {offsets = [0, 0], sizes = [128, 32], strides = [1, 1]} : vector<128x96xf32> to vector<128x32xf32>
    %102 = arith.mulf %101, %98 : vector<128x32xf32>
    %103 = arith.addf %100, %102 : vector<128x32xf32>
    %104 = vector.extract_strided_slice %96 {offsets = [0, 64], sizes = [128, 32], strides = [1, 1]} : vector<128x96xf32> to vector<128x32xf32>
    %105 = math.tanh %103 : vector<128x32xf32>
    %106 = arith.mulf %104, %105 : vector<128x32xf32>
    %cst_36 = arith.constant dense<0.000000e+00> : vector<128x128xf32>
    %107 = tpu.matmul %106, %1, %cst_36 {dimension_numbers = #tpu.dot_dimension_numbers<[1], [0], [0], [1], [0, 0, 1, 1], [], []>} : vector<128x32xf32>, vector<32x128xf32>, vector<128x128xf32> -> vector<128x128xf32>
    %108 = vector.broadcast %2 : vector<1x128xf32> to vector<128x128xf32>
    %109 = arith.addf %107, %108 : vector<128x128xf32>
    %c384 = arith.constant 384 : index
    %c0_37 = arith.constant 0 : index
    %110 = vector.load %arg11[%c384, %c0_37] : memref<1024x128xf32, #tpu.memory_space<vmem>>, vector<128x128xf32>
    tpu.vector_store %arg11[%c384, %c0_37], %109 {strides = array<i32>} : memref<1024x128xf32, #tpu.memory_space<vmem>>, vector<128x128xf32>,
    %111 = vector.extract_strided_slice %10 {offsets = [512, 0], sizes = [128, 128], strides = [1, 1]} : vector<1024x128xf32> to vector<128x128xf32>
    %cst_38 = arith.constant dense<0.000000e+00> : vector<128x128xf32>
    %112 = tpu.matmul %106, %0, %cst_38 {dimension_numbers = #tpu.dot_dimension_numbers<[1], [0], [0], [1], [0, 0, 1, 1], [], []>} : vector<128x32xf32>, vector<32x128xf32>, vector<128x128xf32> -> vector<128x128xf32>
    %113 = arith.addf %111, %112 : vector<128x128xf32>
    %114 = vector.extract_strided_slice %113 {offsets = [0, 0], sizes = [128, 96], strides = [1, 1]} : vector<128x128xf32> to vector<128x96xf32>
    %cst_39 = arith.constant 5.000000e-01 : f32
    %115 = vector.broadcast %cst_39 : f32 to vector<128x96xf32>
    %116 = arith.mulf %115, %114 : vector<128x96xf32>
    %117 = math.tanh %116 : vector<128x96xf32>
    %cst_40 = arith.constant 5.000000e-01 : f32
    %118 = vector.broadcast %cst_40 : f32 to vector<128x96xf32>
    %119 = arith.mulf %118, %117 : vector<128x96xf32>
    %cst_41 = arith.constant 5.000000e-01 : f32
    %120 = vector.broadcast %cst_41 : f32 to vector<128x96xf32>
    %121 = arith.addf %119, %120 : vector<128x96xf32>
    %122 = vector.extract_strided_slice %113 {offsets = [0, 96], sizes = [128, 32], strides = [1, 1]} : vector<128x128xf32> to vector<128x32xf32>
    %123 = math.tanh %122 : vector<128x32xf32>
    %124 = vector.extract_strided_slice %121 {offsets = [0, 32], sizes = [128, 32], strides = [1, 1]} : vector<128x96xf32> to vector<128x32xf32>
    %125 = arith.mulf %124, %103 : vector<128x32xf32>
    %126 = vector.extract_strided_slice %121 {offsets = [0, 0], sizes = [128, 32], strides = [1, 1]} : vector<128x96xf32> to vector<128x32xf32>
    %127 = arith.mulf %126, %123 : vector<128x32xf32>
    %128 = arith.addf %125, %127 : vector<128x32xf32>
    %129 = vector.extract_strided_slice %121 {offsets = [0, 64], sizes = [128, 32], strides = [1, 1]} : vector<128x96xf32> to vector<128x32xf32>
    %130 = math.tanh %128 : vector<128x32xf32>
    %131 = arith.mulf %129, %130 : vector<128x32xf32>
    %cst_42 = arith.constant dense<0.000000e+00> : vector<128x128xf32>
    %132 = tpu.matmul %131, %1, %cst_42 {dimension_numbers = #tpu.dot_dimension_numbers<[1], [0], [0], [1], [0, 0, 1, 1], [], []>} : vector<128x32xf32>, vector<32x128xf32>, vector<128x128xf32> -> vector<128x128xf32>
    %133 = vector.broadcast %2 : vector<1x128xf32> to vector<128x128xf32>
    %134 = arith.addf %132, %133 : vector<128x128xf32>
    %c512 = arith.constant 512 : index
    %c0_43 = arith.constant 0 : index
    %135 = vector.load %arg11[%c512, %c0_43] : memref<1024x128xf32, #tpu.memory_space<vmem>>, vector<128x128xf32>
    tpu.vector_store %arg11[%c512, %c0_43], %134 {strides = array<i32>} : memref<1024x128xf32, #tpu.memory_space<vmem>>, vector<128x128xf32>,
    %136 = vector.extract_strided_slice %10 {offsets = [640, 0], sizes = [128, 128], strides = [1, 1]} : vector<1024x128xf32> to vector<128x128xf32>
    %cst_44 = arith.constant dense<0.000000e+00> : vector<128x128xf32>
    %137 = tpu.matmul %131, %0, %cst_44 {dimension_numbers = #tpu.dot_dimension_numbers<[1], [0], [0], [1], [0, 0, 1, 1], [], []>} : vector<128x32xf32>, vector<32x128xf32>, vector<128x128xf32> -> vector<128x128xf32>
    %138 = arith.addf %136, %137 : vector<128x128xf32>
    %139 = vector.extract_strided_slice %138 {offsets = [0, 0], sizes = [128, 96], strides = [1, 1]} : vector<128x128xf32> to vector<128x96xf32>
    %cst_45 = arith.constant 5.000000e-01 : f32
    %140 = vector.broadcast %cst_45 : f32 to vector<128x96xf32>
    %141 = arith.mulf %140, %139 : vector<128x96xf32>
    %142 = math.tanh %141 : vector<128x96xf32>
    %cst_46 = arith.constant 5.000000e-01 : f32
    %143 = vector.broadcast %cst_46 : f32 to vector<128x96xf32>
    %144 = arith.mulf %143, %142 : vector<128x96xf32>
    %cst_47 = arith.constant 5.000000e-01 : f32
    %145 = vector.broadcast %cst_47 : f32 to vector<128x96xf32>
    %146 = arith.addf %144, %145 : vector<128x96xf32>
    %147 = vector.extract_strided_slice %138 {offsets = [0, 96], sizes = [128, 32], strides = [1, 1]} : vector<128x128xf32> to vector<128x32xf32>
    %148 = math.tanh %147 : vector<128x32xf32>
    %149 = vector.extract_strided_slice %146 {offsets = [0, 32], sizes = [128, 32], strides = [1, 1]} : vector<128x96xf32> to vector<128x32xf32>
    %150 = arith.mulf %149, %128 : vector<128x32xf32>
    %151 = vector.extract_strided_slice %146 {offsets = [0, 0], sizes = [128, 32], strides = [1, 1]} : vector<128x96xf32> to vector<128x32xf32>
    %152 = arith.mulf %151, %148 : vector<128x32xf32>
    %153 = arith.addf %150, %152 : vector<128x32xf32>
    %154 = vector.extract_strided_slice %146 {offsets = [0, 64], sizes = [128, 32], strides = [1, 1]} : vector<128x96xf32> to vector<128x32xf32>
    %155 = math.tanh %153 : vector<128x32xf32>
    %156 = arith.mulf %154, %155 : vector<128x32xf32>
    %cst_48 = arith.constant dense<0.000000e+00> : vector<128x128xf32>
    %157 = tpu.matmul %156, %1, %cst_48 {dimension_numbers = #tpu.dot_dimension_numbers<[1], [0], [0], [1], [0, 0, 1, 1], [], []>} : vector<128x32xf32>, vector<32x128xf32>, vector<128x128xf32> -> vector<128x128xf32>
    %158 = vector.broadcast %2 : vector<1x128xf32> to vector<128x128xf32>
    %159 = arith.addf %157, %158 : vector<128x128xf32>
    %c640 = arith.constant 640 : index
    %c0_49 = arith.constant 0 : index
    %160 = vector.load %arg11[%c640, %c0_49] : memref<1024x128xf32, #tpu.memory_space<vmem>>, vector<128x128xf32>
    tpu.vector_store %arg11[%c640, %c0_49], %159 {strides = array<i32>} : memref<1024x128xf32, #tpu.memory_space<vmem>>, vector<128x128xf32>,
    %161 = vector.extract_strided_slice %10 {offsets = [768, 0], sizes = [128, 128], strides = [1, 1]} : vector<1024x128xf32> to vector<128x128xf32>
    %cst_50 = arith.constant dense<0.000000e+00> : vector<128x128xf32>
    %162 = tpu.matmul %156, %0, %cst_50 {dimension_numbers = #tpu.dot_dimension_numbers<[1], [0], [0], [1], [0, 0, 1, 1], [], []>} : vector<128x32xf32>, vector<32x128xf32>, vector<128x128xf32> -> vector<128x128xf32>
    %163 = arith.addf %161, %162 : vector<128x128xf32>
    %164 = vector.extract_strided_slice %163 {offsets = [0, 0], sizes = [128, 96], strides = [1, 1]} : vector<128x128xf32> to vector<128x96xf32>
    %cst_51 = arith.constant 5.000000e-01 : f32
    %165 = vector.broadcast %cst_51 : f32 to vector<128x96xf32>
    %166 = arith.mulf %165, %164 : vector<128x96xf32>
    %167 = math.tanh %166 : vector<128x96xf32>
    %cst_52 = arith.constant 5.000000e-01 : f32
    %168 = vector.broadcast %cst_52 : f32 to vector<128x96xf32>
    %169 = arith.mulf %168, %167 : vector<128x96xf32>
    %cst_53 = arith.constant 5.000000e-01 : f32
    %170 = vector.broadcast %cst_53 : f32 to vector<128x96xf32>
    %171 = arith.addf %169, %170 : vector<128x96xf32>
    %172 = vector.extract_strided_slice %163 {offsets = [0, 96], sizes = [128, 32], strides = [1, 1]} : vector<128x128xf32> to vector<128x32xf32>
    %173 = math.tanh %172 : vector<128x32xf32>
    %174 = vector.extract_strided_slice %171 {offsets = [0, 32], sizes = [128, 32], strides = [1, 1]} : vector<128x96xf32> to vector<128x32xf32>
    %175 = arith.mulf %174, %153 : vector<128x32xf32>
    %176 = vector.extract_strided_slice %171 {offsets = [0, 0], sizes = [128, 32], strides = [1, 1]} : vector<128x96xf32> to vector<128x32xf32>
    %177 = arith.mulf %176, %173 : vector<128x32xf32>
    %178 = arith.addf %175, %177 : vector<128x32xf32>
    %179 = vector.extract_strided_slice %171 {offsets = [0, 64], sizes = [128, 32], strides = [1, 1]} : vector<128x96xf32> to vector<128x32xf32>
    %180 = math.tanh %178 : vector<128x32xf32>
    %181 = arith.mulf %179, %180 : vector<128x32xf32>
    %cst_54 = arith.constant dense<0.000000e+00> : vector<128x128xf32>
    %182 = tpu.matmul %181, %1, %cst_54 {dimension_numbers = #tpu.dot_dimension_numbers<[1], [0], [0], [1], [0, 0, 1, 1], [], []>} : vector<128x32xf32>, vector<32x128xf32>, vector<128x128xf32> -> vector<128x128xf32>
    %183 = vector.broadcast %2 : vector<1x128xf32> to vector<128x128xf32>
    %184 = arith.addf %182, %183 : vector<128x128xf32>
    %c768 = arith.constant 768 : index
    %c0_55 = arith.constant 0 : index
    %185 = vector.load %arg11[%c768, %c0_55] : memref<1024x128xf32, #tpu.memory_space<vmem>>, vector<128x128xf32>
    tpu.vector_store %arg11[%c768, %c0_55], %184 {strides = array<i32>} : memref<1024x128xf32, #tpu.memory_space<vmem>>, vector<128x128xf32>,
    %186 = vector.extract_strided_slice %10 {offsets = [896, 0], sizes = [128, 128], strides = [1, 1]} : vector<1024x128xf32> to vector<128x128xf32>
    %cst_56 = arith.constant dense<0.000000e+00> : vector<128x128xf32>
    %187 = tpu.matmul %181, %0, %cst_56 {dimension_numbers = #tpu.dot_dimension_numbers<[1], [0], [0], [1], [0, 0, 1, 1], [], []>} : vector<128x32xf32>, vector<32x128xf32>, vector<128x128xf32> -> vector<128x128xf32>
    %188 = arith.addf %186, %187 : vector<128x128xf32>
    %189 = vector.extract_strided_slice %188 {offsets = [0, 0], sizes = [128, 96], strides = [1, 1]} : vector<128x128xf32> to vector<128x96xf32>
    %cst_57 = arith.constant 5.000000e-01 : f32
    %190 = vector.broadcast %cst_57 : f32 to vector<128x96xf32>
    %191 = arith.mulf %190, %189 : vector<128x96xf32>
    %192 = math.tanh %191 : vector<128x96xf32>
    %cst_58 = arith.constant 5.000000e-01 : f32
    %193 = vector.broadcast %cst_58 : f32 to vector<128x96xf32>
    %194 = arith.mulf %193, %192 : vector<128x96xf32>
    %cst_59 = arith.constant 5.000000e-01 : f32
    %195 = vector.broadcast %cst_59 : f32 to vector<128x96xf32>
    %196 = arith.addf %194, %195 : vector<128x96xf32>
    %197 = vector.extract_strided_slice %188 {offsets = [0, 96], sizes = [128, 32], strides = [1, 1]} : vector<128x128xf32> to vector<128x32xf32>
    %198 = math.tanh %197 : vector<128x32xf32>
    %199 = vector.extract_strided_slice %196 {offsets = [0, 32], sizes = [128, 32], strides = [1, 1]} : vector<128x96xf32> to vector<128x32xf32>
    %200 = arith.mulf %199, %178 : vector<128x32xf32>
    %201 = vector.extract_strided_slice %196 {offsets = [0, 0], sizes = [128, 32], strides = [1, 1]} : vector<128x96xf32> to vector<128x32xf32>
    %202 = arith.mulf %201, %198 : vector<128x32xf32>
    %203 = arith.addf %200, %202 : vector<128x32xf32>
    %204 = vector.extract_strided_slice %196 {offsets = [0, 64], sizes = [128, 32], strides = [1, 1]} : vector<128x96xf32> to vector<128x32xf32>
    %205 = math.tanh %203 : vector<128x32xf32>
    %206 = arith.mulf %204, %205 : vector<128x32xf32>
    %cst_60 = arith.constant dense<0.000000e+00> : vector<128x128xf32>
    %207 = tpu.matmul %206, %1, %cst_60 {dimension_numbers = #tpu.dot_dimension_numbers<[1], [0], [0], [1], [0, 0, 1, 1], [], []>} : vector<128x32xf32>, vector<32x128xf32>, vector<128x128xf32> -> vector<128x128xf32>
    %208 = vector.broadcast %2 : vector<1x128xf32> to vector<128x128xf32>
    %209 = arith.addf %207, %208 : vector<128x128xf32>
    %c896 = arith.constant 896 : index
    %c0_61 = arith.constant 0 : index
    %210 = vector.load %arg11[%c896, %c0_61] : memref<1024x128xf32, #tpu.memory_space<vmem>>, vector<128x128xf32>
    tpu.vector_store %arg11[%c896, %c0_61], %209 {strides = array<i32>} : memref<1024x128xf32, #tpu.memory_space<vmem>>, vector<128x128xf32>,
    %c0_62 = arith.constant 0 : index
    %c0_63 = arith.constant 0 : index
    %211 = vector.load %arg6[%c0_62, %c0_63] : memref<32x128xf32, #tpu.memory_space<vmem>>, vector<32x128xf32>
    %cst_64 = arith.constant 0.000000e+00 : f32
    %212 = vector.broadcast %cst_64 : f32 to vector<128x32xf32>
    %cst_65 = arith.constant 0.000000e+00 : f32
    %213 = vector.broadcast %cst_65 : f32 to vector<128x32xf32>
    %c0_66 = arith.constant 0 : index
    %c0_67 = arith.constant 0 : index
    %214 = vector.load %arg11[%c0_66, %c0_67] : memref<1024x128xf32, #tpu.memory_space<vmem>>, vector<128x128xf32>
    %cst_68 = arith.constant dense<0.000000e+00> : vector<128x128xf32>
    %215 = tpu.matmul %212, %211, %cst_68 {dimension_numbers = #tpu.dot_dimension_numbers<[1], [0], [0], [1], [0, 0, 1, 1], [], []>} : vector<128x32xf32>, vector<32x128xf32>, vector<128x128xf32> -> vector<128x128xf32>
    %216 = arith.addf %214, %215 : vector<128x128xf32>
    %217 = vector.extract_strided_slice %216 {offsets = [0, 0], sizes = [128, 96], strides = [1, 1]} : vector<128x128xf32> to vector<128x96xf32>
    %cst_69 = arith.constant 5.000000e-01 : f32
    %218 = vector.broadcast %cst_69 : f32 to vector<128x96xf32>
    %219 = arith.mulf %218, %217 : vector<128x96xf32>
    %220 = math.tanh %219 : vector<128x96xf32>
    %cst_70 = arith.constant 5.000000e-01 : f32
    %221 = vector.broadcast %cst_70 : f32 to vector<128x96xf32>
    %222 = arith.mulf %221, %220 : vector<128x96xf32>
    %cst_71 = arith.constant 5.000000e-01 : f32
    %223 = vector.broadcast %cst_71 : f32 to vector<128x96xf32>
    %224 = arith.addf %222, %223 : vector<128x96xf32>
    %225 = vector.extract_strided_slice %216 {offsets = [0, 96], sizes = [128, 32], strides = [1, 1]} : vector<128x128xf32> to vector<128x32xf32>
    %226 = math.tanh %225 : vector<128x32xf32>
    %227 = vector.extract_strided_slice %224 {offsets = [0, 32], sizes = [128, 32], strides = [1, 1]} : vector<128x96xf32> to vector<128x32xf32>
    %228 = arith.mulf %227, %213 : vector<128x32xf32>
    %229 = vector.extract_strided_slice %224 {offsets = [0, 0], sizes = [128, 32], strides = [1, 1]} : vector<128x96xf32> to vector<128x32xf32>
    %230 = arith.mulf %229, %226 : vector<128x32xf32>
    %231 = arith.addf %228, %230 : vector<128x32xf32>
    %232 = vector.extract_strided_slice %224 {offsets = [0, 64], sizes = [128, 32], strides = [1, 1]} : vector<128x96xf32> to vector<128x32xf32>
    %233 = math.tanh %231 : vector<128x32xf32>
    %234 = arith.mulf %232, %233 : vector<128x32xf32>
    %c128_72 = arith.constant 128 : index
    %c0_73 = arith.constant 0 : index
    %235 = vector.load %arg11[%c128_72, %c0_73] : memref<1024x128xf32, #tpu.memory_space<vmem>>, vector<128x128xf32>
    %cst_74 = arith.constant dense<0.000000e+00> : vector<128x128xf32>
    %236 = tpu.matmul %234, %211, %cst_74 {dimension_numbers = #tpu.dot_dimension_numbers<[1], [0], [0], [1], [0, 0, 1, 1], [], []>} : vector<128x32xf32>, vector<32x128xf32>, vector<128x128xf32> -> vector<128x128xf32>
    %237 = arith.addf %235, %236 : vector<128x128xf32>
    %238 = vector.extract_strided_slice %237 {offsets = [0, 0], sizes = [128, 96], strides = [1, 1]} : vector<128x128xf32> to vector<128x96xf32>
    %cst_75 = arith.constant 5.000000e-01 : f32
    %239 = vector.broadcast %cst_75 : f32 to vector<128x96xf32>
    %240 = arith.mulf %239, %238 : vector<128x96xf32>
    %241 = math.tanh %240 : vector<128x96xf32>
    %cst_76 = arith.constant 5.000000e-01 : f32
    %242 = vector.broadcast %cst_76 : f32 to vector<128x96xf32>
    %243 = arith.mulf %242, %241 : vector<128x96xf32>
    %cst_77 = arith.constant 5.000000e-01 : f32
    %244 = vector.broadcast %cst_77 : f32 to vector<128x96xf32>
    %245 = arith.addf %243, %244 : vector<128x96xf32>
    %246 = vector.extract_strided_slice %237 {offsets = [0, 96], sizes = [128, 32], strides = [1, 1]} : vector<128x128xf32> to vector<128x32xf32>
    %247 = math.tanh %246 : vector<128x32xf32>
    %248 = vector.extract_strided_slice %245 {offsets = [0, 32], sizes = [128, 32], strides = [1, 1]} : vector<128x96xf32> to vector<128x32xf32>
    %249 = arith.mulf %248, %231 : vector<128x32xf32>
    %250 = vector.extract_strided_slice %245 {offsets = [0, 0], sizes = [128, 32], strides = [1, 1]} : vector<128x96xf32> to vector<128x32xf32>
    %251 = arith.mulf %250, %247 : vector<128x32xf32>
    %252 = arith.addf %249, %251 : vector<128x32xf32>
    %253 = vector.extract_strided_slice %245 {offsets = [0, 64], sizes = [128, 32], strides = [1, 1]} : vector<128x96xf32> to vector<128x32xf32>
    %254 = math.tanh %252 : vector<128x32xf32>
    %255 = arith.mulf %253, %254 : vector<128x32xf32>
    %c256_78 = arith.constant 256 : index
    %c0_79 = arith.constant 0 : index
    %256 = vector.load %arg11[%c256_78, %c0_79] : memref<1024x128xf32, #tpu.memory_space<vmem>>, vector<128x128xf32>
    %cst_80 = arith.constant dense<0.000000e+00> : vector<128x128xf32>
    %257 = tpu.matmul %255, %211, %cst_80 {dimension_numbers = #tpu.dot_dimension_numbers<[1], [0], [0], [1], [0, 0, 1, 1], [], []>} : vector<128x32xf32>, vector<32x128xf32>, vector<128x128xf32> -> vector<128x128xf32>
    %258 = arith.addf %256, %257 : vector<128x128xf32>
    %259 = vector.extract_strided_slice %258 {offsets = [0, 0], sizes = [128, 96], strides = [1, 1]} : vector<128x128xf32> to vector<128x96xf32>
    %cst_81 = arith.constant 5.000000e-01 : f32
    %260 = vector.broadcast %cst_81 : f32 to vector<128x96xf32>
    %261 = arith.mulf %260, %259 : vector<128x96xf32>
    %262 = math.tanh %261 : vector<128x96xf32>
    %cst_82 = arith.constant 5.000000e-01 : f32
    %263 = vector.broadcast %cst_82 : f32 to vector<128x96xf32>
    %264 = arith.mulf %263, %262 : vector<128x96xf32>
    %cst_83 = arith.constant 5.000000e-01 : f32
    %265 = vector.broadcast %cst_83 : f32 to vector<128x96xf32>
    %266 = arith.addf %264, %265 : vector<128x96xf32>
    %267 = vector.extract_strided_slice %258 {offsets = [0, 96], sizes = [128, 32], strides = [1, 1]} : vector<128x128xf32> to vector<128x32xf32>
    %268 = math.tanh %267 : vector<128x32xf32>
    %269 = vector.extract_strided_slice %266 {offsets = [0, 32], sizes = [128, 32], strides = [1, 1]} : vector<128x96xf32> to vector<128x32xf32>
    %270 = arith.mulf %269, %252 : vector<128x32xf32>
    %271 = vector.extract_strided_slice %266 {offsets = [0, 0], sizes = [128, 32], strides = [1, 1]} : vector<128x96xf32> to vector<128x32xf32>
    %272 = arith.mulf %271, %268 : vector<128x32xf32>
    %273 = arith.addf %270, %272 : vector<128x32xf32>
    %274 = vector.extract_strided_slice %266 {offsets = [0, 64], sizes = [128, 32], strides = [1, 1]} : vector<128x96xf32> to vector<128x32xf32>
    %275 = math.tanh %273 : vector<128x32xf32>
    %276 = arith.mulf %274, %275 : vector<128x32xf32>
    %c384_84 = arith.constant 384 : index
    %c0_85 = arith.constant 0 : index
    %277 = vector.load %arg11[%c384_84, %c0_85] : memref<1024x128xf32, #tpu.memory_space<vmem>>, vector<128x128xf32>
    %cst_86 = arith.constant dense<0.000000e+00> : vector<128x128xf32>
    %278 = tpu.matmul %276, %211, %cst_86 {dimension_numbers = #tpu.dot_dimension_numbers<[1], [0], [0], [1], [0, 0, 1, 1], [], []>} : vector<128x32xf32>, vector<32x128xf32>, vector<128x128xf32> -> vector<128x128xf32>
    %279 = arith.addf %277, %278 : vector<128x128xf32>
    %280 = vector.extract_strided_slice %279 {offsets = [0, 0], sizes = [128, 96], strides = [1, 1]} : vector<128x128xf32> to vector<128x96xf32>
    %cst_87 = arith.constant 5.000000e-01 : f32
    %281 = vector.broadcast %cst_87 : f32 to vector<128x96xf32>
    %282 = arith.mulf %281, %280 : vector<128x96xf32>
    %283 = math.tanh %282 : vector<128x96xf32>
    %cst_88 = arith.constant 5.000000e-01 : f32
    %284 = vector.broadcast %cst_88 : f32 to vector<128x96xf32>
    %285 = arith.mulf %284, %283 : vector<128x96xf32>
    %cst_89 = arith.constant 5.000000e-01 : f32
    %286 = vector.broadcast %cst_89 : f32 to vector<128x96xf32>
    %287 = arith.addf %285, %286 : vector<128x96xf32>
    %288 = vector.extract_strided_slice %279 {offsets = [0, 96], sizes = [128, 32], strides = [1, 1]} : vector<128x128xf32> to vector<128x32xf32>
    %289 = math.tanh %288 : vector<128x32xf32>
    %290 = vector.extract_strided_slice %287 {offsets = [0, 32], sizes = [128, 32], strides = [1, 1]} : vector<128x96xf32> to vector<128x32xf32>
    %291 = arith.mulf %290, %273 : vector<128x32xf32>
    %292 = vector.extract_strided_slice %287 {offsets = [0, 0], sizes = [128, 32], strides = [1, 1]} : vector<128x96xf32> to vector<128x32xf32>
    %293 = arith.mulf %292, %289 : vector<128x32xf32>
    %294 = arith.addf %291, %293 : vector<128x32xf32>
    %295 = vector.extract_strided_slice %287 {offsets = [0, 64], sizes = [128, 32], strides = [1, 1]} : vector<128x96xf32> to vector<128x32xf32>
    %296 = math.tanh %294 : vector<128x32xf32>
    %297 = arith.mulf %295, %296 : vector<128x32xf32>
    %c512_90 = arith.constant 512 : index
    %c0_91 = arith.constant 0 : index
    %298 = vector.load %arg11[%c512_90, %c0_91] : memref<1024x128xf32, #tpu.memory_space<vmem>>, vector<128x128xf32>
    %cst_92 = arith.constant dense<0.000000e+00> : vector<128x128xf32>
    %299 = tpu.matmul %297, %211, %cst_92 {dimension_numbers = #tpu.dot_dimension_numbers<[1], [0], [0], [1], [0, 0, 1, 1], [], []>} : vector<128x32xf32>, vector<32x128xf32>, vector<128x128xf32> -> vector<128x128xf32>
    %300 = arith.addf %298, %299 : vector<128x128xf32>
    %301 = vector.extract_strided_slice %300 {offsets = [0, 0], sizes = [128, 96], strides = [1, 1]} : vector<128x128xf32> to vector<128x96xf32>
    %cst_93 = arith.constant 5.000000e-01 : f32
    %302 = vector.broadcast %cst_93 : f32 to vector<128x96xf32>
    %303 = arith.mulf %302, %301 : vector<128x96xf32>
    %304 = math.tanh %303 : vector<128x96xf32>
    %cst_94 = arith.constant 5.000000e-01 : f32
    %305 = vector.broadcast %cst_94 : f32 to vector<128x96xf32>
    %306 = arith.mulf %305, %304 : vector<128x96xf32>
    %cst_95 = arith.constant 5.000000e-01 : f32
    %307 = vector.broadcast %cst_95 : f32 to vector<128x96xf32>
    %308 = arith.addf %306, %307 : vector<128x96xf32>
    %309 = vector.extract_strided_slice %300 {offsets = [0, 96], sizes = [128, 32], strides = [1, 1]} : vector<128x128xf32> to vector<128x32xf32>
    %310 = math.tanh %309 : vector<128x32xf32>
    %311 = vector.extract_strided_slice %308 {offsets = [0, 32], sizes = [128, 32], strides = [1, 1]} : vector<128x96xf32> to vector<128x32xf32>
    %312 = arith.mulf %311, %294 : vector<128x32xf32>
    %313 = vector.extract_strided_slice %308 {offsets = [0, 0], sizes = [128, 32], strides = [1, 1]} : vector<128x96xf32> to vector<128x32xf32>
    %314 = arith.mulf %313, %310 : vector<128x32xf32>
    %315 = arith.addf %312, %314 : vector<128x32xf32>
    %316 = vector.extract_strided_slice %308 {offsets = [0, 64], sizes = [128, 32], strides = [1, 1]} : vector<128x96xf32> to vector<128x32xf32>
    %317 = math.tanh %315 : vector<128x32xf32>
    %318 = arith.mulf %316, %317 : vector<128x32xf32>
    %c640_96 = arith.constant 640 : index
    %c0_97 = arith.constant 0 : index
    %319 = vector.load %arg11[%c640_96, %c0_97] : memref<1024x128xf32, #tpu.memory_space<vmem>>, vector<128x128xf32>
    %cst_98 = arith.constant dense<0.000000e+00> : vector<128x128xf32>
    %320 = tpu.matmul %318, %211, %cst_98 {dimension_numbers = #tpu.dot_dimension_numbers<[1], [0], [0], [1], [0, 0, 1, 1], [], []>} : vector<128x32xf32>, vector<32x128xf32>, vector<128x128xf32> -> vector<128x128xf32>
    %321 = arith.addf %319, %320 : vector<128x128xf32>
    %322 = vector.extract_strided_slice %321 {offsets = [0, 0], sizes = [128, 96], strides = [1, 1]} : vector<128x128xf32> to vector<128x96xf32>
    %cst_99 = arith.constant 5.000000e-01 : f32
    %323 = vector.broadcast %cst_99 : f32 to vector<128x96xf32>
    %324 = arith.mulf %323, %322 : vector<128x96xf32>
    %325 = math.tanh %324 : vector<128x96xf32>
    %cst_100 = arith.constant 5.000000e-01 : f32
    %326 = vector.broadcast %cst_100 : f32 to vector<128x96xf32>
    %327 = arith.mulf %326, %325 : vector<128x96xf32>
    %cst_101 = arith.constant 5.000000e-01 : f32
    %328 = vector.broadcast %cst_101 : f32 to vector<128x96xf32>
    %329 = arith.addf %327, %328 : vector<128x96xf32>
    %330 = vector.extract_strided_slice %321 {offsets = [0, 96], sizes = [128, 32], strides = [1, 1]} : vector<128x128xf32> to vector<128x32xf32>
    %331 = math.tanh %330 : vector<128x32xf32>
    %332 = vector.extract_strided_slice %329 {offsets = [0, 32], sizes = [128, 32], strides = [1, 1]} : vector<128x96xf32> to vector<128x32xf32>
    %333 = arith.mulf %332, %315 : vector<128x32xf32>
    %334 = vector.extract_strided_slice %329 {offsets = [0, 0], sizes = [128, 32], strides = [1, 1]} : vector<128x96xf32> to vector<128x32xf32>
    %335 = arith.mulf %334, %331 : vector<128x32xf32>
    %336 = arith.addf %333, %335 : vector<128x32xf32>
    %337 = vector.extract_strided_slice %329 {offsets = [0, 64], sizes = [128, 32], strides = [1, 1]} : vector<128x96xf32> to vector<128x32xf32>
    %338 = math.tanh %336 : vector<128x32xf32>
    %339 = arith.mulf %337, %338 : vector<128x32xf32>
    %c768_102 = arith.constant 768 : index
    %c0_103 = arith.constant 0 : index
    %340 = vector.load %arg11[%c768_102, %c0_103] : memref<1024x128xf32, #tpu.memory_space<vmem>>, vector<128x128xf32>
    %cst_104 = arith.constant dense<0.000000e+00> : vector<128x128xf32>
    %341 = tpu.matmul %339, %211, %cst_104 {dimension_numbers = #tpu.dot_dimension_numbers<[1], [0], [0], [1], [0, 0, 1, 1], [], []>} : vector<128x32xf32>, vector<32x128xf32>, vector<128x128xf32> -> vector<128x128xf32>
    %342 = arith.addf %340, %341 : vector<128x128xf32>
    %343 = vector.extract_strided_slice %342 {offsets = [0, 0], sizes = [128, 96], strides = [1, 1]} : vector<128x128xf32> to vector<128x96xf32>
    %cst_105 = arith.constant 5.000000e-01 : f32
    %344 = vector.broadcast %cst_105 : f32 to vector<128x96xf32>
    %345 = arith.mulf %344, %343 : vector<128x96xf32>
    %346 = math.tanh %345 : vector<128x96xf32>
    %cst_106 = arith.constant 5.000000e-01 : f32
    %347 = vector.broadcast %cst_106 : f32 to vector<128x96xf32>
    %348 = arith.mulf %347, %346 : vector<128x96xf32>
    %cst_107 = arith.constant 5.000000e-01 : f32
    %349 = vector.broadcast %cst_107 : f32 to vector<128x96xf32>
    %350 = arith.addf %348, %349 : vector<128x96xf32>
    %351 = vector.extract_strided_slice %342 {offsets = [0, 96], sizes = [128, 32], strides = [1, 1]} : vector<128x128xf32> to vector<128x32xf32>
    %352 = math.tanh %351 : vector<128x32xf32>
    %353 = vector.extract_strided_slice %350 {offsets = [0, 32], sizes = [128, 32], strides = [1, 1]} : vector<128x96xf32> to vector<128x32xf32>
    %354 = arith.mulf %353, %336 : vector<128x32xf32>
    %355 = vector.extract_strided_slice %350 {offsets = [0, 0], sizes = [128, 32], strides = [1, 1]} : vector<128x96xf32> to vector<128x32xf32>
    %356 = arith.mulf %355, %352 : vector<128x32xf32>
    %357 = arith.addf %354, %356 : vector<128x32xf32>
    %358 = vector.extract_strided_slice %350 {offsets = [0, 64], sizes = [128, 32], strides = [1, 1]} : vector<128x96xf32> to vector<128x32xf32>
    %359 = math.tanh %357 : vector<128x32xf32>
    %360 = arith.mulf %358, %359 : vector<128x32xf32>
    %c896_108 = arith.constant 896 : index
    %c0_109 = arith.constant 0 : index
    %361 = vector.load %arg11[%c896_108, %c0_109] : memref<1024x128xf32, #tpu.memory_space<vmem>>, vector<128x128xf32>
    %cst_110 = arith.constant dense<0.000000e+00> : vector<128x128xf32>
    %362 = tpu.matmul %360, %211, %cst_110 {dimension_numbers = #tpu.dot_dimension_numbers<[1], [0], [0], [1], [0, 0, 1, 1], [], []>} : vector<128x32xf32>, vector<32x128xf32>, vector<128x128xf32> -> vector<128x128xf32>
    %363 = arith.addf %361, %362 : vector<128x128xf32>
    %364 = vector.extract_strided_slice %363 {offsets = [0, 0], sizes = [128, 96], strides = [1, 1]} : vector<128x128xf32> to vector<128x96xf32>
    %cst_111 = arith.constant 5.000000e-01 : f32
    %365 = vector.broadcast %cst_111 : f32 to vector<128x96xf32>
    %366 = arith.mulf %365, %364 : vector<128x96xf32>
    %367 = math.tanh %366 : vector<128x96xf32>
    %cst_112 = arith.constant 5.000000e-01 : f32
    %368 = vector.broadcast %cst_112 : f32 to vector<128x96xf32>
    %369 = arith.mulf %368, %367 : vector<128x96xf32>
    %cst_113 = arith.constant 5.000000e-01 : f32
    %370 = vector.broadcast %cst_113 : f32 to vector<128x96xf32>
    %371 = arith.addf %369, %370 : vector<128x96xf32>
    %372 = vector.extract_strided_slice %363 {offsets = [0, 96], sizes = [128, 32], strides = [1, 1]} : vector<128x128xf32> to vector<128x32xf32>
    %373 = math.tanh %372 : vector<128x32xf32>
    %374 = vector.extract_strided_slice %371 {offsets = [0, 32], sizes = [128, 32], strides = [1, 1]} : vector<128x96xf32> to vector<128x32xf32>
    %375 = arith.mulf %374, %357 : vector<128x32xf32>
    %376 = vector.extract_strided_slice %371 {offsets = [0, 0], sizes = [128, 32], strides = [1, 1]} : vector<128x96xf32> to vector<128x32xf32>
    %377 = arith.mulf %376, %373 : vector<128x32xf32>
    %378 = arith.addf %375, %377 : vector<128x32xf32>
    %379 = vector.extract_strided_slice %371 {offsets = [0, 64], sizes = [128, 32], strides = [1, 1]} : vector<128x96xf32> to vector<128x32xf32>
    %380 = math.tanh %378 : vector<128x32xf32>
    %381 = arith.mulf %379, %380 : vector<128x32xf32>
    %c0_114 = arith.constant 0 : index
    %c0_115 = arith.constant 0 : index
    %382 = vector.load %arg8[%c0_114, %c0_115] : memref<32x4xf32, #tpu.memory_space<vmem>>, vector<32x4xf32>
    %cst_116 = arith.constant dense<0.000000e+00> : vector<128x4xf32>
    %383 = tpu.matmul %381, %382, %cst_116 {dimension_numbers = #tpu.dot_dimension_numbers<[1], [0], [0], [1], [0, 0, 1, 1], [], []>} : vector<128x32xf32>, vector<32x4xf32>, vector<128x4xf32> -> vector<128x4xf32>
    %c0_117 = arith.constant 0 : index
    %c0_118 = arith.constant 0 : index
    %384 = vector.load %arg9[%c0_117, %c0_118] : memref<1x4xf32, #tpu.memory_space<vmem>>, vector<1x4xf32>
    %385 = vector.broadcast %384 : vector<1x4xf32> to vector<128x4xf32>
    %386 = arith.addf %383, %385 : vector<128x4xf32>
    %c0_119 = arith.constant 0 : index
    %c0_120 = arith.constant 0 : index
    %387 = vector.load %arg10[%c0_119, %c0_120] : memref<128x4xf32, #tpu.memory_space<vmem>>, vector<128x4xf32>
    tpu.vector_store %arg10[%c0_119, %c0_120], %386 {strides = array<i32>} : memref<128x4xf32, #tpu.memory_space<vmem>>, vector<128x4xf32>,
    return
  }
  func.func @transform_0(%arg0: i32) -> (i32, i32) {
    %c0_i32 = arith.constant 0 : i32
    %c0_i32_0 = arith.constant 0 : i32
    return %arg0, %c0_i32 : i32, i32
  }
  func.func @transform_1(%arg0: i32) -> (i32, i32) {
    %c0_i32 = arith.constant 0 : i32
    %c0_i32_0 = arith.constant 0 : i32
    %c0_i32_1 = arith.constant 0 : i32
    return %c0_i32, %c0_i32_0 : i32, i32
  }
  func.func @transform_2(%arg0: i32) -> (i32, i32) {
    %c0_i32 = arith.constant 0 : i32
    %c0_i32_0 = arith.constant 0 : i32
    %c0_i32_1 = arith.constant 0 : i32
    return %c0_i32, %c0_i32_0 : i32, i32
  }
  func.func @transform_3(%arg0: i32) -> (i32, i32) {
    %c0_i32 = arith.constant 0 : i32
    %c0_i32_0 = arith.constant 0 : i32
    %c0_i32_1 = arith.constant 0 : i32
    return %c0_i32, %c0_i32_0 : i32, i32
  }
  func.func @transform_4(%arg0: i32) -> (i32, i32) {
    %c0_i32 = arith.constant 0 : i32
    %c0_i32_0 = arith.constant 0 : i32
    %c0_i32_1 = arith.constant 0 : i32
    return %c0_i32, %c0_i32_0 : i32, i32
  }
  func.func @transform_5(%arg0: i32) -> (i32, i32) {
    %c0_i32 = arith.constant 0 : i32
    %c0_i32_0 = arith.constant 0 : i32
    %c0_i32_1 = arith.constant 0 : i32
    return %c0_i32, %c0_i32_0 : i32, i32
  }
  func.func @transform_6(%arg0: i32) -> (i32, i32) {
    %c0_i32 = arith.constant 0 : i32
    %c0_i32_0 = arith.constant 0 : i32
    %c0_i32_1 = arith.constant 0 : i32
    return %c0_i32, %c0_i32_0 : i32, i32
  }
  func.func @transform_7(%arg0: i32) -> (i32, i32) {
    %c0_i32 = arith.constant 0 : i32
    %c0_i32_0 = arith.constant 0 : i32
    %c0_i32_1 = arith.constant 0 : i32
    return %c0_i32, %c0_i32_0 : i32, i32
  }
  func.func @transform_8(%arg0: i32) -> (i32, i32) {
    %c0_i32 = arith.constant 0 : i32
    %c0_i32_0 = arith.constant 0 : i32
    %c0_i32_1 = arith.constant 0 : i32
    return %c0_i32, %c0_i32_0 : i32, i32
  }
  func.func @transform_9(%arg0: i32) -> (i32, i32) {
    %c0_i32 = arith.constant 0 : i32
    %c0_i32_0 = arith.constant 0 : i32
    return %arg0, %c0_i32 : i32, i32
  }
}

</mosaic_0001>

<bundles_post_ra>
// kernel: tpu_custom_call.1
= control target key start
LH: loop header
LB: loop body
LE: loop exit
PB: predicated region body
PF: predicated region fallthrough
CT: control target
= control target key end

     0   :  { %vm177_vm0 = vcmask 64512   ;;  %s16744_s30 = smov 32   ;;  %vm1267_vm1 = vcmask 261120   ;;  %vm12341_vm2 = vcmask 31744   ;;  %s22457_s1 = inlined_call_operand.vmem [shape: f32[8,128], index: 1, kind: input, shape index: {}]   ;;  %s22458_s0 = inlined_call_operand.vmem [shape: f32[1024,8], index: 0, kind: input, shape index: {}]   ;;  %s22459_s2 = inlined_call_operand.vmem [shape: f32[32,128], index: 2, kind: input, shape index: {}]   ;;  %s22460_s3 = inlined_call_operand.vmem [shape: f32[1,128], index: 3, kind: input, shape index: {}]   ;;  %s22461_s4 = inlined_call_operand.vmem [shape: f32[32,128], index: 4, kind: input, shape index: {}]   ;;  %s22462_s5 = inlined_call_operand.vmem [shape: f32[32,128], index: 5, kind: input, shape index: {}]   ;;  %s22463_s6 = inlined_call_operand.vmem [shape: f32[1,128], index: 6, kind: input, shape index: {}]   ;;  %s22464_s7 = inlined_call_operand.vmem [shape: f32[32,4], index: 7, kind: input, shape index: {}]   ;;  %s22465_s8 = inlined_call_operand.vmem [shape: f32[1,4], index: 8, kind: input, shape index: {}]   ;;  %s22466_s9 = inlined_call_operand.vmem [shape: f32[128,4], index: 9, kind: output, shape index: {}]  }
   0x1   :  { %v41_v0 = vld [vmem:[%s22457_s1] sm:$0xff]  ;;  %v44_v2 = vld [vmem:[%s22458_s0 + $0x8] sm:$0xff]  ;;  %v45_v5 = vld [vmem:[%s22458_s0 + $0x10] sm:$0xff] }
   0x2   :  { %v43_v1 = vld [vmem:[%s22458_s0] sm:$0xff]  ;;  %13490 = vmatprep.subr.mxu0 %v41_v0  ;;  %v33_v4 = vld [vmem:[%s22459_s2 + $0x8] sm:$0xff]  ;;  %14684 = vmatprep.subr.mxu1 %v41_v0  ;;  %v46_v7 = vld [vmem:[%s22458_s0 + $0x18] sm:$0xff] }
   0x3   :  { %13492 = vmatprep.mubr.msk.f32.mxu0 %vm177_vm0, %v43_v1  ;;  %v32_v3 = vld [vmem:[%s22459_s2] sm:$0xff]  ;;  %13491 = vmatpush3.msra.mxu0 %v41_v0  ;;  %v48_v9 = vld [vmem:[%s22458_s0 + $0x28] sm:$0xff]  ;;  %v49_v10 = vld [vmem:[%s22458_s0 + $0x30] sm:$0xff] }
   0x4   :  { %v16815_v6 = vpack.c.bf16 %v33_v4, %v32_v3  ;;  %13493 = vmatmul.mubr.msk.f32.vlgmr.msra.gmra.mrb[0].mxu0 %vm177_vm0, %v44_v2  ;;  %14685 = vmatpush3.msra.mxu1 %v41_v0  ;;  %v47_v8 = vld [vmem:[%s22458_s0 + $0x20] sm:$0xff]  ;;  %v50_v11 = vld [vmem:[%s22458_s0 + $0x38] sm:$0xff]  ;;  %v52_v13 = vld [vmem:[%s22458_s0 + $0x48] sm:$0xff] }
   0x5   :  { %13495 = vmatprep.mubr.msk.f32.mxu0 %vm177_vm0, %v45_v5  ;;  %v51_v12 = vld [vmem:[%s22458_s0 + $0x40] sm:$0xff]  ;;  %v53_v14 = vld [vmem:[%s22458_s0 + $0x50] sm:$0xff]  ;;  %v54_v15 = vld [vmem:[%s22458_s0 + $0x58] sm:$0xff] }
   0x6   :  { %14485 = vmatprep.subr.bf16.mxu0 %v16815_v6  ;;  %v55_v16 = vld [vmem:[%s22458_s0 + $0x60] sm:$0xff]  ;;  %v34_v17 = vld [vmem:[%s22459_s2 + $0x10] sm:$0xff]  ;;  %v35_v18 = vld [vmem:[%s22459_s2 + $0x18] sm:$0xff] }
   0x7   :  { %14487 = vmatpush3.bf16.msra.mxu0 %v16815_v6  ;;  %v16866_v19 = vpack.c.bf16 %v35_v18, %v34_v17  ;;  %v56_v20 = vld [vmem:[%s22458_s0 + $0x68] sm:$0xff]  ;;  %v57_v21 = vld [vmem:[%s22458_s0 + $0x70] sm:$0xff]  ;;  %v58_v22 = vld [vmem:[%s22458_s0 + $0x78] sm:$0xff] }
   0x8   :  { %13496 = vmatmul.mubr.msk.f32.gmra.mrb[2].mxu0 %vm177_vm0, %v46_v7  ;;  %v59_v23 = vld [vmem:[%s22458_s0 + $0x80] sm:$0xff]  ;;  %v60_v24 = vld [vmem:[%s22458_s0 + $0x88] sm:$0xff]  ;;  %v61_v25 = vld [vmem:[%s22458_s0 + $0x90] sm:$0xff] }
   0x9   :  { %13498 = vmatprep.mubr.msk.f32.mxu0 %vm177_vm0, %v47_v8  ;;  %14489 = vmatprep.subr.bf16.mxu0 %v16866_v19  ;;  %v62_v26 = vld [vmem:[%s22458_s0 + $0x98] sm:$0xff]  ;;  %v63_v27 = vld [vmem:[%s22458_s0 + $0xa0] sm:$0xff]  ;;  %v64_v28 = vld [vmem:[%s22458_s0 + $0xa8] sm:$0xff] }
   0xa   :  { %v65_v29 = vld [vmem:[%s22458_s0 + $0xb0] sm:$0xff]  ;;  %v66_v30 = vld [vmem:[%s22458_s0 + $0xb8] sm:$0xff]  ;;  %v67_v31 = vld [vmem:[%s22458_s0 + $0xc0] sm:$0xff] }
   0xb   :  { %14491 = vmatpush3.bf16.msra.mxu0 %v16866_v19  ;;  %v68_v32 = vld [vmem:[%s22458_s0 + $0xc8] sm:$0xff]  ;;  %v69_v33 = vld [vmem:[%s22458_s0 + $0xd0] sm:$0xff]  ;;  %v70_v34 = vld [vmem:[%s22458_s0 + $0xd8] sm:$0xff] }
   0xc   :  { %13499 = vmatmul.mubr.msk.f32.gmra.mrb[4].mxu0 %vm177_vm0, %v48_v9  ;;  %14501 = vmatprep.subr.bf16.mxu0 %v16815_v6  ;;  %v71_v35 = vld [vmem:[%s22458_s0 + $0xe0] sm:$0xff]  ;;  %v72_v36 = vld [vmem:[%s22458_s0 + $0xe8] sm:$0xff]  ;;  %v73_v37 = vld [vmem:[%s22458_s0 + $0xf0] sm:$0xff] }
   0xd   :  { %13501 = vmatprep.mubr.msk.f32.mxu0 %vm177_vm0, %v49_v10  ;;  %v74_v38 = vld [vmem:[%s22458_s0 + $0xf8] sm:$0xff]  ;;  %v75_v39 = vld [vmem:[%s22458_s0 + $0x100] sm:$0xff]  ;;  %v76_v40 = vld [vmem:[%s22458_s0 + $0x108] sm:$0xff] }
   0xe   :  { %v77_v41 = vld [vmem:[%s22458_s0 + $0x110] sm:$0xff]  ;;  %v78_v42 = vld [vmem:[%s22458_s0 + $0x118] sm:$0xff]  ;;  %v79_v43 = vld [vmem:[%s22458_s0 + $0x120] sm:$0xff] }
   0xf   :  { %v80_v44 = vld [vmem:[%s22458_s0 + $0x128] sm:$0xff]  ;;  %v81_v45 = vld [vmem:[%s22458_s0 + $0x130] sm:$0xff]  ;;  %v82_v46 = vld [vmem:[%s22458_s0 + $0x138] sm:$0xff] }
  0x10   :  { %13502 = vmatmul.mubr.msk.f32.gmra.mrb[6].mxu0 %vm177_vm0, %v50_v11  ;;  %v83_v47 = vld [vmem:[%s22458_s0 + $0x140] sm:$0xff]  ;;  %v84_v48 = vld [vmem:[%s22458_s0 + $0x148] sm:$0xff]  ;;  %v85_v49 = vld [vmem:[%s22458_s0 + $0x150] sm:$0xff] }
  0x11   :  { %13504 = vmatprep.mubr.msk.f32.mxu0 %vm177_vm0, %v51_v12  ;;  %v86_v50 = vld [vmem:[%s22458_s0 + $0x158] sm:$0xff]  ;;  %v87_v51 = vld [vmem:[%s22458_s0 + $0x160] sm:$0xff]  ;;  %v88_v52 = vld [vmem:[%s22458_s0 + $0x168] sm:$0xff] }
  0x12   :  { %v89_v53 = vld [vmem:[%s22458_s0 + $0x170] sm:$0xff]  ;;  %v90_v54 = vld [vmem:[%s22458_s0 + $0x178] sm:$0xff]  ;;  %v91_v55 = vld [vmem:[%s22458_s0 + $0x180] sm:$0xff] }
  0x13   :  { %v92_v56 = vld [vmem:[%s22458_s0 + $0x188] sm:$0xff]  ;;  %v93_v57 = vld [vmem:[%s22458_s0 + $0x190] sm:$0xff]  ;;  %v94_v58 = vld [vmem:[%s22458_s0 + $0x198] sm:$0xff] }
  0x14   :  { %13505 = vmatmul.mubr.msk.f32.gmra.mrb[8].mxu0 %vm177_vm0, %v52_v13  ;;  %v95_v59 = vld [vmem:[%s22458_s0 + $0x1a0] sm:$0xff]  ;;  %v96_v60 = vld [vmem:[%s22458_s0 + $0x1a8] sm:$0xff]  ;;  %v97_v61 = vld [vmem:[%s22458_s0 + $0x1b0] sm:$0xff] }
  0x15   :  { %13507 = vmatprep.mubr.msk.f32.mxu0 %vm177_vm0, %v53_v14  ;;  %v98_v62 = vld [vmem:[%s22458_s0 + $0x1b8] sm:$0xff]  ;;  %v99_v63 = vld [vmem:[%s22458_s0 + $0x1c0] sm:$0xff]  ;;  %v100_v0 = vld [vmem:[%s22458_s0 + $0x1c8] sm:$0xff] }
  0x16   :  { %v101_v1 = vld [vmem:[%s22458_s0 + $0x1d0] sm:$0xff]  ;;  %v102_v2 = vld [vmem:[%s22458_s0 + $0x1d8] sm:$0xff]  ;;  %v103_v3 = vld [vmem:[%s22458_s0 + $0x1e0] sm:$0xff] }
  0x17   :  { %v104_v4 = vld [vmem:[%s22458_s0 + $0x1e8] sm:$0xff]  ;;  %v105_v5 = vld [vmem:[%s22458_s0 + $0x1f0] sm:$0xff]  ;;  %v106_v7 = vld [vmem:[%s22458_s0 + $0x1f8] sm:$0xff] }
  0x18   :  { %13508 = vmatmul.mubr.msk.f32.gmra.mrb[10].mxu0 %vm177_vm0, %v54_v15  ;;  %v107_v8 = vld [vmem:[%s22458_s0 + $0x200] sm:$0xff]  ;;  %v108_v9 = vld [vmem:[%s22458_s0 + $0x208] sm:$0xff]  ;;  %v109_v10 = vld [vmem:[%s22458_s0 + $0x210] sm:$0xff] }
  0x19   :  { %13510 = vmatprep.mubr.msk.f32.mxu0 %vm177_vm0, %v55_v16  ;;  %v110_v11 = vld [vmem:[%s22458_s0 + $0x218] sm:$0xff]  ;;  %v111_v12 = vld [vmem:[%s22458_s0 + $0x220] sm:$0xff]  ;;  %v112_v13 = vld [vmem:[%s22458_s0 + $0x228] sm:$0xff] }
  0x1a   :  { %v113_v14 = vld [vmem:[%s22458_s0 + $0x230] sm:$0xff]  ;;  %v114_v15 = vld [vmem:[%s22458_s0 + $0x238] sm:$0xff]  ;;  %v115_v16 = vld [vmem:[%s22458_s0 + $0x240] sm:$0xff] }
  0x1b   :  { %v116_v17 = vld [vmem:[%s22458_s0 + $0x248] sm:$0xff]  ;;  %v117_v18 = vld [vmem:[%s22458_s0 + $0x250] sm:$0xff] }
  0x1c   :  { %13511 = vmatmul.mubr.msk.f32.gmra.mrb[12].mxu0 %vm177_vm0, %v56_v20  ;;  %v118_v20 = vld [vmem:[%s22458_s0 + $0x258] sm:$0xff] }
  0x1d   :  { %13513 = vmatprep.mubr.msk.f32.mxu0 %vm177_vm0, %v57_v21  ;;  %v119_v21 = vld [vmem:[%s22458_s0 + $0x260] sm:$0xff] }
  0x20   :  { %13514 = vmatmul.mubr.msk.f32.gmra.mrb[14].mxu0 %vm177_vm0, %v58_v22  ;;  %v120_v22 = vld [vmem:[%s22458_s0 + $0x268] sm:$0xff] }
  0x21   :  { %13516 = vmatprep.mubr.msk.f32.mxu0 %vm177_vm0, %v59_v23  ;;  %v121_v23 = vld [vmem:[%s22458_s0 + $0x270] sm:$0xff] }
  0x24   :  { %13517 = vmatmul.mubr.msk.f32.gmra.mrb[16].mxu0 %vm177_vm0, %v60_v24  ;;  %v122_v24 = vld [vmem:[%s22458_s0 + $0x278] sm:$0xff] }
  0x25   :  { %13519 = vmatprep.mubr.msk.f32.mxu0 %vm177_vm0, %v61_v25  ;;  %v123_v25 = vld [vmem:[%s22458_s0 + $0x280] sm:$0xff] }
  0x28   :  { %13520 = vmatmul.mubr.msk.f32.gmra.mrb[18].mxu0 %vm177_vm0, %v62_v26  ;;  %v124_v26 = vld [vmem:[%s22458_s0 + $0x288] sm:$0xff] }
  0x29   :  { %13522 = vmatprep.mubr.msk.f32.mxu0 %vm177_vm0, %v63_v27  ;;  %v125_v27 = vld [vmem:[%s22458_s0 + $0x290] sm:$0xff] }
  0x2c   :  { %13523 = vmatmul.mubr.msk.f32.gmra.mrb[20].mxu0 %vm177_vm0, %v64_v28  ;;  %v126_v28 = vld [vmem:[%s22458_s0 + $0x298] sm:$0xff] }
  0x2d   :  { %13525 = vmatprep.mubr.msk.f32.mxu0 %vm177_vm0, %v65_v29  ;;  %v127_v29 = vld [vmem:[%s22458_s0 + $0x2a0] sm:$0xff] }
  0x30   :  { %13526 = vmatmul.mubr.msk.f32.gmra.mrb[22].mxu0 %vm177_vm0, %v66_v30  ;;  %v128_v30 = vld [vmem:[%s22458_s0 + $0x2a8] sm:$0xff] }
  0x31   :  { %13528 = vmatprep.mubr.msk.f32.mxu0 %vm177_vm0, %v67_v31  ;;  %v129_v31 = vld [vmem:[%s22458_s0 + $0x2b0] sm:$0xff] }
  0x34   :  { %13529 = vmatmul.mubr.msk.f32.gmra.mrb[24].mxu0 %vm177_vm0, %v68_v32  ;;  %v130_v32 = vld [vmem:[%s22458_s0 + $0x2b8] sm:$0xff] }
  0x35   :  { %13531 = vmatprep.mubr.msk.f32.mxu0 %vm177_vm0, %v69_v33  ;;  %v131_v33 = vld [vmem:[%s22458_s0 + $0x2c0] sm:$0xff] }
  0x38   :  { %13532 = vmatmul.mubr.msk.f32.gmra.mrb[26].mxu0 %vm177_vm0, %v70_v34  ;;  %v132_v34 = vld [vmem:[%s22458_s0 + $0x2c8] sm:$0xff] }
  0x39   :  { %13534 = vmatprep.mubr.msk.f32.mxu0 %vm177_vm0, %v71_v35  ;;  %v133_v35 = vld [vmem:[%s22458_s0 + $0x2d0] sm:$0xff] }
  0x3c   :  { %13535 = vmatmul.mubr.msk.f32.gmra.mrb[28].mxu0 %vm177_vm0, %v72_v36  ;;  %v134_v36 = vld [vmem:[%s22458_s0 + $0x2d8] sm:$0xff] }
  0x3d   :  { %13537 = vmatprep.mubr.msk.f32.mxu0 %vm177_vm0, %v73_v37  ;;  %v135_v37 = vld [vmem:[%s22458_s0 + $0x2e0] sm:$0xff] }
  0x40   :  { %13538 = vmatmul.mubr.msk.f32.gmra.mrb[30].mxu0 %vm177_vm0, %v74_v38  ;;  %v136_v38 = vld [vmem:[%s22458_s0 + $0x2e8] sm:$0xff] }
  0x41   :  { %13540 = vmatprep.mubr.msk.f32.mxu0 %vm177_vm0, %v75_v39  ;;  %v137_v39 = vld [vmem:[%s22458_s0 + $0x2f0] sm:$0xff] }
  0x44   :  { %13541 = vmatmul.mubr.msk.f32.gmra.mrb[32].mxu0 %vm177_vm0, %v76_v40  ;;  %v138_v40 = vld [vmem:[%s22458_s0 + $0x2f8] sm:$0xff] }
  0x45   :  { %13543 = vmatprep.mubr.msk.f32.mxu0 %vm177_vm0, %v77_v41  ;;  %v139_v41 = vld [vmem:[%s22458_s0 + $0x300] sm:$0xff] }
  0x48   :  { %13544 = vmatmul.mubr.msk.f32.gmra.mrb[34].mxu0 %vm177_vm0, %v78_v42  ;;  %v140_v42 = vld [vmem:[%s22458_s0 + $0x308] sm:$0xff] }
  0x49   :  { %13546 = vmatprep.mubr.msk.f32.mxu0 %vm177_vm0, %v79_v43  ;;  %v141_v43 = vld [vmem:[%s22458_s0 + $0x310] sm:$0xff] }
  0x4c   :  { %13547 = vmatmul.mubr.msk.f32.gmra.mrb[36].mxu0 %vm177_vm0, %v80_v44  ;;  %v142_v44 = vld [vmem:[%s22458_s0 + $0x318] sm:$0xff] }
  0x4d   :  { %13549 = vmatprep.mubr.msk.f32.mxu0 %vm177_vm0, %v81_v45  ;;  %v143_v45 = vld [vmem:[%s22458_s0 + $0x320] sm:$0xff] }
  0x50   :  { %13550 = vmatmul.mubr.msk.f32.gmra.mrb[38].mxu0 %vm177_vm0, %v82_v46  ;;  %v144_v46 = vld [vmem:[%s22458_s0 + $0x328] sm:$0xff] }
  0x51   :  { %13552 = vmatprep.mubr.msk.f32.mxu0 %vm177_vm0, %v83_v47  ;;  %v145_v47 = vld [vmem:[%s22458_s0 + $0x330] sm:$0xff] }
  0x54   :  { %13553 = vmatmul.mubr.msk.f32.gmra.mrb[40].mxu0 %vm177_vm0, %v84_v48  ;;  %v146_v48 = vld [vmem:[%s22458_s0 + $0x338] sm:$0xff] }
  0x55   :  { %13555 = vmatprep.mubr.msk.f32.mxu0 %vm177_vm0, %v85_v49  ;;  %v147_v49 = vld [vmem:[%s22458_s0 + $0x340] sm:$0xff] }
  0x58   :  { %13556 = vmatmul.mubr.msk.f32.gmra.mrb[42].mxu0 %vm177_vm0, %v86_v50  ;;  %v148_v50 = vld [vmem:[%s22458_s0 + $0x348] sm:$0xff] }
  0x59   :  { %13558 = vmatprep.mubr.msk.f32.mxu0 %vm177_vm0, %v87_v51  ;;  %v149_v51 = vld [vmem:[%s22458_s0 + $0x350] sm:$0xff] }
  0x5c   :  { %13559 = vmatmul.mubr.msk.f32.gmra.mrb[44].mxu0 %vm177_vm0, %v88_v52  ;;  %v150_v52 = vld [vmem:[%s22458_s0 + $0x358] sm:$0xff] }
  0x5d   :  { %13561 = vmatprep.mubr.msk.f32.mxu0 %vm177_vm0, %v89_v53  ;;  %v151_v53 = vld [vmem:[%s22458_s0 + $0x360] sm:$0xff] }
  0x60   :  { %13562 = vmatmul.mubr.msk.f32.gmra.mrb[46].mxu0 %vm177_vm0, %v90_v54  ;;  %v152_v54 = vld [vmem:[%s22458_s0 + $0x368] sm:$0xff] }
  0x61   :  { %13564 = vmatprep.mubr.msk.f32.mxu0 %vm177_vm0, %v91_v55  ;;  %v153_v55 = vld [vmem:[%s22458_s0 + $0x370] sm:$0xff] }
  0x64   :  { %13565 = vmatmul.mubr.msk.f32.gmra.mrb[48].mxu0 %vm177_vm0, %v92_v56  ;;  %v154_v56 = vld [vmem:[%s22458_s0 + $0x378] sm:$0xff] }
  0x65   :  { %13567 = vmatprep.mubr.msk.f32.mxu0 %vm177_vm0, %v93_v57  ;;  %v155_v57 = vld [vmem:[%s22458_s0 + $0x380] sm:$0xff] }
  0x68   :  { %13568 = vmatmul.mubr.msk.f32.gmra.mrb[50].mxu0 %vm177_vm0, %v94_v58  ;;  %v156_v58 = vld [vmem:[%s22458_s0 + $0x388] sm:$0xff] }
  0x69   :  { %13570 = vmatprep.mubr.msk.f32.mxu0 %vm177_vm0, %v95_v59  ;;  %v157_v59 = vld [vmem:[%s22458_s0 + $0x390] sm:$0xff] }
  0x6c   :  { %13571 = vmatmul.mubr.msk.f32.gmra.mrb[52].mxu0 %vm177_vm0, %v96_v60  ;;  %v158_v60 = vld [vmem:[%s22458_s0 + $0x398] sm:$0xff] }
  0x6d   :  { %13573 = vmatprep.mubr.msk.f32.mxu0 %vm177_vm0, %v97_v61  ;;  %v159_v61 = vld [vmem:[%s22458_s0 + $0x3a0] sm:$0xff] }
  0x70   :  { %13574 = vmatmul.mubr.msk.f32.gmra.mrb[54].mxu0 %vm177_vm0, %v98_v62  ;;  %v160_v62 = vld [vmem:[%s22458_s0 + $0x3a8] sm:$0xff] }
  0x71   :  { %13576 = vmatprep.mubr.msk.f32.mxu0 %vm177_vm0, %v99_v63  ;;  %v161_v63 = vld [vmem:[%s22458_s0 + $0x3b0] sm:$0xff] }
  0x74   :  { %13577 = vmatmul.mubr.msk.f32.gmra.mrb[56].mxu0 %vm177_vm0, %v100_v0  ;;  %v162_v0 = vld [vmem:[%s22458_s0 + $0x3b8] sm:$0xff] }
  0x75   :  { %13579 = vmatprep.mubr.msk.f32.mxu0 %vm177_vm0, %v101_v1  ;;  %v16743_v1 = vmov 0.0  }
  0x78   :  { %13580 = vmatmul.mubr.msk.f32.gmra.mrb[58].mxu0 %vm177_vm0, %v102_v2  ;;  %v17323_v2 = vld [vmem:[%s22460_s3] ss:$0 sm:$0xff] }
  0x79   :  { %13582 = vmatprep.mubr.msk.f32.mxu0 %vm177_vm0, %v103_v3 }
  0x7c   :  { %13583 = vmatmul.mubr.msk.f32.gmra.mrb[60].mxu0 %vm177_vm0, %v104_v4 }
  0x7d   :  { %13585 = vmatprep.mubr.msk.f32.mxu0 %vm177_vm0, %v105_v5 }
  0x80   :  { %13586 = vmatmul.mubr.msk.f32.gmra.mrb[62].mxu0 %vm177_vm0, %v106_v7 }
  0x81   :  { %13588 = vmatprep.mubr.msk.f32.mxu0 %vm177_vm0, %v107_v8 }
  0x84   :  { %13589 = vmatmul.mubr.msk.f32.gmra.mrb[64].mxu0 %vm177_vm0, %v108_v9 }
  0x85   :  { %13591 = vmatprep.mubr.msk.f32.mxu0 %vm177_vm0, %v109_v10 }
  0x88   :  { %13592 = vmatmul.mubr.msk.f32.gmra.mrb[66].mxu0 %vm177_vm0, %v110_v11 }
  0x89   :  { %13594 = vmatprep.mubr.msk.f32.mxu0 %vm177_vm0, %v111_v12 }
  0x8c   :  { %13595 = vmatmul.mubr.msk.f32.gmra.mrb[68].mxu0 %vm177_vm0, %v112_v13 }
  0x8d   :  { %13597 = vmatprep.mubr.msk.f32.mxu0 %vm177_vm0, %v113_v14 }
  0x90   :  { %13598 = vmatmul.mubr.msk.f32.gmra.mrb[70].mxu0 %vm177_vm0, %v114_v15 }
  0x91   :  { %13600 = vmatprep.mubr.msk.f32.mxu0 %vm177_vm0, %v115_v16 }
  0x94   :  { %13601 = vmatmul.mubr.msk.f32.gmra.mrb[72].mxu0 %vm177_vm0, %v116_v17 }
  0x95   :  { %13603 = vmatprep.mubr.msk.f32.mxu0 %vm177_vm0, %v117_v18 }
  0x98   :  { %13604 = vmatmul.mubr.msk.f32.gmra.mrb[74].mxu0 %vm177_vm0, %v118_v20 }
  0x99   :  { %13606 = vmatprep.mubr.msk.f32.mxu0 %vm177_vm0, %v119_v21 }
  0x9c   :  { %13607 = vmatmul.mubr.msk.f32.gmra.mrb[76].mxu0 %vm177_vm0, %v120_v22 }
  0x9d   :  { %13609 = vmatprep.mubr.msk.f32.mxu0 %vm177_vm0, %v121_v23 }
  0xa0   :  { %13610 = vmatmul.mubr.msk.f32.gmra.mrb[78].mxu0 %vm177_vm0, %v122_v24 }
  0xa1   :  { %13612 = vmatprep.mubr.msk.f32.mxu0 %vm177_vm0, %v123_v25 }
  0xa4   :  { %13613 = vmatmul.mubr.msk.f32.gmra.mrb[80].mxu0 %vm177_vm0, %v124_v26 }
  0xa5   :  { %13615 = vmatprep.mubr.msk.f32.mxu0 %vm177_vm0, %v125_v27 }
  0xa8   :  { %13616 = vmatmul.mubr.msk.f32.gmra.mrb[82].mxu0 %vm177_vm0, %v126_v28 }
  0xa9   :  { %13618 = vmatprep.mubr.msk.f32.mxu0 %vm177_vm0, %v127_v29 }
  0xac   :  { %13619 = vmatmul.mubr.msk.f32.gmra.mrb[84].mxu0 %vm177_vm0, %v128_v30 }
  0xad   :  { %13621 = vmatprep.mubr.msk.f32.mxu0 %vm177_vm0, %v129_v31 }
  0xb0   :  { %13622 = vmatmul.mubr.msk.f32.gmra.mrb[86].mxu0 %vm177_vm0, %v130_v32 }
  0xb1   :  { %13624 = vmatprep.mubr.msk.f32.mxu0 %vm177_vm0, %v131_v33 }
  0xb4   :  { %13625 = vmatmul.mubr.msk.f32.gmra.mrb[88].mxu0 %vm177_vm0, %v132_v34 }
  0xb5   :  { %13627 = vmatprep.mubr.msk.f32.mxu0 %vm177_vm0, %v133_v35 }
  0xb8   :  { %13628 = vmatmul.mubr.msk.f32.gmra.mrb[90].mxu0 %vm177_vm0, %v134_v36 }
  0xb9   :  { %13630 = vmatprep.mubr.msk.f32.mxu0 %vm177_vm0, %v135_v37 }
  0xbc   :  { %13631 = vmatmul.mubr.msk.f32.gmra.mrb[92].mxu0 %vm177_vm0, %v136_v38 }
  0xbd   :  { %13633 = vmatprep.mubr.msk.f32.mxu0 %vm177_vm0, %v137_v39 }
  0xc0   :  { %13634 = vmatmul.mubr.msk.f32.gmra.mrb[94].mxu0 %vm177_vm0, %v138_v40 }
  0xc1   :  { %13636 = vmatprep.mubr.msk.f32.mxu0 %vm177_vm0, %v139_v41 }
  0xc4   :  { %13637 = vmatmul.mubr.msk.f32.gmra.mrb[96].mxu0 %vm177_vm0, %v140_v42 }
  0xc5   :  { %13639 = vmatprep.mubr.msk.f32.mxu0 %vm177_vm0, %v141_v43 }
  0xc8   :  { %13640 = vmatmul.mubr.msk.f32.gmra.mrb[98].mxu0 %vm177_vm0, %v142_v44 }
  0xc9   :  { %13642 = vmatprep.mubr.msk.f32.mxu0 %vm177_vm0, %v143_v45 }
  0xcc   :  { %13643 = vmatmul.mubr.msk.f32.gmra.mrb[100].mxu0 %vm177_vm0, %v144_v46 }
  0xcd   :  { %13645 = vmatprep.mubr.msk.f32.mxu0 %vm177_vm0, %v145_v47 }
  0xd0   :  { %13646 = vmatmul.mubr.msk.f32.gmra.mrb[102].mxu0 %vm177_vm0, %v146_v48 }
  0xd1   :  { %13648 = vmatprep.mubr.msk.f32.mxu0 %vm177_vm0, %v147_v49 }
  0xd4   :  { %13649 = vmatmul.mubr.msk.f32.gmra.mrb[104].mxu0 %vm177_vm0, %v148_v50 }
  0xd5   :  { %13651 = vmatprep.mubr.msk.f32.mxu0 %vm177_vm0, %v149_v51 }
  0xd8   :  { %13652 = vmatmul.mubr.msk.f32.gmra.mrb[106].mxu0 %vm177_vm0, %v150_v52 }
  0xd9   :  { %13654 = vmatprep.mubr.msk.f32.mxu0 %vm177_vm0, %v151_v53 }
  0xdc   :  { %13655 = vmatmul.mubr.msk.f32.gmra.mrb[108].mxu0 %vm177_vm0, %v152_v54 }
  0xdd   :  { %13657 = vmatprep.mubr.msk.f32.mxu0 %vm177_vm0, %v153_v55 }
  0xe0   :  { %13658 = vmatmul.mubr.msk.f32.gmra.mrb[110].mxu0 %vm177_vm0, %v154_v56 }
  0xe1   :  { %13660 = vmatprep.mubr.msk.f32.mxu0 %vm177_vm0, %v155_v57 }
  0xe4   :  { %13661 = vmatmul.mubr.msk.f32.gmra.mrb[112].mxu0 %vm177_vm0, %v156_v58 }
  0xe5   :  { %13663 = vmatprep.mubr.msk.f32.mxu0 %vm177_vm0, %v157_v59 }
  0xe8   :  { %13664 = vmatmul.mubr.msk.f32.gmra.mrb[114].mxu0 %vm177_vm0, %v158_v60 }
  0xe9   :  { %13666 = vmatprep.mubr.msk.f32.mxu0 %vm177_vm0, %v159_v61 }
  0xec   :  { %13667 = vmatmul.mubr.msk.f32.gmra.mrb[116].mxu0 %vm177_vm0, %v160_v62 }
  0xed   :  { %13669 = vmatprep.mubr.msk.f32.mxu0 %vm177_vm0, %v161_v63 }
  0xf0   :  { %13670 = vmatmul.mubr.msk.f32.gmra.mrb[118].mxu0 %vm177_vm0, %v162_v0 }
  0xf1   :  { %13692 = vmatprep.mubr.f32.mxu0 %v16743_v1 }
  0xf4   :  { %13693 = vmatmul.mubr.f32.vlgmr.msra.gmra.mrb[0].mxu0 %v16743_v1 }
  0xf5   :  { %13695 = vmatprep.mubr.f32.mxu0 %v16743_v1  ;;  %14503 = vmatpush3.bf16.msra.mxu0 %v16815_v6 }
  0xf6   :  { %14505 = vmatprep.subr.bf16.mxu0 %v16866_v19 }
  0xf8   :  { %13696 = vmatmul.mubr.f32.gmra.mrb[2].mxu0 %v16743_v1 }
  0xf9   :  { %13698 = vmatprep.mubr.f32.mxu0 %v16743_v1  ;;  %14507 = vmatpush3.bf16.msra.mxu0 %v16866_v19 }
  0xfa   :  { %14517 = vmatprep.subr.bf16.mxu0 %v16815_v6 }
  0xfc   :  { %13699 = vmatmul.mubr.f32.gmra.mrb[4].mxu0 %v16743_v1 }
  0xfd   :  { %13701 = vmatprep.mubr.f32.mxu0 %v16743_v1 }
 0x100   :  { %13702 = vmatmul.mubr.f32.gmra.mrb[6].mxu0 %v16743_v1 }
 0x101   :  { %13704 = vmatprep.mubr.f32.mxu0 %v16743_v1 }
 0x104   :  { %13705 = vmatmul.mubr.f32.gmra.mrb[8].mxu0 %v16743_v1 }
 0x105   :  { %13707 = vmatprep.mubr.f32.mxu0 %v16743_v1 }
 0x108   :  { %13708 = vmatmul.mubr.f32.gmra.mrb[10].mxu0 %v16743_v1 }
 0x109   :  { %13710 = vmatprep.mubr.f32.mxu0 %v16743_v1 }
 0x10c   :  { %13711 = vmatmul.mubr.f32.gmra.mrb[12].mxu0 %v16743_v1 }
 0x10d   :  { %13713 = vmatprep.mubr.f32.mxu0 %v16743_v1 }
 0x110   :  { %13714 = vmatmul.mubr.f32.gmra.mrb[14].mxu0 %v16743_v1 }
 0x1c7   :  { %v13694_v3 = vpop.f32.mrb[0].mxu0 }
 0x1c8   :  { %v1337_v4 = vpop.f32.mrb[1].mxu0  ;;  %v17329_v7 = vadd.f32 %v13694_v3, %v17323_v2 }
 0x1c9   :  { %v17326_v5 = vadd.f32 %v17323_v2, %v1337_v4 }
 0x1ca   :  { %v1433_v54 = vmul.f32 0.5, %v17329_v7 }
 0x1cb   :  { %15201 = vtanh.f32 %v17326_v5  ;;  %v13697_v8 = vpop.f32.mrb[2].mxu0  ;;  %v1432_v53 = vmul.f32 0.5, %v17326_v5 }
 0x1cc   :  { %v1347_v9 = vpop.f32.mrb[3].mxu0  ;;  %15203 = vtanh.f32 %v17329_v7  ;;  %v17337_v11 = vadd.f32 %v13697_v8, %v17323_v2 }
 0x1cd   :  { %v17333_v10 = vadd.f32 %v17323_v2, %v1347_v9 }
 0x1ce   :  { %v1435_v56 = vmul.f32 0.5, %v17337_v11 }
 0x1cf   :  { %15205 = vtanh.f32 %v17333_v10  ;;  %v13700_v12 = vpop.f32.mrb[4].mxu0  ;;  %v1434_v55 = vmul.f32 0.5, %v17333_v10 }
 0x1d0   :  { %v1357_v13 = vpop.f32.mrb[5].mxu0  ;;  %15207 = vtanh.f32 %v17337_v11  ;;  %v17345_v15 = vadd.f32 %v13700_v12, %v17323_v2 }
 0x1d1   :  { %v17341_v14 = vadd.f32 %v17323_v2, %v1357_v13 }
 0x1d2   :  { %v1437_v58 = vmul.f32 0.5, %v17345_v15 }
 0x1d3   :  { %15209 = vtanh.f32 %v17341_v14  ;;  %v13703_v16 = vpop.f32.mrb[6].mxu0  ;;  %v1436_v57 = vmul.f32 0.5, %v17341_v14 }
 0x1d4   :  { %v1367_v17 = vpop.f32.mrb[7].mxu0  ;;  %15211 = vtanh.f32 %v17345_v15  ;;  %v17353_v21 = vadd.f32 %v13703_v16, %v17323_v2 }
 0x1d5   :  { %v15202_v18 = vpop.eup %15201  ;;  %v17349_v20 = vadd.f32 %v17323_v2, %v1367_v17 }
 0x1d6   :  { %1544 = vrot.lane.b32.xlu0 %v15202_v18, %s16744_s30  ;;  %v15204_v23 = vpop.eup %15203  ;;  %v1439_v61 = vmul.f32 0.5, %v17353_v21 }
 0x1d7   :  { %15213 = vtanh.f32 %v17349_v20  ;;  %v13706_v22 = vpop.f32.mrb[8].mxu0  ;;  %v1438_v59 = vmul.f32 0.5, %v17349_v20 }
 0x1d8   :  { %v1377_v24 = vpop.f32.mrb[9].mxu0  ;;  %15215 = vtanh.f32 %v17353_v21  ;;  %v17362_v27 = vadd.f32 %v13706_v22, %v17323_v2 }
 0x1d9   :  { %v15206_v25 = vpop.eup %15205  ;;  %v17358_v26 = vadd.f32 %v17323_v2, %v1377_v24 }
 0x1da   :  { %1546 = vrot.lane.b32.xlu0 %v15204_v23, %s16744_s30  ;;  %1548 = vrot.lane.b32.xlu1 %v15206_v25, %s16744_s30  ;;  %v15208_v29 = vpop.eup %15207  ;;  %v1441_v4 = vmul.f32 0.5, %v17362_v27 }
 0x1db   :  { %15217 = vtanh.f32 %v17358_v26  ;;  %v13709_v28 = vpop.f32.mrb[10].mxu0  ;;  %v1440_v62 = vmul.f32 0.5, %v17358_v26 }
 0x1dc   :  { %v1387_v30 = vpop.f32.mrb[11].mxu0  ;;  %15219 = vtanh.f32 %v17362_v27  ;;  %v17372_v33 = vadd.f32 %v13709_v28, %v17323_v2 }
 0x1dd   :  { %v15210_v31 = vpop.eup %15209  ;;  %v17368_v32 = vadd.f32 %v17323_v2, %v1387_v30 }
 0x1de   :  { %1550 = vrot.lane.b32.xlu1 %v15208_v29, %s16744_s30  ;;  %1552 = vrot.lane.b32.xlu0 %v15210_v31, %s16744_s30  ;;  %v15212_v35 = vpop.eup %15211  ;;  %v1443_v13 = vmul.f32 0.5, %v17372_v33 }
 0x1df   :  { %15221 = vtanh.f32 %v17368_v32  ;;  %v13712_v34 = vpop.f32.mrb[12].mxu0  ;;  %v1442_v5 = vmul.f32 0.5, %v17368_v32 }
 0x1e0   :  { %v1397_v36 = vpop.f32.mrb[13].mxu0  ;;  %15223 = vtanh.f32 %v17372_v33  ;;  %v17382_v39 = vadd.f32 %v13712_v34, %v17323_v2 }
 0x1e1   :  { %v15214_v37 = vpop.eup %15213  ;;  %v17378_v38 = vadd.f32 %v17323_v2, %v1397_v36 }
 0x1e2   :  { %1554 = vrot.lane.b32.xlu1 %v15212_v35, %s16744_s30  ;;  %1556 = vrot.lane.b32.xlu0 %v15214_v37, %s16744_s30  ;;  %v15216_v41 = vpop.eup %15215  ;;  %v1445_v25 = vmul.f32 0.5, %v17382_v39 }
 0x1e3   :  { %15225 = vtanh.f32 %v17378_v38  ;;  %v13715_v40 = vpop.f32.mrb[14].mxu0  ;;  %v1444_v15 = vmul.f32 0.5, %v17378_v38 }
 0x1e4   :  { %v1407_v42 = vpop.f32.mrb[15].mxu0  ;;  %15227 = vtanh.f32 %v17382_v39  ;;  %v17394_v45 = vadd.f32 %v13715_v40, %v17323_v2 }
 0x1e5   :  { %v15218_v43 = vpop.eup %15217  ;;  %v17388_v44 = vadd.f32 %v17323_v2, %v1407_v42 }
 0x1e6   :  { %1558 = vrot.lane.b32.xlu1 %v15216_v41, %s16744_s30  ;;  %1560 = vrot.lane.b32.xlu0 %v15218_v43, %s16744_s30  ;;  %v15220_v46 = vpop.eup %15219  ;;  %v1447_v39 = vmul.f32 0.5, %v17394_v45 }
 0x1e7   :  { %15229 = vtanh.f32 %v17388_v44  ;;  %v1446_v28 = vmul.f32 0.5, %v17388_v44 }
 0x1e8   :  { %15231 = vtanh.f32 %v17394_v45 }
 0x1e9   :  { %v15222_v47 = vpop.eup %15221  ;;  %15233 = vtanh.f32 %v1432_v53 }
 0x1ea   :  { %1562 = vrot.lane.b32.xlu1 %v15220_v46, %s16744_s30  ;;  %1564 = vrot.lane.b32.xlu0 %v15222_v47, %s16744_s30  ;;  %v15224_v48 = vpop.eup %15223  ;;  %15235 = vtanh.f32 %v1433_v54 }
 0x1eb   :  { %15237 = vtanh.f32 %v1434_v55 }
 0x1ec   :  { %15239 = vtanh.f32 %v1435_v56 }
 0x1ed   :  { %v15226_v49 = vpop.eup %15225  ;;  %15241 = vtanh.f32 %v1436_v57 }
 0x1ee   :  { %1566 = vrot.lane.b32.xlu1 %v15224_v48, %s16744_s30  ;;  %1568 = vrot.lane.b32.xlu0 %v15226_v49, %s16744_s30  ;;  %v15228_v50 = vpop.eup %15227  ;;  %15243 = vtanh.f32 %v1437_v58 }
 0x1ef   :  { %15245 = vtanh.f32 %v1438_v59 }
 0x1f0   :  { %15247 = vtanh.f32 %v1439_v61 }
 0x1f1   :  { %v15230_v51 = vpop.eup %15229  ;;  %15249 = vtanh.f32 %v1440_v62 }
 0x1f2   :  { %1570 = vrot.lane.b32.xlu1 %v15228_v50, %s16744_s30  ;;  %1572 = vrot.lane.b32.xlu0 %v15230_v51, %s16744_s30  ;;  %v15232_v52 = vpop.eup %15231  ;;  %15251 = vtanh.f32 %v1441_v4 }
 0x1f3   :  { %v15234_v60 = vpop.eup %15233  ;;  %15253 = vtanh.f32 %v1442_v5 }
 0x1f4   :  { %v15236_v63 = vpop.eup %15235  ;;  %v1464_v0 = vmul.f32 0.5, %v15234_v60  ;;  %15255 = vtanh.f32 %v1443_v13 }
 0x1f5   :  { %v15238_v3 = vpop.eup %15237  ;;  %v1465_v8 = vmul.f32 0.5, %v15236_v63  ;;  %15257 = vtanh.f32 %v1444_v15 }
 0x1f6   :  { %1574 = vrot.lane.b32.xlu1 %v15232_v52, %s16744_s30  ;;  %v15240_v7 = vpop.eup %15239  ;;  %v1466_v9 = vmul.f32 0.5, %v15238_v3  ;;  %v17416_v10 = vadd.f32 0.5, %v1464_v0  ;;  %15259 = vtanh.f32 %v1445_v25 }
 0x1f7   :  { %v15242_v11 = vpop.eup %15241  ;;  %v1467_v17 = vmul.f32 0.5, %v15240_v7  ;;  %v17422_v20 = vadd.f32 0.5, %v1465_v8  ;;  %15261 = vtanh.f32 %v1446_v28 }
 0x1f8   :  { %v15244_v16 = vpop.eup %15243  ;;  %v1468_v18 = vmul.f32 0.5, %v15242_v11  ;;  %v17424_v21 = vadd.f32 0.5, %v1466_v9  ;;  %15263 = vtanh.f32 %v1447_v39 }
 0x1f9   :  { %v15246_v22 = vpop.eup %15245  ;;  %v1469_v30 = vmul.f32 0.5, %v15244_v16  ;;  %v17432_v32 = vadd.f32 0.5, %v1467_v17 }
 0x1fa   :  { %v15248_v29 = vpop.eup %15247  ;;  %v1470_v31 = vmul.f32 0.5, %v15246_v22  ;;  %v17434_v33 = vadd.f32 0.5, %v1468_v18 }
 0x1fb   :  { %v15250_v34 = vpop.eup %15249  ;;  %v1471_v41 = vmul.f32 0.5, %v15248_v29  ;;  %v17441_v43 = vadd.f32 0.5, %v1469_v30 }
 0x1fc   :  { %v15252_v40 = vpop.eup %15251  ;;  %v1472_v42 = vmul.f32 0.5, %v15250_v34  ;;  %v17443_v44 = vadd.f32 0.5, %v1470_v31  ;;  %v1512_v34 = vmul.f32 0.0, %v17416_v10 }
 0x1fd   :  { %v15254_v46 = vpop.eup %15253  ;;  %v1473_v51 = vmul.f32 0.5, %v15252_v40  ;;  %v17449_v53 = vadd.f32 0.5, %v1471_v41 }
 0x1fe   :  { %v15256_v45 = vpop.eup %15255  ;;  %v1474_v52 = vmul.f32 0.5, %v15254_v46  ;;  %v17451_v54 = vadd.f32 0.5, %v1472_v42  ;;  %v1515_v46 = vmul.f32 0.0, %v17432_v32 }
 0x1ff   :  { %v15258_v55 = vpop.eup %15257  ;;  %v1475_v61 = vmul.f32 0.5, %v15256_v45  ;;  %v17457_v63 = vadd.f32 0.5, %v1473_v51  ;;  %v1517_v51 = vmul.f32 0.0, %v17441_v43 }
 0x200   :  { %v15260_v60 = vpop.eup %15259  ;;  %v1476_v62 = vmul.f32 0.5, %v15258_v55  ;;  %v17459_v0 = vadd.f32 0.5, %v1474_v52  ;;  %v1518_v52 = vmul.f32 0.0, %v17443_v44 }
 0x201   :  { %v15262_v3 = vpop.eup %15261  ;;  %v1477_v9 = vmul.f32 0.5, %v15260_v60  ;;  %v1519_v60 = vmul.f32 0.0, %v17449_v53 }
 0x202   :  { %v1478_v11 = vmul.f32 0.5, %v15262_v3  ;;  %v17467_v13 = vadd.f32 0.5, %v1476_v62 }
 0x248   :  { %v1545_v12 = vpop.permute.xlu0 %1544 }
 0x249   :  { %v1592_v14 = vmul.f32 %v1545_v12, %v17416_v10  ;;  %v17465_v12 = vadd.f32 0.5, %v1475_v61  ;;  %v1520_v61 = vmul.f32 0.0, %v17451_v54 }
 0x24b   :  { %1624 = vrot.lane.b32.xlu0 %v1592_v14, %s16744_s30  ;;  %v15264_v14 = vpop.eup %15263 }
 0x24c   :  { %v1547_v23 = vpop.permute.xlu0 %1546  ;;  %v1549_v24 = vpop.permute.xlu1 %1548  ;;  %v1479_v22 = vmul.f32 0.5, %v15264_v14 }
 0x24d   :  { %v1593_v26 = vmul.f32 %v1547_v23, %v17422_v20  ;;  %v1594_v27 = vmul.f32 %v1549_v24, %v17424_v21  ;;  %v17473_v23 = vadd.f32 0.5, %v1477_v9  ;;  %v17475_v24 = vadd.f32 0.5, %v1478_v11 }
 0x24e   :  { %v17481_v29 = vadd.f32 0.5, %v1479_v22  ;;  %v1521_v9 = vmul.f32 0.0, %v17457_v63  ;;  %v1522_v11 = vmul.f32 0.0, %v17459_v0 }
 0x24f   :  { %1626 = vrot.lane.b32.xlu1 %v1593_v26, %s16744_s30  ;;  %1628 = vrot.lane.b32.xlu0 %v1594_v27, %s16744_s30 }
 0x250   :  { %v1551_v35 = vpop.permute.xlu1 %1550  ;;  %v1553_v36 = vpop.permute.xlu0 %1552 }
 0x251   :  { %v1595_v37 = vmul.f32 %v1551_v35, %v17432_v32  ;;  %v1596_v38 = vmul.f32 %v1553_v36, %v17434_v33 }
 0x253   :  { %1630 = vrot.lane.b32.xlu1 %v1595_v37, %s16744_s30  ;;  %1632 = vrot.lane.b32.xlu0 %v1596_v38, %s16744_s30  ;;  %v1513_v37 = vmul.f32 0.0, %v17422_v20  ;;  %v1514_v38 = vmul.f32 0.0, %v17424_v21 }
 0x254   :  { %v1555_v47 = vpop.permute.xlu1 %1554  ;;  %v1557_v48 = vpop.permute.xlu0 %1556 }
 0x255   :  { %v1597_v49 = vmul.f32 %v1555_v47, %v17441_v43  ;;  %v1598_v50 = vmul.f32 %v1557_v48, %v17443_v44  ;;  %v1516_v47 = vmul.f32 0.0, %v17434_v33 }
 0x257   :  { %1634 = vrot.lane.b32.xlu1 %v1597_v49, %s16744_s30  ;;  %1636 = vrot.lane.b32.xlu0 %v1598_v50, %s16744_s30 }
 0x258   :  { %v1559_v56 = vpop.permute.xlu1 %1558  ;;  %v1561_v57 = vpop.permute.xlu0 %1560 }
 0x259   :  { %v1599_v58 = vmul.f32 %v1559_v56, %v17449_v53  ;;  %v1600_v59 = vmul.f32 %v1561_v57, %v17451_v54 }
 0x25b   :  { %1638 = vrot.lane.b32.xlu1 %v1599_v58, %s16744_s30  ;;  %1640 = vrot.lane.b32.xlu0 %v1600_v59, %s16744_s30 }
 0x25c   :  { %v1563_v4 = vpop.permute.xlu1 %1562  ;;  %v1565_v5 = vpop.permute.xlu0 %1564 }
 0x25d   :  { %v1601_v7 = vmul.f32 %v1563_v4, %v17457_v63  ;;  %v1602_v8 = vmul.f32 %v1565_v5, %v17459_v0 }
 0x25f   :  { %1642 = vrot.lane.b32.xlu1 %v1601_v7, %s16744_s30  ;;  %1644 = vrot.lane.b32.xlu0 %v1602_v8, %s16744_s30 }
 0x260   :  { %v1567_v15 = vpop.permute.xlu1 %1566  ;;  %v1569_v16 = vpop.permute.xlu0 %1568 }
 0x261   :  { %v1603_v17 = vmul.f32 %v1567_v15, %v17465_v12  ;;  %v1604_v18 = vmul.f32 %v1569_v16, %v17467_v13 }
 0x263   :  { %1646 = vrot.lane.b32.xlu1 %v1603_v17, %s16744_s30  ;;  %1648 = vrot.lane.b32.xlu0 %v1604_v18, %s16744_s30 }
 0x264   :  { %v1571_v25 = vpop.permute.xlu1 %1570  ;;  %v1573_v26 = vpop.permute.xlu0 %1572 }
 0x265   :  { %v1605_v27 = vmul.f32 %v1571_v25, %v17473_v23  ;;  %v1606_v28 = vmul.f32 %v1573_v26, %v17475_v24  ;;  %v1523_v25 = vmul.f32 0.0, %v17465_v12  ;;  %v1524_v26 = vmul.f32 0.0, %v17467_v13 }
 0x267   :  { %1650 = vrot.lane.b32.xlu1 %v1605_v27, %s16744_s30  ;;  %1652 = vrot.lane.b32.xlu0 %v1606_v28, %s16744_s30 }
 0x268   :  { %v1575_v30 = vpop.permute.xlu1 %1574 }
 0x269   :  { %v1607_v31 = vmul.f32 %v1575_v30, %v17481_v29 }
 0x26b   :  { %1654 = vrot.lane.b32.xlu1 %v1607_v31, %s16744_s30 }
 0x2bd   :  { %v1625_v35 = vpop.permute.xlu0 %1624 }
 0x2be   :  { %v17486_v36 = vadd.f32 %v1625_v35, %v1512_v34 }
 0x2c0   :  { %15265 = vtanh.f32 %v17486_v36 }
 0x2c1   :  { %v1627_v39 = vpop.permute.xlu1 %1626  ;;  %v1629_v40 = vpop.permute.xlu0 %1628 }
 0x2c2   :  { %v17491_v41 = vadd.f32 %v1627_v39, %v1513_v37  ;;  %v17493_v42 = vadd.f32 %v1629_v40, %v1514_v38  ;;  %v1525_v37 = vmul.f32 0.0, %v17473_v23  ;;  %v1526_v38 = vmul.f32 0.0, %v17475_v24 }
 0x2c4   :  { %15267 = vtanh.f32 %v17491_v41 }
 0x2c5   :  { %15269 = vtanh.f32 %v17493_v42  ;;  %v1631_v48 = vpop.permute.xlu1 %1630  ;;  %v1633_v49 = vpop.permute.xlu0 %1632 }
 0x2c6   :  { %v17499_v50 = vadd.f32 %v1631_v48, %v1515_v46  ;;  %v17501_v45 = vadd.f32 %v1633_v49, %v1516_v47 }
 0x2c8   :  { %15271 = vtanh.f32 %v17499_v50 }
 0x2c9   :  { %15273 = vtanh.f32 %v17501_v45  ;;  %v1635_v55 = vpop.permute.xlu1 %1634  ;;  %v1637_v56 = vpop.permute.xlu0 %1636 }
 0x2ca   :  { %v15266_v57 = vpop.eup %15265  ;;  %v17507_v58 = vadd.f32 %v1635_v55, %v1517_v51  ;;  %v17509_v59 = vadd.f32 %v1637_v56, %v1518_v52  ;;  %v1527_v51 = vmul.f32 0.0, %v17481_v29 }
 0x2cb   :  { %1720 = vrot.lane.b32.xlu0 %v15266_v57, %s16744_s30 }
 0x2cc   :  { %15275 = vtanh.f32 %v17507_v58 }
 0x2cd   :  { %15277 = vtanh.f32 %v17509_v59  ;;  %v1639_v62 = vpop.permute.xlu1 %1638  ;;  %v1641_v3 = vpop.permute.xlu0 %1640 }
 0x2ce   :  { %v15268_v4 = vpop.eup %15267  ;;  %v17516_v5 = vadd.f32 %v1639_v62, %v1519_v60  ;;  %v17518_v7 = vadd.f32 %v1641_v3, %v1520_v61  ;;  %v163_v60 = vld [vmem:[%s22458_s0 + $0x3c0] sm:$0xff]  ;;  %v164_v61 = vld [vmem:[%s22458_s0 + $0x3c8] sm:$0xff]  ;;  %v165_v62 = vld [vmem:[%s22458_s0 + $0x3d0] sm:$0xff] }
 0x2cf   :  { %v15270_v8 = vpop.eup %15269  ;;  %1722 = vrot.lane.b32.xlu1 %v15268_v4, %s16744_s30  ;;  %13672 = vmatprep.mubr.msk.f32.mxu1 %vm177_vm0, %v163_v60  ;;  %v36_v4 = vld [vmem:[%s22461_s4] sm:$0xff] }
 0x2d0   :  { %15279 = vtanh.f32 %v17516_v5  ;;  %1724 = vrot.lane.b32.xlu0 %v15270_v8, %s16744_s30  ;;  %13673 = vmatmul.mubr.msk.f32.vlgmr.msra.gmra.mrb[0].mxu1 %vm177_vm0, %v164_v61  ;;  %v37_v8 = vld [vmem:[%s22461_s4 + $0x8] sm:$0xff] }
 0x2d1   :  { %15281 = vtanh.f32 %v17518_v7  ;;  %v1643_v14 = vpop.permute.xlu1 %1642  ;;  %v1645_v15 = vpop.permute.xlu0 %1644  ;;  %13675 = vmatprep.mubr.msk.f32.mxu1 %vm177_vm0, %v165_v62 }
 0x2d2   :  { %v15272_v16 = vpop.eup %15271  ;;  %v17526_v17 = vadd.f32 %v1643_v14, %v1521_v9  ;;  %v17528_v18 = vadd.f32 %v1645_v15, %v1522_v11  ;;  %v166_v11 = vld [vmem:[%s22458_s0 + $0x3d8] sm:$0xff]  ;;  %v17582_v14 = vpack.c.bf16 %v37_v8, %v36_v4  ;;  %v167_v15 = vld [vmem:[%s22458_s0 + $0x3e0] sm:$0xff] }
 0x2d3   :  { %v15274_v22 = vpop.eup %15273  ;;  %1726 = vrot.lane.b32.xlu1 %v15272_v16, %s16744_s30 }
 0x2d4   :  { %15283 = vtanh.f32 %v17526_v17  ;;  %1728 = vrot.lane.b32.xlu0 %v15274_v22, %s16744_s30  ;;  %14493 = vmatprep.subr.bf16.mxu1 %v17582_v14 }
 0x2d5   :  { %15285 = vtanh.f32 %v17528_v18  ;;  %v1647_v27 = vpop.permute.xlu1 %1646  ;;  %v1649_v28 = vpop.permute.xlu0 %1648  ;;  %13676 = vmatmul.mubr.msk.f32.gmra.mrb[2].mxu1 %vm177_vm0, %v166_v11 }
 0x2d6   :  { %v15276_v30 = vpop.eup %15275  ;;  %v17536_v31 = vadd.f32 %v1647_v27, %v1523_v25  ;;  %v17538_v34 = vadd.f32 %v1649_v28, %v1524_v26  ;;  %13678 = vmatprep.mubr.msk.f32.mxu1 %vm177_vm0, %v167_v15  ;;  %v168_v25 = vld [vmem:[%s22458_s0 + $0x3e8] sm:$0xff]  ;;  %14495 = vmatpush3.bf16.msra.mxu1 %v17582_v14  ;;  %v169_v26 = vld [vmem:[%s22458_s0 + $0x3f0] sm:$0xff]  ;;  %v170_v28 = vld [vmem:[%s22458_s0 + $0x3f8] sm:$0xff]  ;;  %s16745_s0 = smov 64  }
 0x2d7   :  { %v15278_v35 = vpop.eup %15277  ;;  %1730 = vrot.lane.b32.xlu1 %v15276_v30, %s16744_s30  ;;  %v38_v30 = vld [vmem:[%s22461_s4 + $0x10] sm:$0xff] }
 0x2d8   :  { %15287 = vtanh.f32 %v17536_v31  ;;  %1732 = vrot.lane.b32.xlu0 %v15278_v35, %s16744_s30  ;;  %v39_v35 = vld [vmem:[%s22461_s4 + $0x18] sm:$0xff] }
 0x2d9   :  { %15289 = vtanh.f32 %v17538_v34  ;;  %v1651_v39 = vpop.permute.xlu1 %1650  ;;  %v1653_v40 = vpop.permute.xlu0 %1652  ;;  %13679 = vmatmul.mubr.msk.f32.gmra.mrb[4].mxu1 %vm177_vm0, %v168_v25 }
 0x2da   :  { %v15280_v46 = vpop.eup %15279  ;;  %v17546_v47 = vadd.f32 %v1651_v39, %v1525_v37  ;;  %v17548_v48 = vadd.f32 %v1653_v40, %v1526_v38  ;;  %13681 = vmatprep.mubr.msk.f32.mxu1 %vm177_vm0, %v169_v26  ;;  %v17613_v37 = vpack.c.bf16 %v39_v35, %v38_v30 }
 0x2db   :  { %v15282_v49 = vpop.eup %15281  ;;  %1734 = vrot.lane.b32.xlu1 %v15280_v46, %s16744_s30 }
 0x2dc   :  { %15291 = vtanh.f32 %v17546_v47  ;;  %1736 = vrot.lane.b32.xlu0 %v15282_v49, %s16744_s30  ;;  %14497 = vmatprep.subr.bf16.mxu1 %v17613_v37 }
 0x2dd   :  { %15293 = vtanh.f32 %v17548_v48  ;;  %v1655_v52 = vpop.permute.xlu1 %1654  ;;  %13682 = vmatmul.mubr.msk.f32.gmra.mrb[6].mxu1 %vm177_vm0, %v170_v28 }
 0x2de   :  { %v15284_v55 = vpop.eup %15283  ;;  %v17555_v56 = vadd.f32 %v1655_v52, %v1527_v51  ;;  %14499 = vmatpush3.bf16.msra.mxu1 %v17613_v37 }
 0x2df   :  { %v15286_v57 = vpop.eup %15285  ;;  %1738 = vrot.lane.b32.xlu1 %v15284_v55, %s16744_s30  ;;  %14509 = vmatprep.subr.bf16.mxu1 %v17582_v14 }
 0x2e0   :  { %15295 = vtanh.f32 %v17555_v56  ;;  %1740 = vrot.lane.b32.xlu0 %v15286_v57, %s16744_s30 }
 0x2e2   :  { %v15288_v3 = vpop.eup %15287 }
 0x2e3   :  { %v15290_v9 = vpop.eup %15289  ;;  %1742 = vrot.lane.b32.xlu1 %v15288_v3, %s16744_s30 }
 0x2e4   :  { %1744 = vrot.lane.b32.xlu0 %v15290_v9, %s16744_s30 }
 0x2e6   :  { %v15292_v16 = vpop.eup %15291 }
 0x2e7   :  { %v15294_v22 = vpop.eup %15293  ;;  %1746 = vrot.lane.b32.xlu1 %v15292_v16, %s16744_s30 }
 0x2e8   :  { %1748 = vrot.lane.b32.xlu0 %v15294_v22, %s16744_s30 }
 0x2ea   :  { %v15296_v27 = vpop.eup %15295 }
 0x2eb   :  { %1750 = vrot.lane.b32.xlu1 %v15296_v27, %s16744_s30 }
 0x33d   :  { %v1721_v38 = vpop.permute.xlu0 %1720 }
 0x33e   :  { %v1768_v39 = vmul.f32 %v1721_v38, %v17416_v10 }
 0x340   :  { %1806 = vrot.lane.b32.xlu0 %v1768_v39, %s16745_s0 }
 0x341   :  { %v1723_v40 = vpop.permute.xlu1 %1722 }
 0x342   :  { %v1769_v46 = vmul.f32 %v1723_v40, %v17422_v20  ;;  %v1725_v49 = vpop.permute.xlu0 %1724 }
 0x343   :  { %v1770_v51 = vmul.f32 %v1725_v49, %v17424_v21 }
 0x344   :  { %1808 = vrot.lane.b32.xlu1 %v1769_v46, %s16745_s0 }
 0x345   :  { %1810 = vrot.lane.b32.xlu0 %v1770_v51, %s16745_s0  ;;  %v1727_v52 = vpop.permute.xlu1 %1726 }
 0x346   :  { %v1771_v55 = vmul.f32 %v1727_v52, %v17432_v32  ;;  %v1729_v57 = vpop.permute.xlu0 %1728 }
 0x347   :  { %v1772_v60 = vmul.f32 %v1729_v57, %v17434_v33 }
 0x348   :  { %1812 = vrot.lane.b32.xlu1 %v1771_v55, %s16745_s0 }
 0x349   :  { %1814 = vrot.lane.b32.xlu0 %v1772_v60, %s16745_s0  ;;  %v1731_v10 = vpop.permute.xlu1 %1730 }
 0x34a   :  { %v1773_v20 = vmul.f32 %v1731_v10, %v17441_v43  ;;  %v1733_v61 = vpop.permute.xlu0 %1732 }
 0x34b   :  { %v1774_v21 = vmul.f32 %v1733_v61, %v17443_v44 }
 0x34c   :  { %1816 = vrot.lane.b32.xlu1 %v1773_v20, %s16745_s0 }
 0x34d   :  { %1818 = vrot.lane.b32.xlu0 %v1774_v21, %s16745_s0  ;;  %v1735_v62 = vpop.permute.xlu1 %1734 }
 0x34e   :  { %v1775_v32 = vmul.f32 %v1735_v62, %v17449_v53  ;;  %v1737_v3 = vpop.permute.xlu0 %1736 }
 0x34f   :  { %v1776_v33 = vmul.f32 %v1737_v3, %v17451_v54 }
 0x350   :  { %1820 = vrot.lane.b32.xlu1 %v1775_v32, %s16745_s0 }
 0x351   :  { %1822 = vrot.lane.b32.xlu0 %v1776_v33, %s16745_s0  ;;  %v1739_v4 = vpop.permute.xlu1 %1738 }
 0x352   :  { %v1777_v43 = vmul.f32 %v1739_v4, %v17457_v63  ;;  %v1741_v8 = vpop.permute.xlu0 %1740 }
 0x353   :  { %v1778_v44 = vmul.f32 %v1741_v8, %v17459_v0 }
 0x354   :  { %1824 = vrot.lane.b32.xlu1 %v1777_v43, %s16745_s0 }
 0x355   :  { %1826 = vrot.lane.b32.xlu0 %v1778_v44, %s16745_s0  ;;  %v1743_v9 = vpop.permute.xlu1 %1742 }
 0x356   :  { %v1779_v53 = vmul.f32 %v1743_v9, %v17465_v12  ;;  %v1745_v11 = vpop.permute.xlu0 %1744 }
 0x357   :  { %v1780_v54 = vmul.f32 %v1745_v11, %v17467_v13 }
 0x358   :  { %1828 = vrot.lane.b32.xlu1 %v1779_v53, %s16745_s0 }
 0x359   :  { %1830 = vrot.lane.b32.xlu0 %v1780_v54, %s16745_s0  ;;  %v1747_v15 = vpop.permute.xlu1 %1746 }
 0x35a   :  { %v1781_v63 = vmul.f32 %v1747_v15, %v17473_v23  ;;  %v1749_v16 = vpop.permute.xlu0 %1748 }
 0x35b   :  { %v1782_v0 = vmul.f32 %v1749_v16, %v17475_v24 }
 0x35c   :  { %1832 = vrot.lane.b32.xlu1 %v1781_v63, %s16745_s0 }
 0x35d   :  { %1834 = vrot.lane.b32.xlu0 %v1782_v0, %s16745_s0  ;;  %v1751_v22 = vpop.permute.xlu1 %1750 }
 0x35e   :  { %v1783_v12 = vmul.f32 %v1751_v22, %v17481_v29 }
 0x360   :  { %1836 = vrot.lane.b32.xlu1 %v1783_v12, %s16745_s0 }
 0x3b2   :  { %v1807_v13 = vpop.permute.xlu0 %1806 }
 0x3b3   :  { %13724 = vmatprep.mubr.msk.f32.mxu1 %vm1267_vm1, %v1807_v13  ;;  %13756 = vmatprep.mubr.msk.f32.mxu0 %vm1267_vm1, %v1807_v13 }
 0x3b6   :  { %v1809_v25 = vpop.permute.xlu1 %1808 }
 0x3b7   :  { %v1811_v23 = vpop.permute.xlu0 %1810  ;;  %13725 = vmatmul.mubr.msk.f32.vlgmr.msra.gmra.mrb[8].mxu1 %vm1267_vm1, %v1809_v25  ;;  %13757 = vmatmul.mubr.msk.f32.vlgmr.msra.gmra.mrb[16].mxu0 %vm1267_vm1, %v1809_v25 }
 0x3b8   :  { %13727 = vmatprep.mubr.msk.f32.mxu1 %vm1267_vm1, %v1811_v23  ;;  %13759 = vmatprep.mubr.msk.f32.mxu0 %vm1267_vm1, %v1811_v23 }
 0x3b9   :  { %14519 = vmatpush3.bf16.msra.mxu0 %v16815_v6  ;;  %14511 = vmatpush3.bf16.msra.mxu1 %v17582_v14 }
 0x3ba   :  { %v1813_v24 = vpop.permute.xlu1 %1812  ;;  %14521 = vmatprep.subr.bf16.mxu0 %v16866_v19  ;;  %14513 = vmatprep.subr.bf16.mxu1 %v17613_v37 }
 0x3bb   :  { %v1815_v29 = vpop.permute.xlu0 %1814  ;;  %13728 = vmatmul.mubr.msk.f32.gmra.mrb[10].mxu1 %vm1267_vm1, %v1813_v24  ;;  %13760 = vmatmul.mubr.msk.f32.gmra.mrb[18].mxu0 %vm1267_vm1, %v1813_v24 }
 0x3bc   :  { %13730 = vmatprep.mubr.msk.f32.mxu1 %vm1267_vm1, %v1815_v29  ;;  %13762 = vmatprep.mubr.msk.f32.mxu0 %vm1267_vm1, %v1815_v29 }
 0x3bd   :  { %14523 = vmatpush3.bf16.msra.mxu0 %v16866_v19  ;;  %14515 = vmatpush3.bf16.msra.mxu1 %v17613_v37 }
 0x3be   :  { %v1817_v26 = vpop.permute.xlu1 %1816  ;;  %14533 = vmatprep.subr.bf16.mxu0 %v16815_v6  ;;  %14525 = vmatprep.subr.bf16.mxu1 %v17582_v14 }
 0x3bf   :  { %v1819_v27 = vpop.permute.xlu0 %1818  ;;  %13731 = vmatmul.mubr.msk.f32.gmra.mrb[12].mxu1 %vm1267_vm1, %v1817_v26  ;;  %13763 = vmatmul.mubr.msk.f32.gmra.mrb[20].mxu0 %vm1267_vm1, %v1817_v26 }
 0x3c0   :  { %13733 = vmatprep.mubr.msk.f32.mxu1 %vm1267_vm1, %v1819_v27  ;;  %13765 = vmatprep.mubr.msk.f32.mxu0 %vm1267_vm1, %v1819_v27 }
 0x3c2   :  { %v1821_v28 = vpop.permute.xlu1 %1820 }
 0x3c3   :  { %v1823_v30 = vpop.permute.xlu0 %1822  ;;  %13734 = vmatmul.mubr.msk.f32.gmra.mrb[14].mxu1 %vm1267_vm1, %v1821_v28  ;;  %13766 = vmatmul.mubr.msk.f32.gmra.mrb[22].mxu0 %vm1267_vm1, %v1821_v28 }
 0x3c4   :  { %13736 = vmatprep.mubr.msk.f32.mxu1 %vm1267_vm1, %v1823_v30  ;;  %13768 = vmatprep.mubr.msk.f32.mxu0 %vm1267_vm1, %v1823_v30 }
 0x3c6   :  { %v1825_v35 = vpop.permute.xlu1 %1824 }
 0x3c7   :  { %v1827_v38 = vpop.permute.xlu0 %1826  ;;  %13737 = vmatmul.mubr.msk.f32.gmra.mrb[16].mxu1 %vm1267_vm1, %v1825_v35  ;;  %13769 = vmatmul.mubr.msk.f32.gmra.mrb[24].mxu0 %vm1267_vm1, %v1825_v35 }
 0x3c8   :  { %13739 = vmatprep.mubr.msk.f32.mxu1 %vm1267_vm1, %v1827_v38  ;;  %13771 = vmatprep.mubr.msk.f32.mxu0 %vm1267_vm1, %v1827_v38 }
 0x3ca   :  { %v1829_v39 = vpop.permute.xlu1 %1828 }
 0x3cb   :  { %v1831_v40 = vpop.permute.xlu0 %1830  ;;  %13740 = vmatmul.mubr.msk.f32.gmra.mrb[18].mxu1 %vm1267_vm1, %v1829_v39  ;;  %13772 = vmatmul.mubr.msk.f32.gmra.mrb[26].mxu0 %vm1267_vm1, %v1829_v39 }
 0x3cc   :  { %13742 = vmatprep.mubr.msk.f32.mxu1 %vm1267_vm1, %v1831_v40  ;;  %13774 = vmatprep.mubr.msk.f32.mxu0 %vm1267_vm1, %v1831_v40 }
 0x3ce   :  { %v1833_v46 = vpop.permute.xlu1 %1832 }
 0x3cf   :  { %v1835_v49 = vpop.permute.xlu0 %1834  ;;  %13743 = vmatmul.mubr.msk.f32.gmra.mrb[20].mxu1 %vm1267_vm1, %v1833_v46  ;;  %13775 = vmatmul.mubr.msk.f32.gmra.mrb[28].mxu0 %vm1267_vm1, %v1833_v46 }
 0x3d0   :  { %13745 = vmatprep.mubr.msk.f32.mxu1 %vm1267_vm1, %v1835_v49  ;;  %13777 = vmatprep.mubr.msk.f32.mxu0 %vm1267_vm1, %v1835_v49 }
 0x3d2   :  { %v1837_v51 = vpop.permute.xlu1 %1836 }
 0x3d3   :  { %13746 = vmatmul.mubr.msk.f32.gmra.mrb[22].mxu1 %vm1267_vm1, %v1837_v51  ;;  %13778 = vmatmul.mubr.msk.f32.gmra.mrb[30].mxu0 %vm1267_vm1, %v1837_v51 }
 0x48a   :  { %v13758_v52 = vpop.f32.mrb[16].mxu0 }
 0x48b   :  { %v17691_v55 = vadd.f32 %v13758_v52, %v17323_v2  ;;  %v2097_v57 = vpop.f32.mrb[17].mxu0 }
 0x48c   :  { %v17694_v60 = vadd.f32 %v17323_v2, %v2097_v57 }
 0x48d   :  { %15297 = vtanh.f32 %v17691_v55 }
 0x48e   :  { %15299 = vtanh.f32 %v17694_v60  ;;  %v13761_v10 = vpop.f32.mrb[18].mxu0 }
 0x48f   :  { %v17699_v20 = vadd.f32 %v13761_v10, %v17323_v2  ;;  %v2107_v61 = vpop.f32.mrb[19].mxu0 }
 0x490   :  { %v17702_v21 = vadd.f32 %v17323_v2, %v2107_v61 }
 0x491   :  { %15301 = vtanh.f32 %v17699_v20 }
 0x492   :  { %15303 = vtanh.f32 %v17702_v21  ;;  %v13764_v62 = vpop.f32.mrb[20].mxu0 }
 0x493   :  { %v17707_v32 = vadd.f32 %v13764_v62, %v17323_v2  ;;  %v2117_v3 = vpop.f32.mrb[21].mxu0 }
 0x494   :  { %v17710_v33 = vadd.f32 %v17323_v2, %v2117_v3  ;;  %v2193_v3 = vmul.f32 0.5, %v17691_v55 }
 0x495   :  { %15305 = vtanh.f32 %v17707_v32 }
 0x496   :  { %15307 = vtanh.f32 %v17710_v33  ;;  %v13767_v4 = vpop.f32.mrb[22].mxu0 }
 0x497   :  { %v15298_v43 = vpop.eup %15297  ;;  %v17715_v8 = vadd.f32 %v13767_v4, %v17323_v2  ;;  %v2127_v44 = vpop.f32.mrb[23].mxu0  ;;  %v2192_v4 = vmul.f32 0.5, %v17694_v60 }
 0x498   :  { %v15300_v9 = vpop.eup %15299  ;;  %v17718_v53 = vadd.f32 %v17323_v2, %v2127_v44  ;;  %2306 = vrot.lane.b32.xlu1 %v15298_v43, %s16744_s30  ;;  %v2195_v43 = vmul.f32 0.5, %v17699_v20  ;;  %v2194_v44 = vmul.f32 0.5, %v17702_v21 }
 0x499   :  { %15309 = vtanh.f32 %v17715_v8  ;;  %2304 = vrot.lane.b32.xlu0 %v15300_v9, %s16744_s30  ;;  %v2197_v9 = vmul.f32 0.5, %v17707_v32 }
 0x49a   :  { %15311 = vtanh.f32 %v17718_v53  ;;  %v13770_v11 = vpop.f32.mrb[24].mxu0  ;;  %v2198_v55 = vmul.f32 0.5, %v17718_v53 }
 0x49b   :  { %v15302_v54 = vpop.eup %15301  ;;  %v17725_v15 = vadd.f32 %v13770_v11, %v17323_v2  ;;  %v2137_v63 = vpop.f32.mrb[25].mxu0  ;;  %v2196_v11 = vmul.f32 0.5, %v17710_v33 }
 0x49c   :  { %v15304_v16 = vpop.eup %15303  ;;  %v17728_v0 = vadd.f32 %v17323_v2, %v2137_v63  ;;  %2310 = vrot.lane.b32.xlu1 %v15302_v54, %s16744_s30  ;;  %v2199_v54 = vmul.f32 0.5, %v17715_v8 }
 0x49d   :  { %15313 = vtanh.f32 %v17725_v15  ;;  %2308 = vrot.lane.b32.xlu0 %v15304_v16, %s16744_s30  ;;  %v2201_v20 = vmul.f32 0.5, %v17725_v15 }
 0x49e   :  { %15315 = vtanh.f32 %v17728_v0  ;;  %v13773_v22 = vpop.f32.mrb[26].mxu0  ;;  %v2200_v21 = vmul.f32 0.5, %v17728_v0 }
 0x49f   :  { %v15306_v12 = vpop.eup %15305  ;;  %v17735_v13 = vadd.f32 %v13773_v22, %v17323_v2  ;;  %v2147_v25 = vpop.f32.mrb[27].mxu0 }
 0x4a0   :  { %v15308_v23 = vpop.eup %15307  ;;  %v17738_v24 = vadd.f32 %v17323_v2, %v2147_v25  ;;  %2314 = vrot.lane.b32.xlu1 %v15306_v12, %s16744_s30 }
 0x4a1   :  { %15317 = vtanh.f32 %v17735_v13  ;;  %2312 = vrot.lane.b32.xlu0 %v15308_v23, %s16744_s30  ;;  %v2203_v33 = vmul.f32 0.5, %v17735_v13 }
 0x4a2   :  { %15319 = vtanh.f32 %v17738_v24  ;;  %v13776_v29 = vpop.f32.mrb[28].mxu0  ;;  %v2202_v8 = vmul.f32 0.5, %v17738_v24 }
 0x4a3   :  { %v15310_v26 = vpop.eup %15309  ;;  %v17745_v27 = vadd.f32 %v13776_v29, %v17323_v2  ;;  %v2157_v28 = vpop.f32.mrb[29].mxu0 }
 0x4a4   :  { %v15312_v30 = vpop.eup %15311  ;;  %v17748_v35 = vadd.f32 %v17323_v2, %v2157_v28  ;;  %2318 = vrot.lane.b32.xlu1 %v15310_v26, %s16744_s30 }
 0x4a5   :  { %15321 = vtanh.f32 %v17745_v27  ;;  %2316 = vrot.lane.b32.xlu0 %v15312_v30, %s16744_s30 }
 0x4a6   :  { %15323 = vtanh.f32 %v17748_v35  ;;  %v13779_v38 = vpop.f32.mrb[30].mxu0  ;;  %v2204_v24 = vmul.f32 0.5, %v17748_v35 }
 0x4a7   :  { %v15314_v39 = vpop.eup %15313  ;;  %v17755_v40 = vadd.f32 %v13779_v38, %v17323_v2  ;;  %v2167_v46 = vpop.f32.mrb[31].mxu0  ;;  %v2205_v38 = vmul.f32 0.5, %v17745_v27 }
 0x4a8   :  { %v15316_v49 = vpop.eup %15315  ;;  %v17758_v51 = vadd.f32 %v17323_v2, %v2167_v46  ;;  %2322 = vrot.lane.b32.xlu1 %v15314_v39, %s16744_s30 }
 0x4a9   :  { %15325 = vtanh.f32 %v17755_v40  ;;  %2320 = vrot.lane.b32.xlu0 %v15316_v49, %s16744_s30 }
 0x4aa   :  { %15327 = vtanh.f32 %v17758_v51 }
 0x4ab   :  { %v15318_v52 = vpop.eup %15317  ;;  %15329 = vtanh.f32 %v2193_v3 }
 0x4ac   :  { %v15320_v57 = vpop.eup %15319  ;;  %2326 = vrot.lane.b32.xlu1 %v15318_v52, %s16744_s30  ;;  %15331 = vtanh.f32 %v2192_v4  ;;  %v2206_v4 = vmul.f32 0.5, %v17758_v51 }
 0x4ad   :  { %2324 = vrot.lane.b32.xlu0 %v15320_v57, %s16744_s30  ;;  %15333 = vtanh.f32 %v2195_v43 }
 0x4ae   :  { %15335 = vtanh.f32 %v2194_v44 }
 0x4af   :  { %v15322_v10 = vpop.eup %15321  ;;  %15337 = vtanh.f32 %v2197_v9 }
 0x4b0   :  { %v15324_v61 = vpop.eup %15323  ;;  %2330 = vrot.lane.b32.xlu1 %v15322_v10, %s16744_s30  ;;  %15339 = vtanh.f32 %v2196_v11 }
 0x4b1   :  { %2328 = vrot.lane.b32.xlu0 %v15324_v61, %s16744_s30  ;;  %15341 = vtanh.f32 %v2199_v54 }
 0x4b2   :  { %15343 = vtanh.f32 %v2198_v55 }
 0x4b3   :  { %v15326_v2 = vpop.eup %15325  ;;  %15345 = vtanh.f32 %v2201_v20 }
 0x4b4   :  { %v15328_v62 = vpop.eup %15327  ;;  %2334 = vrot.lane.b32.xlu1 %v15326_v2, %s16744_s30  ;;  %15347 = vtanh.f32 %v2200_v21 }
 0x4b5   :  { %2332 = vrot.lane.b32.xlu0 %v15328_v62, %s16744_s30  ;;  %v15330_v63 = vpop.eup %15329  ;;  %15349 = vtanh.f32 %v2203_v33  ;;  %v2207_v62 = vmul.f32 0.5, %v17755_v40 }
 0x4b6   :  { %v15332_v60 = vpop.eup %15331  ;;  %v2225_v16 = vmul.f32 0.5, %v15330_v63  ;;  %15351 = vtanh.f32 %v2202_v8 }
 0x4b7   :  { %v15334_v22 = vpop.eup %15333  ;;  %v2224_v32 = vmul.f32 0.5, %v15332_v60  ;;  %15353 = vtanh.f32 %v2205_v38 }
 0x4b8   :  { %v15336_v12 = vpop.eup %15335  ;;  %v2227_v25 = vmul.f32 0.5, %v15334_v22  ;;  %v17782_v53 = vadd.f32 0.5, %v2225_v16  ;;  %15355 = vtanh.f32 %v2204_v24 }
 0x4b9   :  { %v15338_v23 = vpop.eup %15337  ;;  %v2226_v29 = vmul.f32 0.5, %v15336_v12  ;;  %v17784_v15 = vadd.f32 0.5, %v2224_v32  ;;  %15357 = vtanh.f32 %v2207_v62 }
 0x4ba   :  { %v15340_v28 = vpop.eup %15339  ;;  %v2229_v39 = vmul.f32 0.5, %v15338_v23  ;;  %v17791_v46 = vadd.f32 0.5, %v2227_v25  ;;  %15359 = vtanh.f32 %v2206_v4 }
 0x4bb   :  { %v15342_v49 = vpop.eup %15341  ;;  %v2228_v52 = vmul.f32 0.5, %v15340_v28  ;;  %v17794_v10 = vadd.f32 0.5, %v2226_v29 }
 0x4bc   :  { %v15344_v61 = vpop.eup %15343  ;;  %v2231_v3 = vmul.f32 0.5, %v15342_v49  ;;  %v17801_v43 = vadd.f32 0.5, %v2229_v39 }
 0x4bd   :  { %v15346_v44 = vpop.eup %15345  ;;  %v2230_v9 = vmul.f32 0.5, %v15344_v61  ;;  %v17804_v54 = vadd.f32 0.5, %v2228_v52 }
 0x4be   :  { %v15348_v55 = vpop.eup %15347  ;;  %v2233_v20 = vmul.f32 0.5, %v15346_v44  ;;  %v17809_v51 = vadd.f32 0.5, %v2231_v3 }
 0x4bf   :  { %v15350_v16 = vpop.eup %15349  ;;  %v2232_v21 = vmul.f32 0.5, %v15348_v55  ;;  %v17812_v32 = vadd.f32 0.5, %v2230_v9 }
 0x4c0   :  { %v15352_v12 = vpop.eup %15351  ;;  %v2235_v23 = vmul.f32 0.5, %v15350_v16  ;;  %v17817_v29 = vadd.f32 0.5, %v2233_v20 }
 0x4c1   :  { %v2234_v28 = vmul.f32 0.5, %v15352_v12 }
 0x4c2   :  { %v17825_v52 = vadd.f32 0.5, %v2235_v23 }
 0x50a   :  { %v2307_v26 = vpop.permute.xlu1 %2306 }
 0x50b   :  { %v2353_v0 = vmul.f32 %v2307_v26, %v17782_v53  ;;  %v2305_v30 = vpop.permute.xlu0 %2304  ;;  %v15354_v26 = vpop.eup %15353 }
 0x50c   :  { %v2352_v13 = vmul.f32 %v2305_v30, %v17784_v15  ;;  %v17820_v30 = vadd.f32 0.5, %v2232_v21  ;;  %v15356_v38 = vpop.eup %15355  ;;  %v2237_v49 = vmul.f32 0.5, %v15354_v26  ;;  %v2272_v26 = vmul.f32 %v17784_v15, %v17486_v36 }
 0x50d   :  { %2386 = vrot.lane.b32.xlu1 %v2353_v0, %s16744_s30  ;;  %v2236_v61 = vmul.f32 0.5, %v15356_v38 }
 0x50e   :  { %v2311_v57 = vpop.permute.xlu1 %2310  ;;  %2384 = vrot.lane.b32.xlu0 %v2352_v13, %s16744_s30  ;;  %v17833_v9 = vadd.f32 0.5, %v2237_v49 }
 0x50f   :  { %v2355_v27 = vmul.f32 %v2311_v57, %v17791_v46  ;;  %v2309_v2 = vpop.permute.xlu0 %2308  ;;  %v15358_v57 = vpop.eup %15357 }
 0x510   :  { %v2354_v35 = vmul.f32 %v2309_v2, %v17794_v10  ;;  %v17828_v2 = vadd.f32 0.5, %v2234_v28  ;;  %v15360_v62 = vpop.eup %15359  ;;  %v2239_v44 = vmul.f32 0.5, %v15358_v57  ;;  %v2277_v57 = vmul.f32 %v17801_v43, %v17507_v58 }
 0x511   :  { %2390 = vrot.lane.b32.xlu1 %v2355_v27, %s16744_s30  ;;  %v2278_v58 = vmul.f32 %v17812_v32, %v17509_v59  ;;  %v2280_v59 = vmul.f32 %v17820_v30, %v17518_v7 }
 0x512   :  { %v2315_v11 = vpop.permute.xlu1 %2314  ;;  %2388 = vrot.lane.b32.xlu0 %v2354_v35, %s16744_s30  ;;  %v17841_v16 = vadd.f32 0.5, %v2239_v44  ;;  %v2282_v7 = vmul.f32 %v17828_v2, %v17528_v18 }
 0x513   :  { %v2357_v40 = vmul.f32 %v2315_v11, %v17801_v43  ;;  %v2313_v63 = vpop.permute.xlu0 %2312  ;;  %v2238_v11 = vmul.f32 0.5, %v15360_v62 }
 0x514   :  { %v2356_v60 = vmul.f32 %v2313_v63, %v17804_v54 }
 0x515   :  { %2394 = vrot.lane.b32.xlu1 %v2357_v40, %s16744_s30  ;;  %v17836_v40 = vadd.f32 0.5, %v2236_v61 }
 0x516   :  { %v2319_v22 = vpop.permute.xlu1 %2318  ;;  %2392 = vrot.lane.b32.xlu0 %v2356_v60, %s16744_s30 }
 0x517   :  { %v2359_v33 = vmul.f32 %v2319_v22, %v17809_v51  ;;  %v2317_v25 = vpop.permute.xlu0 %2316  ;;  %v17844_v22 = vadd.f32 0.5, %v2238_v11  ;;  %v2284_v18 = vmul.f32 %v17836_v40, %v17538_v34 }
 0x518   :  { %v2358_v8 = vmul.f32 %v2317_v25, %v17812_v32 }
 0x519   :  { %2398 = vrot.lane.b32.xlu1 %v2359_v33, %s16744_s30  ;;  %v2286_v34 = vmul.f32 %v17844_v22, %v17548_v48 }
 0x51a   :  { %v2323_v0 = vpop.permute.xlu1 %2322  ;;  %2396 = vrot.lane.b32.xlu0 %v2358_v8, %s16744_s30  ;;  %v2273_v8 = vmul.f32 %v17782_v53, %v17491_v41  ;;  %v2274_v41 = vmul.f32 %v17794_v10, %v17493_v42 }
 0x51b   :  { %v2361_v13 = vmul.f32 %v2323_v0, %v17817_v29  ;;  %v2321_v39 = vpop.permute.xlu0 %2320 }
 0x51c   :  { %v2360_v24 = vmul.f32 %v2321_v39, %v17820_v30 }
 0x51d   :  { %2402 = vrot.lane.b32.xlu1 %v2361_v13, %s16744_s30  ;;  %v2275_v13 = vmul.f32 %v17791_v46, %v17499_v50  ;;  %v2276_v50 = vmul.f32 %v17804_v54, %v17501_v45 }
 0x51e   :  { %v2327_v27 = vpop.permute.xlu1 %2326  ;;  %2400 = vrot.lane.b32.xlu0 %v2360_v24, %s16744_s30 }
 0x51f   :  { %v2363_v35 = vmul.f32 %v2327_v27, %v17825_v52  ;;  %v2325_v3 = vpop.permute.xlu0 %2324 }
 0x520   :  { %v2362_v4 = vmul.f32 %v2325_v3, %v17828_v2 }
 0x521   :  { %2406 = vrot.lane.b32.xlu1 %v2363_v35, %s16744_s30  ;;  %v2279_v35 = vmul.f32 %v17809_v51, %v17516_v5  ;;  %v2281_v5 = vmul.f32 %v17817_v29, %v17526_v17  ;;  %v2283_v17 = vmul.f32 %v17825_v52, %v17536_v31  ;;  %v2285_v31 = vmul.f32 %v17833_v9, %v17546_v47 }
 0x522   :  { %v2331_v55 = vpop.permute.xlu1 %2330  ;;  %2404 = vrot.lane.b32.xlu0 %v2362_v4, %s16744_s30  ;;  %v2287_v47 = vmul.f32 %v17841_v16, %v17555_v56 }
 0x523   :  { %v2365_v63 = vmul.f32 %v2331_v55, %v17833_v9  ;;  %v2329_v60 = vpop.permute.xlu0 %2328 }
 0x524   :  { %v2364_v20 = vmul.f32 %v2329_v60, %v17836_v40 }
 0x525   :  { %2410 = vrot.lane.b32.xlu1 %v2365_v63, %s16744_s30 }
 0x526   :  { %v2335_v21 = vpop.permute.xlu1 %2334  ;;  %2408 = vrot.lane.b32.xlu0 %v2364_v20, %s16744_s30 }
 0x527   :  { %v2367_v12 = vmul.f32 %v2335_v21, %v17841_v16  ;;  %v2333_v33 = vpop.permute.xlu0 %2332 }
 0x528   :  { %v2366_v25 = vmul.f32 %v2333_v33, %v17844_v22 }
 0x529   :  { %2414 = vrot.lane.b32.xlu1 %v2367_v12, %s16744_s30 }
 0x52a   :  { %2412 = vrot.lane.b32.xlu0 %v2366_v25, %s16744_s30 }
 0x57f   :  { %v2387_v23 = vpop.permute.xlu1 %2386 }
 0x580   :  { %v17854_v28 = vadd.f32 %v2387_v23, %v2273_v8  ;;  %v2385_v0 = vpop.permute.xlu0 %2384 }
 0x581   :  { %v17856_v38 = vadd.f32 %v2385_v0, %v2272_v26 }
 0x582   :  { %15361 = vtanh.f32 %v17854_v28 }
 0x583   :  { %15363 = vtanh.f32 %v17856_v38  ;;  %v2391_v39 = vpop.permute.xlu1 %2390 }
 0x584   :  { %v17864_v24 = vadd.f32 %v2391_v39, %v2275_v13  ;;  %v2389_v49 = vpop.permute.xlu0 %2388 }
 0x585   :  { %v17866_v36 = vadd.f32 %v2389_v49, %v2274_v41 }
 0x586   :  { %15365 = vtanh.f32 %v17864_v24 }
 0x587   :  { %15367 = vtanh.f32 %v17866_v36  ;;  %v2395_v61 = vpop.permute.xlu1 %2394 }
 0x588   :  { %v17874_v27 = vadd.f32 %v2395_v61, %v2277_v57  ;;  %v2393_v62 = vpop.permute.xlu0 %2392 }
 0x589   :  { %v17876_v42 = vadd.f32 %v2393_v62, %v2276_v50 }
 0x58a   :  { %15369 = vtanh.f32 %v17874_v27 }
 0x58b   :  { %15371 = vtanh.f32 %v17876_v42  ;;  %v2399_v3 = vpop.permute.xlu1 %2398 }
 0x58c   :  { %v15362_v4 = vpop.eup %15361  ;;  %v17884_v44 = vadd.f32 %v2399_v3, %v2279_v35  ;;  %v2397_v45 = vpop.permute.xlu0 %2396 }
 0x58d   :  { %v15364_v11 = vpop.eup %15363  ;;  %v17886_v55 = vadd.f32 %v2397_v45, %v2278_v58  ;;  %2482 = vrot.lane.b32.xlu1 %v15362_v4, %s16744_s30 }
 0x58e   :  { %15373 = vtanh.f32 %v17884_v44  ;;  %2480 = vrot.lane.b32.xlu0 %v15364_v11, %s16744_s30 }
 0x58f   :  { %15375 = vtanh.f32 %v17886_v55  ;;  %v2403_v63 = vpop.permute.xlu1 %2402 }
 0x590   :  { %v15366_v60 = vpop.eup %15365  ;;  %v17896_v20 = vadd.f32 %v2403_v63, %v2281_v5  ;;  %v2401_v21 = vpop.permute.xlu0 %2400 }
 0x591   :  { %v15368_v12 = vpop.eup %15367  ;;  %v17898_v33 = vadd.f32 %v2401_v21, %v2280_v59  ;;  %2486 = vrot.lane.b32.xlu1 %v15366_v60, %s16744_s30 }
 0x592   :  { %15377 = vtanh.f32 %v17896_v20  ;;  %2484 = vrot.lane.b32.xlu0 %v15368_v12, %s16744_s30 }
 0x593   :  { %15379 = vtanh.f32 %v17898_v33  ;;  %v2407_v25 = vpop.permute.xlu1 %2406 }
 0x594   :  { %v15370_v8 = vpop.eup %15369  ;;  %v17908_v23 = vadd.f32 %v2407_v25, %v2283_v17  ;;  %v2405_v26 = vpop.permute.xlu0 %2404 }
 0x595   :  { %v15372_v0 = vpop.eup %15371  ;;  %v17910_v13 = vadd.f32 %v2405_v26, %v2282_v7  ;;  %2490 = vrot.lane.b32.xlu1 %v15370_v8, %s16744_s30 }
 0x596   :  { %15381 = vtanh.f32 %v17908_v23  ;;  %2488 = vrot.lane.b32.xlu0 %v15372_v0, %s16744_s30 }
 0x597   :  { %15383 = vtanh.f32 %v17910_v13  ;;  %v2411_v39 = vpop.permute.xlu1 %2410 }
 0x598   :  { %v15374_v41 = vpop.eup %15373  ;;  %v17920_v49 = vadd.f32 %v2411_v39, %v2285_v31  ;;  %v2409_v57 = vpop.permute.xlu0 %2408 }
 0x599   :  { %v15376_v61 = vpop.eup %15375  ;;  %v17922_v50 = vadd.f32 %v2409_v57, %v2284_v18  ;;  %2494 = vrot.lane.b32.xlu1 %v15374_v41, %s16744_s30 }
 0x59a   :  { %15385 = vtanh.f32 %v17920_v49  ;;  %2492 = vrot.lane.b32.xlu0 %v15376_v61, %s16744_s30 }
 0x59b   :  { %15387 = vtanh.f32 %v17922_v50  ;;  %v2415_v62 = vpop.permute.xlu1 %2414 }
 0x59c   :  { %v15378_v35 = vpop.eup %15377  ;;  %v17932_v3 = vadd.f32 %v2415_v62, %v2287_v47  ;;  %v2413_v58 = vpop.permute.xlu0 %2412 }
 0x59d   :  { %v15380_v4 = vpop.eup %15379  ;;  %v17934_v45 = vadd.f32 %v2413_v58, %v2286_v34  ;;  %2498 = vrot.lane.b32.xlu1 %v15378_v35, %s16744_s30 }
 0x59e   :  { %15389 = vtanh.f32 %v17932_v3  ;;  %2496 = vrot.lane.b32.xlu0 %v15380_v4, %s16744_s30 }
 0x59f   :  { %15391 = vtanh.f32 %v17934_v45 }
 0x5a0   :  { %v15382_v56 = vpop.eup %15381 }
 0x5a1   :  { %v15384_v11 = vpop.eup %15383  ;;  %2502 = vrot.lane.b32.xlu1 %v15382_v56, %s16744_s30 }
 0x5a2   :  { %2500 = vrot.lane.b32.xlu0 %v15384_v11, %s16744_s30 }
 0x5a4   :  { %v15386_v48 = vpop.eup %15385 }
 0x5a5   :  { %v15388_v5 = vpop.eup %15387  ;;  %2506 = vrot.lane.b32.xlu1 %v15386_v48, %s16744_s30 }
 0x5a6   :  { %2504 = vrot.lane.b32.xlu0 %v15388_v5, %s16744_s30 }
 0x5a8   :  { %v15390_v63 = vpop.eup %15389 }
 0x5a9   :  { %v15392_v59 = vpop.eup %15391  ;;  %2510 = vrot.lane.b32.xlu1 %v15390_v63, %s16744_s30 }
 0x5aa   :  { %2508 = vrot.lane.b32.xlu0 %v15392_v59, %s16744_s30 }
 0x5ff   :  { %v2483_v60 = vpop.permute.xlu1 %2482 }
 0x600   :  { %v2529_v21 = vmul.f32 %v2483_v60, %v17782_v53  ;;  %v2481_v12 = vpop.permute.xlu0 %2480 }
 0x601   :  { %v2528_v17 = vmul.f32 %v2481_v12, %v17784_v15 }
 0x602   :  { %2562 = vrot.lane.b32.xlu1 %v2529_v21, %s16745_s0 }
 0x603   :  { %v2487_v25 = vpop.permute.xlu1 %2486  ;;  %2560 = vrot.lane.b32.xlu0 %v2528_v17, %s16745_s0 }
 0x604   :  { %v2531_v7 = vmul.f32 %v2487_v25, %v17791_v46  ;;  %v2485_v8 = vpop.permute.xlu0 %2484 }
 0x605   :  { %v2530_v26 = vmul.f32 %v2485_v8, %v17794_v10  ;;  %v18021_v8 = vld [vmem:[%s22460_s3] ss:$0 sm:$0xff] }
 0x606   :  { %2566 = vrot.lane.b32.xlu1 %v2531_v7, %s16745_s0 }
 0x607   :  { %v2491_v0 = vpop.permute.xlu1 %2490  ;;  %2564 = vrot.lane.b32.xlu0 %v2530_v26, %s16745_s0 }
 0x608   :  { %v2533_v53 = vmul.f32 %v2491_v0, %v17801_v43  ;;  %v2489_v31 = vpop.permute.xlu0 %2488 }
 0x609   :  { %v2532_v15 = vmul.f32 %v2489_v31, %v17804_v54 }
 0x60a   :  { %2570 = vrot.lane.b32.xlu1 %v2533_v53, %s16745_s0 }
 0x60b   :  { %v2495_v39 = vpop.permute.xlu1 %2494  ;;  %2568 = vrot.lane.b32.xlu0 %v2532_v15, %s16745_s0 }
 0x60c   :  { %v2535_v46 = vmul.f32 %v2495_v39, %v17809_v51  ;;  %v2493_v18 = vpop.permute.xlu0 %2492 }
 0x60d   :  { %v2534_v10 = vmul.f32 %v2493_v18, %v17812_v32 }
 0x60e   :  { %2574 = vrot.lane.b32.xlu1 %v2535_v46, %s16745_s0 }
 0x60f   :  { %v2499_v41 = vpop.permute.xlu1 %2498  ;;  %2572 = vrot.lane.b32.xlu0 %v2534_v10, %s16745_s0 }
 0x610   :  { %v2537_v43 = vmul.f32 %v2499_v41, %v17817_v29  ;;  %v2497_v57 = vpop.permute.xlu0 %2496 }
 0x611   :  { %v2536_v54 = vmul.f32 %v2497_v57, %v17820_v30 }
 0x612   :  { %2578 = vrot.lane.b32.xlu1 %v2537_v43, %s16745_s0 }
 0x613   :  { %v2503_v61 = vpop.permute.xlu1 %2502  ;;  %2576 = vrot.lane.b32.xlu0 %v2536_v54, %s16745_s0 }
 0x614   :  { %v2539_v51 = vmul.f32 %v2503_v61, %v17825_v52  ;;  %v2501_v47 = vpop.permute.xlu0 %2500 }
 0x615   :  { %v2538_v32 = vmul.f32 %v2501_v47, %v17828_v2 }
 0x616   :  { %2582 = vrot.lane.b32.xlu1 %v2539_v51, %s16745_s0 }
 0x617   :  { %v2507_v62 = vpop.permute.xlu1 %2506  ;;  %2580 = vrot.lane.b32.xlu0 %v2538_v32, %s16745_s0 }
 0x618   :  { %v2541_v29 = vmul.f32 %v2507_v62, %v17833_v9  ;;  %v2505_v34 = vpop.permute.xlu0 %2504 }
 0x619   :  { %v2540_v30 = vmul.f32 %v2505_v34, %v17836_v40 }
 0x61a   :  { %2586 = vrot.lane.b32.xlu1 %v2541_v29, %s16745_s0 }
 0x61b   :  { %v2511_v35 = vpop.permute.xlu1 %2510  ;;  %2584 = vrot.lane.b32.xlu0 %v2540_v30, %s16745_s0 }
 0x61c   :  { %v2543_v52 = vmul.f32 %v2511_v35, %v17841_v16  ;;  %v2509_v58 = vpop.permute.xlu0 %2508 }
 0x61d   :  { %v2542_v2 = vmul.f32 %v2509_v58, %v17844_v22 }
 0x61e   :  { %2590 = vrot.lane.b32.xlu1 %v2543_v52, %s16745_s0 }
 0x61f   :  { %2588 = vrot.lane.b32.xlu0 %v2542_v2, %s16745_s0 }
 0x674   :  { %v2563_v4 = vpop.permute.xlu1 %2562 }
 0x675   :  { %v2561_v56 = vpop.permute.xlu0 %2560 }
 0x676   :  { %13788 = vmatprep.mubr.msk.f32.mxu1 %vm1267_vm1, %v2561_v56  ;;  %13820 = vmatprep.mubr.msk.f32.mxu0 %vm1267_vm1, %v2561_v56 }
 0x677   :  { %13789 = vmatmul.mubr.msk.f32.vlgmr.msra.gmra.mrb[24].mxu1 %vm1267_vm1, %v2563_v4  ;;  %13821 = vmatmul.mubr.msk.f32.vlgmr.msra.gmra.mrb[32].mxu0 %vm1267_vm1, %v2563_v4 }
 0x678   :  { %v2567_v9 = vpop.permute.xlu1 %2566  ;;  %14535 = vmatpush3.bf16.msra.mxu0 %v16815_v6  ;;  %14527 = vmatpush3.bf16.msra.mxu1 %v17582_v14 }
 0x679   :  { %v2565_v40 = vpop.permute.xlu0 %2564  ;;  %14537 = vmatprep.subr.bf16.mxu0 %v16866_v19  ;;  %14529 = vmatprep.subr.bf16.mxu1 %v17613_v37 }
 0x67a   :  { %13791 = vmatprep.mubr.msk.f32.mxu1 %vm1267_vm1, %v2565_v40  ;;  %13823 = vmatprep.mubr.msk.f32.mxu0 %vm1267_vm1, %v2565_v40 }
 0x67b   :  { %13792 = vmatmul.mubr.msk.f32.gmra.mrb[26].mxu1 %vm1267_vm1, %v2567_v9  ;;  %13824 = vmatmul.mubr.msk.f32.gmra.mrb[34].mxu0 %vm1267_vm1, %v2567_v9 }
 0x67c   :  { %v2571_v16 = vpop.permute.xlu1 %2570  ;;  %14539 = vmatpush3.bf16.msra.mxu0 %v16866_v19  ;;  %14531 = vmatpush3.bf16.msra.mxu1 %v17613_v37 }
 0x67d   :  { %v2569_v22 = vpop.permute.xlu0 %2568  ;;  %14549 = vmatprep.subr.bf16.mxu0 %v16815_v6  ;;  %14541 = vmatprep.subr.bf16.mxu1 %v17582_v14 }
 0x67e   :  { %13794 = vmatprep.mubr.msk.f32.mxu1 %vm1267_vm1, %v2569_v22  ;;  %13826 = vmatprep.mubr.msk.f32.mxu0 %vm1267_vm1, %v2569_v22 }
 0x67f   :  { %13795 = vmatmul.mubr.msk.f32.gmra.mrb[28].mxu1 %vm1267_vm1, %v2571_v16  ;;  %13827 = vmatmul.mubr.msk.f32.gmra.mrb[36].mxu0 %vm1267_vm1, %v2571_v16 }
 0x680   :  { %v2575_v11 = vpop.permute.xlu1 %2574 }
 0x681   :  { %v2573_v48 = vpop.permute.xlu0 %2572 }
 0x682   :  { %13797 = vmatprep.mubr.msk.f32.mxu1 %vm1267_vm1, %v2573_v48  ;;  %13829 = vmatprep.mubr.msk.f32.mxu0 %vm1267_vm1, %v2573_v48 }
 0x683   :  { %13798 = vmatmul.mubr.msk.f32.gmra.mrb[30].mxu1 %vm1267_vm1, %v2575_v11  ;;  %13830 = vmatmul.mubr.msk.f32.gmra.mrb[38].mxu0 %vm1267_vm1, %v2575_v11 }
 0x684   :  { %v2579_v5 = vpop.permute.xlu1 %2578 }
 0x685   :  { %v2577_v63 = vpop.permute.xlu0 %2576 }
 0x686   :  { %13800 = vmatprep.mubr.msk.f32.mxu1 %vm1267_vm1, %v2577_v63  ;;  %13832 = vmatprep.mubr.msk.f32.mxu0 %vm1267_vm1, %v2577_v63 }
 0x687   :  { %13801 = vmatmul.mubr.msk.f32.gmra.mrb[32].mxu1 %vm1267_vm1, %v2579_v5  ;;  %13833 = vmatmul.mubr.msk.f32.gmra.mrb[40].mxu0 %vm1267_vm1, %v2579_v5 }
 0x688   :  { %v2583_v59 = vpop.permute.xlu1 %2582 }
 0x689   :  { %v2581_v60 = vpop.permute.xlu0 %2580 }
 0x68a   :  { %13803 = vmatprep.mubr.msk.f32.mxu1 %vm1267_vm1, %v2581_v60  ;;  %13835 = vmatprep.mubr.msk.f32.mxu0 %vm1267_vm1, %v2581_v60 }
 0x68b   :  { %13804 = vmatmul.mubr.msk.f32.gmra.mrb[34].mxu1 %vm1267_vm1, %v2583_v59  ;;  %13836 = vmatmul.mubr.msk.f32.gmra.mrb[42].mxu0 %vm1267_vm1, %v2583_v59 }
 0x68c   :  { %v2587_v21 = vpop.permute.xlu1 %2586 }
 0x68d   :  { %v2585_v12 = vpop.permute.xlu0 %2584 }
 0x68e   :  { %13806 = vmatprep.mubr.msk.f32.mxu1 %vm1267_vm1, %v2585_v12  ;;  %13838 = vmatprep.mubr.msk.f32.mxu0 %vm1267_vm1, %v2585_v12 }
 0x68f   :  { %13807 = vmatmul.mubr.msk.f32.gmra.mrb[36].mxu1 %vm1267_vm1, %v2587_v21  ;;  %13839 = vmatmul.mubr.msk.f32.gmra.mrb[44].mxu0 %vm1267_vm1, %v2587_v21 }
 0x690   :  { %v2591_v25 = vpop.permute.xlu1 %2590 }
 0x691   :  { %v2589_v17 = vpop.permute.xlu0 %2588 }
 0x692   :  { %13809 = vmatprep.mubr.msk.f32.mxu1 %vm1267_vm1, %v2589_v17  ;;  %13841 = vmatprep.mubr.msk.f32.mxu0 %vm1267_vm1, %v2589_v17 }
 0x693   :  { %13810 = vmatmul.mubr.msk.f32.gmra.mrb[38].mxu1 %vm1267_vm1, %v2591_v25  ;;  %13842 = vmatmul.mubr.msk.f32.gmra.mrb[46].mxu0 %vm1267_vm1, %v2591_v25 }
 0x74a   :  { %v13822_v7 = vpop.f32.mrb[32].mxu0 }
 0x74b   :  { %v18024_v26 = vadd.f32 %v18021_v8, %v13822_v7  ;;  %v2851_v0 = vpop.f32.mrb[33].mxu0 }
 0x74c   :  { %v18027_v53 = vadd.f32 %v18021_v8, %v2851_v0 }
 0x74d   :  { %15393 = vtanh.f32 %v18024_v26 }
 0x74e   :  { %15395 = vtanh.f32 %v18027_v53  ;;  %v13825_v31 = vpop.f32.mrb[34].mxu0 }
 0x74f   :  { %v18032_v15 = vadd.f32 %v18021_v8, %v13825_v31  ;;  %v2861_v39 = vpop.f32.mrb[35].mxu0 }
 0x750   :  { %v18035_v46 = vadd.f32 %v18021_v8, %v2861_v39 }
 0x751   :  { %15397 = vtanh.f32 %v18032_v15 }
 0x752   :  { %15399 = vtanh.f32 %v18035_v46  ;;  %v13828_v18 = vpop.f32.mrb[36].mxu0 }
 0x753   :  { %v18040_v10 = vadd.f32 %v18021_v8, %v13828_v18  ;;  %v2871_v41 = vpop.f32.mrb[37].mxu0 }
 0x754   :  { %v18043_v43 = vadd.f32 %v18021_v8, %v2871_v41 }
 0x755   :  { %15401 = vtanh.f32 %v18040_v10 }
 0x756   :  { %15403 = vtanh.f32 %v18043_v43  ;;  %v13831_v57 = vpop.f32.mrb[38].mxu0 }
 0x757   :  { %v15394_v54 = vpop.eup %15393  ;;  %v18048_v61 = vadd.f32 %v18021_v8, %v13831_v57  ;;  %v2881_v51 = vpop.f32.mrb[39].mxu0  ;;  %v2947_v57 = vmul.f32 0.5, %v18024_v26 }
 0x758   :  { %v15396_v47 = vpop.eup %15395  ;;  %v18051_v32 = vadd.f32 %v18021_v8, %v2881_v51  ;;  %3060 = vrot.lane.b32.xlu1 %v15394_v54, %s16744_s30  ;;  %v2946_v54 = vmul.f32 0.5, %v18027_v53  ;;  %v2949_v51 = vmul.f32 0.5, %v18032_v15 }
 0x759   :  { %15405 = vtanh.f32 %v18048_v61  ;;  %3058 = vrot.lane.b32.xlu0 %v15396_v47, %s16744_s30  ;;  %v2948_v47 = vmul.f32 0.5, %v18035_v46 }
 0x75a   :  { %15407 = vtanh.f32 %v18051_v32  ;;  %v13834_v62 = vpop.f32.mrb[40].mxu0  ;;  %v2952_v26 = vmul.f32 0.5, %v18051_v32 }
 0x75b   :  { %v15398_v29 = vpop.eup %15397  ;;  %v18058_v34 = vadd.f32 %v18021_v8, %v13834_v62  ;;  %v2891_v30 = vpop.f32.mrb[41].mxu0  ;;  %v2951_v62 = vmul.f32 0.5, %v18040_v10 }
 0x75c   :  { %v15400_v35 = vpop.eup %15399  ;;  %v18061_v52 = vadd.f32 %v18021_v8, %v2891_v30  ;;  %3064 = vrot.lane.b32.xlu1 %v15398_v29, %s16744_s30  ;;  %v2950_v29 = vmul.f32 0.5, %v18043_v43  ;;  %v2953_v30 = vmul.f32 0.5, %v18048_v61 }
 0x75d   :  { %15409 = vtanh.f32 %v18058_v34  ;;  %3062 = vrot.lane.b32.xlu0 %v15400_v35, %s16744_s30  ;;  %v2955_v15 = vmul.f32 0.5, %v18058_v34 }
 0x75e   :  { %15411 = vtanh.f32 %v18061_v52  ;;  %v13837_v58 = vpop.f32.mrb[42].mxu0  ;;  %v2954_v46 = vmul.f32 0.5, %v18061_v52 }
 0x75f   :  { %v15402_v2 = vpop.eup %15401  ;;  %v18068_v4 = vadd.f32 %v18021_v8, %v13837_v58  ;;  %v2901_v56 = vpop.f32.mrb[43].mxu0 }
 0x760   :  { %v15404_v9 = vpop.eup %15403  ;;  %v18071_v40 = vadd.f32 %v18021_v8, %v2901_v56  ;;  %3068 = vrot.lane.b32.xlu1 %v15402_v2, %s16744_s30 }
 0x761   :  { %15413 = vtanh.f32 %v18068_v4  ;;  %3066 = vrot.lane.b32.xlu0 %v15404_v9, %s16744_s30  ;;  %v2957_v43 = vmul.f32 0.5, %v18068_v4 }
 0x762   :  { %15415 = vtanh.f32 %v18071_v40  ;;  %v13840_v16 = vpop.f32.mrb[44].mxu0  ;;  %v2956_v61 = vmul.f32 0.5, %v18071_v40 }
 0x763   :  { %v15406_v22 = vpop.eup %15405  ;;  %v18078_v11 = vadd.f32 %v18021_v8, %v13840_v16  ;;  %v2911_v48 = vpop.f32.mrb[45].mxu0 }
 0x764   :  { %v15408_v5 = vpop.eup %15407  ;;  %v18081_v63 = vadd.f32 %v18021_v8, %v2911_v48  ;;  %3072 = vrot.lane.b32.xlu1 %v15406_v22, %s16744_s30 }
 0x765   :  { %15417 = vtanh.f32 %v18078_v11  ;;  %3070 = vrot.lane.b32.xlu0 %v15408_v5, %s16744_s30 }
 0x766   :  { %15419 = vtanh.f32 %v18081_v63  ;;  %v13843_v59 = vpop.f32.mrb[46].mxu0  ;;  %v2958_v40 = vmul.f32 0.5, %v18081_v63 }
 0x767   :  { %v15410_v60 = vpop.eup %15409  ;;  %v18088_v21 = vadd.f32 %v18021_v8, %v13843_v59  ;;  %v2921_v12 = vpop.f32.mrb[47].mxu0 }
 0x768   :  { %v15412_v17 = vpop.eup %15411  ;;  %v18091_v25 = vadd.f32 %v18021_v8, %v2921_v12  ;;  %3076 = vrot.lane.b32.xlu1 %v15410_v60, %s16744_s30  ;;  %v2959_v60 = vmul.f32 0.5, %v18078_v11 }
 0x769   :  { %15421 = vtanh.f32 %v18088_v21  ;;  %3074 = vrot.lane.b32.xlu0 %v15412_v17, %s16744_s30 }
 0x76a   :  { %15423 = vtanh.f32 %v18091_v25 }
 0x76b   :  { %v15414_v7 = vpop.eup %15413  ;;  %15425 = vtanh.f32 %v2947_v57  ;;  %v2961_v57 = vmul.f32 0.5, %v18088_v21 }
 0x76c   :  { %v15416_v0 = vpop.eup %15415  ;;  %3080 = vrot.lane.b32.xlu1 %v15414_v7, %s16744_s30  ;;  %15427 = vtanh.f32 %v2946_v54 }
 0x76d   :  { %3078 = vrot.lane.b32.xlu0 %v15416_v0, %s16744_s30  ;;  %15429 = vtanh.f32 %v2949_v51  ;;  %v2960_v51 = vmul.f32 0.5, %v18091_v25 }
 0x76e   :  { %15431 = vtanh.f32 %v2948_v47 }
 0x76f   :  { %v15418_v31 = vpop.eup %15417  ;;  %15433 = vtanh.f32 %v2951_v62 }
 0x770   :  { %v15420_v39 = vpop.eup %15419  ;;  %3084 = vrot.lane.b32.xlu1 %v15418_v31, %s16744_s30  ;;  %15435 = vtanh.f32 %v2950_v29 }
 0x771   :  { %3082 = vrot.lane.b32.xlu0 %v15420_v39, %s16744_s30  ;;  %15437 = vtanh.f32 %v2953_v30 }
 0x772   :  { %15439 = vtanh.f32 %v2952_v26 }
 0x773   :  { %v15422_v18 = vpop.eup %15421  ;;  %15441 = vtanh.f32 %v2955_v15 }
 0x774   :  { %v15424_v41 = vpop.eup %15423  ;;  %3088 = vrot.lane.b32.xlu1 %v15422_v18, %s16744_s30  ;;  %15443 = vtanh.f32 %v2954_v46 }
 0x775   :  { %3086 = vrot.lane.b32.xlu0 %v15424_v41, %s16744_s30  ;;  %v15426_v35 = vpop.eup %15425  ;;  %15445 = vtanh.f32 %v2957_v43 }
 0x776   :  { %v15428_v53 = vpop.eup %15427  ;;  %v2979_v58 = vmul.f32 0.5, %v15426_v35  ;;  %15447 = vtanh.f32 %v2956_v61 }
 0x777   :  { %v15430_v2 = vpop.eup %15429  ;;  %v2978_v10 = vmul.f32 0.5, %v15428_v53  ;;  %15449 = vtanh.f32 %v2959_v60 }
 0x778   :  { %v15432_v56 = vpop.eup %15431  ;;  %v2981_v9 = vmul.f32 0.5, %v15430_v2  ;;  %v18115_v32 = vadd.f32 0.5, %v2979_v58  ;;  %15451 = vtanh.f32 %v2958_v40 }
 0x779   :  { %v15434_v16 = vpop.eup %15433  ;;  %v2980_v22 = vmul.f32 0.5, %v15432_v56  ;;  %v18117_v34 = vadd.f32 0.5, %v2978_v10  ;;  %15453 = vtanh.f32 %v2961_v57 }
 0x77a   :  { %v15436_v5 = vpop.eup %15435  ;;  %v2983_v12 = vmul.f32 0.5, %v15434_v16  ;;  %v18124_v17 = vadd.f32 0.5, %v2981_v9  ;;  %15455 = vtanh.f32 %v2960_v51 }
 0x77b   :  { %v15438_v7 = vpop.eup %15437  ;;  %v2982_v0 = vmul.f32 0.5, %v15436_v5  ;;  %v18127_v39 = vadd.f32 0.5, %v2980_v22 }
 0x77c   :  { %v15440_v18 = vpop.eup %15439  ;;  %v2985_v54 = vmul.f32 0.5, %v15438_v7  ;;  %v18134_v47 = vadd.f32 0.5, %v2983_v12 }
 0x77d   :  { %v15442_v62 = vpop.eup %15441  ;;  %v2984_v29 = vmul.f32 0.5, %v15440_v18  ;;  %v18137_v26 = vadd.f32 0.5, %v2982_v0 }
 0x77e   :  { %v15444_v35 = vpop.eup %15443  ;;  %v2987_v58 = vmul.f32 0.5, %v15442_v62  ;;  %v18142_v25 = vadd.f32 0.5, %v2985_v54 }
 0x77f   :  { %v15446_v46 = vpop.eup %15445  ;;  %v2986_v2 = vmul.f32 0.5, %v15444_v35  ;;  %v18145_v56 = vadd.f32 0.5, %v2984_v29 }
 0x780   :  { %v15448_v43 = vpop.eup %15447  ;;  %v2989_v22 = vmul.f32 0.5, %v15446_v46 }
 0x781   :  { %v15450_v5 = vpop.eup %15449  ;;  %v18153_v60 = vadd.f32 0.5, %v2986_v2 }
 0x782   :  { %v2991_v0 = vmul.f32 0.5, %v15450_v5 }
 0x7ca   :  { %v3061_v48 = vpop.permute.xlu1 %3060 }
 0x7cb   :  { %v3107_v52 = vmul.f32 %v3061_v48, %v18115_v32  ;;  %v3059_v59 = vpop.permute.xlu0 %3058  ;;  %v18150_v48 = vadd.f32 0.5, %v2987_v58 }
 0x7cc   :  { %v3106_v4 = vmul.f32 %v3059_v59, %v18117_v34 }
 0x7cd   :  { %3140 = vrot.lane.b32.xlu1 %v3107_v52, %s16744_s30  ;;  %v2988_v52 = vmul.f32 0.5, %v15448_v43 }
 0x7ce   :  { %v3065_v31 = vpop.permute.xlu1 %3064  ;;  %3138 = vrot.lane.b32.xlu0 %v3106_v4, %s16744_s30  ;;  %v15452_v4 = vpop.eup %15451 }
 0x7cf   :  { %v3109_v11 = vmul.f32 %v3065_v31, %v18124_v17  ;;  %v3063_v41 = vpop.permute.xlu0 %3062  ;;  %v18158_v31 = vadd.f32 0.5, %v2989_v22  ;;  %v15454_v18 = vpop.eup %15453  ;;  %v18161_v57 = vadd.f32 0.5, %v2988_v52  ;;  %v3027_v22 = vmul.f32 %v18115_v32, %v17854_v28 }
 0x7d0   :  { %v3108_v63 = vmul.f32 %v3063_v41, %v18127_v39  ;;  %v2993_v29 = vmul.f32 0.5, %v15454_v18  ;;  %v3026_v52 = vmul.f32 %v18117_v34, %v17856_v38  ;;  %v3028_v28 = vmul.f32 %v18127_v39, %v17866_v36 }
 0x7d1   :  { %3144 = vrot.lane.b32.xlu1 %v3109_v11, %s16744_s30  ;;  %v2990_v11 = vmul.f32 0.5, %v15452_v4 }
 0x7d2   :  { %v3069_v30 = vpop.permute.xlu1 %3068  ;;  %3142 = vrot.lane.b32.xlu0 %v3108_v63, %s16744_s30  ;;  %v15456_v63 = vpop.eup %15455  ;;  %v18174_v2 = vadd.f32 0.5, %v2993_v29 }
 0x7d3   :  { %v3111_v21 = vmul.f32 %v3069_v30, %v18134_v47  ;;  %v3067_v53 = vpop.permute.xlu0 %3066  ;;  %v18166_v30 = vadd.f32 0.5, %v2991_v0  ;;  %v2992_v35 = vmul.f32 0.5, %v15456_v63 }
 0x7d4   :  { %v3110_v15 = vmul.f32 %v3067_v53, %v18137_v26  ;;  %v18169_v53 = vadd.f32 0.5, %v2990_v11  ;;  %v3031_v11 = vmul.f32 %v18134_v47, %v17874_v27  ;;  %v3032_v27 = vmul.f32 %v18145_v56, %v17886_v55 }
 0x7d5   :  { %3148 = vrot.lane.b32.xlu1 %v3111_v21, %s16744_s30  ;;  %v18177_v43 = vadd.f32 0.5, %v2992_v35  ;;  %v3034_v55 = vmul.f32 %v18153_v60, %v17898_v33  ;;  %v3036_v33 = vmul.f32 %v18161_v57, %v17910_v13 }
 0x7d6   :  { %v3073_v10 = vpop.permute.xlu1 %3072  ;;  %3146 = vrot.lane.b32.xlu0 %v3110_v15, %s16744_s30  ;;  %v3038_v13 = vmul.f32 %v18169_v53, %v17922_v50 }
 0x7d7   :  { %v3113_v9 = vmul.f32 %v3073_v10, %v18142_v25  ;;  %v3071_v61 = vpop.permute.xlu0 %3070  ;;  %v3040_v50 = vmul.f32 %v18177_v43, %v17934_v45 }
 0x7d8   :  { %v3112_v16 = vmul.f32 %v3071_v61, %v18145_v56 }
 0x7d9   :  { %3152 = vrot.lane.b32.xlu1 %v3113_v9, %s16744_s30 }
 0x7da   :  { %v3077_v59 = vpop.permute.xlu1 %3076  ;;  %3150 = vrot.lane.b32.xlu0 %v3112_v16, %s16744_s30 }
 0x7db   :  { %v3115_v12 = vmul.f32 %v3077_v59, %v18150_v48  ;;  %v3075_v40 = vpop.permute.xlu0 %3074 }
 0x7dc   :  { %v3114_v7 = vmul.f32 %v3075_v40, %v18153_v60  ;;  %v3029_v40 = vmul.f32 %v18124_v17, %v17864_v24  ;;  %v3030_v24 = vmul.f32 %v18137_v26, %v17876_v42 }
 0x7dd   :  { %3156 = vrot.lane.b32.xlu1 %v3115_v12, %s16744_s30 }
 0x7de   :  { %v3081_v41 = vpop.permute.xlu1 %3080  ;;  %3154 = vrot.lane.b32.xlu0 %v3114_v7, %s16744_s30 }
 0x7df   :  { %v3117_v54 = vmul.f32 %v3081_v41, %v18158_v31  ;;  %v3079_v51 = vpop.permute.xlu0 %3078 }
 0x7e0   :  { %v3116_v62 = vmul.f32 %v3079_v51, %v18161_v57  ;;  %v3033_v51 = vmul.f32 %v18142_v25, %v17884_v44  ;;  %v3035_v44 = vmul.f32 %v18150_v48, %v17896_v20  ;;  %v3037_v20 = vmul.f32 %v18158_v31, %v17908_v23 }
 0x7e1   :  { %3160 = vrot.lane.b32.xlu1 %v3117_v54, %s16744_s30  ;;  %v3039_v23 = vmul.f32 %v18166_v30, %v17920_v49  ;;  %v3041_v49 = vmul.f32 %v18174_v2, %v17932_v3 }
 0x7e2   :  { %v3085_v21 = vpop.permute.xlu1 %3084  ;;  %3158 = vrot.lane.b32.xlu0 %v3116_v62, %s16744_s30 }
 0x7e3   :  { %v3119_v15 = vmul.f32 %v3085_v21, %v18166_v30  ;;  %v3083_v58 = vpop.permute.xlu0 %3082 }
 0x7e4   :  { %v3118_v46 = vmul.f32 %v3083_v58, %v18169_v53 }
 0x7e5   :  { %3164 = vrot.lane.b32.xlu1 %v3119_v15, %s16744_s30 }
 0x7e6   :  { %v3089_v10 = vpop.permute.xlu1 %3088  ;;  %3162 = vrot.lane.b32.xlu0 %v3118_v46, %s16744_s30 }
 0x7e7   :  { %v3121_v9 = vmul.f32 %v3089_v10, %v18174_v2  ;;  %v3087_v61 = vpop.permute.xlu0 %3086 }
 0x7e8   :  { %v3120_v16 = vmul.f32 %v3087_v61, %v18177_v43 }
 0x7e9   :  { %3168 = vrot.lane.b32.xlu1 %v3121_v9, %s16744_s30 }
 0x7ea   :  { %3166 = vrot.lane.b32.xlu0 %v3120_v16, %s16744_s30 }
 0x83f   :  { %v3141_v5 = vpop.permute.xlu1 %3140 }
 0x840   :  { %v18187_v59 = vadd.f32 %v3141_v5, %v3027_v22  ;;  %v3139_v4 = vpop.permute.xlu0 %3138 }
 0x841   :  { %v18189_v12 = vadd.f32 %v3139_v4, %v3026_v52 }
 0x842   :  { %15457 = vtanh.f32 %v18187_v59 }
 0x843   :  { %15459 = vtanh.f32 %v18189_v12  ;;  %v3145_v7 = vpop.permute.xlu1 %3144 }
 0x844   :  { %v18197_v0 = vadd.f32 %v3145_v7, %v3029_v40  ;;  %v3143_v18 = vpop.permute.xlu0 %3142 }
 0x845   :  { %v18199_v38 = vadd.f32 %v3143_v18, %v3028_v28 }
 0x846   :  { %15461 = vtanh.f32 %v18197_v0 }
 0x847   :  { %15463 = vtanh.f32 %v18199_v38  ;;  %v3149_v41 = vpop.permute.xlu1 %3148 }
 0x848   :  { %v18207_v63 = vadd.f32 %v3149_v41, %v3031_v11  ;;  %v3147_v54 = vpop.permute.xlu0 %3146 }
 0x849   :  { %v18209_v36 = vadd.f32 %v3147_v54, %v3030_v24 }
 0x84a   :  { %15465 = vtanh.f32 %v18207_v63 }
 0x84b   :  { %15467 = vtanh.f32 %v18209_v36  ;;  %v3153_v62 = vpop.permute.xlu1 %3152 }
 0x84c   :  { %v15458_v29 = vpop.eup %15457  ;;  %v18217_v35 = vadd.f32 %v3153_v62, %v3033_v51  ;;  %v3151_v42 = vpop.permute.xlu0 %3150 }
 0x84d   :  { %v15460_v21 = vpop.eup %15459  ;;  %v18219_v15 = vadd.f32 %v3151_v42, %v3032_v27  ;;  %3236 = vrot.lane.b32.xlu1 %v15458_v29, %s16744_s30 }
 0x84e   :  { %15469 = vtanh.f32 %v18217_v35  ;;  %3234 = vrot.lane.b32.xlu0 %v15460_v21, %s16744_s30 }
 0x84f   :  { %15471 = vtanh.f32 %v18219_v15  ;;  %v3157_v58 = vpop.permute.xlu1 %3156 }
 0x850   :  { %v15462_v46 = vpop.eup %15461  ;;  %v18229_v10 = vadd.f32 %v3157_v58, %v3035_v44  ;;  %v3155_v9 = vpop.permute.xlu0 %3154 }
 0x851   :  { %v15464_v61 = vpop.eup %15463  ;;  %v18231_v16 = vadd.f32 %v3155_v9, %v3034_v55  ;;  %3240 = vrot.lane.b32.xlu1 %v15462_v46, %s16744_s30 }
 0x852   :  { %15473 = vtanh.f32 %v18229_v10  ;;  %3238 = vrot.lane.b32.xlu0 %v15464_v61, %s16744_s30 }
 0x853   :  { %15475 = vtanh.f32 %v18231_v16  ;;  %v3161_v22 = vpop.permute.xlu1 %3160 }
 0x854   :  { %v15466_v5 = vpop.eup %15465  ;;  %v18241_v52 = vadd.f32 %v3161_v22, %v3037_v20  ;;  %v3159_v4 = vpop.permute.xlu0 %3158 }
 0x855   :  { %v15468_v40 = vpop.eup %15467  ;;  %v18243_v7 = vadd.f32 %v3159_v4, %v3036_v33  ;;  %3244 = vrot.lane.b32.xlu1 %v15466_v5, %s16744_s30 }
 0x856   :  { %15477 = vtanh.f32 %v18241_v52  ;;  %3242 = vrot.lane.b32.xlu0 %v15468_v40, %s16744_s30 }
 0x857   :  { %15479 = vtanh.f32 %v18243_v7  ;;  %v3165_v28 = vpop.permute.xlu1 %3164 }
 0x858   :  { %v15470_v18 = vpop.eup %15469  ;;  %v18253_v11 = vadd.f32 %v3165_v28, %v3039_v23  ;;  %v3163_v41 = vpop.permute.xlu0 %3162 }
 0x859   :  { %v15472_v24 = vpop.eup %15471  ;;  %v18255_v54 = vadd.f32 %v3163_v41, %v3038_v13  ;;  %3248 = vrot.lane.b32.xlu1 %v15470_v18, %s16744_s30 }
 0x85a   :  { %15481 = vtanh.f32 %v18253_v11  ;;  %3246 = vrot.lane.b32.xlu0 %v15472_v24, %s16744_s30 }
 0x85b   :  { %15483 = vtanh.f32 %v18255_v54  ;;  %v3169_v51 = vpop.permute.xlu1 %3168 }
 0x85c   :  { %v15474_v62 = vpop.eup %15473  ;;  %v18265_v27 = vadd.f32 %v3169_v51, %v3041_v49  ;;  %v3167_v29 = vpop.permute.xlu0 %3166 }
 0x85d   :  { %v15476_v42 = vpop.eup %15475  ;;  %v18267_v21 = vadd.f32 %v3167_v29, %v3040_v50  ;;  %3252 = vrot.lane.b32.xlu1 %v15474_v62, %s16744_s30 }
 0x85e   :  { %15485 = vtanh.f32 %v18265_v27  ;;  %3250 = vrot.lane.b32.xlu0 %v15476_v42, %s16744_s30 }
 0x85f   :  { %15487 = vtanh.f32 %v18267_v21 }
 0x860   :  { %v15478_v3 = vpop.eup %15477 }
 0x861   :  { %v15480_v44 = vpop.eup %15479  ;;  %3256 = vrot.lane.b32.xlu1 %v15478_v3, %s16744_s30 }
 0x862   :  { %3254 = vrot.lane.b32.xlu0 %v15480_v44, %s16744_s30 }
 0x864   :  { %v15482_v45 = vpop.eup %15481 }
 0x865   :  { %v15484_v58 = vpop.eup %15483  ;;  %3260 = vrot.lane.b32.xlu1 %v15482_v45, %s16744_s30 }
 0x866   :  { %3258 = vrot.lane.b32.xlu0 %v15484_v58, %s16744_s30 }
 0x868   :  { %v15486_v55 = vpop.eup %15485 }
 0x869   :  { %v15488_v46 = vpop.eup %15487  ;;  %3264 = vrot.lane.b32.xlu1 %v15486_v55, %s16744_s30 }
 0x86a   :  { %3262 = vrot.lane.b32.xlu0 %v15488_v46, %s16744_s30 }
 0x8bf   :  { %v3237_v9 = vpop.permute.xlu1 %3236 }
 0x8c0   :  { %v3283_v61 = vmul.f32 %v3237_v9, %v18115_v32  ;;  %v3235_v20 = vpop.permute.xlu0 %3234 }
 0x8c1   :  { %v3282_v22 = vmul.f32 %v3235_v20, %v18117_v34 }
 0x8c2   :  { %3316 = vrot.lane.b32.xlu1 %v3283_v61, %s16745_s0 }
 0x8c3   :  { %v3241_v33 = vpop.permute.xlu1 %3240  ;;  %3314 = vrot.lane.b32.xlu0 %v3282_v22, %s16745_s0 }
 0x8c4   :  { %v3285_v5 = vmul.f32 %v3241_v33, %v18124_v17  ;;  %v3239_v4 = vpop.permute.xlu0 %3238 }
 0x8c5   :  { %v3284_v40 = vmul.f32 %v3239_v4, %v18127_v39 }
 0x8c6   :  { %3320 = vrot.lane.b32.xlu1 %v3285_v5, %s16745_s0 }
 0x8c7   :  { %v3245_v23 = vpop.permute.xlu1 %3244  ;;  %3318 = vrot.lane.b32.xlu0 %v3284_v40, %s16745_s0 }
 0x8c8   :  { %v3287_v32 = vmul.f32 %v3245_v23, %v18134_v47  ;;  %v3243_v28 = vpop.permute.xlu0 %3242 }
 0x8c9   :  { %v3286_v34 = vmul.f32 %v3243_v28, %v18137_v26 }
 0x8ca   :  { %3324 = vrot.lane.b32.xlu1 %v3287_v32, %s16745_s0 }
 0x8cb   :  { %v3249_v13 = vpop.permute.xlu1 %3248  ;;  %3322 = vrot.lane.b32.xlu0 %v3286_v34, %s16745_s0 }
 0x8cc   :  { %v3289_v17 = vmul.f32 %v3249_v13, %v18142_v25  ;;  %v3247_v18 = vpop.permute.xlu0 %3246 }
 0x8cd   :  { %v3288_v39 = vmul.f32 %v3247_v18, %v18145_v56 }
 0x8ce   :  { %3328 = vrot.lane.b32.xlu1 %v3289_v17, %s16745_s0 }
 0x8cf   :  { %v3253_v41 = vpop.permute.xlu1 %3252  ;;  %3326 = vrot.lane.b32.xlu0 %v3288_v39, %s16745_s0 }
 0x8d0   :  { %v3291_v47 = vmul.f32 %v3253_v41, %v18150_v48  ;;  %v3251_v24 = vpop.permute.xlu0 %3250 }
 0x8d1   :  { %v3290_v26 = vmul.f32 %v3251_v24, %v18153_v60 }
 0x8d2   :  { %3332 = vrot.lane.b32.xlu1 %v3291_v47, %s16745_s0 }
 0x8d3   :  { %v3257_v49 = vpop.permute.xlu1 %3256  ;;  %3330 = vrot.lane.b32.xlu0 %v3290_v26, %s16745_s0 }
 0x8d4   :  { %v3293_v25 = vmul.f32 %v3257_v49, %v18158_v31  ;;  %v3255_v51 = vpop.permute.xlu0 %3254 }
 0x8d5   :  { %v3292_v56 = vmul.f32 %v3255_v51, %v18161_v57 }
 0x8d6   :  { %3336 = vrot.lane.b32.xlu1 %v3293_v25, %s16745_s0 }
 0x8d7   :  { %v3261_v50 = vpop.permute.xlu1 %3260  ;;  %3334 = vrot.lane.b32.xlu0 %v3292_v56, %s16745_s0 }
 0x8d8   :  { %v3295_v48 = vmul.f32 %v3261_v50, %v18166_v30  ;;  %v3259_v62 = vpop.permute.xlu0 %3258 }
 0x8d9   :  { %v3294_v60 = vmul.f32 %v3259_v62, %v18169_v53 }
 0x8da   :  { %3340 = vrot.lane.b32.xlu1 %v3295_v48, %s16745_s0 }
 0x8db   :  { %v3265_v29 = vpop.permute.xlu1 %3264  ;;  %3338 = vrot.lane.b32.xlu0 %v3294_v60, %s16745_s0 }
 0x8dc   :  { %v3297_v31 = vmul.f32 %v3265_v29, %v18174_v2  ;;  %v3263_v42 = vpop.permute.xlu0 %3262 }
 0x8dd   :  { %v3296_v57 = vmul.f32 %v3263_v42, %v18177_v43 }
 0x8de   :  { %3344 = vrot.lane.b32.xlu1 %v3297_v31, %s16745_s0 }
 0x8df   :  { %3342 = vrot.lane.b32.xlu0 %v3296_v57, %s16745_s0 }
 0x934   :  { %v3317_v3 = vpop.permute.xlu1 %3316 }
 0x935   :  { %v3315_v44 = vpop.permute.xlu0 %3314 }
 0x936   :  { %13852 = vmatprep.mubr.msk.f32.mxu1 %vm1267_vm1, %v3315_v44  ;;  %13884 = vmatprep.mubr.msk.f32.mxu0 %vm1267_vm1, %v3315_v44 }
 0x937   :  { %13853 = vmatmul.mubr.msk.f32.vlgmr.msra.gmra.mrb[40].mxu1 %vm1267_vm1, %v3317_v3  ;;  %13885 = vmatmul.mubr.msk.f32.vlgmr.msra.gmra.mrb[48].mxu0 %vm1267_vm1, %v3317_v3 }
 0x938   :  { %v3321_v30 = vpop.permute.xlu1 %3320  ;;  %14551 = vmatpush3.bf16.msra.mxu0 %v16815_v6  ;;  %14543 = vmatpush3.bf16.msra.mxu1 %v17582_v14 }
 0x939   :  { %v3319_v53 = vpop.permute.xlu0 %3318  ;;  %14553 = vmatprep.subr.bf16.mxu0 %v16866_v19  ;;  %14545 = vmatprep.subr.bf16.mxu1 %v17613_v37 }
 0x93a   :  { %13855 = vmatprep.mubr.msk.f32.mxu1 %vm1267_vm1, %v3319_v53  ;;  %13887 = vmatprep.mubr.msk.f32.mxu0 %vm1267_vm1, %v3319_v53 }
 0x93b   :  { %13856 = vmatmul.mubr.msk.f32.gmra.mrb[42].mxu1 %vm1267_vm1, %v3321_v30  ;;  %13888 = vmatmul.mubr.msk.f32.gmra.mrb[50].mxu0 %vm1267_vm1, %v3321_v30 }
 0x93c   :  { %v3325_v2 = vpop.permute.xlu1 %3324  ;;  %14555 = vmatpush3.bf16.msra.mxu0 %v16866_v19  ;;  %14547 = vmatpush3.bf16.msra.mxu1 %v17613_v37 }
 0x93d   :  { %v3323_v43 = vpop.permute.xlu0 %3322  ;;  %14565 = vmatprep.subr.bf16.mxu0 %v16815_v6  ;;  %14557 = vmatprep.subr.bf16.mxu1 %v17582_v14 }
 0x93e   :  { %13858 = vmatprep.mubr.msk.f32.mxu1 %vm1267_vm1, %v3323_v43  ;;  %13890 = vmatprep.mubr.msk.f32.mxu0 %vm1267_vm1, %v3323_v43 }
 0x93f   :  { %13859 = vmatmul.mubr.msk.f32.gmra.mrb[44].mxu1 %vm1267_vm1, %v3325_v2  ;;  %13891 = vmatmul.mubr.msk.f32.gmra.mrb[52].mxu0 %vm1267_vm1, %v3325_v2 }
 0x940   :  { %v3329_v45 = vpop.permute.xlu1 %3328 }
 0x941   :  { %v3327_v58 = vpop.permute.xlu0 %3326 }
 0x942   :  { %13861 = vmatprep.mubr.msk.f32.mxu1 %vm1267_vm1, %v3327_v58  ;;  %13893 = vmatprep.mubr.msk.f32.mxu0 %vm1267_vm1, %v3327_v58 }
 0x943   :  { %13862 = vmatmul.mubr.msk.f32.gmra.mrb[46].mxu1 %vm1267_vm1, %v3329_v45  ;;  %13894 = vmatmul.mubr.msk.f32.gmra.mrb[54].mxu0 %vm1267_vm1, %v3329_v45 }
 0x944   :  { %v3333_v55 = vpop.permute.xlu1 %3332 }
 0x945   :  { %v3331_v46 = vpop.permute.xlu0 %3330 }
 0x946   :  { %13864 = vmatprep.mubr.msk.f32.mxu1 %vm1267_vm1, %v3331_v46  ;;  %13896 = vmatprep.mubr.msk.f32.mxu0 %vm1267_vm1, %v3331_v46 }
 0x947   :  { %13865 = vmatmul.mubr.msk.f32.gmra.mrb[48].mxu1 %vm1267_vm1, %v3333_v55  ;;  %13897 = vmatmul.mubr.msk.f32.gmra.mrb[56].mxu0 %vm1267_vm1, %v3333_v55 }
 0x948   :  { %v3337_v9 = vpop.permute.xlu1 %3336 }
 0x949   :  { %v3335_v61 = vpop.permute.xlu0 %3334 }
 0x94a   :  { %13867 = vmatprep.mubr.msk.f32.mxu1 %vm1267_vm1, %v3335_v61  ;;  %13899 = vmatprep.mubr.msk.f32.mxu0 %vm1267_vm1, %v3335_v61 }
 0x94b   :  { %13868 = vmatmul.mubr.msk.f32.gmra.mrb[50].mxu1 %vm1267_vm1, %v3337_v9  ;;  %13900 = vmatmul.mubr.msk.f32.gmra.mrb[58].mxu0 %vm1267_vm1, %v3337_v9 }
 0x94c   :  { %v3341_v20 = vpop.permute.xlu1 %3340 }
 0x94d   :  { %v3339_v22 = vpop.permute.xlu0 %3338 }
 0x94e   :  { %13870 = vmatprep.mubr.msk.f32.mxu1 %vm1267_vm1, %v3339_v22  ;;  %13902 = vmatprep.mubr.msk.f32.mxu0 %vm1267_vm1, %v3339_v22 }
 0x94f   :  { %13871 = vmatmul.mubr.msk.f32.gmra.mrb[52].mxu1 %vm1267_vm1, %v3341_v20  ;;  %13903 = vmatmul.mubr.msk.f32.gmra.mrb[60].mxu0 %vm1267_vm1, %v3341_v20 }
 0x950   :  { %v3345_v5 = vpop.permute.xlu1 %3344 }
 0x951   :  { %v3343_v33 = vpop.permute.xlu0 %3342 }
 0x952   :  { %13873 = vmatprep.mubr.msk.f32.mxu1 %vm1267_vm1, %v3343_v33  ;;  %13905 = vmatprep.mubr.msk.f32.mxu0 %vm1267_vm1, %v3343_v33 }
 0x953   :  { %13874 = vmatmul.mubr.msk.f32.gmra.mrb[54].mxu1 %vm1267_vm1, %v3345_v5  ;;  %13906 = vmatmul.mubr.msk.f32.gmra.mrb[62].mxu0 %vm1267_vm1, %v3345_v5 }
 0xa0a   :  { %v13886_v4 = vpop.f32.mrb[48].mxu0 }
 0xa0b   :  { %v18352_v40 = vadd.f32 %v18021_v8, %v13886_v4  ;;  %v3605_v23 = vpop.f32.mrb[49].mxu0 }
 0xa0c   :  { %v18355_v32 = vadd.f32 %v18021_v8, %v3605_v23 }
 0xa0d   :  { %15489 = vtanh.f32 %v18352_v40 }
 0xa0e   :  { %15491 = vtanh.f32 %v18355_v32  ;;  %v13889_v28 = vpop.f32.mrb[50].mxu0 }
 0xa0f   :  { %v18360_v34 = vadd.f32 %v18021_v8, %v13889_v28  ;;  %v3615_v13 = vpop.f32.mrb[51].mxu0 }
 0xa10   :  { %v18363_v17 = vadd.f32 %v18021_v8, %v3615_v13 }
 0xa11   :  { %15493 = vtanh.f32 %v18360_v34 }
 0xa12   :  { %15495 = vtanh.f32 %v18363_v17  ;;  %v13892_v18 = vpop.f32.mrb[52].mxu0 }
 0xa13   :  { %v18368_v39 = vadd.f32 %v18021_v8, %v13892_v18  ;;  %v3625_v41 = vpop.f32.mrb[53].mxu0 }
 0xa14   :  { %v18371_v47 = vadd.f32 %v18021_v8, %v3625_v41  ;;  %v3701_v41 = vmul.f32 0.5, %v18352_v40 }
 0xa15   :  { %15497 = vtanh.f32 %v18368_v39 }
 0xa16   :  { %15499 = vtanh.f32 %v18371_v47  ;;  %v13895_v24 = vpop.f32.mrb[54].mxu0 }
 0xa17   :  { %v15490_v26 = vpop.eup %15489  ;;  %v18376_v49 = vadd.f32 %v18021_v8, %v13895_v24  ;;  %v3635_v25 = vpop.f32.mrb[55].mxu0  ;;  %v3700_v24 = vmul.f32 0.5, %v18355_v32 }
 0xa18   :  { %v15492_v51 = vpop.eup %15491  ;;  %v18379_v56 = vadd.f32 %v18021_v8, %v3635_v25  ;;  %3814 = vrot.lane.b32.xlu1 %v15490_v26, %s16744_s30  ;;  %v3703_v26 = vmul.f32 0.5, %v18360_v34  ;;  %v3702_v25 = vmul.f32 0.5, %v18363_v17 }
 0xa19   :  { %15501 = vtanh.f32 %v18376_v49  ;;  %3812 = vrot.lane.b32.xlu0 %v15492_v51, %s16744_s30  ;;  %v3705_v51 = vmul.f32 0.5, %v18368_v39 }
 0xa1a   :  { %15503 = vtanh.f32 %v18379_v56  ;;  %v13898_v50 = vpop.f32.mrb[56].mxu0  ;;  %v3706_v40 = vmul.f32 0.5, %v18379_v56 }
 0xa1b   :  { %v15494_v48 = vpop.eup %15493  ;;  %v18386_v62 = vadd.f32 %v18021_v8, %v13898_v50  ;;  %v3645_v60 = vpop.f32.mrb[57].mxu0  ;;  %v3704_v50 = vmul.f32 0.5, %v18371_v47 }
 0xa1c   :  { %v15496_v29 = vpop.eup %15495  ;;  %v18389_v31 = vadd.f32 %v18021_v8, %v3645_v60  ;;  %3818 = vrot.lane.b32.xlu1 %v15494_v48, %s16744_s30  ;;  %v3707_v48 = vmul.f32 0.5, %v18376_v49 }
 0xa1d   :  { %15505 = vtanh.f32 %v18386_v62  ;;  %3816 = vrot.lane.b32.xlu0 %v15496_v29, %s16744_s30  ;;  %v3709_v34 = vmul.f32 0.5, %v18386_v62 }
 0xa1e   :  { %15507 = vtanh.f32 %v18389_v31  ;;  %v13901_v42 = vpop.f32.mrb[58].mxu0  ;;  %v3708_v17 = vmul.f32 0.5, %v18389_v31 }
 0xa1f   :  { %v15498_v57 = vpop.eup %15497  ;;  %v18396_v3 = vadd.f32 %v18021_v8, %v13901_v42  ;;  %v3655_v44 = vpop.f32.mrb[59].mxu0 }
 0xa20   :  { %v15500_v30 = vpop.eup %15499  ;;  %v18399_v53 = vadd.f32 %v18021_v8, %v3655_v44  ;;  %3822 = vrot.lane.b32.xlu1 %v15498_v57, %s16744_s30 }
 0xa21   :  { %15509 = vtanh.f32 %v18396_v3  ;;  %3820 = vrot.lane.b32.xlu0 %v15500_v30, %s16744_s30  ;;  %v3711_v47 = vmul.f32 0.5, %v18396_v3 }
 0xa22   :  { %15511 = vtanh.f32 %v18399_v53  ;;  %v13904_v2 = vpop.f32.mrb[60].mxu0  ;;  %v3710_v49 = vmul.f32 0.5, %v18399_v53 }
 0xa23   :  { %v15502_v43 = vpop.eup %15501  ;;  %v18406_v45 = vadd.f32 %v18021_v8, %v13904_v2  ;;  %v3665_v58 = vpop.f32.mrb[61].mxu0 }
 0xa24   :  { %v15504_v55 = vpop.eup %15503  ;;  %v18409_v46 = vadd.f32 %v18021_v8, %v3665_v58  ;;  %3826 = vrot.lane.b32.xlu1 %v15502_v43, %s16744_s30 }
 0xa25   :  { %15513 = vtanh.f32 %v18406_v45  ;;  %3824 = vrot.lane.b32.xlu0 %v15504_v55, %s16744_s30 }
 0xa26   :  { %15515 = vtanh.f32 %v18409_v46  ;;  %v13907_v9 = vpop.f32.mrb[62].mxu0  ;;  %v3712_v53 = vmul.f32 0.5, %v18409_v46 }
 0xa27   :  { %v15506_v61 = vpop.eup %15505  ;;  %v18416_v20 = vadd.f32 %v18021_v8, %v13907_v9  ;;  %v3675_v22 = vpop.f32.mrb[63].mxu0  ;;  %v3713_v9 = vmul.f32 0.5, %v18406_v45 }
 0xa28   :  { %v15508_v33 = vpop.eup %15507  ;;  %v18419_v5 = vadd.f32 %v18021_v8, %v3675_v22  ;;  %3830 = vrot.lane.b32.xlu1 %v15506_v61, %s16744_s30 }
 0xa29   :  { %15517 = vtanh.f32 %v18416_v20  ;;  %3828 = vrot.lane.b32.xlu0 %v15508_v33, %s16744_s30 }
 0xa2a   :  { %15519 = vtanh.f32 %v18419_v5 }
 0xa2b   :  { %v15510_v4 = vpop.eup %15509  ;;  %15521 = vtanh.f32 %v3701_v41 }
 0xa2c   :  { %v15512_v23 = vpop.eup %15511  ;;  %3834 = vrot.lane.b32.xlu1 %v15510_v4, %s16744_s30  ;;  %15523 = vtanh.f32 %v3700_v24  ;;  %v3714_v24 = vmul.f32 0.5, %v18419_v5 }
 0xa2d   :  { %3832 = vrot.lane.b32.xlu0 %v15512_v23, %s16744_s30  ;;  %15525 = vtanh.f32 %v3703_v26 }
 0xa2e   :  { %15527 = vtanh.f32 %v3702_v25 }
 0xa2f   :  { %v15514_v28 = vpop.eup %15513  ;;  %15529 = vtanh.f32 %v3705_v51 }
 0xa30   :  { %v15516_v13 = vpop.eup %15515  ;;  %3838 = vrot.lane.b32.xlu1 %v15514_v28, %s16744_s30  ;;  %15531 = vtanh.f32 %v3704_v50 }
 0xa31   :  { %3836 = vrot.lane.b32.xlu0 %v15516_v13, %s16744_s30  ;;  %15533 = vtanh.f32 %v3707_v48 }
 0xa32   :  { %15535 = vtanh.f32 %v3706_v40 }
 0xa33   :  { %v15518_v8 = vpop.eup %15517  ;;  %15537 = vtanh.f32 %v3709_v34 }
 0xa34   :  { %v15520_v18 = vpop.eup %15519  ;;  %3842 = vrot.lane.b32.xlu1 %v15518_v8, %s16744_s30  ;;  %15539 = vtanh.f32 %v3708_v17 }
 0xa35   :  { %3840 = vrot.lane.b32.xlu0 %v15520_v18, %s16744_s30  ;;  %v15522_v60 = vpop.eup %15521  ;;  %15541 = vtanh.f32 %v3711_v47  ;;  %v3715_v18 = vmul.f32 0.5, %v18416_v20 }
 0xa36   :  { %v15524_v32 = vpop.eup %15523  ;;  %v3733_v29 = vmul.f32 0.5, %v15522_v60  ;;  %15543 = vtanh.f32 %v3710_v49 }
 0xa37   :  { %v15526_v42 = vpop.eup %15525  ;;  %v3732_v39 = vmul.f32 0.5, %v15524_v32  ;;  %15545 = vtanh.f32 %v3713_v9 }
 0xa38   :  { %v15528_v57 = vpop.eup %15527  ;;  %v3735_v44 = vmul.f32 0.5, %v15526_v42  ;;  %v18443_v56 = vadd.f32 0.5, %v3733_v29  ;;  %15547 = vtanh.f32 %v3712_v53 }
 0xa39   :  { %v15530_v30 = vpop.eup %15529  ;;  %v3734_v2 = vmul.f32 0.5, %v15528_v57  ;;  %v18445_v62 = vadd.f32 0.5, %v3732_v39  ;;  %15549 = vtanh.f32 %v3715_v18 }
 0xa3a   :  { %v15532_v58 = vpop.eup %15531  ;;  %v3737_v61 = vmul.f32 0.5, %v15530_v30  ;;  %v18452_v22 = vadd.f32 0.5, %v3735_v44  ;;  %15551 = vtanh.f32 %v3714_v24 }
 0xa3b   :  { %v15534_v33 = vpop.eup %15533  ;;  %v3736_v4 = vmul.f32 0.5, %v15532_v58  ;;  %v18455_v28 = vadd.f32 0.5, %v3734_v2 }
 0xa3c   :  { %v15536_v13 = vpop.eup %15535  ;;  %v3739_v41 = vmul.f32 0.5, %v15534_v33  ;;  %v18462_v26 = vadd.f32 0.5, %v3737_v61 }
 0xa3d   :  { %v15538_v25 = vpop.eup %15537  ;;  %v3738_v51 = vmul.f32 0.5, %v15536_v13  ;;  %v18465_v48 = vadd.f32 0.5, %v3736_v4 }
 0xa3e   :  { %v15540_v40 = vpop.eup %15539  ;;  %v3741_v34 = vmul.f32 0.5, %v15538_v25  ;;  %v18470_v5 = vadd.f32 0.5, %v3739_v41 }
 0xa3f   :  { %v15542_v29 = vpop.eup %15541  ;;  %v3740_v17 = vmul.f32 0.5, %v15540_v40  ;;  %v18473_v39 = vadd.f32 0.5, %v3738_v51 }
 0xa40   :  { %v15544_v57 = vpop.eup %15543  ;;  %v3743_v30 = vmul.f32 0.5, %v15542_v29  ;;  %v18478_v2 = vadd.f32 0.5, %v3741_v34 }
 0xa41   :  { %v3742_v58 = vmul.f32 0.5, %v15544_v57 }
 0xa42   :  { %v18486_v4 = vadd.f32 0.5, %v3743_v30 }
 0xa8a   :  { %v3815_v43 = vpop.permute.xlu1 %3814 }
 0xa8b   :  { %v3861_v31 = vmul.f32 %v3815_v43, %v18443_v56  ;;  %v3813_v55 = vpop.permute.xlu0 %3812  ;;  %v15546_v43 = vpop.eup %15545 }
 0xa8c   :  { %v3860_v3 = vmul.f32 %v3813_v55, %v18445_v62  ;;  %v18481_v55 = vadd.f32 0.5, %v3740_v17  ;;  %v15548_v9 = vpop.eup %15547  ;;  %v3745_v33 = vmul.f32 0.5, %v15546_v43  ;;  %v3780_v43 = vmul.f32 %v18445_v62, %v18189_v12 }
 0xa8d   :  { %3894 = vrot.lane.b32.xlu1 %v3861_v31, %s16744_s30  ;;  %v3744_v13 = vmul.f32 0.5, %v15548_v9 }
 0xa8e   :  { %v3819_v23 = vpop.permute.xlu1 %3818  ;;  %3892 = vrot.lane.b32.xlu0 %v3860_v3, %s16744_s30  ;;  %v18494_v51 = vadd.f32 0.5, %v3745_v33 }
 0xa8f   :  { %v3863_v45 = vmul.f32 %v3819_v23, %v18452_v22  ;;  %v3817_v8 = vpop.permute.xlu0 %3816  ;;  %v15550_v23 = vpop.eup %15549 }
 0xa90   :  { %v3862_v46 = vmul.f32 %v3817_v8, %v18455_v28  ;;  %v18489_v8 = vadd.f32 0.5, %v3742_v58  ;;  %v15552_v18 = vpop.eup %15551  ;;  %v3747_v25 = vmul.f32 0.5, %v15550_v23  ;;  %v3785_v23 = vmul.f32 %v18462_v26, %v18207_v63 }
 0xa91   :  { %3898 = vrot.lane.b32.xlu1 %v3863_v45, %s16744_s30  ;;  %v3786_v63 = vmul.f32 %v18473_v39, %v18219_v15  ;;  %v3788_v15 = vmul.f32 %v18481_v55, %v18231_v16 }
 0xa92   :  { %v3823_v50 = vpop.permute.xlu1 %3822  ;;  %3896 = vrot.lane.b32.xlu0 %v3862_v46, %s16744_s30  ;;  %v18502_v29 = vadd.f32 0.5, %v3747_v25  ;;  %v3790_v16 = vmul.f32 %v18489_v8, %v18243_v7 }
 0xa93   :  { %v3865_v20 = vmul.f32 %v3823_v50, %v18462_v26  ;;  %v3821_v60 = vpop.permute.xlu0 %3820  ;;  %v3746_v50 = vmul.f32 0.5, %v15552_v18 }
 0xa94   :  { %v3864_v32 = vmul.f32 %v3821_v60, %v18465_v48 }
 0xa95   :  { %3902 = vrot.lane.b32.xlu1 %v3865_v20, %s16744_s30  ;;  %v18497_v20 = vadd.f32 0.5, %v3744_v13 }
 0xa96   :  { %v3827_v42 = vpop.permute.xlu1 %3826  ;;  %3900 = vrot.lane.b32.xlu0 %v3864_v32, %s16744_s30 }
 0xa97   :  { %v3867_v47 = vmul.f32 %v3827_v42, %v18470_v5  ;;  %v3825_v44 = vpop.permute.xlu0 %3824  ;;  %v18505_v42 = vadd.f32 0.5, %v3746_v50  ;;  %v3792_v7 = vmul.f32 %v18497_v20, %v18255_v54 }
 0xa98   :  { %v3866_v49 = vmul.f32 %v3825_v44, %v18473_v39 }
 0xa99   :  { %3906 = vrot.lane.b32.xlu1 %v3867_v47, %s16744_s30  ;;  %v3794_v54 = vmul.f32 %v18505_v42, %v18267_v21 }
 0xa9a   :  { %v3831_v31 = vpop.permute.xlu1 %3830  ;;  %3904 = vrot.lane.b32.xlu0 %v3866_v49, %s16744_s30  ;;  %v3781_v49 = vmul.f32 %v18443_v56, %v18187_v59  ;;  %v3782_v59 = vmul.f32 %v18455_v28, %v18199_v38 }
 0xa9b   :  { %v3869_v3 = vmul.f32 %v3831_v31, %v18478_v2  ;;  %v3829_v61 = vpop.permute.xlu0 %3828 }
 0xa9c   :  { %v3868_v53 = vmul.f32 %v3829_v61, %v18481_v55 }
 0xa9d   :  { %3910 = vrot.lane.b32.xlu1 %v3869_v3, %s16744_s30  ;;  %v3783_v3 = vmul.f32 %v18452_v22, %v18197_v0  ;;  %v3784_v0 = vmul.f32 %v18465_v48, %v18209_v36 }
 0xa9e   :  { %v3835_v45 = vpop.permute.xlu1 %3834  ;;  %3908 = vrot.lane.b32.xlu0 %v3868_v53, %s16744_s30 }
 0xa9f   :  { %v3871_v46 = vmul.f32 %v3835_v45, %v18486_v4  ;;  %v3833_v41 = vpop.permute.xlu0 %3832 }
 0xaa0   :  { %v3870_v24 = vmul.f32 %v3833_v41, %v18489_v8 }
 0xaa1   :  { %3914 = vrot.lane.b32.xlu1 %v3871_v46, %s16744_s30  ;;  %v3787_v46 = vmul.f32 %v18470_v5, %v18217_v35  ;;  %v3789_v35 = vmul.f32 %v18478_v2, %v18229_v10  ;;  %v3791_v10 = vmul.f32 %v18486_v4, %v18241_v52  ;;  %v3793_v52 = vmul.f32 %v18494_v51, %v18253_v11 }
 0xaa2   :  { %v3839_v40 = vpop.permute.xlu1 %3838  ;;  %3912 = vrot.lane.b32.xlu0 %v3870_v24, %s16744_s30  ;;  %v3795_v11 = vmul.f32 %v18502_v29, %v18265_v27 }
 0xaa3   :  { %v3873_v60 = vmul.f32 %v3839_v40, %v18494_v51  ;;  %v3837_v32 = vpop.permute.xlu0 %3836 }
 0xaa4   :  { %v3872_v34 = vmul.f32 %v3837_v32, %v18497_v20 }
 0xaa5   :  { %3918 = vrot.lane.b32.xlu1 %v3873_v60, %s16744_s30 }
 0xaa6   :  { %v3843_v17 = vpop.permute.xlu1 %3842  ;;  %3916 = vrot.lane.b32.xlu0 %v3872_v34, %s16744_s30 }
 0xaa7   :  { %v3875_v57 = vmul.f32 %v3843_v17, %v18502_v29  ;;  %v3841_v47 = vpop.permute.xlu0 %3840 }
 0xaa8   :  { %v3874_v44 = vmul.f32 %v3841_v47, %v18505_v42 }
 0xaa9   :  { %3922 = vrot.lane.b32.xlu1 %v3875_v57, %s16744_s30 }
 0xaaa   :  { %3920 = vrot.lane.b32.xlu0 %v3874_v44, %s16744_s30 }
 0xaff   :  { %v3895_v30 = vpop.permute.xlu1 %3894 }
 0xb00   :  { %v18515_v58 = vadd.f32 %v3895_v30, %v3781_v49  ;;  %v3893_v31 = vpop.permute.xlu0 %3892 }
 0xb01   :  { %v18517_v9 = vadd.f32 %v3893_v31, %v3780_v43 }
 0xb02   :  { %15553 = vtanh.f32 %v18515_v58 }
 0xb03   :  { %15555 = vtanh.f32 %v18517_v9  ;;  %v3899_v61 = vpop.permute.xlu1 %3898 }
 0xb04   :  { %v18525_v53 = vadd.f32 %v3899_v61, %v3783_v3  ;;  %v3897_v33 = vpop.permute.xlu0 %3896 }
 0xb05   :  { %v18527_v12 = vadd.f32 %v3897_v33, %v3782_v59 }
 0xb06   :  { %15557 = vtanh.f32 %v18525_v53 }
 0xb07   :  { %15559 = vtanh.f32 %v18527_v12  ;;  %v3903_v13 = vpop.permute.xlu1 %3902 }
 0xb08   :  { %v18535_v45 = vadd.f32 %v3903_v13, %v3785_v23  ;;  %v3901_v18 = vpop.permute.xlu0 %3900 }
 0xb09   :  { %v18537_v38 = vadd.f32 %v3901_v18, %v3784_v0 }
 0xb0a   :  { %15561 = vtanh.f32 %v18535_v45 }
 0xb0b   :  { %15563 = vtanh.f32 %v18537_v38  ;;  %v3907_v41 = vpop.permute.xlu1 %3906 }
 0xb0c   :  { %v15554_v24 = vpop.eup %15553  ;;  %v18545_v25 = vadd.f32 %v3907_v41, %v3787_v46  ;;  %v3905_v36 = vpop.permute.xlu0 %3904 }
 0xb0d   :  { %v15556_v50 = vpop.eup %15555  ;;  %v18547_v40 = vadd.f32 %v3905_v36, %v3786_v63  ;;  %3990 = vrot.lane.b32.xlu1 %v15554_v24, %s16744_s30 }
 0xb0e   :  { %15565 = vtanh.f32 %v18545_v25  ;;  %3988 = vrot.lane.b32.xlu0 %v15556_v50, %s16744_s30 }
 0xb0f   :  { %15567 = vtanh.f32 %v18547_v40  ;;  %v3911_v60 = vpop.permute.xlu1 %3910 }
 0xb10   :  { %v15558_v32 = vpop.eup %15557  ;;  %v18557_v34 = vadd.f32 %v3911_v60, %v3789_v35  ;;  %v3909_v17 = vpop.permute.xlu0 %3908 }
 0xb11   :  { %v15560_v57 = vpop.eup %15559  ;;  %v18559_v47 = vadd.f32 %v3909_v17, %v3788_v15  ;;  %3994 = vrot.lane.b32.xlu1 %v15558_v32, %s16744_s30 }
 0xb12   :  { %15569 = vtanh.f32 %v18557_v34  ;;  %3992 = vrot.lane.b32.xlu0 %v15560_v57, %s16744_s30 }
 0xb13   :  { %15571 = vtanh.f32 %v18559_v47  ;;  %v3915_v44 = vpop.permute.xlu1 %3914 }
 0xb14   :  { %v15562_v49 = vpop.eup %15561  ;;  %v18569_v30 = vadd.f32 %v3915_v44, %v3791_v10  ;;  %v3913_v43 = vpop.permute.xlu0 %3912 }
 0xb15   :  { %v15564_v31 = vpop.eup %15563  ;;  %v18571_v3 = vadd.f32 %v3913_v43, %v3790_v16  ;;  %3998 = vrot.lane.b32.xlu1 %v15562_v49, %s16744_s30 }
 0xb16   :  { %15573 = vtanh.f32 %v18569_v30  ;;  %3996 = vrot.lane.b32.xlu0 %v15564_v31, %s16744_s30 }
 0xb17   :  { %15575 = vtanh.f32 %v18571_v3  ;;  %v3919_v61 = vpop.permute.xlu1 %3918 }
 0xb18   :  { %v15566_v59 = vpop.eup %15565  ;;  %v18581_v33 = vadd.f32 %v3919_v61, %v3793_v52  ;;  %v3917_v23 = vpop.permute.xlu0 %3916 }
 0xb19   :  { %v15568_v13 = vpop.eup %15567  ;;  %v18583_v0 = vadd.f32 %v3917_v23, %v3792_v7  ;;  %4002 = vrot.lane.b32.xlu1 %v15566_v59, %s16744_s30 }
 0xb1a   :  { %15577 = vtanh.f32 %v18581_v33  ;;  %4000 = vrot.lane.b32.xlu0 %v15568_v13, %s16744_s30 }
 0xb1b   :  { %15579 = vtanh.f32 %v18583_v0  ;;  %v3923_v18 = vpop.permute.xlu1 %3922 }
 0xb1c   :  { %v15570_v46 = vpop.eup %15569  ;;  %v18593_v41 = vadd.f32 %v3923_v18, %v3795_v11  ;;  %v3921_v63 = vpop.permute.xlu0 %3920 }
 0xb1d   :  { %v15572_v24 = vpop.eup %15571  ;;  %v18595_v36 = vadd.f32 %v3921_v63, %v3794_v54  ;;  %4006 = vrot.lane.b32.xlu1 %v15570_v46, %s16744_s30 }
 0xb1e   :  { %15581 = vtanh.f32 %v18593_v41  ;;  %4004 = vrot.lane.b32.xlu0 %v15572_v24, %s16744_s30 }
 0xb1f   :  { %15583 = vtanh.f32 %v18595_v36 }
 0xb20   :  { %v15574_v27 = vpop.eup %15573 }
 0xb21   :  { %v15576_v50 = vpop.eup %15575  ;;  %4010 = vrot.lane.b32.xlu1 %v15574_v27, %s16744_s30 }
 0xb22   :  { %4008 = vrot.lane.b32.xlu0 %v15576_v50, %s16744_s30 }
 0xb24   :  { %v15578_v21 = vpop.eup %15577 }
 0xb25   :  { %v15580_v35 = vpop.eup %15579  ;;  %4014 = vrot.lane.b32.xlu1 %v15578_v21, %s16744_s30 }
 0xb26   :  { %4012 = vrot.lane.b32.xlu0 %v15580_v35, %s16744_s30 }
 0xb28   :  { %v15582_v60 = vpop.eup %15581 }
 0xb29   :  { %v15584_v15 = vpop.eup %15583  ;;  %4018 = vrot.lane.b32.xlu1 %v15582_v60, %s16744_s30 }
 0xb2a   :  { %4016 = vrot.lane.b32.xlu0 %v15584_v15, %s16744_s30 }
 0xb7f   :  { %v3991_v32 = vpop.permute.xlu1 %3990 }
 0xb80   :  { %v4037_v17 = vmul.f32 %v3991_v32, %v18443_v56  ;;  %v3989_v57 = vpop.permute.xlu0 %3988 }
 0xb81   :  { %v4036_v10 = vmul.f32 %v3989_v57, %v18445_v62 }
 0xb82   :  { %4070 = vrot.lane.b32.xlu1 %v4037_v17, %s16745_s0 }
 0xb83   :  { %v3995_v44 = vpop.permute.xlu1 %3994  ;;  %4068 = vrot.lane.b32.xlu0 %v4036_v10, %s16745_s0 }
 0xb84   :  { %v4039_v16 = vmul.f32 %v3995_v44, %v18452_v22  ;;  %v3993_v49 = vpop.permute.xlu0 %3992 }
 0xb85   :  { %v4038_v43 = vmul.f32 %v3993_v49, %v18455_v28  ;;  %v18682_v49 = vld [vmem:[%s22460_s3] ss:$0 sm:$0xff] }
 0xb86   :  { %4074 = vrot.lane.b32.xlu1 %v4039_v16, %s16745_s0 }
 0xb87   :  { %v3999_v31 = vpop.permute.xlu1 %3998  ;;  %4072 = vrot.lane.b32.xlu0 %v4038_v43, %s16745_s0 }
 0xb88   :  { %v4041_v56 = vmul.f32 %v3999_v31, %v18462_v26  ;;  %v3997_v52 = vpop.permute.xlu0 %3996 }
 0xb89   :  { %v4040_v62 = vmul.f32 %v3997_v52, %v18465_v48 }
 0xb8a   :  { %4078 = vrot.lane.b32.xlu1 %v4041_v56, %s16745_s0 }
 0xb8b   :  { %v4003_v61 = vpop.permute.xlu1 %4002  ;;  %4076 = vrot.lane.b32.xlu0 %v4040_v62, %s16745_s0 }
 0xb8c   :  { %v4043_v22 = vmul.f32 %v4003_v61, %v18470_v5  ;;  %v4001_v7 = vpop.permute.xlu0 %4000 }
 0xb8d   :  { %v4042_v28 = vmul.f32 %v4001_v7, %v18473_v39 }
 0xb8e   :  { %4082 = vrot.lane.b32.xlu1 %v4043_v22, %s16745_s0 }
 0xb8f   :  { %v4007_v59 = vpop.permute.xlu1 %4006  ;;  %4080 = vrot.lane.b32.xlu0 %v4042_v28, %s16745_s0 }
 0xb90   :  { %v4045_v26 = vmul.f32 %v4007_v59, %v18478_v2  ;;  %v4005_v23 = vpop.permute.xlu0 %4004 }
 0xb91   :  { %v4044_v48 = vmul.f32 %v4005_v23, %v18481_v55 }
 0xb92   :  { %4086 = vrot.lane.b32.xlu1 %v4045_v26, %s16745_s0 }
 0xb93   :  { %v4011_v13 = vpop.permute.xlu1 %4010  ;;  %4084 = vrot.lane.b32.xlu0 %v4044_v48, %s16745_s0 }
 0xb94   :  { %v4047_v5 = vmul.f32 %v4011_v13, %v18486_v4  ;;  %v4009_v11 = vpop.permute.xlu0 %4008 }
 0xb95   :  { %v4046_v39 = vmul.f32 %v4009_v11, %v18489_v8 }
 0xb96   :  { %4090 = vrot.lane.b32.xlu1 %v4047_v5, %s16745_s0 }
 0xb97   :  { %v4015_v18 = vpop.permute.xlu1 %4014  ;;  %4088 = vrot.lane.b32.xlu0 %v4046_v39, %s16745_s0 }
 0xb98   :  { %v4049_v2 = vmul.f32 %v4015_v18, %v18494_v51  ;;  %v4013_v54 = vpop.permute.xlu0 %4012 }
 0xb99   :  { %v4048_v55 = vmul.f32 %v4013_v54, %v18497_v20 }
 0xb9a   :  { %4094 = vrot.lane.b32.xlu1 %v4049_v2, %s16745_s0 }
 0xb9b   :  { %v4019_v46 = vpop.permute.xlu1 %4018  ;;  %4092 = vrot.lane.b32.xlu0 %v4048_v55, %s16745_s0 }
 0xb9c   :  { %v4051_v4 = vmul.f32 %v4019_v46, %v18502_v29  ;;  %v4017_v63 = vpop.permute.xlu0 %4016 }
 0xb9d   :  { %v4050_v8 = vmul.f32 %v4017_v63, %v18505_v42 }
 0xb9e   :  { %4098 = vrot.lane.b32.xlu1 %v4051_v4, %s16745_s0 }
 0xb9f   :  { %4096 = vrot.lane.b32.xlu0 %v4050_v8, %s16745_s0 }
 0xbf4   :  { %v4071_v24 = vpop.permute.xlu1 %4070 }
 0xbf5   :  { %v4069_v27 = vpop.permute.xlu0 %4068 }
 0xbf6   :  { %13916 = vmatprep.mubr.msk.f32.mxu1 %vm1267_vm1, %v4069_v27  ;;  %13948 = vmatprep.mubr.msk.f32.mxu0 %vm1267_vm1, %v4069_v27 }
 0xbf7   :  { %13917 = vmatmul.mubr.msk.f32.vlgmr.msra.gmra.mrb[56].mxu1 %vm1267_vm1, %v4071_v24  ;;  %13949 = vmatmul.mubr.msk.f32.vlgmr.msra.gmra.mrb[64].mxu0 %vm1267_vm1, %v4071_v24 }
 0xbf8   :  { %v4075_v51 = vpop.permute.xlu1 %4074  ;;  %14567 = vmatpush3.bf16.msra.mxu0 %v16815_v6  ;;  %14559 = vmatpush3.bf16.msra.mxu1 %v17582_v14 }
 0xbf9   :  { %v4073_v20 = vpop.permute.xlu0 %4072  ;;  %14569 = vmatprep.subr.bf16.mxu0 %v16866_v19  ;;  %14561 = vmatprep.subr.bf16.mxu1 %v17613_v37 }
 0xbfa   :  { %13919 = vmatprep.mubr.msk.f32.mxu1 %vm1267_vm1, %v4073_v20  ;;  %13951 = vmatprep.mubr.msk.f32.mxu0 %vm1267_vm1, %v4073_v20 }
 0xbfb   :  { %13920 = vmatmul.mubr.msk.f32.gmra.mrb[58].mxu1 %vm1267_vm1, %v4075_v51  ;;  %13952 = vmatmul.mubr.msk.f32.gmra.mrb[66].mxu0 %vm1267_vm1, %v4075_v51 }
 0xbfc   :  { %v4079_v29 = vpop.permute.xlu1 %4078  ;;  %14571 = vmatpush3.bf16.msra.mxu0 %v16866_v19  ;;  %14563 = vmatpush3.bf16.msra.mxu1 %v17613_v37 }
 0xbfd   :  { %v4077_v42 = vpop.permute.xlu0 %4076  ;;  %14581 = vmatprep.subr.bf16.mxu0 %v16815_v6  ;;  %14573 = vmatprep.subr.bf16.mxu1 %v17582_v14 }
 0xbfe   :  { %13922 = vmatprep.mubr.msk.f32.mxu1 %vm1267_vm1, %v4077_v42  ;;  %13954 = vmatprep.mubr.msk.f32.mxu0 %vm1267_vm1, %v4077_v42 }
 0xbff   :  { %13923 = vmatmul.mubr.msk.f32.gmra.mrb[60].mxu1 %vm1267_vm1, %v4079_v29  ;;  %13955 = vmatmul.mubr.msk.f32.gmra.mrb[68].mxu0 %vm1267_vm1, %v4079_v29 }
 0xc00   :  { %v4083_v50 = vpop.permute.xlu1 %4082 }
 0xc01   :  { %v4081_v21 = vpop.permute.xlu0 %4080 }
 0xc02   :  { %13925 = vmatprep.mubr.msk.f32.mxu1 %vm1267_vm1, %v4081_v21  ;;  %13957 = vmatprep.mubr.msk.f32.mxu0 %vm1267_vm1, %v4081_v21 }
 0xc03   :  { %13926 = vmatmul.mubr.msk.f32.gmra.mrb[62].mxu1 %vm1267_vm1, %v4083_v50  ;;  %13958 = vmatmul.mubr.msk.f32.gmra.mrb[70].mxu0 %vm1267_vm1, %v4083_v50 }
 0xc04   :  { %v4087_v35 = vpop.permute.xlu1 %4086 }
 0xc05   :  { %v4085_v60 = vpop.permute.xlu0 %4084 }
 0xc06   :  { %13928 = vmatprep.mubr.msk.f32.mxu1 %vm1267_vm1, %v4085_v60  ;;  %13960 = vmatprep.mubr.msk.f32.mxu0 %vm1267_vm1, %v4085_v60 }
 0xc07   :  { %13929 = vmatmul.mubr.msk.f32.gmra.mrb[64].mxu1 %vm1267_vm1, %v4087_v35  ;;  %13961 = vmatmul.mubr.msk.f32.gmra.mrb[72].mxu0 %vm1267_vm1, %v4087_v35 }
 0xc08   :  { %v4091_v15 = vpop.permute.xlu1 %4090 }
 0xc09   :  { %v4089_v32 = vpop.permute.xlu0 %4088 }
 0xc0a   :  { %13931 = vmatprep.mubr.msk.f32.mxu1 %vm1267_vm1, %v4089_v32  ;;  %13963 = vmatprep.mubr.msk.f32.mxu0 %vm1267_vm1, %v4089_v32 }
 0xc0b   :  { %13932 = vmatmul.mubr.msk.f32.gmra.mrb[66].mxu1 %vm1267_vm1, %v4091_v15  ;;  %13964 = vmatmul.mubr.msk.f32.gmra.mrb[74].mxu0 %vm1267_vm1, %v4091_v15 }
 0xc0c   :  { %v4095_v17 = vpop.permute.xlu1 %4094 }
 0xc0d   :  { %v4093_v57 = vpop.permute.xlu0 %4092 }
 0xc0e   :  { %13934 = vmatprep.mubr.msk.f32.mxu1 %vm1267_vm1, %v4093_v57  ;;  %13966 = vmatprep.mubr.msk.f32.mxu0 %vm1267_vm1, %v4093_v57 }
 0xc0f   :  { %13935 = vmatmul.mubr.msk.f32.gmra.mrb[68].mxu1 %vm1267_vm1, %v4095_v17  ;;  %13967 = vmatmul.mubr.msk.f32.gmra.mrb[76].mxu0 %vm1267_vm1, %v4095_v17 }
 0xc10   :  { %v4099_v44 = vpop.permute.xlu1 %4098 }
 0xc11   :  { %v4097_v10 = vpop.permute.xlu0 %4096 }
 0xc12   :  { %13937 = vmatprep.mubr.msk.f32.mxu1 %vm1267_vm1, %v4097_v10  ;;  %13969 = vmatprep.mubr.msk.f32.mxu0 %vm1267_vm1, %v4097_v10 }
 0xc13   :  { %13938 = vmatmul.mubr.msk.f32.gmra.mrb[70].mxu1 %vm1267_vm1, %v4099_v44  ;;  %13970 = vmatmul.mubr.msk.f32.gmra.mrb[78].mxu0 %vm1267_vm1, %v4099_v44 }
 0xcca   :  { %v13950_v16 = vpop.f32.mrb[64].mxu0 }
 0xccb   :  { %v18685_v43 = vadd.f32 %v18682_v49, %v13950_v16  ;;  %v4359_v31 = vpop.f32.mrb[65].mxu0 }
 0xccc   :  { %v18688_v56 = vadd.f32 %v18682_v49, %v4359_v31 }
 0xccd   :  { %15585 = vtanh.f32 %v18685_v43 }
 0xcce   :  { %15587 = vtanh.f32 %v18688_v56  ;;  %v13953_v52 = vpop.f32.mrb[66].mxu0 }
 0xccf   :  { %v18693_v62 = vadd.f32 %v18682_v49, %v13953_v52  ;;  %v4369_v61 = vpop.f32.mrb[67].mxu0 }
 0xcd0   :  { %v18696_v22 = vadd.f32 %v18682_v49, %v4369_v61 }
 0xcd1   :  { %15589 = vtanh.f32 %v18693_v62 }
 0xcd2   :  { %15591 = vtanh.f32 %v18696_v22  ;;  %v13956_v7 = vpop.f32.mrb[68].mxu0 }
 0xcd3   :  { %v18701_v28 = vadd.f32 %v18682_v49, %v13956_v7  ;;  %v4379_v59 = vpop.f32.mrb[69].mxu0 }
 0xcd4   :  { %v18704_v26 = vadd.f32 %v18682_v49, %v4379_v59 }
 0xcd5   :  { %15593 = vtanh.f32 %v18701_v28 }
 0xcd6   :  { %15595 = vtanh.f32 %v18704_v26  ;;  %v13959_v23 = vpop.f32.mrb[70].mxu0 }
 0xcd7   :  { %v15586_v48 = vpop.eup %15585  ;;  %v18709_v13 = vadd.f32 %v18682_v49, %v13959_v23  ;;  %v4389_v5 = vpop.f32.mrb[71].mxu0  ;;  %v4455_v23 = vmul.f32 0.5, %v18685_v43 }
 0xcd8   :  { %v15588_v11 = vpop.eup %15587  ;;  %v18712_v39 = vadd.f32 %v18682_v49, %v4389_v5  ;;  %4568 = vrot.lane.b32.xlu1 %v15586_v48, %s16744_s30  ;;  %v4454_v48 = vmul.f32 0.5, %v18688_v56  ;;  %v4457_v5 = vmul.f32 0.5, %v18693_v62 }
 0xcd9   :  { %15597 = vtanh.f32 %v18709_v13  ;;  %4566 = vrot.lane.b32.xlu0 %v15588_v11, %s16744_s30  ;;  %v4456_v11 = vmul.f32 0.5, %v18696_v22 }
 0xcda   :  { %15599 = vtanh.f32 %v18712_v39  ;;  %v13962_v18 = vpop.f32.mrb[72].mxu0  ;;  %v4460_v43 = vmul.f32 0.5, %v18712_v39 }
 0xcdb   :  { %v15590_v2 = vpop.eup %15589  ;;  %v18719_v54 = vadd.f32 %v18682_v49, %v13962_v18  ;;  %v4399_v55 = vpop.f32.mrb[73].mxu0  ;;  %v4459_v18 = vmul.f32 0.5, %v18701_v28 }
 0xcdc   :  { %v15592_v46 = vpop.eup %15591  ;;  %v18722_v4 = vadd.f32 %v18682_v49, %v4399_v55  ;;  %4572 = vrot.lane.b32.xlu1 %v15590_v2, %s16744_s30  ;;  %v4458_v2 = vmul.f32 0.5, %v18704_v26  ;;  %v4461_v55 = vmul.f32 0.5, %v18709_v13 }
 0xcdd   :  { %15601 = vtanh.f32 %v18719_v54  ;;  %4570 = vrot.lane.b32.xlu0 %v15592_v46, %s16744_s30  ;;  %v4463_v62 = vmul.f32 0.5, %v18719_v54 }
 0xcde   :  { %15603 = vtanh.f32 %v18722_v4  ;;  %v13965_v63 = vpop.f32.mrb[74].mxu0  ;;  %v4462_v22 = vmul.f32 0.5, %v18722_v4 }
 0xcdf   :  { %v15594_v8 = vpop.eup %15593  ;;  %v18729_v24 = vadd.f32 %v18682_v49, %v13965_v63  ;;  %v4409_v27 = vpop.f32.mrb[75].mxu0 }
 0xce0   :  { %v15596_v51 = vpop.eup %15595  ;;  %v18732_v20 = vadd.f32 %v18682_v49, %v4409_v27  ;;  %4576 = vrot.lane.b32.xlu1 %v15594_v8, %s16744_s30 }
 0xce1   :  { %15605 = vtanh.f32 %v18729_v24  ;;  %4574 = vrot.lane.b32.xlu0 %v15596_v51, %s16744_s30  ;;  %v4465_v26 = vmul.f32 0.5, %v18729_v24 }
 0xce2   :  { %15607 = vtanh.f32 %v18732_v20  ;;  %v13968_v29 = vpop.f32.mrb[76].mxu0  ;;  %v4464_v13 = vmul.f32 0.5, %v18732_v20 }
 0xce3   :  { %v15598_v42 = vpop.eup %15597  ;;  %v18739_v50 = vadd.f32 %v18682_v49, %v13968_v29  ;;  %v4419_v21 = vpop.f32.mrb[77].mxu0 }
 0xce4   :  { %v15600_v35 = vpop.eup %15599  ;;  %v18742_v60 = vadd.f32 %v18682_v49, %v4419_v21  ;;  %4580 = vrot.lane.b32.xlu1 %v15598_v42, %s16744_s30 }
 0xce5   :  { %15609 = vtanh.f32 %v18739_v50  ;;  %4578 = vrot.lane.b32.xlu0 %v15600_v35, %s16744_s30 }
 0xce6   :  { %15611 = vtanh.f32 %v18742_v60  ;;  %v13971_v15 = vpop.f32.mrb[78].mxu0  ;;  %v4466_v20 = vmul.f32 0.5, %v18742_v60 }
 0xce7   :  { %v15602_v32 = vpop.eup %15601  ;;  %v18749_v17 = vadd.f32 %v18682_v49, %v13971_v15  ;;  %v4429_v57 = vpop.f32.mrb[79].mxu0 }
 0xce8   :  { %v15604_v10 = vpop.eup %15603  ;;  %v18752_v44 = vadd.f32 %v18682_v49, %v4429_v57  ;;  %4584 = vrot.lane.b32.xlu1 %v15602_v32, %s16744_s30  ;;  %v4467_v32 = vmul.f32 0.5, %v18739_v50 }
 0xce9   :  { %15613 = vtanh.f32 %v18749_v17  ;;  %4582 = vrot.lane.b32.xlu0 %v15604_v10, %s16744_s30 }
 0xcea   :  { %15615 = vtanh.f32 %v18752_v44 }
 0xceb   :  { %v15606_v16 = vpop.eup %15605  ;;  %15617 = vtanh.f32 %v4455_v23  ;;  %v4469_v23 = vmul.f32 0.5, %v18749_v17 }
 0xcec   :  { %v15608_v31 = vpop.eup %15607  ;;  %4588 = vrot.lane.b32.xlu1 %v15606_v16, %s16744_s30  ;;  %15619 = vtanh.f32 %v4454_v48 }
 0xced   :  { %4586 = vrot.lane.b32.xlu0 %v15608_v31, %s16744_s30  ;;  %15621 = vtanh.f32 %v4457_v5  ;;  %v4468_v5 = vmul.f32 0.5, %v18752_v44 }
 0xcee   :  { %15623 = vtanh.f32 %v4456_v11 }
 0xcef   :  { %v15610_v52 = vpop.eup %15609  ;;  %15625 = vtanh.f32 %v4459_v18 }
 0xcf0   :  { %v15612_v61 = vpop.eup %15611  ;;  %4592 = vrot.lane.b32.xlu1 %v15610_v52, %s16744_s30  ;;  %15627 = vtanh.f32 %v4458_v2 }
 0xcf1   :  { %4590 = vrot.lane.b32.xlu0 %v15612_v61, %s16744_s30  ;;  %15629 = vtanh.f32 %v4461_v55 }
 0xcf2   :  { %15631 = vtanh.f32 %v4460_v43 }
 0xcf3   :  { %v15614_v7 = vpop.eup %15613  ;;  %15633 = vtanh.f32 %v4463_v62 }
 0xcf4   :  { %v15616_v59 = vpop.eup %15615  ;;  %4596 = vrot.lane.b32.xlu1 %v15614_v7, %s16744_s30  ;;  %15635 = vtanh.f32 %v4462_v22 }
 0xcf5   :  { %4594 = vrot.lane.b32.xlu0 %v15616_v59, %s16744_s30  ;;  %v15618_v46 = vpop.eup %15617  ;;  %15637 = vtanh.f32 %v4465_v26 }
 0xcf6   :  { %v15620_v56 = vpop.eup %15619  ;;  %v4487_v63 = vmul.f32 0.5, %v15618_v46  ;;  %15639 = vtanh.f32 %v4464_v13 }
 0xcf7   :  { %v15622_v8 = vpop.eup %15621  ;;  %v4486_v28 = vmul.f32 0.5, %v15620_v56  ;;  %15641 = vtanh.f32 %v4467_v32 }
 0xcf8   :  { %v15624_v27 = vpop.eup %15623  ;;  %v4489_v51 = vmul.f32 0.5, %v15622_v8  ;;  %v18776_v39 = vadd.f32 0.5, %v4487_v63  ;;  %15643 = vtanh.f32 %v4466_v20 }
 0xcf9   :  { %v15626_v29 = vpop.eup %15625  ;;  %v4488_v42 = vmul.f32 0.5, %v15624_v27  ;;  %v18778_v54 = vadd.f32 0.5, %v4486_v28  ;;  %15645 = vtanh.f32 %v4469_v23 }
 0xcfa   :  { %v15628_v35 = vpop.eup %15627  ;;  %v4491_v57 = vmul.f32 0.5, %v15626_v29  ;;  %v18785_v10 = vadd.f32 0.5, %v4489_v51  ;;  %15647 = vtanh.f32 %v4468_v5 }
 0xcfb   :  { %v15630_v16 = vpop.eup %15629  ;;  %v4490_v31 = vmul.f32 0.5, %v15628_v35  ;;  %v18788_v61 = vadd.f32 0.5, %v4488_v42 }
 0xcfc   :  { %v15632_v7 = vpop.eup %15631  ;;  %v4493_v48 = vmul.f32 0.5, %v15630_v16  ;;  %v18795_v11 = vadd.f32 0.5, %v4491_v57 }
 0xcfd   :  { %v15634_v18 = vpop.eup %15633  ;;  %v4492_v2 = vmul.f32 0.5, %v15632_v7  ;;  %v18798_v43 = vadd.f32 0.5, %v4490_v31 }
 0xcfe   :  { %v15636_v46 = vpop.eup %15635  ;;  %v4495_v63 = vmul.f32 0.5, %v15634_v18  ;;  %v18803_v44 = vadd.f32 0.5, %v4493_v48 }
 0xcff   :  { %v15638_v22 = vpop.eup %15637  ;;  %v4494_v8 = vmul.f32 0.5, %v15636_v46  ;;  %v18806_v27 = vadd.f32 0.5, %v4492_v2 }
 0xd00   :  { %v15640_v26 = vpop.eup %15639  ;;  %v4497_v42 = vmul.f32 0.5, %v15638_v22 }
 0xd01   :  { %v15642_v35 = vpop.eup %15641  ;;  %v18814_v32 = vadd.f32 0.5, %v4494_v8 }
 0xd02   :  { %v4499_v31 = vmul.f32 0.5, %v15642_v35 }
 0xd4a   :  { %v4569_v21 = vpop.permute.xlu1 %4568 }
 0xd4b   :  { %v4615_v4 = vmul.f32 %v4569_v21, %v18776_v39  ;;  %v4567_v15 = vpop.permute.xlu0 %4566  ;;  %v18811_v21 = vadd.f32 0.5, %v4495_v63 }
 0xd4c   :  { %v4614_v24 = vmul.f32 %v4567_v15, %v18778_v54 }
 0xd4d   :  { %4648 = vrot.lane.b32.xlu1 %v4615_v4, %s16744_s30  ;;  %v4496_v4 = vmul.f32 0.5, %v15640_v26 }
 0xd4e   :  { %v4573_v52 = vpop.permute.xlu1 %4572  ;;  %4646 = vrot.lane.b32.xlu0 %v4614_v24, %s16744_s30  ;;  %v15644_v24 = vpop.eup %15643 }
 0xd4f   :  { %v4617_v50 = vmul.f32 %v4573_v52, %v18785_v10  ;;  %v4571_v59 = vpop.permute.xlu0 %4570  ;;  %v18819_v52 = vadd.f32 0.5, %v4497_v42  ;;  %v15646_v7 = vpop.eup %15645  ;;  %v18822_v23 = vadd.f32 0.5, %v4496_v4  ;;  %v4535_v42 = vmul.f32 %v18776_v39, %v18515_v58 }
 0xd50   :  { %v4616_v60 = vmul.f32 %v4571_v59, %v18788_v61  ;;  %v4501_v2 = vmul.f32 0.5, %v15646_v7  ;;  %v4534_v4 = vmul.f32 %v18778_v54, %v18517_v9  ;;  %v4536_v58 = vmul.f32 %v18788_v61, %v18527_v12 }
 0xd51   :  { %4652 = vrot.lane.b32.xlu1 %v4617_v50, %s16744_s30  ;;  %v4498_v50 = vmul.f32 0.5, %v15644_v24 }
 0xd52   :  { %v4577_v55 = vpop.permute.xlu1 %4576  ;;  %4650 = vrot.lane.b32.xlu0 %v4616_v60, %s16744_s30  ;;  %v15648_v60 = vpop.eup %15647  ;;  %v18835_v8 = vadd.f32 0.5, %v4501_v2 }
 0xd53   :  { %v4619_v17 = vmul.f32 %v4577_v55, %v18795_v11  ;;  %v4575_v56 = vpop.permute.xlu0 %4574  ;;  %v18827_v55 = vadd.f32 0.5, %v4499_v31  ;;  %v4500_v46 = vmul.f32 0.5, %v15648_v60 }
 0xd54   :  { %v4618_v62 = vmul.f32 %v4575_v56, %v18798_v43  ;;  %v18830_v56 = vadd.f32 0.5, %v4498_v50  ;;  %v4539_v50 = vmul.f32 %v18795_v11, %v18535_v45  ;;  %v4540_v45 = vmul.f32 %v18806_v27, %v18547_v40 }
 0xd55   :  { %4656 = vrot.lane.b32.xlu1 %v4619_v17, %s16744_s30  ;;  %v18838_v26 = vadd.f32 0.5, %v4500_v46  ;;  %v4542_v40 = vmul.f32 %v18814_v32, %v18559_v47  ;;  %v4544_v47 = vmul.f32 %v18822_v23, %v18571_v3 }
 0xd56   :  { %v4581_v28 = vpop.permute.xlu1 %4580  ;;  %4654 = vrot.lane.b32.xlu0 %v4618_v62, %s16744_s30  ;;  %v4546_v3 = vmul.f32 %v18830_v56, %v18583_v0 }
 0xd57   :  { %v4621_v51 = vmul.f32 %v4581_v28, %v18803_v44  ;;  %v4579_v13 = vpop.permute.xlu0 %4578  ;;  %v4548_v0 = vmul.f32 %v18838_v26, %v18595_v36 }
 0xd58   :  { %v4620_v29 = vmul.f32 %v4579_v13, %v18806_v27 }
 0xd59   :  { %4660 = vrot.lane.b32.xlu1 %v4621_v51, %s16744_s30 }
 0xd5a   :  { %v4585_v15 = vpop.permute.xlu1 %4584  ;;  %4658 = vrot.lane.b32.xlu0 %v4620_v29, %s16744_s30 }
 0xd5b   :  { %v4623_v57 = vmul.f32 %v4585_v15, %v18811_v21  ;;  %v4583_v20 = vpop.permute.xlu0 %4582 }
 0xd5c   :  { %v4622_v16 = vmul.f32 %v4583_v20, %v18814_v32  ;;  %v4537_v20 = vmul.f32 %v18785_v10, %v18525_v53  ;;  %v4538_v53 = vmul.f32 %v18798_v43, %v18537_v38 }
 0xd5d   :  { %4664 = vrot.lane.b32.xlu1 %v4623_v57, %s16744_s30 }
 0xd5e   :  { %v4589_v59 = vpop.permute.xlu1 %4588  ;;  %4662 = vrot.lane.b32.xlu0 %v4622_v16, %s16744_s30 }
 0xd5f   :  { %v4625_v48 = vmul.f32 %v4589_v59, %v18819_v52  ;;  %v4587_v5 = vpop.permute.xlu0 %4586 }
 0xd60   :  { %v4624_v18 = vmul.f32 %v4587_v5, %v18822_v23  ;;  %v4541_v5 = vmul.f32 %v18803_v44, %v18545_v25  ;;  %v4543_v25 = vmul.f32 %v18811_v21, %v18557_v34  ;;  %v4545_v34 = vmul.f32 %v18819_v52, %v18569_v30 }
 0xd61   :  { %4668 = vrot.lane.b32.xlu1 %v4625_v48, %s16744_s30  ;;  %v4547_v30 = vmul.f32 %v18827_v55, %v18581_v33  ;;  %v4549_v33 = vmul.f32 %v18835_v8, %v18593_v41 }
 0xd62   :  { %v4593_v17 = vpop.permute.xlu1 %4592  ;;  %4666 = vrot.lane.b32.xlu0 %v4624_v18, %s16744_s30 }
 0xd63   :  { %v4627_v62 = vmul.f32 %v4593_v17, %v18827_v55  ;;  %v4591_v63 = vpop.permute.xlu0 %4590 }
 0xd64   :  { %v4626_v22 = vmul.f32 %v4591_v63, %v18830_v56 }
 0xd65   :  { %4672 = vrot.lane.b32.xlu1 %v4627_v62, %s16744_s30 }
 0xd66   :  { %v4597_v28 = vpop.permute.xlu1 %4596  ;;  %4670 = vrot.lane.b32.xlu0 %v4626_v22, %s16744_s30 }
 0xd67   :  { %v4629_v51 = vmul.f32 %v4597_v28, %v18835_v8  ;;  %v4595_v13 = vpop.permute.xlu0 %4594 }
 0xd68   :  { %v4628_v29 = vmul.f32 %v4595_v13, %v18838_v26 }
 0xd69   :  { %4676 = vrot.lane.b32.xlu1 %v4629_v51, %s16744_s30 }
 0xd6a   :  { %4674 = vrot.lane.b32.xlu0 %v4628_v29, %s16744_s30 }
 0xdbf   :  { %v4649_v35 = vpop.permute.xlu1 %4648 }
 0xdc0   :  { %v18848_v15 = vadd.f32 %v4649_v35, %v4535_v42  ;;  %v4647_v24 = vpop.permute.xlu0 %4646 }
 0xdc1   :  { %v18850_v57 = vadd.f32 %v4647_v24, %v4534_v4 }
 0xdc2   :  { %15649 = vtanh.f32 %v18848_v15 }
 0xdc3   :  { %15651 = vtanh.f32 %v18850_v57  ;;  %v4653_v16 = vpop.permute.xlu1 %4652 }
 0xdc4   :  { %v18858_v31 = vadd.f32 %v4653_v16, %v4537_v20  ;;  %v4651_v7 = vpop.permute.xlu0 %4650 }
 0xdc5   :  { %v18860_v9 = vadd.f32 %v4651_v7, %v4536_v58 }
 0xdc6   :  { %15653 = vtanh.f32 %v18858_v31 }
 0xdc7   :  { %15655 = vtanh.f32 %v18860_v9  ;;  %v4657_v59 = vpop.permute.xlu1 %4656 }
 0xdc8   :  { %v18868_v60 = vadd.f32 %v4657_v59, %v4539_v50  ;;  %v4655_v48 = vpop.permute.xlu0 %4654 }
 0xdc9   :  { %v18870_v12 = vadd.f32 %v4655_v48, %v4538_v53 }
 0xdca   :  { %15657 = vtanh.f32 %v18868_v60 }
 0xdcb   :  { %15659 = vtanh.f32 %v18870_v12  ;;  %v4661_v18 = vpop.permute.xlu1 %4660 }
 0xdcc   :  { %v15650_v2 = vpop.eup %15649  ;;  %v18878_v46 = vadd.f32 %v4661_v18, %v4541_v5  ;;  %v4659_v38 = vpop.permute.xlu0 %4658 }
 0xdcd   :  { %v15652_v17 = vpop.eup %15651  ;;  %v18880_v62 = vadd.f32 %v4659_v38, %v4540_v45  ;;  %4744 = vrot.lane.b32.xlu1 %v15650_v2, %s16744_s30 }
 0xdce   :  { %15661 = vtanh.f32 %v18878_v46  ;;  %4742 = vrot.lane.b32.xlu0 %v15652_v17, %s16744_s30 }
 0xdcf   :  { %15663 = vtanh.f32 %v18880_v62  ;;  %v4665_v63 = vpop.permute.xlu1 %4664 }
 0xdd0   :  { %v15654_v22 = vpop.eup %15653  ;;  %v18890_v28 = vadd.f32 %v4665_v63, %v4543_v25  ;;  %v4663_v51 = vpop.permute.xlu0 %4662 }
 0xdd1   :  { %v15656_v13 = vpop.eup %15655  ;;  %v18892_v29 = vadd.f32 %v4663_v51, %v4542_v40  ;;  %4748 = vrot.lane.b32.xlu1 %v15654_v22, %s16744_s30 }
 0xdd2   :  { %15665 = vtanh.f32 %v18890_v28  ;;  %4746 = vrot.lane.b32.xlu0 %v15656_v13, %s16744_s30 }
 0xdd3   :  { %15667 = vtanh.f32 %v18892_v29  ;;  %v4669_v42 = vpop.permute.xlu1 %4668 }
 0xdd4   :  { %v15658_v35 = vpop.eup %15657  ;;  %v18902_v4 = vadd.f32 %v4669_v42, %v4545_v34  ;;  %v4667_v24 = vpop.permute.xlu0 %4666 }
 0xdd5   :  { %v15660_v20 = vpop.eup %15659  ;;  %v18904_v16 = vadd.f32 %v4667_v24, %v4544_v47  ;;  %4752 = vrot.lane.b32.xlu1 %v15658_v35, %s16744_s30 }
 0xdd6   :  { %15669 = vtanh.f32 %v18902_v4  ;;  %4750 = vrot.lane.b32.xlu0 %v15660_v20, %s16744_s30 }
 0xdd7   :  { %15671 = vtanh.f32 %v18904_v16  ;;  %v4673_v58 = vpop.permute.xlu1 %4672 }
 0xdd8   :  { %v15662_v7 = vpop.eup %15661  ;;  %v18914_v50 = vadd.f32 %v4673_v58, %v4547_v30  ;;  %v4671_v59 = vpop.permute.xlu0 %4670 }
 0xdd9   :  { %v15664_v53 = vpop.eup %15663  ;;  %v18916_v48 = vadd.f32 %v4671_v59, %v4546_v3  ;;  %4756 = vrot.lane.b32.xlu1 %v15662_v7, %s16744_s30 }
 0xdda   :  { %15673 = vtanh.f32 %v18914_v50  ;;  %4754 = vrot.lane.b32.xlu0 %v15664_v53, %s16744_s30 }
 0xddb   :  { %15675 = vtanh.f32 %v18916_v48  ;;  %v4677_v5 = vpop.permute.xlu1 %4676 }
 0xddc   :  { %v15666_v18 = vpop.eup %15665  ;;  %v18926_v45 = vadd.f32 %v4677_v5, %v4549_v33  ;;  %v4675_v2 = vpop.permute.xlu0 %4674 }
 0xddd   :  { %v15668_v38 = vpop.eup %15667  ;;  %v18928_v17 = vadd.f32 %v4675_v2, %v4548_v0  ;;  %4760 = vrot.lane.b32.xlu1 %v15666_v18, %s16744_s30 }
 0xdde   :  { %15677 = vtanh.f32 %v18926_v45  ;;  %4758 = vrot.lane.b32.xlu0 %v15668_v38, %s16744_s30 }
 0xddf   :  { %15679 = vtanh.f32 %v18928_v17 }
 0xde0   :  { %v15670_v41 = vpop.eup %15669 }
 0xde1   :  { %v15672_v25 = vpop.eup %15671  ;;  %4764 = vrot.lane.b32.xlu1 %v15670_v41, %s16744_s30 }
 0xde2   :  { %4762 = vrot.lane.b32.xlu0 %v15672_v25, %s16744_s30 }
 0xde4   :  { %v15674_v36 = vpop.eup %15673 }
 0xde5   :  { %v15676_v63 = vpop.eup %15675  ;;  %4768 = vrot.lane.b32.xlu1 %v15674_v36, %s16744_s30 }
 0xde6   :  { %4766 = vrot.lane.b32.xlu0 %v15676_v63, %s16744_s30 }
 0xde8   :  { %v15678_v40 = vpop.eup %15677 }
 0xde9   :  { %v15680_v22 = vpop.eup %15679  ;;  %4772 = vrot.lane.b32.xlu1 %v15678_v40, %s16744_s30 }
 0xdea   :  { %4770 = vrot.lane.b32.xlu0 %v15680_v22, %s16744_s30 }
 0xe3f   :  { %v4745_v51 = vpop.permute.xlu1 %4744 }
 0xe40   :  { %v4791_v13 = vmul.f32 %v4745_v51, %v18776_v39  ;;  %v4743_v34 = vpop.permute.xlu0 %4742 }
 0xe41   :  { %v4790_v42 = vmul.f32 %v4743_v34, %v18778_v54 }
 0xe42   :  { %4824 = vrot.lane.b32.xlu1 %v4791_v13, %s16745_s0 }
 0xe43   :  { %v4749_v47 = vpop.permute.xlu1 %4748  ;;  %4822 = vrot.lane.b32.xlu0 %v4790_v42, %s16745_s0 }
 0xe44   :  { %v4793_v35 = vmul.f32 %v4749_v47, %v18785_v10  ;;  %v4747_v24 = vpop.permute.xlu0 %4746 }
 0xe45   :  { %v4792_v20 = vmul.f32 %v4747_v24, %v18788_v61 }
 0xe46   :  { %4828 = vrot.lane.b32.xlu1 %v4793_v35, %s16745_s0 }
 0xe47   :  { %v4753_v30 = vpop.permute.xlu1 %4752  ;;  %4826 = vrot.lane.b32.xlu0 %v4792_v20, %s16745_s0 }
 0xe48   :  { %v4795_v39 = vmul.f32 %v4753_v30, %v18795_v11  ;;  %v4751_v58 = vpop.permute.xlu0 %4750 }
 0xe49   :  { %v4794_v54 = vmul.f32 %v4751_v58, %v18798_v43 }
 0xe4a   :  { %4832 = vrot.lane.b32.xlu1 %v4795_v39, %s16745_s0 }
 0xe4b   :  { %v4757_v3 = vpop.permute.xlu1 %4756  ;;  %4830 = vrot.lane.b32.xlu0 %v4794_v54, %s16745_s0 }
 0xe4c   :  { %v4797_v10 = vmul.f32 %v4757_v3, %v18803_v44  ;;  %v4755_v7 = vpop.permute.xlu0 %4754 }
 0xe4d   :  { %v4796_v61 = vmul.f32 %v4755_v7, %v18806_v27 }
 0xe4e   :  { %4836 = vrot.lane.b32.xlu1 %v4797_v10, %s16745_s0 }
 0xe4f   :  { %v4761_v59 = vpop.permute.xlu1 %4760  ;;  %4834 = vrot.lane.b32.xlu0 %v4796_v61, %s16745_s0 }
 0xe50   :  { %v4799_v11 = vmul.f32 %v4761_v59, %v18811_v21  ;;  %v4759_v53 = vpop.permute.xlu0 %4758 }
 0xe51   :  { %v4798_v43 = vmul.f32 %v4759_v53, %v18814_v32 }
 0xe52   :  { %4840 = vrot.lane.b32.xlu1 %v4799_v11, %s16745_s0 }
 0xe53   :  { %v4765_v33 = vpop.permute.xlu1 %4764  ;;  %4838 = vrot.lane.b32.xlu0 %v4798_v43, %s16745_s0 }
 0xe54   :  { %v4801_v44 = vmul.f32 %v4765_v33, %v18819_v52  ;;  %v4763_v5 = vpop.permute.xlu0 %4762 }
 0xe55   :  { %v4800_v27 = vmul.f32 %v4763_v5, %v18822_v23 }
 0xe56   :  { %4844 = vrot.lane.b32.xlu1 %v4801_v44, %s16745_s0 }
 0xe57   :  { %v4769_v0 = vpop.permute.xlu1 %4768  ;;  %4842 = vrot.lane.b32.xlu0 %v4800_v27, %s16745_s0 }
 0xe58   :  { %v4803_v21 = vmul.f32 %v4769_v0, %v18827_v55  ;;  %v4767_v18 = vpop.permute.xlu0 %4766 }
 0xe59   :  { %v4802_v32 = vmul.f32 %v4767_v18, %v18830_v56 }
 0xe5a   :  { %4848 = vrot.lane.b32.xlu1 %v4803_v21, %s16745_s0 }
 0xe5b   :  { %v4773_v2 = vpop.permute.xlu1 %4772  ;;  %4846 = vrot.lane.b32.xlu0 %v4802_v32, %s16745_s0 }
 0xe5c   :  { %v4805_v52 = vmul.f32 %v4773_v2, %v18835_v8  ;;  %v4771_v38 = vpop.permute.xlu0 %4770 }
 0xe5d   :  { %v4804_v23 = vmul.f32 %v4771_v38, %v18838_v26 }
 0xe5e   :  { %4852 = vrot.lane.b32.xlu1 %v4805_v52, %s16745_s0 }
 0xe5f   :  { %4850 = vrot.lane.b32.xlu0 %v4804_v23, %s16745_s0 }
 0xeb4   :  { %v4825_v41 = vpop.permute.xlu1 %4824 }
 0xeb5   :  { %v4823_v25 = vpop.permute.xlu0 %4822 }
 0xeb6   :  { %13980 = vmatprep.mubr.msk.f32.mxu1 %vm1267_vm1, %v4823_v25  ;;  %14012 = vmatprep.mubr.msk.f32.mxu0 %vm1267_vm1, %v4823_v25 }
 0xeb7   :  { %13981 = vmatmul.mubr.msk.f32.vlgmr.msra.gmra.mrb[72].mxu1 %vm1267_vm1, %v4825_v41  ;;  %14013 = vmatmul.mubr.msk.f32.vlgmr.msra.gmra.mrb[80].mxu0 %vm1267_vm1, %v4825_v41 }
 0xeb8   :  { %v4829_v55 = vpop.permute.xlu1 %4828  ;;  %14583 = vmatpush3.bf16.msra.mxu0 %v16815_v6  ;;  %14575 = vmatpush3.bf16.msra.mxu1 %v17582_v14 }
 0xeb9   :  { %v4827_v56 = vpop.permute.xlu0 %4826  ;;  %14585 = vmatprep.subr.bf16.mxu0 %v16866_v19  ;;  %14577 = vmatprep.subr.bf16.mxu1 %v17613_v37 }
 0xeba   :  { %13983 = vmatprep.mubr.msk.f32.mxu1 %vm1267_vm1, %v4827_v56  ;;  %14015 = vmatprep.mubr.msk.f32.mxu0 %vm1267_vm1, %v4827_v56 }
 0xebb   :  { %13984 = vmatmul.mubr.msk.f32.gmra.mrb[74].mxu1 %vm1267_vm1, %v4829_v55  ;;  %14016 = vmatmul.mubr.msk.f32.gmra.mrb[82].mxu0 %vm1267_vm1, %v4829_v55 }
 0xebc   :  { %v4833_v8 = vpop.permute.xlu1 %4832  ;;  %14587 = vmatpush3.bf16.msra.mxu0 %v16866_v19  ;;  %14579 = vmatpush3.bf16.msra.mxu1 %v17613_v37 }
 0xebd   :  { %v4831_v26 = vpop.permute.xlu0 %4830  ;;  %14597 = vmatprep.subr.bf16.mxu0 %v16815_v6  ;;  %14589 = vmatprep.subr.bf16.mxu1 %v17582_v14 }
 0xebe   :  { %13986 = vmatprep.mubr.msk.f32.mxu1 %vm1267_vm1, %v4831_v26  ;;  %14018 = vmatprep.mubr.msk.f32.mxu0 %vm1267_vm1, %v4831_v26 }
 0xebf   :  { %13987 = vmatmul.mubr.msk.f32.gmra.mrb[76].mxu1 %vm1267_vm1, %v4833_v8  ;;  %14019 = vmatmul.mubr.msk.f32.gmra.mrb[84].mxu0 %vm1267_vm1, %v4833_v8 }
 0xec0   :  { %v4837_v36 = vpop.permute.xlu1 %4836 }
 0xec1   :  { %v4835_v63 = vpop.permute.xlu0 %4834 }
 0xec2   :  { %13989 = vmatprep.mubr.msk.f32.mxu1 %vm1267_vm1, %v4835_v63  ;;  %14021 = vmatprep.mubr.msk.f32.mxu0 %vm1267_vm1, %v4835_v63 }
 0xec3   :  { %13990 = vmatmul.mubr.msk.f32.gmra.mrb[78].mxu1 %vm1267_vm1, %v4837_v36  ;;  %14022 = vmatmul.mubr.msk.f32.gmra.mrb[86].mxu0 %vm1267_vm1, %v4837_v36 }
 0xec4   :  { %v4841_v40 = vpop.permute.xlu1 %4840 }
 0xec5   :  { %v4839_v22 = vpop.permute.xlu0 %4838 }
 0xec6   :  { %13992 = vmatprep.mubr.msk.f32.mxu1 %vm1267_vm1, %v4839_v22  ;;  %14024 = vmatprep.mubr.msk.f32.mxu0 %vm1267_vm1, %v4839_v22 }
 0xec7   :  { %13993 = vmatmul.mubr.msk.f32.gmra.mrb[80].mxu1 %vm1267_vm1, %v4841_v40  ;;  %14025 = vmatmul.mubr.msk.f32.gmra.mrb[88].mxu0 %vm1267_vm1, %v4841_v40 }
 0xec8   :  { %v4845_v51 = vpop.permute.xlu1 %4844 }
 0xec9   :  { %v4843_v13 = vpop.permute.xlu0 %4842 }
 0xeca   :  { %13995 = vmatprep.mubr.msk.f32.mxu1 %vm1267_vm1, %v4843_v13  ;;  %14027 = vmatprep.mubr.msk.f32.mxu0 %vm1267_vm1, %v4843_v13 }
 0xecb   :  { %13996 = vmatmul.mubr.msk.f32.gmra.mrb[82].mxu1 %vm1267_vm1, %v4845_v51  ;;  %14028 = vmatmul.mubr.msk.f32.gmra.mrb[90].mxu0 %vm1267_vm1, %v4845_v51 }
 0xecc   :  { %v4849_v34 = vpop.permute.xlu1 %4848 }
 0xecd   :  { %v4847_v42 = vpop.permute.xlu0 %4846 }
 0xece   :  { %13998 = vmatprep.mubr.msk.f32.mxu1 %vm1267_vm1, %v4847_v42  ;;  %14030 = vmatprep.mubr.msk.f32.mxu0 %vm1267_vm1, %v4847_v42 }
 0xecf   :  { %13999 = vmatmul.mubr.msk.f32.gmra.mrb[84].mxu1 %vm1267_vm1, %v4849_v34  ;;  %14031 = vmatmul.mubr.msk.f32.gmra.mrb[92].mxu0 %vm1267_vm1, %v4849_v34 }
 0xed0   :  { %v4853_v35 = vpop.permute.xlu1 %4852 }
 0xed1   :  { %v4851_v47 = vpop.permute.xlu0 %4850 }
 0xed2   :  { %14001 = vmatprep.mubr.msk.f32.mxu1 %vm1267_vm1, %v4851_v47  ;;  %14033 = vmatprep.mubr.msk.f32.mxu0 %vm1267_vm1, %v4851_v47 }
 0xed3   :  { %14002 = vmatmul.mubr.msk.f32.gmra.mrb[86].mxu1 %vm1267_vm1, %v4853_v35  ;;  %14034 = vmatmul.mubr.msk.f32.gmra.mrb[94].mxu0 %vm1267_vm1, %v4853_v35 }
 0xf8a   :  { %v14014_v24 = vpop.f32.mrb[80].mxu0 }
 0xf8b   :  { %v19013_v20 = vadd.f32 %v18682_v49, %v14014_v24  ;;  %v5113_v30 = vpop.f32.mrb[81].mxu0 }
 0xf8c   :  { %v19016_v39 = vadd.f32 %v18682_v49, %v5113_v30 }
 0xf8d   :  { %15681 = vtanh.f32 %v19013_v20 }
 0xf8e   :  { %15683 = vtanh.f32 %v19016_v39  ;;  %v14017_v58 = vpop.f32.mrb[82].mxu0 }
 0xf8f   :  { %v19021_v54 = vadd.f32 %v18682_v49, %v14017_v58  ;;  %v5123_v3 = vpop.f32.mrb[83].mxu0 }
 0xf90   :  { %v19024_v10 = vadd.f32 %v18682_v49, %v5123_v3 }
 0xf91   :  { %15685 = vtanh.f32 %v19021_v54 }
 0xf92   :  { %15687 = vtanh.f32 %v19024_v10  ;;  %v14020_v7 = vpop.f32.mrb[84].mxu0 }
 0xf93   :  { %v19029_v61 = vadd.f32 %v18682_v49, %v14020_v7  ;;  %v5133_v59 = vpop.f32.mrb[85].mxu0 }
 0xf94   :  { %v19032_v11 = vadd.f32 %v18682_v49, %v5133_v59  ;;  %v5209_v59 = vmul.f32 0.5, %v19013_v20 }
 0xf95   :  { %15689 = vtanh.f32 %v19029_v61 }
 0xf96   :  { %15691 = vtanh.f32 %v19032_v11  ;;  %v14023_v53 = vpop.f32.mrb[86].mxu0 }
 0xf97   :  { %v15682_v43 = vpop.eup %15681  ;;  %v19037_v33 = vadd.f32 %v18682_v49, %v14023_v53  ;;  %v5143_v44 = vpop.f32.mrb[87].mxu0  ;;  %v5208_v53 = vmul.f32 0.5, %v19016_v39 }
 0xf98   :  { %v15684_v5 = vpop.eup %15683  ;;  %v19040_v27 = vadd.f32 %v18682_v49, %v5143_v44  ;;  %5322 = vrot.lane.b32.xlu1 %v15682_v43, %s16744_s30  ;;  %v5211_v43 = vmul.f32 0.5, %v19021_v54  ;;  %v5210_v44 = vmul.f32 0.5, %v19024_v10 }
 0xf99   :  { %15693 = vtanh.f32 %v19037_v33  ;;  %5320 = vrot.lane.b32.xlu0 %v15684_v5, %s16744_s30  ;;  %v5213_v5 = vmul.f32 0.5, %v19029_v61 }
 0xf9a   :  { %15695 = vtanh.f32 %v19040_v27  ;;  %v14026_v0 = vpop.f32.mrb[88].mxu0  ;;  %v5214_v20 = vmul.f32 0.5, %v19040_v27 }
 0xf9b   :  { %v15686_v21 = vpop.eup %15685  ;;  %v19047_v18 = vadd.f32 %v18682_v49, %v14026_v0  ;;  %v5153_v32 = vpop.f32.mrb[89].mxu0  ;;  %v5212_v0 = vmul.f32 0.5, %v19032_v11 }
 0xf9c   :  { %v15688_v2 = vpop.eup %15687  ;;  %v19050_v52 = vadd.f32 %v18682_v49, %v5153_v32  ;;  %5326 = vrot.lane.b32.xlu1 %v15686_v21, %s16744_s30  ;;  %v5215_v21 = vmul.f32 0.5, %v19037_v33 }
 0xf9d   :  { %15697 = vtanh.f32 %v19047_v18  ;;  %5324 = vrot.lane.b32.xlu0 %v15688_v2, %s16744_s30  ;;  %v5217_v54 = vmul.f32 0.5, %v19047_v18 }
 0xf9e   :  { %15699 = vtanh.f32 %v19050_v52  ;;  %v14029_v38 = vpop.f32.mrb[90].mxu0  ;;  %v5216_v10 = vmul.f32 0.5, %v19050_v52 }
 0xf9f   :  { %v15690_v23 = vpop.eup %15689  ;;  %v19057_v41 = vadd.f32 %v18682_v49, %v14029_v38  ;;  %v5163_v25 = vpop.f32.mrb[91].mxu0 }
 0xfa0   :  { %v15692_v55 = vpop.eup %15691  ;;  %v19060_v56 = vadd.f32 %v18682_v49, %v5163_v25  ;;  %5330 = vrot.lane.b32.xlu1 %v15690_v23, %s16744_s30 }
 0xfa1   :  { %15701 = vtanh.f32 %v19057_v41  ;;  %5328 = vrot.lane.b32.xlu0 %v15692_v55, %s16744_s30  ;;  %v5219_v11 = vmul.f32 0.5, %v19057_v41 }
 0xfa2   :  { %15703 = vtanh.f32 %v19060_v56  ;;  %v14032_v8 = vpop.f32.mrb[92].mxu0  ;;  %v5218_v33 = vmul.f32 0.5, %v19060_v56 }
 0xfa3   :  { %v15694_v26 = vpop.eup %15693  ;;  %v19067_v36 = vadd.f32 %v18682_v49, %v14032_v8  ;;  %v5173_v63 = vpop.f32.mrb[93].mxu0 }
 0xfa4   :  { %v15696_v40 = vpop.eup %15695  ;;  %v19070_v22 = vadd.f32 %v18682_v49, %v5173_v63  ;;  %5334 = vrot.lane.b32.xlu1 %v15694_v26, %s16744_s30 }
 0xfa5   :  { %15705 = vtanh.f32 %v19067_v36  ;;  %5332 = vrot.lane.b32.xlu0 %v15696_v40, %s16744_s30 }
 0xfa6   :  { %15707 = vtanh.f32 %v19070_v22  ;;  %v14035_v51 = vpop.f32.mrb[94].mxu0  ;;  %v5220_v56 = vmul.f32 0.5, %v19070_v22 }
 0xfa7   :  { %v15698_v13 = vpop.eup %15697  ;;  %v19077_v34 = vadd.f32 %v18682_v49, %v14035_v51  ;;  %v5183_v42 = vpop.f32.mrb[95].mxu0  ;;  %v5221_v51 = vmul.f32 0.5, %v19067_v36 }
 0xfa8   :  { %v15700_v47 = vpop.eup %15699  ;;  %v19080_v35 = vadd.f32 %v18682_v49, %v5183_v42  ;;  %5338 = vrot.lane.b32.xlu1 %v15698_v13, %s16744_s30 }
 0xfa9   :  { %15709 = vtanh.f32 %v19077_v34  ;;  %5336 = vrot.lane.b32.xlu0 %v15700_v47, %s16744_s30 }
 0xfaa   :  { %15711 = vtanh.f32 %v19080_v35 }
 0xfab   :  { %v15702_v24 = vpop.eup %15701  ;;  %15713 = vtanh.f32 %v5209_v59 }
 0xfac   :  { %v15704_v30 = vpop.eup %15703  ;;  %5342 = vrot.lane.b32.xlu1 %v15702_v24, %s16744_s30  ;;  %15715 = vtanh.f32 %v5208_v53  ;;  %v5222_v53 = vmul.f32 0.5, %v19080_v35 }
 0xfad   :  { %5340 = vrot.lane.b32.xlu0 %v15704_v30, %s16744_s30  ;;  %15717 = vtanh.f32 %v5211_v43 }
 0xfae   :  { %15719 = vtanh.f32 %v5210_v44 }
 0xfaf   :  { %v15706_v58 = vpop.eup %15705  ;;  %15721 = vtanh.f32 %v5213_v5 }
 0xfb0   :  { %v15708_v3 = vpop.eup %15707  ;;  %5346 = vrot.lane.b32.xlu1 %v15706_v58, %s16744_s30  ;;  %15723 = vtanh.f32 %v5212_v0 }
 0xfb1   :  { %5344 = vrot.lane.b32.xlu0 %v15708_v3, %s16744_s30  ;;  %15725 = vtanh.f32 %v5215_v21 }
 0xfb2   :  { %15727 = vtanh.f32 %v5214_v20 }
 0xfb3   :  { %v15710_v49 = vpop.eup %15709  ;;  %15729 = vtanh.f32 %v5217_v54 }
 0xfb4   :  { %v15712_v7 = vpop.eup %15711  ;;  %5350 = vrot.lane.b32.xlu1 %v15710_v49, %s16744_s30  ;;  %15731 = vtanh.f32 %v5216_v10 }
 0xfb5   :  { %5348 = vrot.lane.b32.xlu0 %v15712_v7, %s16744_s30  ;;  %v15714_v32 = vpop.eup %15713  ;;  %15733 = vtanh.f32 %v5219_v11  ;;  %v5223_v7 = vmul.f32 0.5, %v19077_v34 }
 0xfb6   :  { %v15716_v39 = vpop.eup %15715  ;;  %v5241_v2 = vmul.f32 0.5, %v15714_v32  ;;  %15735 = vtanh.f32 %v5218_v33 }
 0xfb7   :  { %v15718_v38 = vpop.eup %15717  ;;  %v5240_v61 = vmul.f32 0.5, %v15716_v39  ;;  %15737 = vtanh.f32 %v5221_v51 }
 0xfb8   :  { %v15720_v23 = vpop.eup %15719  ;;  %v5243_v25 = vmul.f32 0.5, %v15718_v38  ;;  %v19104_v27 = vadd.f32 0.5, %v5241_v2  ;;  %15739 = vtanh.f32 %v5220_v56 }
 0xfb9   :  { %v15722_v55 = vpop.eup %15721  ;;  %v5242_v8 = vmul.f32 0.5, %v15720_v23  ;;  %v19106_v18 = vadd.f32 0.5, %v5240_v61  ;;  %15741 = vtanh.f32 %v5223_v7 }
 0xfba   :  { %v15724_v63 = vpop.eup %15723  ;;  %v5245_v13 = vmul.f32 0.5, %v15722_v55  ;;  %v19113_v42 = vadd.f32 0.5, %v5243_v25  ;;  %15743 = vtanh.f32 %v5222_v53 }
 0xfbb   :  { %v15726_v47 = vpop.eup %15725  ;;  %v5244_v24 = vmul.f32 0.5, %v15724_v63  ;;  %v19116_v58 = vadd.f32 0.5, %v5242_v8 }
 0xfbc   :  { %v15728_v3 = vpop.eup %15727  ;;  %v5247_v59 = vmul.f32 0.5, %v15726_v47  ;;  %v19123_v43 = vadd.f32 0.5, %v5245_v13 }
 0xfbd   :  { %v15730_v44 = vpop.eup %15729  ;;  %v5246_v5 = vmul.f32 0.5, %v15728_v3  ;;  %v19126_v21 = vadd.f32 0.5, %v5244_v24 }
 0xfbe   :  { %v15732_v20 = vpop.eup %15731  ;;  %v5249_v54 = vmul.f32 0.5, %v15730_v44  ;;  %v19131_v35 = vadd.f32 0.5, %v5247_v59 }
 0xfbf   :  { %v15734_v2 = vpop.eup %15733  ;;  %v5248_v10 = vmul.f32 0.5, %v15732_v20  ;;  %v19134_v61 = vadd.f32 0.5, %v5246_v5 }
 0xfc0   :  { %v15736_v23 = vpop.eup %15735  ;;  %v5251_v55 = vmul.f32 0.5, %v15734_v2  ;;  %v19139_v8 = vadd.f32 0.5, %v5249_v54 }
 0xfc1   :  { %v5250_v63 = vmul.f32 0.5, %v15736_v23 }
 0xfc2   :  { %v19147_v24 = vadd.f32 0.5, %v5251_v55 }
0x100a   :  { %v5323_v26 = vpop.permute.xlu1 %5322 }
0x100b   :  { %v5369_v52 = vmul.f32 %v5323_v26, %v19104_v27  ;;  %v5321_v40 = vpop.permute.xlu0 %5320  ;;  %v15738_v26 = vpop.eup %15737 }
0x100c   :  { %v5368_v41 = vmul.f32 %v5321_v40, %v19106_v18  ;;  %v19142_v40 = vadd.f32 0.5, %v5248_v10  ;;  %v15740_v51 = vpop.eup %15739  ;;  %v5253_v47 = vmul.f32 0.5, %v15738_v26  ;;  %v5288_v26 = vmul.f32 %v19106_v18, %v18850_v57 }
0x100d   :  { %5402 = vrot.lane.b32.xlu1 %v5369_v52, %s16744_s30  ;;  %v5252_v3 = vmul.f32 0.5, %v15740_v51 }
0x100e   :  { %v5327_v30 = vpop.permute.xlu1 %5326  ;;  %5400 = vrot.lane.b32.xlu0 %v5368_v41, %s16744_s30  ;;  %v19155_v5 = vadd.f32 0.5, %v5253_v47 }
0x100f   :  { %v5371_v36 = vmul.f32 %v5327_v30, %v19113_v42  ;;  %v5325_v49 = vpop.permute.xlu0 %5324  ;;  %v15742_v30 = vpop.eup %15741 }
0x1010   :  { %v5370_v22 = vmul.f32 %v5325_v49, %v19116_v58  ;;  %v19150_v49 = vadd.f32 0.5, %v5250_v63  ;;  %v15744_v7 = vpop.eup %15743  ;;  %v5255_v44 = vmul.f32 0.5, %v15742_v30  ;;  %v5293_v30 = vmul.f32 %v19123_v43, %v18868_v60 }
0x1011   :  { %5406 = vrot.lane.b32.xlu1 %v5371_v36, %s16744_s30  ;;  %v5294_v60 = vmul.f32 %v19134_v61, %v18880_v62  ;;  %v5296_v62 = vmul.f32 %v19142_v40, %v18892_v29 }
0x1012   :  { %v5331_v0 = vpop.permute.xlu1 %5330  ;;  %5404 = vrot.lane.b32.xlu0 %v5370_v22, %s16744_s30  ;;  %v19163_v2 = vadd.f32 0.5, %v5255_v44  ;;  %v5298_v29 = vmul.f32 %v19150_v49, %v18904_v16 }
0x1013   :  { %v5373_v34 = vmul.f32 %v5331_v0, %v19123_v43  ;;  %v5329_v32 = vpop.permute.xlu0 %5328  ;;  %v5254_v0 = vmul.f32 0.5, %v15744_v7 }
0x1014   :  { %v5372_v39 = vmul.f32 %v5329_v32, %v19126_v21 }
0x1015   :  { %5410 = vrot.lane.b32.xlu1 %v5373_v34, %s16744_s30  ;;  %v19158_v34 = vadd.f32 0.5, %v5252_v3 }
0x1016   :  { %v5335_v38 = vpop.permute.xlu1 %5334  ;;  %5408 = vrot.lane.b32.xlu0 %v5372_v39, %s16744_s30 }
0x1017   :  { %v5375_v11 = vmul.f32 %v5335_v38, %v19131_v35  ;;  %v5333_v25 = vpop.permute.xlu0 %5332  ;;  %v19166_v38 = vadd.f32 0.5, %v5254_v0  ;;  %v5300_v16 = vmul.f32 %v19158_v34, %v18916_v48 }
0x1018   :  { %v5374_v33 = vmul.f32 %v5333_v25, %v19134_v61 }
0x1019   :  { %5414 = vrot.lane.b32.xlu1 %v5375_v11, %s16744_s30  ;;  %v5302_v48 = vmul.f32 %v19166_v38, %v18928_v17 }
0x101a   :  { %v5339_v52 = vpop.permute.xlu1 %5338  ;;  %5412 = vrot.lane.b32.xlu0 %v5374_v33, %s16744_s30  ;;  %v5289_v33 = vmul.f32 %v19104_v27, %v18848_v15  ;;  %v5290_v15 = vmul.f32 %v19116_v58, %v18860_v9 }
0x101b   :  { %v5377_v41 = vmul.f32 %v5339_v52, %v19139_v8  ;;  %v5337_v13 = vpop.permute.xlu0 %5336 }
0x101c   :  { %v5376_v56 = vmul.f32 %v5337_v13, %v19142_v40 }
0x101d   :  { %5418 = vrot.lane.b32.xlu1 %v5377_v41, %s16744_s30  ;;  %v5291_v41 = vmul.f32 %v19113_v42, %v18858_v31  ;;  %v5292_v31 = vmul.f32 %v19126_v21, %v18870_v12 }
0x101e   :  { %v5343_v36 = vpop.permute.xlu1 %5342  ;;  %5416 = vrot.lane.b32.xlu0 %v5376_v56, %s16744_s30 }
0x101f   :  { %v5379_v22 = vmul.f32 %v5343_v36, %v19147_v24  ;;  %v5341_v59 = vpop.permute.xlu0 %5340 }
0x1020   :  { %v5378_v53 = vmul.f32 %v5341_v59, %v19150_v49 }
0x1021   :  { %5422 = vrot.lane.b32.xlu1 %v5379_v22, %s16744_s30  ;;  %v5295_v22 = vmul.f32 %v19131_v35, %v18878_v46  ;;  %v5297_v46 = vmul.f32 %v19139_v8, %v18890_v28  ;;  %v5299_v28 = vmul.f32 %v19147_v24, %v18902_v4  ;;  %v5301_v4 = vmul.f32 %v19155_v5, %v18914_v50 }
0x1022   :  { %v5347_v20 = vpop.permute.xlu1 %5346  ;;  %5420 = vrot.lane.b32.xlu0 %v5378_v53, %s16744_s30  ;;  %v5303_v50 = vmul.f32 %v19163_v2, %v18926_v45 }
0x1023   :  { %v5381_v32 = vmul.f32 %v5347_v20, %v19155_v5  ;;  %v5345_v39 = vpop.permute.xlu0 %5344 }
0x1024   :  { %v5380_v54 = vmul.f32 %v5345_v39, %v19158_v34 }
0x1025   :  { %5426 = vrot.lane.b32.xlu1 %v5381_v32, %s16744_s30 }
0x1026   :  { %v5351_v10 = vpop.permute.xlu1 %5350  ;;  %5424 = vrot.lane.b32.xlu0 %v5380_v54, %s16744_s30 }
0x1027   :  { %v5383_v23 = vmul.f32 %v5351_v10, %v19163_v2  ;;  %v5349_v11 = vpop.permute.xlu0 %5348 }
0x1028   :  { %v5382_v25 = vmul.f32 %v5349_v11, %v19166_v38 }
0x1029   :  { %5430 = vrot.lane.b32.xlu1 %v5383_v23, %s16744_s30 }
0x102a   :  { %5428 = vrot.lane.b32.xlu0 %v5382_v25, %s16744_s30 }
0x107f   :  { %v5403_v55 = vpop.permute.xlu1 %5402 }
0x1080   :  { %v19176_v63 = vadd.f32 %v5403_v55, %v5289_v33  ;;  %v5401_v52 = vpop.permute.xlu0 %5400 }
0x1081   :  { %v19178_v51 = vadd.f32 %v5401_v52, %v5288_v26 }
0x1082   :  { %15745 = vtanh.f32 %v19176_v63 }
0x1083   :  { %15747 = vtanh.f32 %v19178_v51  ;;  %v5407_v13 = vpop.permute.xlu1 %5406 }
0x1084   :  { %v19186_v56 = vadd.f32 %v5407_v13, %v5291_v41  ;;  %v5405_v47 = vpop.permute.xlu0 %5404 }
0x1085   :  { %v19188_v57 = vadd.f32 %v5405_v47, %v5290_v15 }
0x1086   :  { %15749 = vtanh.f32 %v19186_v56 }
0x1087   :  { %15751 = vtanh.f32 %v19188_v57  ;;  %v5411_v3 = vpop.permute.xlu1 %5410 }
0x1088   :  { %v19196_v36 = vadd.f32 %v5411_v3, %v5293_v30  ;;  %v5409_v7 = vpop.permute.xlu0 %5408 }
0x1089   :  { %v19198_v9 = vadd.f32 %v5409_v7, %v5292_v31 }
0x108a   :  { %15753 = vtanh.f32 %v19196_v36 }
0x108b   :  { %15755 = vtanh.f32 %v19198_v9  ;;  %v5415_v59 = vpop.permute.xlu1 %5414 }
0x108c   :  { %v15746_v53 = vpop.eup %15745  ;;  %v19206_v44 = vadd.f32 %v5415_v59, %v5295_v22  ;;  %v5413_v12 = vpop.permute.xlu0 %5412 }
0x108d   :  { %v15748_v0 = vpop.eup %15747  ;;  %v19208_v20 = vadd.f32 %v5413_v12, %v5294_v60  ;;  %5498 = vrot.lane.b32.xlu1 %v15746_v53, %s16744_s30 }
0x108e   :  { %15757 = vtanh.f32 %v19206_v44  ;;  %5496 = vrot.lane.b32.xlu0 %v15748_v0, %s16744_s30 }
0x108f   :  { %15759 = vtanh.f32 %v19208_v20  ;;  %v5419_v32 = vpop.permute.xlu1 %5418 }
0x1090   :  { %v15750_v39 = vpop.eup %15749  ;;  %v19218_v54 = vadd.f32 %v5419_v32, %v5297_v46  ;;  %v5417_v10 = vpop.permute.xlu0 %5416 }
0x1091   :  { %v15752_v23 = vpop.eup %15751  ;;  %v19220_v11 = vadd.f32 %v5417_v10, %v5296_v62  ;;  %5502 = vrot.lane.b32.xlu1 %v15750_v39, %s16744_s30 }
0x1092   :  { %15761 = vtanh.f32 %v19218_v54  ;;  %5500 = vrot.lane.b32.xlu0 %v15752_v23, %s16744_s30 }
0x1093   :  { %15763 = vtanh.f32 %v19220_v11  ;;  %v5423_v25 = vpop.permute.xlu1 %5422 }
0x1094   :  { %v15754_v33 = vpop.eup %15753  ;;  %v19230_v55 = vadd.f32 %v5423_v25, %v5299_v28  ;;  %v5421_v26 = vpop.permute.xlu0 %5420 }
0x1095   :  { %v15756_v52 = vpop.eup %15755  ;;  %v19232_v41 = vadd.f32 %v5421_v26, %v5298_v29  ;;  %5506 = vrot.lane.b32.xlu1 %v15754_v33, %s16744_s30 }
0x1096   :  { %15765 = vtanh.f32 %v19230_v55  ;;  %5504 = vrot.lane.b32.xlu0 %v15756_v52, %s16744_s30 }
0x1097   :  { %15767 = vtanh.f32 %v19232_v41  ;;  %v5427_v13 = vpop.permute.xlu1 %5426 }
0x1098   :  { %v15758_v15 = vpop.eup %15757  ;;  %v19242_v47 = vadd.f32 %v5427_v13, %v5301_v4  ;;  %v5425_v30 = vpop.permute.xlu0 %5424 }
0x1099   :  { %v15760_v3 = vpop.eup %15759  ;;  %v19244_v31 = vadd.f32 %v5425_v30, %v5300_v16  ;;  %5510 = vrot.lane.b32.xlu1 %v15758_v15, %s16744_s30 }
0x109a   :  { %15769 = vtanh.f32 %v19242_v47  ;;  %5508 = vrot.lane.b32.xlu0 %v15760_v3, %s16744_s30 }
0x109b   :  { %15771 = vtanh.f32 %v19244_v31  ;;  %v5431_v7 = vpop.permute.xlu1 %5430 }
0x109c   :  { %v15762_v22 = vpop.eup %15761  ;;  %v19254_v59 = vadd.f32 %v5431_v7, %v5303_v50  ;;  %v5429_v60 = vpop.permute.xlu0 %5428 }
0x109d   :  { %v15764_v53 = vpop.eup %15763  ;;  %v19256_v12 = vadd.f32 %v5429_v60, %v5302_v48  ;;  %5514 = vrot.lane.b32.xlu1 %v15762_v22, %s16744_s30 }
0x109e   :  { %15773 = vtanh.f32 %v19254_v59  ;;  %5512 = vrot.lane.b32.xlu0 %v15764_v53, %s16744_s30 }
0x109f   :  { %15775 = vtanh.f32 %v19256_v12 }
0x10a0   :  { %v15766_v45 = vpop.eup %15765 }
0x10a1   :  { %v15768_v0 = vpop.eup %15767  ;;  %5518 = vrot.lane.b32.xlu1 %v15766_v45, %s16744_s30 }
0x10a2   :  { %5516 = vrot.lane.b32.xlu0 %v15768_v0, %s16744_s30 }
0x10a4   :  { %v15770_v17 = vpop.eup %15769 }
0x10a5   :  { %v15772_v46 = vpop.eup %15771  ;;  %5522 = vrot.lane.b32.xlu1 %v15770_v17, %s16744_s30 }
0x10a6   :  { %5520 = vrot.lane.b32.xlu0 %v15772_v46, %s16744_s30 }
0x10a8   :  { %v15774_v32 = vpop.eup %15773 }
0x10a9   :  { %v15776_v62 = vpop.eup %15775  ;;  %5526 = vrot.lane.b32.xlu1 %v15774_v32, %s16744_s30 }
0x10aa   :  { %5524 = vrot.lane.b32.xlu0 %v15776_v62, %s16744_s30 }
0x10ff   :  { %v5499_v39 = vpop.permute.xlu1 %5498 }
0x1100   :  { %v5545_v10 = vmul.f32 %v5499_v39, %v19104_v27  ;;  %v5497_v23 = vpop.permute.xlu0 %5496 }
0x1101   :  { %v5544_v28 = vmul.f32 %v5497_v23, %v19106_v18 }
0x1102   :  { %5578 = vrot.lane.b32.xlu1 %v5545_v10, %s16745_s0 }
0x1103   :  { %v5503_v25 = vpop.permute.xlu1 %5502  ;;  %5576 = vrot.lane.b32.xlu0 %v5544_v28, %s16745_s0 }
0x1104   :  { %v5547_v29 = vmul.f32 %v5503_v25, %v19113_v42  ;;  %v5501_v33 = vpop.permute.xlu0 %5500  ;;  %v19342_v25 = vld [vmem:[%s22460_s3] ss:$0 sm:$0xff] }
0x1105   :  { %v5546_v26 = vmul.f32 %v5501_v33, %v19116_v58 }
0x1106   :  { %5582 = vrot.lane.b32.xlu1 %v5547_v29, %s16745_s0 }
0x1107   :  { %v5507_v52 = vpop.permute.xlu1 %5506  ;;  %5580 = vrot.lane.b32.xlu0 %v5546_v26, %s16745_s0 }
0x1108   :  { %v5549_v27 = vmul.f32 %v5507_v52, %v19123_v43  ;;  %v5505_v4 = vpop.permute.xlu0 %5504 }
0x1109   :  { %v5548_v18 = vmul.f32 %v5505_v4, %v19126_v21 }
0x110a   :  { %5586 = vrot.lane.b32.xlu1 %v5549_v27, %s16745_s0 }
0x110b   :  { %v5511_v13 = vpop.permute.xlu1 %5510  ;;  %5584 = vrot.lane.b32.xlu0 %v5548_v18, %s16745_s0 }
0x110c   :  { %v5551_v42 = vmul.f32 %v5511_v13, %v19131_v35  ;;  %v5509_v16 = vpop.permute.xlu0 %5508 }
0x110d   :  { %v5550_v58 = vmul.f32 %v5509_v16, %v19134_v61 }
0x110e   :  { %5590 = vrot.lane.b32.xlu1 %v5551_v42, %s16745_s0 }
0x110f   :  { %v5515_v15 = vpop.permute.xlu1 %5514  ;;  %5588 = vrot.lane.b32.xlu0 %v5550_v58, %s16745_s0 }
0x1110   :  { %v5553_v43 = vmul.f32 %v5515_v15, %v19139_v8  ;;  %v5513_v30 = vpop.permute.xlu0 %5512 }
0x1111   :  { %v5552_v21 = vmul.f32 %v5513_v30, %v19142_v40 }
0x1112   :  { %5594 = vrot.lane.b32.xlu1 %v5553_v43, %s16745_s0 }
0x1113   :  { %v5519_v3 = vpop.permute.xlu1 %5518  ;;  %5592 = vrot.lane.b32.xlu0 %v5552_v21, %s16745_s0 }
0x1114   :  { %v5555_v35 = vmul.f32 %v5519_v3, %v19147_v24  ;;  %v5517_v50 = vpop.permute.xlu0 %5516 }
0x1115   :  { %v5554_v61 = vmul.f32 %v5517_v50, %v19150_v49 }
0x1116   :  { %5598 = vrot.lane.b32.xlu1 %v5555_v35, %s16745_s0 }
0x1117   :  { %v5523_v7 = vpop.permute.xlu1 %5522  ;;  %5596 = vrot.lane.b32.xlu0 %v5554_v61, %s16745_s0 }
0x1118   :  { %v5557_v8 = vmul.f32 %v5523_v7, %v19155_v5  ;;  %v5521_v48 = vpop.permute.xlu0 %5520 }
0x1119   :  { %v5556_v40 = vmul.f32 %v5521_v48, %v19158_v34 }
0x111a   :  { %5602 = vrot.lane.b32.xlu1 %v5557_v8, %s16745_s0 }
0x111b   :  { %v5527_v22 = vpop.permute.xlu1 %5526  ;;  %5600 = vrot.lane.b32.xlu0 %v5556_v40, %s16745_s0 }
0x111c   :  { %v5559_v24 = vmul.f32 %v5527_v22, %v19163_v2  ;;  %v5525_v60 = vpop.permute.xlu0 %5524 }
0x111d   :  { %v5558_v49 = vmul.f32 %v5525_v60, %v19166_v38 }
0x111e   :  { %5606 = vrot.lane.b32.xlu1 %v5559_v24, %s16745_s0 }
0x111f   :  { %5604 = vrot.lane.b32.xlu0 %v5558_v49, %s16745_s0 }
0x1174   :  { %v5579_v53 = vpop.permute.xlu1 %5578 }
0x1175   :  { %v5577_v45 = vpop.permute.xlu0 %5576 }
0x1176   :  { %14044 = vmatprep.mubr.msk.f32.mxu1 %vm1267_vm1, %v5577_v45  ;;  %14076 = vmatprep.mubr.msk.f32.mxu0 %vm1267_vm1, %v5577_v45 }
0x1177   :  { %14045 = vmatmul.mubr.msk.f32.vlgmr.msra.gmra.mrb[88].mxu1 %vm1267_vm1, %v5579_v53  ;;  %14077 = vmatmul.mubr.msk.f32.vlgmr.msra.gmra.mrb[96].mxu0 %vm1267_vm1, %v5579_v53 }
0x1178   :  { %v5583_v5 = vpop.permute.xlu1 %5582  ;;  %14599 = vmatpush3.bf16.msra.mxu0 %v16815_v6  ;;  %14591 = vmatpush3.bf16.msra.mxu1 %v17582_v14 }
0x1179   :  { %v5581_v34 = vpop.permute.xlu0 %5580  ;;  %14601 = vmatprep.subr.bf16.mxu0 %v16866_v19  ;;  %14593 = vmatprep.subr.bf16.mxu1 %v17613_v37 }
0x117a   :  { %14047 = vmatprep.mubr.msk.f32.mxu1 %vm1267_vm1, %v5581_v34  ;;  %14079 = vmatprep.mubr.msk.f32.mxu0 %vm1267_vm1, %v5581_v34 }
0x117b   :  { %14048 = vmatmul.mubr.msk.f32.gmra.mrb[90].mxu1 %vm1267_vm1, %v5583_v5  ;;  %14080 = vmatmul.mubr.msk.f32.gmra.mrb[98].mxu0 %vm1267_vm1, %v5583_v5 }
0x117c   :  { %v5587_v2 = vpop.permute.xlu1 %5586  ;;  %14603 = vmatpush3.bf16.msra.mxu0 %v16866_v19  ;;  %14595 = vmatpush3.bf16.msra.mxu1 %v17613_v37 }
0x117d   :  { %v5585_v6 = vpop.permute.xlu0 %5584  ;;  %14605 = vmatprep.subr.bf16.mxu1 %v17582_v14 }
0x117e   :  { %14050 = vmatprep.mubr.msk.f32.mxu1 %vm1267_vm1, %v5585_v6  ;;  %14082 = vmatprep.mubr.msk.f32.mxu0 %vm1267_vm1, %v5585_v6 }
0x117f   :  { %14051 = vmatmul.mubr.msk.f32.gmra.mrb[92].mxu1 %vm1267_vm1, %v5587_v2  ;;  %14083 = vmatmul.mubr.msk.f32.gmra.mrb[100].mxu0 %vm1267_vm1, %v5587_v2 }
0x1180   :  { %v5591_v38 = vpop.permute.xlu1 %5590 }
0x1181   :  { %v5589_v0 = vpop.permute.xlu0 %5588 }
0x1182   :  { %14053 = vmatprep.mubr.msk.f32.mxu1 %vm1267_vm1, %v5589_v0  ;;  %14085 = vmatprep.mubr.msk.f32.mxu0 %vm1267_vm1, %v5589_v0 }
0x1183   :  { %14054 = vmatmul.mubr.msk.f32.gmra.mrb[94].mxu1 %vm1267_vm1, %v5591_v38  ;;  %14086 = vmatmul.mubr.msk.f32.gmra.mrb[102].mxu0 %vm1267_vm1, %v5591_v38 }
0x1184   :  { %v5595_v19 = vpop.permute.xlu1 %5594 }
0x1185   :  { %v5593_v17 = vpop.permute.xlu0 %5592 }
0x1186   :  { %14056 = vmatprep.mubr.msk.f32.mxu1 %vm1267_vm1, %v5593_v17  ;;  %14088 = vmatprep.mubr.msk.f32.mxu0 %vm1267_vm1, %v5593_v17 }
0x1187   :  { %14057 = vmatmul.mubr.msk.f32.gmra.mrb[96].mxu1 %vm1267_vm1, %v5595_v19  ;;  %14089 = vmatmul.mubr.msk.f32.gmra.mrb[104].mxu0 %vm1267_vm1, %v5595_v19 }
0x1188   :  { %v5599_v46 = vpop.permute.xlu1 %5598 }
0x1189   :  { %v5597_v32 = vpop.permute.xlu0 %5596 }
0x118a   :  { %14059 = vmatprep.mubr.msk.f32.mxu1 %vm1267_vm1, %v5597_v32  ;;  %14091 = vmatprep.mubr.msk.f32.mxu0 %vm1267_vm1, %v5597_v32 }
0x118b   :  { %14060 = vmatmul.mubr.msk.f32.gmra.mrb[98].mxu1 %vm1267_vm1, %v5599_v46  ;;  %14092 = vmatmul.mubr.msk.f32.gmra.mrb[106].mxu0 %vm1267_vm1, %v5599_v46 }
0x118c   :  { %v5603_v62 = vpop.permute.xlu1 %5602 }
0x118d   :  { %v5601_v39 = vpop.permute.xlu0 %5600 }
0x118e   :  { %14062 = vmatprep.mubr.msk.f32.mxu1 %vm1267_vm1, %v5601_v39  ;;  %14094 = vmatprep.mubr.msk.f32.mxu0 %vm1267_vm1, %v5601_v39 }
0x118f   :  { %14063 = vmatmul.mubr.msk.f32.gmra.mrb[100].mxu1 %vm1267_vm1, %v5603_v62  ;;  %14095 = vmatmul.mubr.msk.f32.gmra.mrb[108].mxu0 %vm1267_vm1, %v5603_v62 }
0x1190   :  { %v5607_v23 = vpop.permute.xlu1 %5606 }
0x1191   :  { %v5605_v10 = vpop.permute.xlu0 %5604 }
0x1192   :  { %14065 = vmatprep.mubr.msk.f32.mxu1 %vm1267_vm1, %v5605_v10  ;;  %14097 = vmatprep.mubr.msk.f32.mxu0 %vm1267_vm1, %v5605_v10 }
0x1193   :  { %14066 = vmatmul.mubr.msk.f32.gmra.mrb[102].mxu1 %vm1267_vm1, %v5607_v23  ;;  %14098 = vmatmul.mubr.msk.f32.gmra.mrb[110].mxu0 %vm1267_vm1, %v5607_v23 }
0x124a   :  { %v14078_v28 = vpop.f32.mrb[96].mxu0 }
0x124b   :  { %v19345_v29 = vadd.f32 %v19342_v25, %v14078_v28  ;;  %v5867_v33 = vpop.f32.mrb[97].mxu0 }
0x124c   :  { %v19348_v26 = vadd.f32 %v19342_v25, %v5867_v33 }
0x124d   :  { %15777 = vtanh.f32 %v19345_v29 }
0x124e   :  { %15779 = vtanh.f32 %v19348_v26  ;;  %v14081_v52 = vpop.f32.mrb[98].mxu0 }
0x124f   :  { %v19353_v27 = vadd.f32 %v19342_v25, %v14081_v52  ;;  %v5877_v4 = vpop.f32.mrb[99].mxu0 }
0x1250   :  { %v19356_v18 = vadd.f32 %v19342_v25, %v5877_v4 }
0x1251   :  { %15781 = vtanh.f32 %v19353_v27 }
0x1252   :  { %15783 = vtanh.f32 %v19356_v18  ;;  %v14084_v13 = vpop.f32.mrb[100].mxu0 }
0x1253   :  { %v19361_v42 = vadd.f32 %v19342_v25, %v14084_v13  ;;  %v5887_v16 = vpop.f32.mrb[101].mxu0  ;;  %v5963_v13 = vmul.f32 0.5, %v19345_v29 }
0x1254   :  { %v19364_v58 = vadd.f32 %v19342_v25, %v5887_v16  ;;  %v5962_v16 = vmul.f32 0.5, %v19348_v26 }
0x1255   :  { %15785 = vtanh.f32 %v19361_v42 }
0x1256   :  { %15787 = vtanh.f32 %v19364_v58  ;;  %v14087_v15 = vpop.f32.mrb[102].mxu0 }
0x1257   :  { %v15778_v43 = vpop.eup %15777  ;;  %v19369_v30 = vadd.f32 %v19342_v25, %v14087_v15  ;;  %v5897_v21 = vpop.f32.mrb[103].mxu0  ;;  %v5965_v15 = vmul.f32 0.5, %v19353_v27 }
0x1258   :  { %v15780_v3 = vpop.eup %15779  ;;  %v19372_v35 = vadd.f32 %v19342_v25, %v5897_v21  ;;  %6076 = vrot.lane.b32.xlu1 %v15778_v43, %s16744_s30  ;;  %v5964_v43 = vmul.f32 0.5, %v19356_v18  ;;  %v5967_v21 = vmul.f32 0.5, %v19361_v42 }
0x1259   :  { %15789 = vtanh.f32 %v19369_v30  ;;  %6074 = vrot.lane.b32.xlu0 %v15780_v3, %s16744_s30  ;;  %v5966_v3 = vmul.f32 0.5, %v19364_v58 }
0x125a   :  { %15791 = vtanh.f32 %v19372_v35  ;;  %v14090_v50 = vpop.f32.mrb[104].mxu0  ;;  %v5968_v29 = vmul.f32 0.5, %v19372_v35 }
0x125b   :  { %v15782_v61 = vpop.eup %15781  ;;  %v19379_v7 = vadd.f32 %v19342_v25, %v14090_v50  ;;  %v5907_v8 = vpop.f32.mrb[105].mxu0  ;;  %v5969_v50 = vmul.f32 0.5, %v19369_v30 }
0x125c   :  { %v15784_v48 = vpop.eup %15783  ;;  %v19382_v40 = vadd.f32 %v19342_v25, %v5907_v8  ;;  %6080 = vrot.lane.b32.xlu1 %v15782_v61, %s16744_s30 }
0x125d   :  { %15793 = vtanh.f32 %v19379_v7  ;;  %6078 = vrot.lane.b32.xlu0 %v15784_v48, %s16744_s30  ;;  %v5971_v27 = vmul.f32 0.5, %v19379_v7 }
0x125e   :  { %15795 = vtanh.f32 %v19382_v40  ;;  %v14093_v22 = vpop.f32.mrb[106].mxu0  ;;  %v5970_v18 = vmul.f32 0.5, %v19382_v40 }
0x125f   :  { %v15786_v24 = vpop.eup %15785  ;;  %v19389_v60 = vadd.f32 %v19342_v25, %v14093_v22  ;;  %v5917_v49 = vpop.f32.mrb[107].mxu0 }
0x1260   :  { %v15788_v53 = vpop.eup %15787  ;;  %v19392_v45 = vadd.f32 %v19342_v25, %v5917_v49  ;;  %6084 = vrot.lane.b32.xlu1 %v15786_v24, %s16744_s30 }
0x1261   :  { %15797 = vtanh.f32 %v19389_v60  ;;  %6082 = vrot.lane.b32.xlu0 %v15788_v53, %s16744_s30  ;;  %v5973_v58 = vmul.f32 0.5, %v19389_v60 }
0x1262   :  { %15799 = vtanh.f32 %v19392_v45  ;;  %v14096_v5 = vpop.f32.mrb[108].mxu0  ;;  %v5972_v30 = vmul.f32 0.5, %v19392_v45 }
0x1263   :  { %v15790_v34 = vpop.eup %15789  ;;  %v19399_v2 = vadd.f32 %v19342_v25, %v14096_v5  ;;  %v5927_v6 = vpop.f32.mrb[109].mxu0 }
0x1264   :  { %v15792_v38 = vpop.eup %15791  ;;  %v19402_v0 = vadd.f32 %v19342_v25, %v5927_v6  ;;  %6088 = vrot.lane.b32.xlu1 %v15790_v34, %s16744_s30 }
0x1265   :  { %15801 = vtanh.f32 %v19399_v2  ;;  %6086 = vrot.lane.b32.xlu0 %v15792_v38, %s16744_s30  ;;  %v5975_v38 = vmul.f32 0.5, %v19399_v2 }
0x1266   :  { %15803 = vtanh.f32 %v19402_v0  ;;  %v14099_v19 = vpop.f32.mrb[110].mxu0  ;;  %v5974_v45 = vmul.f32 0.5, %v19402_v0 }
0x1267   :  { %v15794_v17 = vpop.eup %15793  ;;  %v19409_v46 = vadd.f32 %v19342_v25, %v14099_v19  ;;  %v5937_v32 = vpop.f32.mrb[111].mxu0 }
0x1268   :  { %v15796_v62 = vpop.eup %15795  ;;  %v19412_v39 = vadd.f32 %v19342_v25, %v5937_v32  ;;  %6092 = vrot.lane.b32.xlu1 %v15794_v17, %s16744_s30 }
0x1269   :  { %15805 = vtanh.f32 %v19409_v46  ;;  %6090 = vrot.lane.b32.xlu0 %v15796_v62, %s16744_s30 }
0x126a   :  { %15807 = vtanh.f32 %v19412_v39 }
0x126b   :  { %v15798_v10 = vpop.eup %15797  ;;  %15809 = vtanh.f32 %v5963_v13  ;;  %v5976_v13 = vmul.f32 0.5, %v19412_v39 }
0x126c   :  { %v15800_v23 = vpop.eup %15799  ;;  %6096 = vrot.lane.b32.xlu1 %v15798_v10, %s16744_s30  ;;  %15811 = vtanh.f32 %v5962_v16 }
0x126d   :  { %6094 = vrot.lane.b32.xlu0 %v15800_v23, %s16744_s30  ;;  %15813 = vtanh.f32 %v5965_v15 }
0x126e   :  { %15815 = vtanh.f32 %v5964_v43 }
0x126f   :  { %v15802_v28 = vpop.eup %15801  ;;  %15817 = vtanh.f32 %v5967_v21 }
0x1270   :  { %v15804_v33 = vpop.eup %15803  ;;  %6100 = vrot.lane.b32.xlu1 %v15802_v28, %s16744_s30  ;;  %15819 = vtanh.f32 %v5966_v3 }
0x1271   :  { %6098 = vrot.lane.b32.xlu0 %v15804_v33, %s16744_s30  ;;  %15821 = vtanh.f32 %v5969_v50 }
0x1272   :  { %15823 = vtanh.f32 %v5968_v29 }
0x1273   :  { %v15806_v52 = vpop.eup %15805  ;;  %15825 = vtanh.f32 %v5971_v27 }
0x1274   :  { %v15808_v4 = vpop.eup %15807  ;;  %6104 = vrot.lane.b32.xlu1 %v15806_v52, %s16744_s30  ;;  %15827 = vtanh.f32 %v5970_v18  ;;  %v5977_v52 = vmul.f32 0.5, %v19409_v46 }
0x1275   :  { %6102 = vrot.lane.b32.xlu0 %v15808_v4, %s16744_s30  ;;  %v15810_v61 = vpop.eup %15809  ;;  %15829 = vtanh.f32 %v5973_v58 }
0x1276   :  { %v15812_v26 = vpop.eup %15811  ;;  %v5995_v8 = vmul.f32 0.5, %v15810_v61  ;;  %15831 = vtanh.f32 %v5972_v30 }
0x1277   :  { %v15814_v48 = vpop.eup %15813  ;;  %v5994_v42 = vmul.f32 0.5, %v15812_v26  ;;  %15833 = vtanh.f32 %v5975_v38 }
0x1278   :  { %v15816_v22 = vpop.eup %15815  ;;  %v5997_v24 = vmul.f32 0.5, %v15814_v48  ;;  %v19436_v35 = vadd.f32 0.5, %v5995_v8  ;;  %15835 = vtanh.f32 %v5974_v45 }
0x1279   :  { %v15818_v49 = vpop.eup %15817  ;;  %v5996_v53 = vmul.f32 0.5, %v15816_v22  ;;  %v19438_v7 = vadd.f32 0.5, %v5994_v42  ;;  %15837 = vtanh.f32 %v5977_v52 }
0x127a   :  { %v15820_v34 = vpop.eup %15819  ;;  %v5999_v19 = vmul.f32 0.5, %v15818_v49  ;;  %v19445_v17 = vadd.f32 0.5, %v5997_v24  ;;  %15839 = vtanh.f32 %v5976_v13 }
0x127b   :  { %v15822_v32 = vpop.eup %15821  ;;  %v5998_v62 = vmul.f32 0.5, %v15820_v34  ;;  %v19448_v23 = vadd.f32 0.5, %v5996_v53 }
0x127c   :  { %v15824_v28 = vpop.eup %15823  ;;  %v6001_v4 = vmul.f32 0.5, %v15822_v32  ;;  %v19455_v16 = vadd.f32 0.5, %v5999_v19 }
0x127d   :  { %v15826_v15 = vpop.eup %15825  ;;  %v6000_v43 = vmul.f32 0.5, %v15824_v28  ;;  %v19458_v3 = vadd.f32 0.5, %v5998_v62 }
0x127e   :  { %v15828_v50 = vpop.eup %15827  ;;  %v6003_v26 = vmul.f32 0.5, %v15826_v15  ;;  %v19463_v39 = vadd.f32 0.5, %v6001_v4 }
0x127f   :  { %v15830_v27 = vpop.eup %15829  ;;  %v6002_v8 = vmul.f32 0.5, %v15828_v50  ;;  %v19466_v48 = vadd.f32 0.5, %v6000_v43 }
0x1280   :  { %v15832_v42 = vpop.eup %15831  ;;  %v6005_v30 = vmul.f32 0.5, %v15830_v27  ;;  %v19471_v49 = vadd.f32 0.5, %v6003_v26 }
0x1281   :  { %v15834_v53 = vpop.eup %15833 }
0x1282   :  { %v6007_v45 = vmul.f32 0.5, %v15834_v53  ;;  %v19479_v32 = vadd.f32 0.5, %v6005_v30  ;;  %v6042_v30 = vmul.f32 %v19438_v7, %v19178_v51 }
0x1284   :  { %v19487_v15 = vadd.f32 0.5, %v6007_v45  ;;  %v6047_v45 = vmul.f32 %v19455_v16, %v19196_v36  ;;  %v6048_v36 = vmul.f32 %v19466_v48, %v19208_v20 }
0x12ca   :  { %v6077_v5 = vpop.permute.xlu1 %6076 }
0x12cb   :  { %v6123_v40 = vmul.f32 %v6077_v5, %v19436_v35  ;;  %v6075_v6 = vpop.permute.xlu0 %6074  ;;  %v6004_v5 = vmul.f32 0.5, %v15832_v42 }
0x12cc   :  { %v6122_v60 = vmul.f32 %v6075_v6, %v19438_v7  ;;  %v15836_v6 = vpop.eup %15835 }
0x12cd   :  { %6156 = vrot.lane.b32.xlu1 %v6123_v40, %s16744_s30  ;;  %v19474_v40 = vadd.f32 0.5, %v6002_v8  ;;  %v15838_v62 = vpop.eup %15837 }
0x12ce   :  { %v6081_v10 = vpop.permute.xlu1 %6080  ;;  %6154 = vrot.lane.b32.xlu0 %v6122_v60, %s16744_s30  ;;  %v6009_v13 = vmul.f32 0.5, %v15838_v62 }
0x12cf   :  { %v6125_v2 = vmul.f32 %v6081_v10, %v19445_v17  ;;  %v6079_v33 = vpop.permute.xlu0 %6078  ;;  %v6006_v10 = vmul.f32 0.5, %v15836_v6  ;;  %v6045_v6 = vmul.f32 %v19445_v17, %v19186_v56  ;;  %v6046_v56 = vmul.f32 %v19458_v3, %v19198_v9 }
0x12d0   :  { %v6124_v0 = vmul.f32 %v6079_v33, %v19448_v23  ;;  %v15840_v33 = vpop.eup %15839  ;;  %v19495_v26 = vadd.f32 0.5, %v6009_v13  ;;  %v6050_v20 = vmul.f32 %v19474_v40, %v19220_v11 }
0x12d1   :  { %6160 = vrot.lane.b32.xlu1 %v6125_v2, %s16744_s30  ;;  %v19482_v2 = vadd.f32 0.5, %v6004_v5  ;;  %v6008_v43 = vmul.f32 0.5, %v15840_v33  ;;  %v19490_v50 = vadd.f32 0.5, %v6006_v10  ;;  %v6049_v33 = vmul.f32 %v19463_v39, %v19206_v44 }
0x12d2   :  { %v6085_v21 = vpop.permute.xlu1 %6084  ;;  %6158 = vrot.lane.b32.xlu0 %v6124_v0, %s16744_s30  ;;  %v6051_v44 = vmul.f32 %v19471_v49, %v19218_v54  ;;  %v6053_v54 = vmul.f32 %v19479_v32, %v19230_v55  ;;  %v6055_v55 = vmul.f32 %v19487_v15, %v19242_v47  ;;  %v6057_v47 = vmul.f32 %v19495_v26, %v19254_v59 }
0x12d3   :  { %v6127_v46 = vmul.f32 %v6085_v21, %v19455_v16  ;;  %v6083_v29 = vpop.permute.xlu0 %6082  ;;  %v19498_v8 = vadd.f32 0.5, %v6008_v43  ;;  %v6052_v11 = vmul.f32 %v19482_v2, %v19232_v41  ;;  %v6054_v41 = vmul.f32 %v19490_v50, %v19244_v31 }
0x12d4   :  { %v6126_v61 = vmul.f32 %v6083_v29, %v19458_v3 }
0x12d5   :  { %6164 = vrot.lane.b32.xlu1 %v6127_v46, %s16744_s30  ;;  %v6056_v31 = vmul.f32 %v19498_v8, %v19256_v12 }
0x12d6   :  { %v6089_v18 = vpop.permute.xlu1 %6088  ;;  %6162 = vrot.lane.b32.xlu0 %v6126_v61, %s16744_s30 }
0x12d7   :  { %v6129_v22 = vmul.f32 %v6089_v18, %v19463_v39  ;;  %v6087_v58 = vpop.permute.xlu0 %6086 }
0x12d8   :  { %v6128_v24 = vmul.f32 %v6087_v58, %v19466_v48  ;;  %v6043_v58 = vmul.f32 %v19436_v35, %v19176_v63  ;;  %v6044_v63 = vmul.f32 %v19448_v23, %v19188_v57 }
0x12d9   :  { %6168 = vrot.lane.b32.xlu1 %v6129_v22, %s16744_s30 }
0x12da   :  { %v6093_v34 = vpop.permute.xlu1 %6092  ;;  %6166 = vrot.lane.b32.xlu0 %v6128_v24, %s16744_s30 }
0x12db   :  { %v6131_v38 = vmul.f32 %v6093_v34, %v19471_v49  ;;  %v6091_v60 = vpop.permute.xlu0 %6090 }
0x12dc   :  { %v6130_v19 = vmul.f32 %v6091_v60, %v19474_v40 }
0x12dd   :  { %6172 = vrot.lane.b32.xlu1 %v6131_v38, %s16744_s30 }
0x12de   :  { %v6097_v28 = vpop.permute.xlu1 %6096  ;;  %6170 = vrot.lane.b32.xlu0 %v6130_v19, %s16744_s30 }
0x12df   :  { %v6133_v52 = vmul.f32 %v6097_v28, %v19479_v32  ;;  %v6095_v0 = vpop.permute.xlu0 %6094 }
0x12e0   :  { %v6132_v4 = vmul.f32 %v6095_v0, %v19482_v2 }
0x12e1   :  { %6176 = vrot.lane.b32.xlu1 %v6133_v52, %s16744_s30 }
0x12e2   :  { %v6101_v21 = vpop.permute.xlu1 %6100  ;;  %6174 = vrot.lane.b32.xlu0 %v6132_v4, %s16744_s30 }
0x12e3   :  { %v6135_v46 = vmul.f32 %v6101_v21, %v19487_v15  ;;  %v6099_v29 = vpop.permute.xlu0 %6098 }
0x12e4   :  { %v6134_v61 = vmul.f32 %v6099_v29, %v19490_v50 }
0x12e5   :  { %6180 = vrot.lane.b32.xlu1 %v6135_v46, %s16744_s30 }
0x12e6   :  { %v6105_v27 = vpop.permute.xlu1 %6104  ;;  %6178 = vrot.lane.b32.xlu0 %v6134_v61, %s16744_s30 }
0x12e7   :  { %v6137_v18 = vmul.f32 %v6105_v27, %v19495_v26  ;;  %v6103_v42 = vpop.permute.xlu0 %6102 }
0x12e8   :  { %v6136_v22 = vmul.f32 %v6103_v42, %v19498_v8 }
0x12e9   :  { %6184 = vrot.lane.b32.xlu1 %v6137_v18, %s16744_s30 }
0x12ea   :  { %6182 = vrot.lane.b32.xlu0 %v6136_v22, %s16744_s30 }
0x133f   :  { %v6157_v24 = vpop.permute.xlu1 %6156 }
0x1340   :  { %v19508_v53 = vadd.f32 %v6157_v24, %v6043_v58  ;;  %v6155_v5 = vpop.permute.xlu0 %6154 }
0x1341   :  { %v19510_v34 = vadd.f32 %v6155_v5, %v6042_v30 }
0x1342   :  { %15841 = vtanh.f32 %v19508_v53 }
0x1343   :  { %15843 = vtanh.f32 %v19510_v34  ;;  %v6161_v38 = vpop.permute.xlu1 %6160 }
0x1344   :  { %v19518_v60 = vadd.f32 %v6161_v38, %v6045_v6  ;;  %v6159_v19 = vpop.permute.xlu0 %6158 }
0x1345   :  { %v19520_v51 = vadd.f32 %v6159_v19, %v6044_v63 }
0x1346   :  { %15845 = vtanh.f32 %v19518_v60 }
0x1347   :  { %15847 = vtanh.f32 %v19520_v51  ;;  %v6165_v62 = vpop.permute.xlu1 %6164 }
0x1348   :  { %v19528_v10 = vadd.f32 %v6165_v62, %v6047_v45  ;;  %v6163_v28 = vpop.permute.xlu0 %6162 }
0x1349   :  { %v19530_v57 = vadd.f32 %v6163_v28, %v6046_v56 }
0x134a   :  { %15849 = vtanh.f32 %v19528_v10 }
0x134b   :  { %15851 = vtanh.f32 %v19530_v57  ;;  %v6169_v52 = vpop.permute.xlu1 %6168 }
0x134c   :  { %v15842_v0 = vpop.eup %15841  ;;  %v19538_v4 = vadd.f32 %v6169_v52, %v6049_v33  ;;  %v6167_v9 = vpop.permute.xlu0 %6166 }
0x134d   :  { %v15844_v13 = vpop.eup %15843  ;;  %v19540_v43 = vadd.f32 %v6167_v9, %v6048_v36  ;;  %6252 = vrot.lane.b32.xlu1 %v15842_v0, %s16744_s30 }
0x134e   :  { %15853 = vtanh.f32 %v19538_v4  ;;  %6250 = vrot.lane.b32.xlu0 %v15844_v13, %s16744_s30 }
0x134f   :  { %15855 = vtanh.f32 %v19540_v43  ;;  %v6173_v21 = vpop.permute.xlu1 %6172 }
0x1350   :  { %v15846_v46 = vpop.eup %15845  ;;  %v19550_v29 = vadd.f32 %v6173_v21, %v6051_v44  ;;  %v6171_v61 = vpop.permute.xlu0 %6170 }
0x1351   :  { %v15848_v27 = vpop.eup %15847  ;;  %v19552_v18 = vadd.f32 %v6171_v61, %v6050_v20  ;;  %6256 = vrot.lane.b32.xlu1 %v15846_v46, %s16744_s30 }
0x1352   :  { %15857 = vtanh.f32 %v19550_v29  ;;  %6254 = vrot.lane.b32.xlu0 %v15848_v27, %s16744_s30 }
0x1353   :  { %15859 = vtanh.f32 %v19552_v18  ;;  %v6177_v42 = vpop.permute.xlu1 %6176 }
0x1354   :  { %v15850_v22 = vpop.eup %15849  ;;  %v19562_v58 = vadd.f32 %v6177_v42, %v6053_v54  ;;  %v6175_v24 = vpop.permute.xlu0 %6174 }
0x1355   :  { %v15852_v30 = vpop.eup %15851  ;;  %v19564_v5 = vadd.f32 %v6175_v24, %v6052_v11  ;;  %6260 = vrot.lane.b32.xlu1 %v15850_v22, %s16744_s30 }
0x1356   :  { %15861 = vtanh.f32 %v19562_v58  ;;  %6258 = vrot.lane.b32.xlu0 %v15852_v30, %s16744_s30 }
0x1357   :  { %15863 = vtanh.f32 %v19564_v5  ;;  %v6181_v6 = vpop.permute.xlu1 %6180 }
0x1358   :  { %v15854_v38 = vpop.eup %15853  ;;  %v19574_v63 = vadd.f32 %v6181_v6, %v6055_v55  ;;  %v6179_v19 = vpop.permute.xlu0 %6178 }
0x1359   :  { %v15856_v45 = vpop.eup %15855  ;;  %v19576_v62 = vadd.f32 %v6179_v19, %v6054_v41  ;;  %6264 = vrot.lane.b32.xlu1 %v15854_v38, %s16744_s30 }
0x135a   :  { %15865 = vtanh.f32 %v19574_v63  ;;  %6262 = vrot.lane.b32.xlu0 %v15856_v45, %s16744_s30 }
0x135b   :  { %15867 = vtanh.f32 %v19576_v62  ;;  %v6185_v56 = vpop.permute.xlu1 %6184 }
0x135c   :  { %v15858_v28 = vpop.eup %15857  ;;  %v19586_v33 = vadd.f32 %v6185_v56, %v6057_v47  ;;  %v6183_v52 = vpop.permute.xlu0 %6182 }
0x135d   :  { %v15860_v36 = vpop.eup %15859  ;;  %v19588_v0 = vadd.f32 %v6183_v52, %v6056_v31  ;;  %6268 = vrot.lane.b32.xlu1 %v15858_v28, %s16744_s30 }
0x135e   :  { %15869 = vtanh.f32 %v19586_v33  ;;  %6266 = vrot.lane.b32.xlu0 %v15860_v36, %s16744_s30 }
0x135f   :  { %15871 = vtanh.f32 %v19588_v0 }
0x1360   :  { %v15862_v59 = vpop.eup %15861 }
0x1361   :  { %v15864_v9 = vpop.eup %15863  ;;  %6272 = vrot.lane.b32.xlu1 %v15862_v59, %s16744_s30 }
0x1362   :  { %6270 = vrot.lane.b32.xlu0 %v15864_v9, %s16744_s30 }
0x1364   :  { %v15866_v12 = vpop.eup %15865 }
0x1365   :  { %v15868_v13 = vpop.eup %15867  ;;  %6276 = vrot.lane.b32.xlu1 %v15866_v12, %s16744_s30 }
0x1366   :  { %6274 = vrot.lane.b32.xlu0 %v15868_v13, %s16744_s30 }
0x1368   :  { %v15870_v44 = vpop.eup %15869 }
0x1369   :  { %v15872_v21 = vpop.eup %15871  ;;  %6280 = vrot.lane.b32.xlu1 %v15870_v44, %s16744_s30 }
0x136a   :  { %6278 = vrot.lane.b32.xlu0 %v15872_v21, %s16744_s30 }
0x13bf   :  { %v6253_v20 = vpop.permute.xlu1 %6252 }
0x13c0   :  { %v6299_v46 = vmul.f32 %v6253_v20, %v19436_v35  ;;  %v6251_v61 = vpop.permute.xlu0 %6250 }
0x13c1   :  { %v6298_v27 = vmul.f32 %v6251_v61, %v19438_v7  ;;  %v13674_v61 = vpop.f32.mrb[0].mxu1 }
0x13c2   :  { %6332 = vrot.lane.b32.xlu1 %v6299_v46, %s16745_s0 }
0x13c3   :  { %v6257_v54 = vpop.permute.xlu1 %6256  ;;  %6330 = vrot.lane.b32.xlu0 %v6298_v27, %s16745_s0  ;;  %v1228_v27 = vpop.f32.mrb[1].mxu1 }
0x13c4   :  { %v6301_v42 = vmul.f32 %v6257_v54, %v19445_v17  ;;  %v6255_v11 = vpop.permute.xlu0 %6254  ;;  %v13677_v54 = vpop.f32.mrb[2].mxu1 }
0x13c5   :  { %v6300_v22 = vmul.f32 %v6255_v11, %v19448_v23 }
0x13c6   :  { %6336 = vrot.lane.b32.xlu1 %v6301_v42, %s16745_s0  ;;  %v1238_v42 = vpop.f32.mrb[3].mxu1 }
0x13c7   :  { %v6261_v24 = vpop.permute.xlu1 %6260  ;;  %6334 = vrot.lane.b32.xlu0 %v6300_v22, %s16745_s0  ;;  %v13680_v11 = vpop.f32.mrb[4].mxu1 }
0x13c8   :  { %v6303_v35 = vmul.f32 %v6261_v24, %v19455_v16  ;;  %v6259_v30 = vpop.permute.xlu0 %6258  ;;  %v1248_v22 = vpop.f32.mrb[5].mxu1 }
0x13c9   :  { %v6302_v7 = vmul.f32 %v6259_v30, %v19458_v3  ;;  %v13683_v24 = vpop.f32.mrb[6].mxu1 }
0x13ca   :  { %6340 = vrot.lane.b32.xlu1 %v6303_v35, %s16745_s0  ;;  %v19667_v35 = vpop.f32.mrb[7].mxu1 }
0x13cb   :  { %v6265_v55 = vpop.permute.xlu1 %6264  ;;  %6338 = vrot.lane.b32.xlu0 %v6302_v7, %s16745_s0 }
0x13cc   :  { %v6305_v17 = vmul.f32 %v6265_v55, %v19463_v39  ;;  %v6263_v6 = vpop.permute.xlu0 %6262 }
0x13cd   :  { %v6304_v23 = vmul.f32 %v6263_v6, %v19466_v48 }
0x13ce   :  { %6344 = vrot.lane.b32.xlu1 %v6305_v17, %s16745_s0 }
0x13cf   :  { %v6269_v41 = vpop.permute.xlu1 %6268  ;;  %6342 = vrot.lane.b32.xlu0 %v6304_v23, %s16745_s0 }
0x13d0   :  { %v6307_v16 = vmul.f32 %v6269_v41, %v19471_v49  ;;  %v6267_v38 = vpop.permute.xlu0 %6266 }
0x13d1   :  { %v6306_v3 = vmul.f32 %v6267_v38, %v19474_v40 }
0x13d2   :  { %6348 = vrot.lane.b32.xlu1 %v6307_v16, %s16745_s0 }
0x13d3   :  { %v6273_v19 = vpop.permute.xlu1 %6272  ;;  %6346 = vrot.lane.b32.xlu0 %v6306_v3, %s16745_s0 }
0x13d4   :  { %v6309_v39 = vmul.f32 %v6273_v19, %v19479_v32  ;;  %v6271_v45 = vpop.permute.xlu0 %6270 }
0x13d5   :  { %v6308_v48 = vmul.f32 %v6271_v45, %v19482_v2 }
0x13d6   :  { %6352 = vrot.lane.b32.xlu1 %v6309_v39, %s16745_s0 }
0x13d7   :  { %v6277_v47 = vpop.permute.xlu1 %6276  ;;  %6350 = vrot.lane.b32.xlu0 %v6308_v48, %s16745_s0 }
0x13d8   :  { %v6311_v49 = vmul.f32 %v6277_v47, %v19487_v15  ;;  %v6275_v56 = vpop.permute.xlu0 %6274 }
0x13d9   :  { %v6310_v40 = vmul.f32 %v6275_v56, %v19490_v50  ;;  %v1234_v56 = vadd.f32 %v19342_v25, %v13674_v61 }
0x13da   :  { %6356 = vrot.lane.b32.xlu1 %v6311_v49, %s16745_s0 }
0x13db   :  { %v6281_v31 = vpop.permute.xlu1 %6280  ;;  %6354 = vrot.lane.b32.xlu0 %v6310_v40, %s16745_s0 }
0x13dc   :  { %v6313_v32 = vmul.f32 %v6281_v31, %v19495_v26  ;;  %v6279_v28 = vpop.permute.xlu0 %6278 }
0x13dd   :  { %v6312_v2 = vmul.f32 %v6279_v28, %v19498_v8 }
0x13de   :  { %6360 = vrot.lane.b32.xlu1 %v6313_v32, %s16745_s0  ;;  %v1229_v32 = vadd.f32 %v19342_v25, %v1228_v27 }
0x13df   :  { %6358 = vrot.lane.b32.xlu0 %v6312_v2, %s16745_s0 }
0x1434   :  { %v6333_v52 = vpop.permute.xlu1 %6332 }
0x1435   :  { %v6331_v36 = vpop.permute.xlu0 %6330 }
0x1436   :  { %14108 = vmatprep.mubr.msk.f32.mxu1 %vm1267_vm1, %v6331_v36  ;;  %14140 = vmatprep.mubr.msk.f32.mxu0 %vm1267_vm1, %v6331_v36 }
0x1437   :  { %14109 = vmatmul.mubr.msk.f32.vlgmr.msra.gmra.mrb[104].mxu1 %vm1267_vm1, %v6333_v52  ;;  %14141 = vmatmul.mubr.msk.f32.vlgmr.msra.gmra.mrb[112].mxu0 %vm1267_vm1, %v6333_v52 }
0x1438   :  { %v6337_v15 = vpop.permute.xlu1 %6336  ;;  %14607 = vmatpush3.bf16.msra.mxu1 %v17582_v14 }
0x1439   :  { %v6335_v50 = vpop.permute.xlu0 %6334  ;;  %14609 = vmatprep.subr.bf16.mxu1 %v17613_v37 }
0x143a   :  { %14111 = vmatprep.mubr.msk.f32.mxu1 %vm1267_vm1, %v6335_v50  ;;  %14143 = vmatprep.mubr.msk.f32.mxu0 %vm1267_vm1, %v6335_v50 }
0x143b   :  { %14112 = vmatmul.mubr.msk.f32.gmra.mrb[106].mxu1 %vm1267_vm1, %v6337_v15  ;;  %14144 = vmatmul.mubr.msk.f32.gmra.mrb[114].mxu0 %vm1267_vm1, %v6337_v15  ;;  %v1244_v15 = vadd.f32 %v19342_v25, %v13677_v54  ;;  %v1264_v54 = vadd.f32 %v19342_v25, %v13683_v24 }
0x143c   :  { %v6341_v26 = vpop.permute.xlu1 %6340  ;;  %14611 = vmatpush3.bf16.msra.mxu1 %v17613_v37 }
0x143d   :  { %v6339_v8 = vpop.permute.xlu0 %6338 }
0x143e   :  { %14114 = vmatprep.mubr.msk.f32.mxu1 %vm1267_vm1, %v6339_v8  ;;  %14146 = vmatprep.mubr.msk.f32.mxu0 %vm1267_vm1, %v6339_v8  ;;  %v1239_v8 = vadd.f32 %v19342_v25, %v1238_v42 }
0x143f   :  { %14115 = vmatmul.mubr.msk.f32.gmra.mrb[108].mxu1 %vm1267_vm1, %v6341_v26  ;;  %14147 = vmatmul.mubr.msk.f32.gmra.mrb[116].mxu0 %vm1267_vm1, %v6341_v26 }
0x1440   :  { %v6345_v14 = vpop.permute.xlu1 %6344 }
0x1441   :  { %v6343_v59 = vpop.permute.xlu0 %6342 }
0x1442   :  { %14117 = vmatprep.mubr.msk.f32.mxu1 %vm1267_vm1, %v6343_v59  ;;  %14149 = vmatprep.mubr.msk.f32.mxu0 %vm1267_vm1, %v6343_v59 }
0x1443   :  { %14118 = vmatmul.mubr.msk.f32.gmra.mrb[110].mxu1 %vm1267_vm1, %v6345_v14  ;;  %14150 = vmatmul.mubr.msk.f32.gmra.mrb[118].mxu0 %vm1267_vm1, %v6345_v14 }
0x1444   :  { %v6349_v37 = vpop.permute.xlu1 %6348 }
0x1445   :  { %v6347_v9 = vpop.permute.xlu0 %6346 }
0x1446   :  { %14120 = vmatprep.mubr.msk.f32.mxu1 %vm1267_vm1, %v6347_v9  ;;  %14152 = vmatprep.mubr.msk.f32.mxu0 %vm1267_vm1, %v6347_v9 }
0x1447   :  { %14121 = vmatmul.mubr.msk.f32.gmra.mrb[112].mxu1 %vm1267_vm1, %v6349_v37  ;;  %14153 = vmatmul.mubr.msk.f32.gmra.mrb[120].mxu0 %vm1267_vm1, %v6349_v37 }
0x1448   :  { %v6353_v12 = vpop.permute.xlu1 %6352 }
0x1449   :  { %v6351_v13 = vpop.permute.xlu0 %6350 }
0x144a   :  { %14123 = vmatprep.mubr.msk.f32.mxu1 %vm1267_vm1, %v6351_v13  ;;  %14155 = vmatprep.mubr.msk.f32.mxu0 %vm1267_vm1, %v6351_v13 }
0x144b   :  { %14124 = vmatmul.mubr.msk.f32.gmra.mrb[114].mxu1 %vm1267_vm1, %v6353_v12  ;;  %14156 = vmatmul.mubr.msk.f32.gmra.mrb[122].mxu0 %vm1267_vm1, %v6353_v12  ;;  %v1254_v12 = vadd.f32 %v19342_v25, %v13680_v11 }
0x144c   :  { %v6357_v44 = vpop.permute.xlu1 %6356 }
0x144d   :  { %v6355_v21 = vpop.permute.xlu0 %6354 }
0x144e   :  { %14126 = vmatprep.mubr.msk.f32.mxu1 %vm1267_vm1, %v6355_v21  ;;  %14158 = vmatprep.mubr.msk.f32.mxu0 %vm1267_vm1, %v6355_v21  ;;  %v1249_v21 = vadd.f32 %v19342_v25, %v1248_v22  ;;  %v1259_v22 = vadd.f32 %v19342_v25, %v19667_v35 }
0x144f   :  { %14127 = vmatmul.mubr.msk.f32.gmra.mrb[116].mxu1 %vm1267_vm1, %v6357_v44  ;;  %14159 = vmatmul.mubr.msk.f32.gmra.mrb[124].mxu0 %vm1267_vm1, %v6357_v44 }
0x1450   :  { %v6361_v46 = vpop.permute.xlu1 %6360 }
0x1451   :  { %v6359_v20 = vpop.permute.xlu0 %6358 }
0x1452   :  { %14129 = vmatprep.mubr.msk.f32.mxu1 %vm1267_vm1, %v6359_v20  ;;  %14161 = vmatprep.mubr.msk.f32.mxu0 %vm1267_vm1, %v6359_v20 }
0x1453   :  { %14130 = vmatmul.mubr.msk.f32.gmra.mrb[118].mxu1 %vm1267_vm1, %v6361_v46  ;;  %14162 = vmatmul.mubr.msk.f32.gmra.mrb[126].mxu0 %vm1267_vm1, %v6361_v46 }
0x150a   :  { %v14142_v30 = vpop.f32.mrb[112].mxu0 }
0x150b   :  { %v19670_v7 = vadd.f32 %v19342_v25, %v14142_v30  ;;  %v6621_v55 = vpop.f32.mrb[113].mxu0 }
0x150c   :  { %v19673_v17 = vadd.f32 %v19342_v25, %v6621_v55 }
0x150d   :  { %15873 = vtanh.f32 %v19670_v7 }
0x150e   :  { %15875 = vtanh.f32 %v19673_v17  ;;  %v14145_v6 = vpop.f32.mrb[114].mxu0 }
0x150f   :  { %v19678_v23 = vadd.f32 %v19342_v25, %v14145_v6  ;;  %v6631_v41 = vpop.f32.mrb[115].mxu0 }
0x1510   :  { %v19681_v16 = vadd.f32 %v19342_v25, %v6631_v41 }
0x1511   :  { %15877 = vtanh.f32 %v19678_v23 }
0x1512   :  { %15879 = vtanh.f32 %v19681_v16  ;;  %v14148_v38 = vpop.f32.mrb[116].mxu0 }
0x1513   :  { %v19686_v3 = vadd.f32 %v19342_v25, %v14148_v38  ;;  %v6641_v19 = vpop.f32.mrb[117].mxu0 }
0x1514   :  { %v19689_v39 = vadd.f32 %v19342_v25, %v6641_v19 }
0x1515   :  { %15881 = vtanh.f32 %v19686_v3 }
0x1516   :  { %15883 = vtanh.f32 %v19689_v39  ;;  %v14151_v45 = vpop.f32.mrb[118].mxu0 }
0x1517   :  { %v15874_v48 = vpop.eup %15873  ;;  %v19694_v47 = vadd.f32 %v19342_v25, %v14151_v45  ;;  %v6651_v49 = vpop.f32.mrb[119].mxu0 }
0x1518   :  { %v15876_v40 = vpop.eup %15875  ;;  %v19698_v31 = vadd.f32 %v19342_v25, %v6651_v49  ;;  %6830 = vrot.lane.b32.xlu1 %v15874_v48, %s16744_s30 }
0x1519   :  { %15885 = vtanh.f32 %v19694_v47  ;;  %6828 = vrot.lane.b32.xlu0 %v15876_v40, %s16744_s30  ;;  %v6716_v40 = vmul.f32 0.5, %v19673_v17 }
0x151a   :  { %15887 = vtanh.f32 %v19698_v31  ;;  %v14154_v28 = vpop.f32.mrb[120].mxu0 }
0x151b   :  { %v15878_v2 = vpop.eup %15877  ;;  %v19705_v52 = vadd.f32 %v14154_v28, %v1234_v56  ;;  %v6661_v36 = vpop.f32.mrb[121].mxu0  ;;  %v6717_v56 = vmul.f32 0.5, %v19670_v7  ;;  %v6718_v28 = vmul.f32 0.5, %v19681_v16  ;;  %v6722_v7 = vmul.f32 0.5, %v19698_v31 }
0x151c   :  { %v15880_v50 = vpop.eup %15879  ;;  %v19708_v26 = vadd.f32 %v6661_v36, %v1229_v32  ;;  %6834 = vrot.lane.b32.xlu1 %v15878_v2, %s16744_s30  ;;  %v6719_v32 = vmul.f32 0.5, %v19678_v23  ;;  %v6721_v2 = vmul.f32 0.5, %v19686_v3  ;;  %v6720_v36 = vmul.f32 0.5, %v19689_v39 }
0x151d   :  { %15889 = vtanh.f32 %v19705_v52  ;;  %6832 = vrot.lane.b32.xlu0 %v15880_v50, %s16744_s30  ;;  %v6725_v23 = vmul.f32 0.5, %v19705_v52 }
0x151e   :  { %15891 = vtanh.f32 %v19708_v26  ;;  %v14157_v14 = vpop.f32.mrb[122].mxu0  ;;  %v6724_v16 = vmul.f32 0.5, %v19708_v26 }
0x151f   :  { %v15882_v59 = vpop.eup %15881  ;;  %v19715_v37 = vadd.f32 %v14157_v14, %v1244_v15  ;;  %v6671_v9 = vpop.f32.mrb[123].mxu0  ;;  %v6723_v15 = vmul.f32 0.5, %v19694_v47 }
0x1520   :  { %v15884_v13 = vpop.eup %15883  ;;  %v19718_v44 = vadd.f32 %v6671_v9, %v1239_v8  ;;  %6838 = vrot.lane.b32.xlu1 %v15882_v59, %s16744_s30 }
0x1521   :  { %15893 = vtanh.f32 %v19715_v37  ;;  %6836 = vrot.lane.b32.xlu0 %v15884_v13, %s16744_s30  ;;  %v6727_v39 = vmul.f32 0.5, %v19715_v37 }
0x1522   :  { %15895 = vtanh.f32 %v19718_v44  ;;  %v14160_v20 = vpop.f32.mrb[124].mxu0  ;;  %v6726_v47 = vmul.f32 0.5, %v19718_v44 }
0x1523   :  { %v15886_v46 = vpop.eup %15885  ;;  %v19725_v61 = vadd.f32 %v14160_v20, %v1254_v12  ;;  %v6681_v27 = vpop.f32.mrb[125].mxu0 }
0x1524   :  { %v15888_v42 = vpop.eup %15887  ;;  %v19728_v11 = vadd.f32 %v6681_v27, %v1249_v21  ;;  %6842 = vrot.lane.b32.xlu1 %v15886_v46, %s16744_s30 }
0x1525   :  { %15897 = vtanh.f32 %v19725_v61  ;;  %6840 = vrot.lane.b32.xlu0 %v15888_v42, %s16744_s30  ;;  %v6729_v27 = vmul.f32 0.5, %v19725_v61 }
0x1526   :  { %15899 = vtanh.f32 %v19728_v11  ;;  %v14163_v30 = vpop.f32.mrb[126].mxu0  ;;  %v6728_v44 = vmul.f32 0.5, %v19728_v11 }
0x1527   :  { %v15890_v55 = vpop.eup %15889  ;;  %v19736_v6 = vadd.f32 %v14163_v30, %v1264_v54  ;;  %v6691_v41 = vpop.f32.mrb[127].mxu0 }
0x1528   :  { %v15892_v24 = vpop.eup %15891  ;;  %v19738_v38 = vadd.f32 %v6691_v41, %v1259_v22  ;;  %6846 = vrot.lane.b32.xlu1 %v15890_v55, %s16744_s30 }
0x1529   :  { %15901 = vtanh.f32 %v19736_v6  ;;  %6844 = vrot.lane.b32.xlu0 %v15892_v24, %s16744_s30 }
0x152a   :  { %15903 = vtanh.f32 %v19738_v38 }
0x152b   :  { %v15894_v25 = vpop.eup %15893  ;;  %15905 = vtanh.f32 %v6717_v56 }
0x152c   :  { %v15896_v35 = vpop.eup %15895  ;;  %6850 = vrot.lane.b32.xlu1 %v15894_v25, %s16744_s30  ;;  %15907 = vtanh.f32 %v6716_v40 }
0x152d   :  { %6848 = vrot.lane.b32.xlu0 %v15896_v35, %s16744_s30  ;;  %15909 = vtanh.f32 %v6719_v32  ;;  %v6731_v35 = vmul.f32 0.5, %v19736_v6 }
0x152e   :  { %15911 = vtanh.f32 %v6718_v28 }
0x152f   :  { %v15898_v19 = vpop.eup %15897  ;;  %15913 = vtanh.f32 %v6721_v2 }
0x1530   :  { %v15900_v45 = vpop.eup %15899  ;;  %6854 = vrot.lane.b32.xlu1 %v15898_v19, %s16744_s30  ;;  %15915 = vtanh.f32 %v6720_v36 }
0x1531   :  { %6852 = vrot.lane.b32.xlu0 %v15900_v45, %s16744_s30  ;;  %15917 = vtanh.f32 %v6723_v15  ;;  %v6730_v45 = vmul.f32 0.5, %v19738_v38 }
0x1532   :  { %15919 = vtanh.f32 %v6722_v7 }
0x1533   :  { %v15902_v48 = vpop.eup %15901  ;;  %15921 = vtanh.f32 %v6725_v23 }
0x1534   :  { %v15904_v49 = vpop.eup %15903  ;;  %6858 = vrot.lane.b32.xlu1 %v15902_v48, %s16744_s30  ;;  %15923 = vtanh.f32 %v6724_v16 }
0x1535   :  { %6856 = vrot.lane.b32.xlu0 %v15904_v49, %s16744_s30  ;;  %v15906_v50 = vpop.eup %15905  ;;  %15925 = vtanh.f32 %v6727_v39 }
0x1536   :  { %v15908_v17 = vpop.eup %15907  ;;  %v6749_v8 = vmul.f32 0.5, %v15906_v50  ;;  %15927 = vtanh.f32 %v6726_v47 }
0x1537   :  { %v15910_v14 = vpop.eup %15909  ;;  %v6748_v3 = vmul.f32 0.5, %v15908_v17  ;;  %15929 = vtanh.f32 %v6729_v27 }
0x1538   :  { %v15912_v59 = vpop.eup %15911  ;;  %v6751_v9 = vmul.f32 0.5, %v15910_v14  ;;  %v19762_v31 = vadd.f32 0.5, %v6749_v8  ;;  %15931 = vtanh.f32 %v6728_v44 }
0x1539   :  { %v15914_v12 = vpop.eup %15913  ;;  %v6750_v13 = vmul.f32 0.5, %v15912_v59  ;;  %v19764_v52 = vadd.f32 0.5, %v6748_v3  ;;  %15933 = vtanh.f32 %v6731_v35 }
0x153a   :  { %v15916_v20 = vpop.eup %15915  ;;  %v6753_v54 = vmul.f32 0.5, %v15914_v12  ;;  %v19771_v42 = vadd.f32 0.5, %v6751_v9  ;;  %15935 = vtanh.f32 %v6730_v45 }
0x153b   :  { %v15918_v22 = vpop.eup %15917  ;;  %v6752_v30 = vmul.f32 0.5, %v15916_v20  ;;  %v19774_v41 = vadd.f32 0.5, %v6750_v13 }
0x153c   :  { %v15920_v24 = vpop.eup %15919  ;;  %v6755_v19 = vmul.f32 0.5, %v15918_v22  ;;  %v19781_v48 = vadd.f32 0.5, %v6753_v54 }
0x153d   :  { %v15922_v49 = vpop.eup %15921  ;;  %v6754_v56 = vmul.f32 0.5, %v15920_v24  ;;  %v19784_v32 = vadd.f32 0.5, %v6752_v30 }
0x153e   :  { %v15924_v28 = vpop.eup %15923  ;;  %v6757_v15 = vmul.f32 0.5, %v15922_v49  ;;  %v19789_v38 = vadd.f32 0.5, %v6755_v19 }
0x153f   :  { %v15926_v7 = vpop.eup %15925  ;;  %v6756_v50 = vmul.f32 0.5, %v15924_v28  ;;  %v19792_v23 = vadd.f32 0.5, %v6754_v56 }
0x1540   :  { %v15928_v8 = vpop.eup %15927  ;;  %v6759_v59 = vmul.f32 0.5, %v15926_v7  ;;  %v19797_v39 = vadd.f32 0.5, %v6757_v15 }
0x1541   :  { %v15930_v9 = vpop.eup %15929  ;;  %v6758_v47 = vmul.f32 0.5, %v15928_v8  ;;  %v19800_v13 = vadd.f32 0.5, %v6756_v50 }
0x1542   :  { %v6761_v27 = vmul.f32 0.5, %v15930_v9  ;;  %v6799_v9 = vmul.f32 %v19771_v42, %v19518_v60 }
0x1543   :  { %v19808_v30 = vadd.f32 0.5, %v6758_v47 }
0x158a   :  { %v6831_v21 = vpop.permute.xlu1 %6830 }
0x158b   :  { %v6877_v26 = vmul.f32 %v6831_v21, %v19762_v31  ;;  %v6829_v46 = vpop.permute.xlu0 %6828  ;;  %v15932_v21 = vpop.eup %15931 }
0x158c   :  { %v6876_v37 = vmul.f32 %v6829_v46, %v19764_v52  ;;  %v15934_v54 = vpop.eup %15933  ;;  %v6760_v44 = vmul.f32 0.5, %v15932_v21 }
0x158d   :  { %6910 = vrot.lane.b32.xlu1 %v6877_v26, %s16744_s30  ;;  %v6763_v35 = vmul.f32 0.5, %v15934_v54 }
0x158e   :  { %v6835_v55 = vpop.permute.xlu1 %6834  ;;  %6908 = vrot.lane.b32.xlu0 %v6876_v37, %s16744_s30  ;;  %v19805_v37 = vadd.f32 0.5, %v6759_v59  ;;  %v19816_v49 = vadd.f32 0.5, %v6760_v44  ;;  %v6803_v44 = vmul.f32 %v19789_v38, %v19538_v4 }
0x158f   :  { %v6879_v61 = vmul.f32 %v6835_v55, %v19771_v42  ;;  %v6833_v25 = vpop.permute.xlu0 %6832  ;;  %v15936_v55 = vpop.eup %15935 }
0x1590   :  { %v6878_v11 = vmul.f32 %v6833_v25, %v19774_v41  ;;  %v6762_v19 = vmul.f32 0.5, %v15936_v55 }
0x1591   :  { %6914 = vrot.lane.b32.xlu1 %v6879_v61, %s16744_s30 }
0x1592   :  { %v6839_v40 = vpop.permute.xlu1 %6838  ;;  %6912 = vrot.lane.b32.xlu0 %v6878_v11, %s16744_s30  ;;  %v19813_v11 = vadd.f32 0.5, %v6761_v27 }
0x1593   :  { %v6881_v6 = vmul.f32 %v6839_v40, %v19781_v48  ;;  %v6837_v2 = vpop.permute.xlu0 %6836 }
0x1594   :  { %v6880_v36 = vmul.f32 %v6837_v2, %v19784_v32 }
0x1595   :  { %6918 = vrot.lane.b32.xlu1 %v6881_v6, %s16744_s30  ;;  %v19821_v6 = vadd.f32 0.5, %v6763_v35  ;;  %v6804_v35 = vmul.f32 %v19800_v13, %v19552_v18 }
0x1596   :  { %v6843_v17 = vpop.permute.xlu1 %6842  ;;  %6916 = vrot.lane.b32.xlu0 %v6880_v36, %s16744_s30  ;;  %v19824_v36 = vadd.f32 0.5, %v6762_v19 }
0x1597   :  { %v6883_v16 = vmul.f32 %v6843_v17, %v19789_v38  ;;  %v6841_v14 = vpop.permute.xlu0 %6840  ;;  %v6797_v17 = vmul.f32 %v19762_v31, %v19508_v53  ;;  %v6801_v53 = vmul.f32 %v19781_v48, %v19528_v10 }
0x1598   :  { %v6882_v3 = vmul.f32 %v6841_v14, %v19792_v23 }
0x1599   :  { %6922 = vrot.lane.b32.xlu1 %v6883_v16, %s16744_s30  ;;  %v6796_v16 = vmul.f32 %v19764_v52, %v19510_v34 }
0x159a   :  { %v6847_v12 = vpop.permute.xlu1 %6846  ;;  %6920 = vrot.lane.b32.xlu0 %v6882_v3, %s16744_s30 }
0x159b   :  { %v6885_v20 = vmul.f32 %v6847_v12, %v19797_v39  ;;  %v6845_v26 = vpop.permute.xlu0 %6844  ;;  %v6798_v12 = vmul.f32 %v19774_v41, %v19520_v51 }
0x159c   :  { %v6884_v46 = vmul.f32 %v6845_v26, %v19800_v13 }
0x159d   :  { %6926 = vrot.lane.b32.xlu1 %v6885_v20, %s16744_s30 }
0x159e   :  { %v6851_v22 = vpop.permute.xlu1 %6850  ;;  %6924 = vrot.lane.b32.xlu0 %v6884_v46, %s16744_s30  ;;  %v6800_v46 = vmul.f32 %v19784_v32, %v19530_v57  ;;  %v6805_v57 = vmul.f32 %v19797_v39, %v19550_v29 }
0x159f   :  { %v6887_v24 = vmul.f32 %v6851_v22, %v19805_v37  ;;  %v6849_v61 = vpop.permute.xlu0 %6848  ;;  %v6802_v22 = vmul.f32 %v19792_v23, %v19540_v43 }
0x15a0   :  { %v6886_v25 = vmul.f32 %v6849_v61, %v19808_v30 }
0x15a1   :  { %6930 = vrot.lane.b32.xlu1 %v6887_v24, %s16744_s30 }
0x15a2   :  { %v6855_v45 = vpop.permute.xlu1 %6854  ;;  %6928 = vrot.lane.b32.xlu0 %v6886_v25, %s16744_s30 }
0x15a3   :  { %v6889_v56 = vmul.f32 %v6855_v45, %v19813_v11  ;;  %v6853_v40 = vpop.permute.xlu0 %6852 }
0x15a4   :  { %v6888_v28 = vmul.f32 %v6853_v40, %v19816_v49 }
0x15a5   :  { %6934 = vrot.lane.b32.xlu1 %v6889_v56, %s16744_s30 }
0x15a6   :  { %v6859_v2 = vpop.permute.xlu1 %6858  ;;  %6932 = vrot.lane.b32.xlu0 %v6888_v28, %s16744_s30  ;;  %v6807_v28 = vmul.f32 %v19805_v37, %v19562_v58 }
0x15a7   :  { %v6891_v15 = vmul.f32 %v6859_v2, %v19821_v6  ;;  %v6857_v7 = vpop.permute.xlu0 %6856  ;;  %v6806_v2 = vmul.f32 %v19808_v30, %v19564_v5 }
0x15a8   :  { %v6890_v50 = vmul.f32 %v6857_v7, %v19824_v36 }
0x15a9   :  { %6938 = vrot.lane.b32.xlu1 %v6891_v15, %s16744_s30 }
0x15aa   :  { %6936 = vrot.lane.b32.xlu0 %v6890_v50, %s16744_s30 }
0x15ff   :  { %v6911_v8 = vpop.permute.xlu1 %6910 }
0x1600   :  { %v6957_v14 = vadd.f32 %v6911_v8, %v6797_v17  ;;  %v6909_v3 = vpop.permute.xlu0 %6908  ;;  %v6809_v8 = vmul.f32 %v19813_v11, %v19574_v63 }
0x1601   :  { %v6956_v59 = vadd.f32 %v6909_v3, %v6796_v16  ;;  %v6808_v16 = vmul.f32 %v19816_v49, %v19576_v62 }
0x1602   :  { %15937 = vtanh.f32 %v6957_v14 }
0x1603   :  { %15939 = vtanh.f32 %v6956_v59  ;;  %v6915_v47 = vpop.permute.xlu1 %6914 }
0x1604   :  { %v6959_v21 = vadd.f32 %v6915_v47, %v6799_v9  ;;  %v6913_v20 = vpop.permute.xlu0 %6912  ;;  %v6811_v47 = vmul.f32 %v19821_v6, %v19586_v33 }
0x1605   :  { %v6958_v26 = vadd.f32 %v6913_v20, %v6798_v12  ;;  %v6810_v12 = vmul.f32 %v19824_v36, %v19588_v0 }
0x1606   :  { %15941 = vtanh.f32 %v6959_v21 }
0x1607   :  { %15943 = vtanh.f32 %v6958_v26  ;;  %v6919_v34 = vpop.permute.xlu1 %6918 }
0x1608   :  { %v6961_v27 = vadd.f32 %v6919_v34, %v6801_v53  ;;  %v6917_v54 = vpop.permute.xlu0 %6916 }
0x1609   :  { %v6960_v60 = vadd.f32 %v6917_v54, %v6800_v46 }
0x160a   :  { %15945 = vtanh.f32 %v6961_v27 }
0x160b   :  { %15947 = vtanh.f32 %v6960_v60  ;;  %v6923_v51 = vpop.permute.xlu1 %6922  ;;  %v7309_v60 = vld [vmem:[%s22462_s5] sm:$0xff] }
0x160c   :  { %v15938_v55 = vpop.eup %15937  ;;  %v6963_v24 = vadd.f32 %v6923_v51, %v6803_v44  ;;  %v6921_v10 = vpop.permute.xlu0 %6920  ;;  %v7310_v44 = vld [vmem:[%s22462_s5 + $0x8] sm:$0xff] }
0x160d   :  { %v15940_v61 = vpop.eup %15939  ;;  %v6962_v25 = vadd.f32 %v6921_v10, %v6802_v22  ;;  %7006 = vrot.lane.b32.xlu1 %v15938_v55, %s16744_s30  ;;  %v19884_v51 = vpack.c.bf16 %v7310_v44, %v7309_v60 }
0x160e   :  { %15949 = vtanh.f32 %v6963_v24  ;;  %7004 = vrot.lane.b32.xlu0 %v15940_v61, %s16744_s30 }
0x160f   :  { %15951 = vtanh.f32 %v6962_v25  ;;  %v6927_v4 = vpop.permute.xlu1 %6926  ;;  %14613 = vmatprep.subr.bf16.mxu1 %v19884_v51 }
0x1610   :  { %v15942_v19 = vpop.eup %15941  ;;  %v6965_v43 = vadd.f32 %v6927_v4, %v6805_v57  ;;  %v6925_v45 = vpop.permute.xlu0 %6924 }
0x1611   :  { %v15944_v56 = vpop.eup %15943  ;;  %v6964_v40 = vadd.f32 %v6925_v45, %v6804_v35  ;;  %7010 = vrot.lane.b32.xlu1 %v15942_v19, %s16744_s30 }
0x1612   :  { %15953 = vtanh.f32 %v6965_v43  ;;  %7008 = vrot.lane.b32.xlu0 %v15944_v56, %s16744_s30 }
0x1613   :  { %15955 = vtanh.f32 %v6964_v40  ;;  %v6931_v29 = vpop.permute.xlu1 %6930 }
0x1614   :  { %v15946_v15 = vpop.eup %15945  ;;  %v6967_v18 = vadd.f32 %v6931_v29, %v6807_v28  ;;  %v6929_v7 = vpop.permute.xlu0 %6928 }
0x1615   :  { %v15948_v50 = vpop.eup %15947  ;;  %v6966_v17 = vadd.f32 %v6929_v7, %v6806_v2  ;;  %7014 = vrot.lane.b32.xlu1 %v15946_v15, %s16744_s30 }
0x1616   :  { %15957 = vtanh.f32 %v6967_v18  ;;  %7012 = vrot.lane.b32.xlu0 %v15948_v50, %s16744_s30 }
0x1617   :  { %15959 = vtanh.f32 %v6966_v17  ;;  %v6935_v58 = vpop.permute.xlu1 %6934 }
0x1618   :  { %v15950_v14 = vpop.eup %15949  ;;  %v6969_v5 = vadd.f32 %v6935_v58, %v6809_v8  ;;  %v6933_v3 = vpop.permute.xlu0 %6932 }
0x1619   :  { %v15952_v59 = vpop.eup %15951  ;;  %v6968_v9 = vadd.f32 %v6933_v3, %v6808_v16  ;;  %7018 = vrot.lane.b32.xlu1 %v15950_v14, %s16744_s30 }
0x161a   :  { %15961 = vtanh.f32 %v6969_v5  ;;  %7016 = vrot.lane.b32.xlu0 %v15952_v59, %s16744_s30 }
0x161b   :  { %15963 = vtanh.f32 %v6968_v9  ;;  %v6939_v63 = vpop.permute.xlu1 %6938 }
0x161c   :  { %v15954_v21 = vpop.eup %15953  ;;  %v6971_v62 = vadd.f32 %v6939_v63, %v6811_v47  ;;  %v6937_v20 = vpop.permute.xlu0 %6936 }
0x161d   :  { %v15956_v26 = vpop.eup %15955  ;;  %v6970_v53 = vadd.f32 %v6937_v20, %v6810_v12  ;;  %7022 = vrot.lane.b32.xlu1 %v15954_v21, %s16744_s30  ;;  %v19970_v20 = vld [vmem:[%s22463_s6] ss:$0 sm:$0xff] }
0x161e   :  { %15965 = vtanh.f32 %v6971_v62  ;;  %7020 = vrot.lane.b32.xlu0 %v15956_v26, %s16744_s30 }
0x161f   :  { %15967 = vtanh.f32 %v6970_v53 }
0x1620   :  { %v15958_v34 = vpop.eup %15957 }
0x1621   :  { %v15960_v46 = vpop.eup %15959  ;;  %7026 = vrot.lane.b32.xlu1 %v15958_v34, %s16744_s30 }
0x1622   :  { %7024 = vrot.lane.b32.xlu0 %v15960_v46, %s16744_s30 }
0x1624   :  { %v15962_v33 = vpop.eup %15961 }
0x1625   :  { %v15964_v27 = vpop.eup %15963  ;;  %7030 = vrot.lane.b32.xlu1 %v15962_v33, %s16744_s30 }
0x1626   :  { %7028 = vrot.lane.b32.xlu0 %v15964_v27, %s16744_s30 }
0x1628   :  { %v15966_v0 = vpop.eup %15965 }
0x1629   :  { %v15968_v54 = vpop.eup %15967  ;;  %7034 = vrot.lane.b32.xlu1 %v15966_v0, %s16744_s30 }
0x162a   :  { %7032 = vrot.lane.b32.xlu0 %v15968_v54, %s16744_s30 }
0x167f   :  { %v7007_v22 = vpop.permute.xlu1 %7006 }
0x1680   :  { %v7053_v55 = vmul.f32 %v7007_v22, %v19762_v31  ;;  %v7005_v24 = vpop.permute.xlu0 %7004 }
0x1681   :  { %v7052_v10 = vmul.f32 %v7005_v24, %v19764_v52 }
0x1682   :  { %7086 = vrot.lane.b32.xlu1 %v7053_v55, %s16745_s0 }
0x1683   :  { %v7011_v61 = vpop.permute.xlu1 %7010  ;;  %7084 = vrot.lane.b32.xlu0 %v7052_v10, %s16745_s0 }
0x1684   :  { %v7055_v25 = vmul.f32 %v7011_v61, %v19771_v42  ;;  %v7009_v57 = vpop.permute.xlu0 %7008 }
0x1685   :  { %v7054_v4 = vmul.f32 %v7009_v57, %v19774_v41 }
0x1686   :  { %7090 = vrot.lane.b32.xlu1 %v7055_v25, %s16745_s0 }
0x1687   :  { %v7015_v35 = vpop.permute.xlu1 %7014  ;;  %7088 = vrot.lane.b32.xlu0 %v7054_v4, %s16745_s0 }
0x1688   :  { %v7057_v31 = vmul.f32 %v7015_v35, %v19781_v48  ;;  %v7013_v19 = vpop.permute.xlu0 %7012 }
0x1689   :  { %v7056_v52 = vmul.f32 %v7013_v19, %v19784_v32 }
0x168a   :  { %7094 = vrot.lane.b32.xlu1 %v7057_v31, %s16745_s0 }
0x168b   :  { %v7019_v43 = vpop.permute.xlu1 %7018  ;;  %7092 = vrot.lane.b32.xlu0 %v7056_v52, %s16745_s0 }
0x168c   :  { %v7059_v42 = vmul.f32 %v7019_v43, %v19789_v38  ;;  %v7017_v45 = vpop.permute.xlu0 %7016 }
0x168d   :  { %v7058_v41 = vmul.f32 %v7017_v45, %v19792_v23 }
0x168e   :  { %7098 = vrot.lane.b32.xlu1 %v7059_v42, %s16745_s0 }
0x168f   :  { %v7023_v56 = vpop.permute.xlu1 %7022  ;;  %7096 = vrot.lane.b32.xlu0 %v7058_v41, %s16745_s0 }
0x1690   :  { %v7061_v48 = vmul.f32 %v7023_v56, %v19797_v39  ;;  %v7021_v40 = vpop.permute.xlu0 %7020 }
0x1691   :  { %v7060_v32 = vmul.f32 %v7021_v40, %v19800_v13 }
0x1692   :  { %7102 = vrot.lane.b32.xlu1 %v7061_v48, %s16745_s0 }
0x1693   :  { %v7027_v28 = vpop.permute.xlu1 %7026  ;;  %7100 = vrot.lane.b32.xlu0 %v7060_v32, %s16745_s0 }
0x1694   :  { %v7063_v38 = vmul.f32 %v7027_v28, %v19805_v37  ;;  %v7025_v29 = vpop.permute.xlu0 %7024 }
0x1695   :  { %v7062_v23 = vmul.f32 %v7025_v29, %v19808_v30 }
0x1696   :  { %7106 = vrot.lane.b32.xlu1 %v7063_v38, %s16745_s0 }
0x1697   :  { %v7031_v2 = vpop.permute.xlu1 %7030  ;;  %7104 = vrot.lane.b32.xlu0 %v7062_v23, %s16745_s0 }
0x1698   :  { %v7065_v39 = vmul.f32 %v7031_v2, %v19813_v11  ;;  %v7029_v15 = vpop.permute.xlu0 %7028  ;;  %v7311_v11 = vld [vmem:[%s22462_s5 + $0x10] sm:$0xff] }
0x1699   :  { %v7064_v13 = vmul.f32 %v7029_v15, %v19816_v49  ;;  %v7312_v49 = vld [vmem:[%s22462_s5 + $0x18] sm:$0xff] }
0x169a   :  { %7110 = vrot.lane.b32.xlu1 %v7065_v39, %s16745_s0  ;;  %v19925_v8 = vpack.c.bf16 %v7312_v49, %v7311_v11 }
0x169b   :  { %v7035_v18 = vpop.permute.xlu1 %7034  ;;  %7108 = vrot.lane.b32.xlu0 %v7064_v13, %s16745_s0 }
0x169c   :  { %v7067_v37 = vmul.f32 %v7035_v18, %v19821_v6  ;;  %v7033_v7 = vpop.permute.xlu0 %7032 }
0x169d   :  { %v7066_v30 = vmul.f32 %v7033_v7, %v19824_v36 }
0x169e   :  { %7114 = vrot.lane.b32.xlu1 %v7067_v37, %s16745_s0 }
0x169f   :  { %7112 = vrot.lane.b32.xlu0 %v7066_v30, %s16745_s0 }
0x16f4   :  { %v7087_v50 = vpop.permute.xlu1 %7086 }
0x16f5   :  { %v7085_v17 = vpop.permute.xlu0 %7084 }
0x16f6   :  { %14172 = vmatprep.mubr.msk.f32.mxu1 %vm1267_vm1, %v7085_v17 }
0x16f7   :  { %14173 = vmatmul.mubr.msk.f32.vlgmr.msra.gmra.mrb[120].mxu1 %vm1267_vm1, %v7087_v50 }
0x16f8   :  { %v7091_v6 = vpop.permute.xlu1 %7090  ;;  %14615 = vmatpush3.bf16.msra.mxu1 %v19884_v51 }
0x16f9   :  { %v7089_v36 = vpop.permute.xlu0 %7088  ;;  %14617 = vmatprep.subr.bf16.mxu1 %v19925_v8 }
0x16fa   :  { %14175 = vmatprep.mubr.msk.f32.mxu1 %vm1267_vm1, %v7089_v36 }
0x16fb   :  { %14176 = vmatmul.mubr.msk.f32.gmra.mrb[122].mxu1 %vm1267_vm1, %v7091_v6 }
0x16fc   :  { %v7095_v58 = vpop.permute.xlu1 %7094  ;;  %14619 = vmatpush3.bf16.msra.mxu1 %v19925_v8 }
0x16fd   :  { %v7093_v16 = vpop.permute.xlu0 %7092  ;;  %14621 = vmatprep.subr.bf16.mxu1 %v19884_v51 }
0x16fe   :  { %14178 = vmatprep.mubr.msk.f32.mxu1 %vm1267_vm1, %v7093_v16 }
0x16ff   :  { %14179 = vmatmul.mubr.msk.f32.gmra.mrb[124].mxu1 %vm1267_vm1, %v7095_v58 }
0x1700   :  { %v7099_v14 = vpop.permute.xlu1 %7098 }
0x1701   :  { %v7097_v5 = vpop.permute.xlu0 %7096 }
0x1702   :  { %14181 = vmatprep.mubr.msk.f32.mxu1 %vm1267_vm1, %v7097_v5 }
0x1703   :  { %14182 = vmatmul.mubr.msk.f32.gmra.mrb[126].mxu1 %vm1267_vm1, %v7099_v14 }
0x1704   :  { %v7103_v3 = vpop.permute.xlu1 %7102 }
0x1705   :  { %v7101_v59 = vpop.permute.xlu0 %7100 }
0x1706   :  { %14184 = vmatprep.mubr.msk.f32.mxu1 %vm1267_vm1, %v7101_v59 }
0x1707   :  { %14185 = vmatmul.mubr.msk.f32.gmra.mrb[128].mxu1 %vm1267_vm1, %v7103_v3 }
0x1708   :  { %v7107_v9 = vpop.permute.xlu1 %7106 }
0x1709   :  { %v7105_v47 = vpop.permute.xlu0 %7104 }
0x170a   :  { %14187 = vmatprep.mubr.msk.f32.mxu1 %vm1267_vm1, %v7105_v47 }
0x170b   :  { %14188 = vmatmul.mubr.msk.f32.gmra.mrb[130].mxu1 %vm1267_vm1, %v7107_v9 }
0x170c   :  { %v7111_v63 = vpop.permute.xlu1 %7110 }
0x170d   :  { %v7109_v12 = vpop.permute.xlu0 %7108 }
0x170e   :  { %14190 = vmatprep.mubr.msk.f32.mxu1 %vm1267_vm1, %v7109_v12 }
0x170f   :  { %14191 = vmatmul.mubr.msk.f32.gmra.mrb[132].mxu1 %vm1267_vm1, %v7111_v63 }
0x1710   :  { %v7115_v62 = vpop.permute.xlu1 %7114 }
0x1711   :  { %v7113_v21 = vpop.permute.xlu0 %7112 }
0x1712   :  { %14193 = vmatprep.mubr.msk.f32.mxu1 %vm1267_vm1, %v7113_v21 }
0x1713   :  { %14194 = vmatmul.mubr.msk.f32.gmra.mrb[134].mxu1 %vm1267_vm1, %v7115_v62 }
0x1714   :  { %14204 = vmatprep.mubr.f32.mxu1 %v16743_v1 }
0x1717   :  { %14205 = vmatmul.mubr.f32.vlgmr.msra.gmra.mrb[8].mxu1 %v16743_v1 }
0x1718   :  { %14207 = vmatprep.mubr.f32.mxu1 %v16743_v1  ;;  %14623 = vmatpush3.bf16.msra.mxu1 %v19884_v51 }
0x1719   :  { %14625 = vmatprep.subr.bf16.mxu1 %v19925_v8 }
0x171b   :  { %14208 = vmatmul.mubr.f32.gmra.mrb[10].mxu1 %v16743_v1 }
0x171c   :  { %14210 = vmatprep.mubr.f32.mxu1 %v16743_v1  ;;  %14627 = vmatpush3.bf16.msra.mxu1 %v19925_v8 }
0x171d   :  { %14629 = vmatprep.subr.bf16.mxu1 %v19884_v51 }
0x171f   :  { %14211 = vmatmul.mubr.f32.gmra.mrb[12].mxu1 %v16743_v1 }
0x1720   :  { %14213 = vmatprep.mubr.f32.mxu1 %v16743_v1 }
0x1723   :  { %14214 = vmatmul.mubr.f32.gmra.mrb[14].mxu1 %v16743_v1 }
0x1724   :  { %14216 = vmatprep.mubr.f32.mxu1 %v16743_v1 }
0x1727   :  { %14217 = vmatmul.mubr.f32.gmra.mrb[16].mxu1 %v16743_v1 }
0x1728   :  { %14219 = vmatprep.mubr.f32.mxu1 %v16743_v1 }
0x172b   :  { %14220 = vmatmul.mubr.f32.gmra.mrb[18].mxu1 %v16743_v1 }
0x172c   :  { %14222 = vmatprep.mubr.f32.mxu1 %v16743_v1 }
0x172f   :  { %14223 = vmatmul.mubr.f32.gmra.mrb[20].mxu1 %v16743_v1 }
0x1730   :  { %14225 = vmatprep.mubr.f32.mxu1 %v16743_v1 }
0x1733   :  { %14226 = vmatmul.mubr.f32.gmra.mrb[22].mxu1 %v16743_v1 }
0x17ea   :  { %v14206_v26 = vpop.f32.mrb[8].mxu1 }
0x17eb   :  { %v19973_v53 = vadd.f32 %v14206_v26, %v19970_v20  ;;  %v7395_v34 = vpop.f32.mrb[9].mxu1 }
0x17ec   :  { %v19976_v46 = vadd.f32 %v19970_v20, %v7395_v34 }
0x17ed   :  { %15969 = vtanh.f32 %v19973_v53  ;;  %v7491_v36 = vmul.f32 0.5, %v19973_v53 }
0x17ee   :  { %15971 = vtanh.f32 %v19976_v46  ;;  %v14209_v33 = vpop.f32.mrb[10].mxu1  ;;  %v7490_v58 = vmul.f32 0.5, %v19976_v46 }
0x17ef   :  { %v19981_v1 = vadd.f32 %v14209_v33, %v19970_v20  ;;  %v7405_v27 = vpop.f32.mrb[11].mxu1 }
0x17f0   :  { %v19984_v0 = vadd.f32 %v19970_v20, %v7405_v27 }
0x17f1   :  { %15973 = vtanh.f32 %v19981_v1  ;;  %v7493_v16 = vmul.f32 0.5, %v19981_v1 }
0x17f2   :  { %15975 = vtanh.f32 %v19984_v0  ;;  %v14212_v54 = vpop.f32.mrb[12].mxu1  ;;  %v7492_v14 = vmul.f32 0.5, %v19984_v0 }
0x17f3   :  { %v19989_v60 = vadd.f32 %v14212_v54, %v19970_v20  ;;  %v7415_v44 = vpop.f32.mrb[13].mxu1 }
0x17f4   :  { %v19992_v22 = vadd.f32 %v19970_v20, %v7415_v44 }
0x17f5   :  { %15977 = vtanh.f32 %v19989_v60  ;;  %v7495_v5 = vmul.f32 0.5, %v19989_v60 }
0x17f6   :  { %15979 = vtanh.f32 %v19992_v22  ;;  %v14215_v55 = vpop.f32.mrb[14].mxu1  ;;  %v7494_v3 = vmul.f32 0.5, %v19992_v22 }
0x17f7   :  { %v15970_v24 = vpop.eup %15969  ;;  %v19997_v10 = vadd.f32 %v14215_v55, %v19970_v20  ;;  %v7425_v61 = vpop.f32.mrb[15].mxu1 }
0x17f8   :  { %v15972_v25 = vpop.eup %15971  ;;  %v20000_v57 = vadd.f32 %v19970_v20, %v7425_v61  ;;  %7604 = vrot.lane.b32.xlu1 %v15970_v24, %s16744_s30 }
0x17f9   :  { %15981 = vtanh.f32 %v19997_v10  ;;  %7602 = vrot.lane.b32.xlu0 %v15972_v25, %s16744_s30  ;;  %v7497_v59 = vmul.f32 0.5, %v19997_v10 }
0x17fa   :  { %15983 = vtanh.f32 %v20000_v57  ;;  %v14218_v4 = vpop.f32.mrb[16].mxu1  ;;  %v7496_v9 = vmul.f32 0.5, %v20000_v57 }
0x17fb   :  { %v15974_v35 = vpop.eup %15973  ;;  %v20007_v31 = vadd.f32 %v14218_v4, %v19970_v20  ;;  %v7435_v19 = vpop.f32.mrb[17].mxu1 }
0x17fc   :  { %v15976_v52 = vpop.eup %15975  ;;  %v20010_v43 = vadd.f32 %v19970_v20, %v7435_v19  ;;  %7608 = vrot.lane.b32.xlu1 %v15974_v35, %s16744_s30 }
0x17fd   :  { %15985 = vtanh.f32 %v20007_v31  ;;  %7606 = vrot.lane.b32.xlu0 %v15976_v52, %s16744_s30  ;;  %v7499_v12 = vmul.f32 0.5, %v20007_v31 }
0x17fe   :  { %15987 = vtanh.f32 %v20010_v43  ;;  %v14221_v42 = vpop.f32.mrb[18].mxu1  ;;  %v7498_v62 = vmul.f32 0.5, %v20010_v43 }
0x17ff   :  { %v15978_v45 = vpop.eup %15977  ;;  %v20017_v41 = vadd.f32 %v14221_v42, %v19970_v20  ;;  %v7445_v56 = vpop.f32.mrb[19].mxu1 }
0x1800   :  { %v15980_v48 = vpop.eup %15979  ;;  %v20020_v40 = vadd.f32 %v19970_v20, %v7445_v56  ;;  %7612 = vrot.lane.b32.xlu1 %v15978_v45, %s16744_s30 }
0x1801   :  { %15989 = vtanh.f32 %v20017_v41  ;;  %7610 = vrot.lane.b32.xlu0 %v15980_v48, %s16744_s30  ;;  %v7501_v46 = vmul.f32 0.5, %v20017_v41 }
0x1802   :  { %15991 = vtanh.f32 %v20020_v40  ;;  %v14224_v32 = vpop.f32.mrb[20].mxu1  ;;  %v7500_v1 = vmul.f32 0.5, %v20020_v40 }
0x1803   :  { %v15982_v28 = vpop.eup %15981  ;;  %v20027_v38 = vadd.f32 %v14224_v32, %v19970_v20  ;;  %v7455_v29 = vpop.f32.mrb[21].mxu1 }
0x1804   :  { %v15984_v23 = vpop.eup %15983  ;;  %v20030_v2 = vadd.f32 %v19970_v20, %v7455_v29  ;;  %7616 = vrot.lane.b32.xlu1 %v15982_v28, %s16744_s30 }
0x1805   :  { %15993 = vtanh.f32 %v20027_v38  ;;  %7614 = vrot.lane.b32.xlu0 %v15984_v23, %s16744_s30  ;;  %v7503_v10 = vmul.f32 0.5, %v20027_v38 }
0x1806   :  { %15995 = vtanh.f32 %v20030_v2  ;;  %v14227_v39 = vpop.f32.mrb[22].mxu1  ;;  %v7502_v57 = vmul.f32 0.5, %v20030_v2 }
0x1807   :  { %v15986_v15 = vpop.eup %15985  ;;  %v20037_v13 = vadd.f32 %v14227_v39, %v19970_v20  ;;  %v7465_v18 = vpop.f32.mrb[23].mxu1 }
0x1808   :  { %v15988_v37 = vpop.eup %15987  ;;  %v20040_v7 = vadd.f32 %v19970_v20, %v7465_v18  ;;  %7620 = vrot.lane.b32.xlu1 %v15986_v15, %s16744_s30 }
0x1809   :  { %15997 = vtanh.f32 %v20037_v13  ;;  %7618 = vrot.lane.b32.xlu0 %v15988_v37, %s16744_s30  ;;  %v7505_v41 = vmul.f32 0.5, %v20037_v13 }
0x180a   :  { %15999 = vtanh.f32 %v20040_v7  ;;  %v7504_v40 = vmul.f32 0.5, %v20040_v7 }
0x180b   :  { %v15990_v30 = vpop.eup %15989  ;;  %16001 = vtanh.f32 %v7491_v36 }
0x180c   :  { %v15992_v11 = vpop.eup %15991  ;;  %7624 = vrot.lane.b32.xlu1 %v15990_v30, %s16744_s30  ;;  %16003 = vtanh.f32 %v7490_v58 }
0x180d   :  { %7622 = vrot.lane.b32.xlu0 %v15992_v11, %s16744_s30  ;;  %16005 = vtanh.f32 %v7493_v16 }
0x180e   :  { %16007 = vtanh.f32 %v7492_v14 }
0x180f   :  { %v15994_v49 = vpop.eup %15993  ;;  %16009 = vtanh.f32 %v7495_v5 }
0x1810   :  { %v15996_v50 = vpop.eup %15995  ;;  %7628 = vrot.lane.b32.xlu1 %v15994_v49, %s16744_s30  ;;  %16011 = vtanh.f32 %v7494_v3 }
0x1811   :  { %7626 = vrot.lane.b32.xlu0 %v15996_v50, %s16744_s30  ;;  %16013 = vtanh.f32 %v7497_v59 }
0x1812   :  { %16015 = vtanh.f32 %v7496_v9 }
0x1813   :  { %v15998_v17 = vpop.eup %15997  ;;  %16017 = vtanh.f32 %v7499_v12 }
0x1814   :  { %v16000_v6 = vpop.eup %15999  ;;  %7632 = vrot.lane.b32.xlu1 %v15998_v17, %s16744_s30  ;;  %16019 = vtanh.f32 %v7498_v62 }
0x1815   :  { %7630 = vrot.lane.b32.xlu0 %v16000_v6, %s16744_s30  ;;  %v16002_v47 = vpop.eup %16001  ;;  %16021 = vtanh.f32 %v7501_v46 }
0x1816   :  { %v16004_v63 = vpop.eup %16003  ;;  %v7523_v21 = vmul.f32 0.5, %v16002_v47  ;;  %16023 = vtanh.f32 %v7500_v1 }
0x1817   :  { %v16006_v26 = vpop.eup %16005  ;;  %v7522_v53 = vmul.f32 0.5, %v16004_v63  ;;  %16025 = vtanh.f32 %v7503_v10 }
0x1818   :  { %v16008_v34 = vpop.eup %16007  ;;  %v7525_v33 = vmul.f32 0.5, %v16006_v26  ;;  %v20064_v27 = vadd.f32 0.5, %v7523_v21  ;;  %16027 = vtanh.f32 %v7502_v57 }
0x1819   :  { %v16010_v0 = vpop.eup %16009  ;;  %v7524_v54 = vmul.f32 0.5, %v16008_v34  ;;  %v20066_v44 = vadd.f32 0.5, %v7522_v53  ;;  %16029 = vtanh.f32 %v7505_v41 }
0x181a   :  { %v16012_v22 = vpop.eup %16011  ;;  %v7527_v25 = vmul.f32 0.5, %v16010_v0  ;;  %v20073_v4 = vadd.f32 0.5, %v7525_v33  ;;  %16031 = vtanh.f32 %v7504_v40  ;;  %v7571_v41 = vmul.f32 0.0, %v20064_v27 }
0x181b   :  { %v16014_v35 = vpop.eup %16013  ;;  %v7526_v31 = vmul.f32 0.5, %v16012_v22  ;;  %v20076_v52 = vadd.f32 0.5, %v7524_v54 }
0x181c   :  { %v16016_v43 = vpop.eup %16015  ;;  %v7529_v48 = vmul.f32 0.5, %v16014_v35  ;;  %v20083_v32 = vadd.f32 0.5, %v7527_v25 }
0x181d   :  { %v16018_v28 = vpop.eup %16017  ;;  %v7528_v38 = vmul.f32 0.5, %v16016_v43  ;;  %v20086_v23 = vadd.f32 0.5, %v7526_v31 }
0x181e   :  { %v16020_v2 = vpop.eup %16019  ;;  %v7531_v18 = vmul.f32 0.5, %v16018_v28  ;;  %v20091_v37 = vadd.f32 0.5, %v7529_v48  ;;  %v7570_v48 = vmul.f32 0.0, %v20066_v44 }
0x181f   :  { %v16022_v7 = vpop.eup %16021  ;;  %v7530_v30 = vmul.f32 0.5, %v16020_v2  ;;  %v20094_v49 = vadd.f32 0.5, %v7528_v38 }
0x1820   :  { %v16024_v50 = vpop.eup %16023  ;;  %v7533_v58 = vmul.f32 0.5, %v16022_v7  ;;  %v20099_v16 = vadd.f32 0.5, %v7531_v18  ;;  %v7575_v7 = vmul.f32 0.0, %v20083_v32 }
0x1821   :  { %v16026_v14 = vpop.eup %16025  ;;  %v7532_v5 = vmul.f32 0.5, %v16024_v50  ;;  %v20102_v59 = vadd.f32 0.5, %v7530_v30 }
0x1822   :  { %v16028_v9 = vpop.eup %16027  ;;  %v7535_v21 = vmul.f32 0.5, %v16026_v14  ;;  %v20107_v62 = vadd.f32 0.5, %v7533_v58  ;;  %v7576_v14 = vmul.f32 0.0, %v20094_v49 }
0x1823   :  { %v16030_v26 = vpop.eup %16029  ;;  %v7534_v53 = vmul.f32 0.5, %v16028_v9  ;;  %v20110_v46 = vadd.f32 0.5, %v7532_v5 }
0x1824   :  { %v16032_v33 = vpop.eup %16031  ;;  %v20115_v22 = vadd.f32 0.5, %v7535_v21 }
0x1825   :  { %v20118_v10 = vadd.f32 0.5, %v7534_v53 }
0x186a   :  { %v7605_v60 = vpop.permute.xlu1 %7604 }
0x186b   :  { %v7651_v55 = vmul.f32 %v7605_v60, %v20064_v27  ;;  %v7603_v24 = vpop.permute.xlu0 %7602  ;;  %v7537_v60 = vmul.f32 0.5, %v16030_v26  ;;  %v7578_v26 = vmul.f32 0.0, %v20102_v59 }
0x186c   :  { %v7650_v61 = vmul.f32 %v7603_v24, %v20066_v44 }
0x186d   :  { %7684 = vrot.lane.b32.xlu1 %v7651_v55, %s16744_s30  ;;  %v7536_v55 = vmul.f32 0.5, %v16032_v33  ;;  %v20123_v35 = vadd.f32 0.5, %v7537_v60 }
0x186e   :  { %v7609_v19 = vpop.permute.xlu1 %7608  ;;  %7682 = vrot.lane.b32.xlu0 %v7650_v61, %s16744_s30 }
0x186f   :  { %v7653_v42 = vmul.f32 %v7609_v19, %v20073_v4  ;;  %v7607_v45 = vpop.permute.xlu0 %7606  ;;  %v20126_v19 = vadd.f32 0.5, %v7536_v55  ;;  %v7580_v55 = vmul.f32 0.0, %v20110_v46 }
0x1870   :  { %v7652_v56 = vmul.f32 %v7607_v45, %v20076_v52 }
0x1871   :  { %7688 = vrot.lane.b32.xlu1 %v7653_v42, %s16744_s30 }
0x1872   :  { %v7613_v29 = vpop.permute.xlu1 %7612  ;;  %7686 = vrot.lane.b32.xlu0 %v7652_v56, %s16744_s30 }
0x1873   :  { %v7655_v39 = vmul.f32 %v7613_v29, %v20083_v32  ;;  %v7611_v15 = vpop.permute.xlu0 %7610  ;;  %v7573_v29 = vmul.f32 0.0, %v20073_v4 }
0x1874   :  { %v7654_v13 = vmul.f32 %v7611_v15, %v20086_v23 }
0x1875   :  { %7692 = vrot.lane.b32.xlu1 %v7655_v39, %s16744_s30  ;;  %v7572_v39 = vmul.f32 0.0, %v20076_v52 }
0x1876   :  { %v7617_v11 = vpop.permute.xlu1 %7616  ;;  %7690 = vrot.lane.b32.xlu0 %v7654_v13, %s16744_s30 }
0x1877   :  { %v7657_v17 = vmul.f32 %v7617_v11, %v20091_v37  ;;  %v7615_v6 = vpop.permute.xlu0 %7614  ;;  %v7574_v11 = vmul.f32 0.0, %v20086_v23 }
0x1878   :  { %v7656_v36 = vmul.f32 %v7615_v6, %v20094_v49 }
0x1879   :  { %7696 = vrot.lane.b32.xlu1 %v7657_v17, %s16744_s30 }
0x187a   :  { %v7621_v3 = vpop.permute.xlu1 %7620  ;;  %7694 = vrot.lane.b32.xlu0 %v7656_v36, %s16744_s30  ;;  %v7577_v36 = vmul.f32 0.0, %v20091_v37 }
0x187b   :  { %v7659_v47 = vmul.f32 %v7621_v3, %v20099_v16  ;;  %v7619_v63 = vpop.permute.xlu0 %7618 }
0x187c   :  { %v7658_v12 = vmul.f32 %v7619_v63, %v20102_v59 }
0x187d   :  { %7700 = vrot.lane.b32.xlu1 %v7659_v47, %s16744_s30 }
0x187e   :  { %v7625_v34 = vpop.permute.xlu1 %7624  ;;  %7698 = vrot.lane.b32.xlu0 %v7658_v12, %s16744_s30  ;;  %v7579_v12 = vmul.f32 0.0, %v20099_v16 }
0x187f   :  { %v7661_v1 = vmul.f32 %v7625_v34, %v20107_v62  ;;  %v7623_v0 = vpop.permute.xlu0 %7622 }
0x1880   :  { %v7660_v54 = vmul.f32 %v7623_v0, %v20110_v46 }
0x1881   :  { %7704 = vrot.lane.b32.xlu1 %v7661_v1, %s16744_s30 }
0x1882   :  { %v7629_v24 = vpop.permute.xlu1 %7628  ;;  %7702 = vrot.lane.b32.xlu0 %v7660_v54, %s16744_s30  ;;  %v7581_v54 = vmul.f32 0.0, %v20107_v62 }
0x1883   :  { %v7663_v61 = vmul.f32 %v7629_v24, %v20115_v22  ;;  %v7627_v25 = vpop.permute.xlu0 %7626 }
0x1884   :  { %v7662_v57 = vmul.f32 %v7627_v25, %v20118_v10 }
0x1885   :  { %7708 = vrot.lane.b32.xlu1 %v7663_v61, %s16744_s30 }
0x1886   :  { %v7633_v31 = vpop.permute.xlu1 %7632  ;;  %7706 = vrot.lane.b32.xlu0 %v7662_v57, %s16744_s30 }
0x1887   :  { %v7665_v43 = vmul.f32 %v7633_v31, %v20123_v35  ;;  %v7631_v42 = vpop.permute.xlu0 %7630 }
0x1888   :  { %v7664_v45 = vmul.f32 %v7631_v42, %v20126_v19 }
0x1889   :  { %7712 = vrot.lane.b32.xlu1 %v7665_v43, %s16744_s30  ;;  %v7583_v43 = vmul.f32 0.0, %v20115_v22 }
0x188a   :  { %7710 = vrot.lane.b32.xlu0 %v7664_v45, %s16744_s30  ;;  %v7582_v45 = vmul.f32 0.0, %v20118_v10 }
0x18df   :  { %v7685_v56 = vpop.permute.xlu1 %7684 }
0x18e0   :  { %v20134_v40 = vadd.f32 %v7685_v56, %v7571_v41  ;;  %v7683_v28 = vpop.permute.xlu0 %7682 }
0x18e1   :  { %v20136_v38 = vadd.f32 %v7683_v28, %v7570_v48 }
0x18e2   :  { %16033 = vtanh.f32 %v20134_v40 }
0x18e3   :  { %16035 = vtanh.f32 %v20136_v38  ;;  %v7689_v2 = vpop.permute.xlu1 %7688 }
0x18e4   :  { %v20142_v15 = vadd.f32 %v7689_v2, %v7573_v29  ;;  %v7687_v13 = vpop.permute.xlu0 %7686  ;;  %v7585_v2 = vmul.f32 0.0, %v20123_v35 }
0x18e5   :  { %v20144_v18 = vadd.f32 %v7687_v13, %v7572_v39  ;;  %v7584_v13 = vmul.f32 0.0, %v20126_v19 }
0x18e6   :  { %16037 = vtanh.f32 %v20142_v15 }
0x18e7   :  { %16039 = vtanh.f32 %v20144_v18  ;;  %v7693_v30 = vpop.permute.xlu1 %7692 }
0x18e8   :  { %v20150_v50 = vadd.f32 %v7693_v30, %v7575_v7  ;;  %v7691_v17 = vpop.permute.xlu0 %7690 }
0x18e9   :  { %v20152_v6 = vadd.f32 %v7691_v17, %v7574_v11 }
0x18ea   :  { %16041 = vtanh.f32 %v20150_v50 }
0x18eb   :  { %16043 = vtanh.f32 %v20152_v6  ;;  %v7697_v58 = vpop.permute.xlu1 %7696 }
0x18ec   :  { %v16034_v5 = vpop.eup %16033  ;;  %v20158_v3 = vadd.f32 %v7697_v58, %v7577_v36  ;;  %v7695_v9 = vpop.permute.xlu0 %7694 }
0x18ed   :  { %v16036_v47 = vpop.eup %16035  ;;  %v20160_v63 = vadd.f32 %v7695_v9, %v7576_v14  ;;  %7780 = vrot.lane.b32.xlu1 %v16034_v5, %s16744_s30 }
0x18ee   :  { %16045 = vtanh.f32 %v20158_v3  ;;  %7778 = vrot.lane.b32.xlu0 %v16036_v47, %s16744_s30 }
0x18ef   :  { %16047 = vtanh.f32 %v20160_v63  ;;  %v7701_v21 = vpop.permute.xlu1 %7700 }
0x18f0   :  { %v16038_v53 = vpop.eup %16037  ;;  %v20168_v34 = vadd.f32 %v7701_v21, %v7579_v12  ;;  %v7699_v33 = vpop.permute.xlu0 %7698 }
0x18f1   :  { %v16040_v1 = vpop.eup %16039  ;;  %v20170_v0 = vadd.f32 %v7699_v33, %v7578_v26  ;;  %7784 = vrot.lane.b32.xlu1 %v16038_v53, %s16744_s30 }
0x18f2   :  { %16049 = vtanh.f32 %v20168_v34  ;;  %7782 = vrot.lane.b32.xlu0 %v16040_v1, %s16744_s30 }
0x18f3   :  { %16051 = vtanh.f32 %v20170_v0  ;;  %v7705_v60 = vpop.permute.xlu1 %7704 }
0x18f4   :  { %v16042_v24 = vpop.eup %16041  ;;  %v20178_v61 = vadd.f32 %v7705_v60, %v7581_v54  ;;  %v7703_v25 = vpop.permute.xlu0 %7702 }
0x18f5   :  { %v16044_v57 = vpop.eup %16043  ;;  %v20180_v31 = vadd.f32 %v7703_v25, %v7580_v55  ;;  %7788 = vrot.lane.b32.xlu1 %v16042_v24, %s16744_s30 }
0x18f6   :  { %16053 = vtanh.f32 %v20178_v61  ;;  %7786 = vrot.lane.b32.xlu0 %v16044_v57, %s16744_s30 }
0x18f7   :  { %16055 = vtanh.f32 %v20180_v31  ;;  %v7709_v42 = vpop.permute.xlu1 %7708 }
0x18f8   :  { %v16046_v41 = vpop.eup %16045  ;;  %v20188_v56 = vadd.f32 %v7709_v42, %v7583_v43  ;;  %v7707_v48 = vpop.permute.xlu0 %7706 }
0x18f9   :  { %v16048_v28 = vpop.eup %16047  ;;  %v20190_v29 = vadd.f32 %v7707_v48, %v7582_v45  ;;  %7792 = vrot.lane.b32.xlu1 %v16046_v41, %s16744_s30 }
0x18fa   :  { %16057 = vtanh.f32 %v20188_v56  ;;  %7790 = vrot.lane.b32.xlu0 %v16048_v28, %s16744_s30 }
0x18fb   :  { %16059 = vtanh.f32 %v20190_v29  ;;  %v7713_v39 = vpop.permute.xlu1 %7712 }
0x18fc   :  { %v16050_v7 = vpop.eup %16049  ;;  %v20198_v30 = vadd.f32 %v7713_v39, %v7585_v2  ;;  %v7711_v11 = vpop.permute.xlu0 %7710 }
0x18fd   :  { %v16052_v17 = vpop.eup %16051  ;;  %v20200_v36 = vadd.f32 %v7711_v11, %v7584_v13  ;;  %7796 = vrot.lane.b32.xlu1 %v16050_v7, %s16744_s30 }
0x18fe   :  { %16061 = vtanh.f32 %v20198_v30  ;;  %7794 = vrot.lane.b32.xlu0 %v16052_v17, %s16744_s30 }
0x18ff   :  { %16063 = vtanh.f32 %v20200_v36 }
0x1900   :  { %v16054_v58 = vpop.eup %16053 }
0x1901   :  { %v16056_v14 = vpop.eup %16055  ;;  %7800 = vrot.lane.b32.xlu1 %v16054_v58, %s16744_s30 }
0x1902   :  { %7798 = vrot.lane.b32.xlu0 %v16056_v14, %s16744_s30 }
0x1904   :  { %v16058_v5 = vpop.eup %16057 }
0x1905   :  { %v16060_v9 = vpop.eup %16059  ;;  %7804 = vrot.lane.b32.xlu1 %v16058_v5, %s16744_s30 }
0x1906   :  { %7802 = vrot.lane.b32.xlu0 %v16060_v9, %s16744_s30 }
0x1908   :  { %v16062_v47 = vpop.eup %16061 }
0x1909   :  { %v16064_v12 = vpop.eup %16063  ;;  %7808 = vrot.lane.b32.xlu1 %v16062_v47, %s16744_s30 }
0x190a   :  { %7806 = vrot.lane.b32.xlu0 %v16064_v12, %s16744_s30 }
0x195f   :  { %v7781_v21 = vpop.permute.xlu1 %7780 }
0x1960   :  { %v7827_v26 = vmul.f32 %v7781_v21, %v20064_v27  ;;  %v7779_v53 = vpop.permute.xlu0 %7778 }
0x1961   :  { %v7826_v33 = vmul.f32 %v7779_v53, %v20066_v44 }
0x1962   :  { %7876 = vrot.lane.b32.xlu1 %v7827_v26, %s16745_s0 }
0x1963   :  { %v7785_v1 = vpop.permute.xlu1 %7784  ;;  %7874 = vrot.lane.b32.xlu0 %v7826_v33, %s16745_s0 }
0x1964   :  { %v7829_v54 = vmul.f32 %v7785_v1, %v20073_v4  ;;  %v7783_v60 = vpop.permute.xlu0 %7782 }
0x1965   :  { %v7828_v55 = vmul.f32 %v7783_v60, %v20076_v52 }
0x1966   :  { %7880 = vrot.lane.b32.xlu1 %v7829_v54, %s16745_s0 }
0x1967   :  { %v7789_v24 = vpop.permute.xlu1 %7788  ;;  %7878 = vrot.lane.b32.xlu0 %v7828_v55, %s16745_s0 }
0x1968   :  { %v7831_v27 = vmul.f32 %v7789_v24, %v20083_v32  ;;  %v7787_v25 = vpop.permute.xlu0 %7786 }
0x1969   :  { %v7830_v44 = vmul.f32 %v7787_v25, %v20086_v23 }
0x196a   :  { %7884 = vrot.lane.b32.xlu1 %v7831_v27, %s16745_s0 }
0x196b   :  { %v7793_v57 = vpop.permute.xlu1 %7792  ;;  %7882 = vrot.lane.b32.xlu0 %v7830_v44, %s16745_s0 }
0x196c   :  { %v7833_v4 = vmul.f32 %v7793_v57, %v20091_v37  ;;  %v7791_v43 = vpop.permute.xlu0 %7790 }
0x196d   :  { %v7832_v52 = vmul.f32 %v7791_v43, %v20094_v49 }
0x196e   :  { %7888 = vrot.lane.b32.xlu1 %v7833_v4, %s16745_s0 }
0x196f   :  { %v7797_v42 = vpop.permute.xlu1 %7796  ;;  %7886 = vrot.lane.b32.xlu0 %v7832_v52, %s16745_s0 }
0x1970   :  { %v7835_v32 = vmul.f32 %v7797_v42, %v20099_v16  ;;  %v7795_v45 = vpop.permute.xlu0 %7794 }
0x1971   :  { %v7834_v23 = vmul.f32 %v7795_v45, %v20102_v59 }
0x1972   :  { %7892 = vrot.lane.b32.xlu1 %v7835_v32, %s16745_s0 }
0x1973   :  { %v7801_v41 = vpop.permute.xlu1 %7800  ;;  %7890 = vrot.lane.b32.xlu0 %v7834_v23, %s16745_s0 }
0x1974   :  { %v7837_v37 = vmul.f32 %v7801_v41, %v20107_v62  ;;  %v7799_v48 = vpop.permute.xlu0 %7798 }
0x1975   :  { %v7836_v49 = vmul.f32 %v7799_v48, %v20110_v46 }
0x1976   :  { %7896 = vrot.lane.b32.xlu1 %v7837_v37, %s16745_s0 }
0x1977   :  { %v7805_v28 = vpop.permute.xlu1 %7804  ;;  %7894 = vrot.lane.b32.xlu0 %v7836_v49, %s16745_s0 }
0x1978   :  { %v7839_v16 = vmul.f32 %v7805_v28, %v20115_v22  ;;  %v7803_v2 = vpop.permute.xlu0 %7802 }
0x1979   :  { %v7838_v59 = vmul.f32 %v7803_v2, %v20118_v10 }
0x197a   :  { %7900 = vrot.lane.b32.xlu1 %v7839_v16, %s16745_s0 }
0x197b   :  { %v7809_v39 = vpop.permute.xlu1 %7808  ;;  %7898 = vrot.lane.b32.xlu0 %v7838_v59, %s16745_s0 }
0x197c   :  { %v7841_v62 = vmul.f32 %v7809_v39, %v20123_v35  ;;  %v7807_v13 = vpop.permute.xlu0 %7806 }
0x197d   :  { %v7840_v46 = vmul.f32 %v7807_v13, %v20126_v19 }
0x197e   :  { %7904 = vrot.lane.b32.xlu1 %v7841_v62, %s16745_s0 }
0x197f   :  { %7902 = vrot.lane.b32.xlu0 %v7840_v46, %s16745_s0 }
0x19d4   :  { %v7877_v7 = vpop.permute.xlu1 %7876 }
0x19d5   :  { %v7875_v11 = vpop.permute.xlu0 %7874 }
0x19d6   :  { %14236 = vmatprep.mubr.msk.f32.mxu1 %vm1267_vm1, %v7875_v11 }
0x19d7   :  { %14237 = vmatmul.mubr.msk.f32.vlgmr.msra.gmra.mrb[24].mxu1 %vm1267_vm1, %v7877_v7 }
0x19d8   :  { %v7881_v22 = vpop.permute.xlu1 %7880  ;;  %14631 = vmatpush3.bf16.msra.mxu1 %v19884_v51 }
0x19d9   :  { %v7879_v10 = vpop.permute.xlu0 %7878  ;;  %14633 = vmatprep.subr.bf16.mxu1 %v19925_v8 }
0x19da   :  { %14239 = vmatprep.mubr.msk.f32.mxu1 %vm1267_vm1, %v7879_v10 }
0x19db   :  { %14240 = vmatmul.mubr.msk.f32.gmra.mrb[26].mxu1 %vm1267_vm1, %v7881_v22 }
0x19dc   :  { %v7885_v35 = vpop.permute.xlu1 %7884  ;;  %14635 = vmatpush3.bf16.msra.mxu1 %v19925_v8 }
0x19dd   :  { %v7883_v19 = vpop.permute.xlu0 %7882  ;;  %14637 = vmatprep.subr.bf16.mxu1 %v19884_v51 }
0x19de   :  { %14242 = vmatprep.mubr.msk.f32.mxu1 %vm1267_vm1, %v7883_v19 }
0x19df   :  { %14243 = vmatmul.mubr.msk.f32.gmra.mrb[28].mxu1 %vm1267_vm1, %v7885_v35 }
0x19e0   :  { %v7889_v17 = vpop.permute.xlu1 %7888 }
0x19e1   :  { %v7887_v58 = vpop.permute.xlu0 %7886 }
0x19e2   :  { %14245 = vmatprep.mubr.msk.f32.mxu1 %vm1267_vm1, %v7887_v58 }
0x19e3   :  { %14246 = vmatmul.mubr.msk.f32.gmra.mrb[30].mxu1 %vm1267_vm1, %v7889_v17 }
0x19e4   :  { %v7893_v14 = vpop.permute.xlu1 %7892 }
0x19e5   :  { %v7891_v5 = vpop.permute.xlu0 %7890 }
0x19e6   :  { %14248 = vmatprep.mubr.msk.f32.mxu1 %vm1267_vm1, %v7891_v5 }
0x19e7   :  { %14249 = vmatmul.mubr.msk.f32.gmra.mrb[32].mxu1 %vm1267_vm1, %v7893_v14 }
0x19e8   :  { %v7897_v9 = vpop.permute.xlu1 %7896 }
0x19e9   :  { %v7895_v47 = vpop.permute.xlu0 %7894 }
0x19ea   :  { %14251 = vmatprep.mubr.msk.f32.mxu1 %vm1267_vm1, %v7895_v47 }
0x19eb   :  { %14252 = vmatmul.mubr.msk.f32.gmra.mrb[34].mxu1 %vm1267_vm1, %v7897_v9 }
0x19ec   :  { %v7901_v12 = vpop.permute.xlu1 %7900 }
0x19ed   :  { %v7899_v21 = vpop.permute.xlu0 %7898 }
0x19ee   :  { %14254 = vmatprep.mubr.msk.f32.mxu1 %vm1267_vm1, %v7899_v21 }
0x19ef   :  { %14255 = vmatmul.mubr.msk.f32.gmra.mrb[36].mxu1 %vm1267_vm1, %v7901_v12 }
0x19f0   :  { %v7905_v53 = vpop.permute.xlu1 %7904 }
0x19f1   :  { %v7903_v26 = vpop.permute.xlu0 %7902 }
0x19f2   :  { %14257 = vmatprep.mubr.msk.f32.mxu1 %vm1267_vm1, %v7903_v26 }
0x19f3   :  { %14258 = vmatmul.mubr.msk.f32.gmra.mrb[38].mxu1 %vm1267_vm1, %v7905_v53 }
0x1aaa   :  { %v14238_v33 = vpop.f32.mrb[24].mxu1 }
0x1aab   :  { %v20265_v1 = vadd.f32 %v14238_v33, %v19970_v20  ;;  %v8004_v54 = vpop.f32.mrb[25].mxu1 }
0x1aac   :  { %v20268_v60 = vadd.f32 %v19970_v20, %v8004_v54 }
0x1aad   :  { %16065 = vtanh.f32 %v20265_v1 }
0x1aae   :  { %16067 = vtanh.f32 %v20268_v60  ;;  %v14241_v55 = vpop.f32.mrb[26].mxu1 }
0x1aaf   :  { %v20273_v24 = vadd.f32 %v14241_v55, %v19970_v20  ;;  %v8014_v27 = vpop.f32.mrb[27].mxu1  ;;  %v8100_v55 = vmul.f32 0.5, %v20265_v1 }
0x1ab0   :  { %v20276_v25 = vadd.f32 %v19970_v20, %v8014_v27  ;;  %v8099_v27 = vmul.f32 0.5, %v20268_v60 }
0x1ab1   :  { %16069 = vtanh.f32 %v20273_v24 }
0x1ab2   :  { %16071 = vtanh.f32 %v20276_v25  ;;  %v14244_v44 = vpop.f32.mrb[28].mxu1 }
0x1ab3   :  { %v20281_v57 = vadd.f32 %v14244_v44, %v19970_v20  ;;  %v8024_v4 = vpop.f32.mrb[29].mxu1  ;;  %v8102_v44 = vmul.f32 0.5, %v20273_v24 }
0x1ab4   :  { %v20284_v43 = vadd.f32 %v19970_v20, %v8024_v4  ;;  %v8101_v4 = vmul.f32 0.5, %v20276_v25 }
0x1ab5   :  { %16073 = vtanh.f32 %v20281_v57 }
0x1ab6   :  { %16075 = vtanh.f32 %v20284_v43  ;;  %v14247_v52 = vpop.f32.mrb[30].mxu1 }
0x1ab7   :  { %v16066_v42 = vpop.eup %16065  ;;  %v20289_v32 = vadd.f32 %v14247_v52, %v19970_v20  ;;  %v8034_v45 = vpop.f32.mrb[31].mxu1  ;;  %v8104_v52 = vmul.f32 0.5, %v20281_v57 }
0x1ab8   :  { %v16068_v23 = vpop.eup %16067  ;;  %v20292_v41 = vadd.f32 %v19970_v20, %v8034_v45  ;;  %8213 = vrot.lane.b32.xlu1 %v16066_v42, %s16744_s30  ;;  %v8103_v42 = vmul.f32 0.5, %v20284_v43 }
0x1ab9   :  { %16077 = vtanh.f32 %v20289_v32  ;;  %8211 = vrot.lane.b32.xlu0 %v16068_v23, %s16744_s30  ;;  %v8106_v45 = vmul.f32 0.5, %v20289_v32 }
0x1aba   :  { %16079 = vtanh.f32 %v20292_v41  ;;  %v14250_v37 = vpop.f32.mrb[32].mxu1  ;;  %v8105_v1 = vmul.f32 0.5, %v20292_v41 }
0x1abb   :  { %v16070_v48 = vpop.eup %16069  ;;  %v20299_v49 = vadd.f32 %v14250_v37, %v19970_v20  ;;  %v8044_v28 = vpop.f32.mrb[33].mxu1 }
0x1abc   :  { %v16072_v16 = vpop.eup %16071  ;;  %v20302_v2 = vadd.f32 %v19970_v20, %v8044_v28  ;;  %8217 = vrot.lane.b32.xlu1 %v16070_v48, %s16744_s30 }
0x1abd   :  { %16081 = vtanh.f32 %v20299_v49  ;;  %8215 = vrot.lane.b32.xlu0 %v16072_v16, %s16744_s30  ;;  %v8108_v24 = vmul.f32 0.5, %v20299_v49 }
0x1abe   :  { %16083 = vtanh.f32 %v20302_v2  ;;  %v14253_v59 = vpop.f32.mrb[34].mxu1  ;;  %v8107_v25 = vmul.f32 0.5, %v20302_v2 }
0x1abf   :  { %v16074_v39 = vpop.eup %16073  ;;  %v20309_v62 = vadd.f32 %v14253_v59, %v19970_v20  ;;  %v8054_v13 = vpop.f32.mrb[35].mxu1 }
0x1ac0   :  { %v16076_v46 = vpop.eup %16075  ;;  %v20312_v7 = vadd.f32 %v19970_v20, %v8054_v13  ;;  %8221 = vrot.lane.b32.xlu1 %v16074_v39, %s16744_s30 }
0x1ac1   :  { %16085 = vtanh.f32 %v20309_v62  ;;  %8219 = vrot.lane.b32.xlu0 %v16076_v46, %s16744_s30  ;;  %v8110_v43 = vmul.f32 0.5, %v20309_v62 }
0x1ac2   :  { %16087 = vtanh.f32 %v20312_v7  ;;  %v14256_v11 = vpop.f32.mrb[36].mxu1  ;;  %v8109_v32 = vmul.f32 0.5, %v20312_v7 }
0x1ac3   :  { %v16078_v22 = vpop.eup %16077  ;;  %v20319_v10 = vadd.f32 %v14256_v11, %v19970_v20  ;;  %v8064_v35 = vpop.f32.mrb[37].mxu1 }
0x1ac4   :  { %v16080_v19 = vpop.eup %16079  ;;  %v20322_v17 = vadd.f32 %v19970_v20, %v8064_v35  ;;  %8225 = vrot.lane.b32.xlu1 %v16078_v22, %s16744_s30 }
0x1ac5   :  { %16089 = vtanh.f32 %v20319_v10  ;;  %8223 = vrot.lane.b32.xlu0 %v16080_v19, %s16744_s30  ;;  %v8112_v22 = vmul.f32 0.5, %v20319_v10 }
0x1ac6   :  { %16091 = vtanh.f32 %v20322_v17  ;;  %v14259_v58 = vpop.f32.mrb[38].mxu1  ;;  %v8111_v7 = vmul.f32 0.5, %v20322_v17 }
0x1ac7   :  { %v16082_v14 = vpop.eup %16081  ;;  %v20329_v5 = vadd.f32 %v14259_v58, %v19970_v20  ;;  %v8074_v9 = vpop.f32.mrb[39].mxu1 }
0x1ac8   :  { %v16084_v47 = vpop.eup %16083  ;;  %v20332_v12 = vadd.f32 %v19970_v20, %v8074_v9  ;;  %8229 = vrot.lane.b32.xlu1 %v16082_v14, %s16744_s30 }
0x1ac9   :  { %16093 = vtanh.f32 %v20329_v5  ;;  %8227 = vrot.lane.b32.xlu0 %v16084_v47, %s16744_s30 }
0x1aca   :  { %16095 = vtanh.f32 %v20332_v12 }
0x1acb   :  { %v16086_v21 = vpop.eup %16085  ;;  %16097 = vtanh.f32 %v8100_v55 }
0x1acc   :  { %v16088_v26 = vpop.eup %16087  ;;  %8233 = vrot.lane.b32.xlu1 %v16086_v21, %s16744_s30  ;;  %16099 = vtanh.f32 %v8099_v27 }
0x1acd   :  { %8231 = vrot.lane.b32.xlu0 %v16088_v26, %s16744_s30  ;;  %16101 = vtanh.f32 %v8102_v44 }
0x1ace   :  { %16103 = vtanh.f32 %v8101_v4 }
0x1acf   :  { %v16090_v53 = vpop.eup %16089  ;;  %16105 = vtanh.f32 %v8104_v52 }
0x1ad0   :  { %v16092_v33 = vpop.eup %16091  ;;  %8237 = vrot.lane.b32.xlu1 %v16090_v53, %s16744_s30  ;;  %16107 = vtanh.f32 %v8103_v42  ;;  %v8114_v53 = vmul.f32 0.5, %v20329_v5 }
0x1ad1   :  { %8235 = vrot.lane.b32.xlu0 %v16092_v33, %s16744_s30  ;;  %16109 = vtanh.f32 %v8106_v45 }
0x1ad2   :  { %16111 = vtanh.f32 %v8105_v1 }
0x1ad3   :  { %v16094_v20 = vpop.eup %16093  ;;  %16113 = vtanh.f32 %v8108_v24 }
0x1ad4   :  { %v16096_v54 = vpop.eup %16095  ;;  %8241 = vrot.lane.b32.xlu1 %v16094_v20, %s16744_s30  ;;  %16115 = vtanh.f32 %v8107_v25  ;;  %v8113_v20 = vmul.f32 0.5, %v20332_v12 }
0x1ad5   :  { %8239 = vrot.lane.b32.xlu0 %v16096_v54, %s16744_s30  ;;  %v16098_v23 = vpop.eup %16097  ;;  %16117 = vtanh.f32 %v8110_v43 }
0x1ad6   :  { %v16100_v60 = vpop.eup %16099  ;;  %v8132_v37 = vmul.f32 0.5, %v16098_v23  ;;  %16119 = vtanh.f32 %v8109_v32 }
0x1ad7   :  { %v16102_v48 = vpop.eup %16101  ;;  %v8131_v57 = vmul.f32 0.5, %v16100_v60  ;;  %16121 = vtanh.f32 %v8112_v22 }
0x1ad8   :  { %v16104_v28 = vpop.eup %16103  ;;  %v8134_v16 = vmul.f32 0.5, %v16102_v48  ;;  %v20356_v41 = vadd.f32 0.5, %v8132_v37  ;;  %16123 = vtanh.f32 %v8111_v7 }
0x1ad9   :  { %v16106_v59 = vpop.eup %16105  ;;  %v8133_v39 = vmul.f32 0.5, %v16104_v28  ;;  %v20358_v49 = vadd.f32 0.5, %v8131_v57  ;;  %16125 = vtanh.f32 %v8114_v53 }
0x1ada   :  { %v16108_v46 = vpop.eup %16107  ;;  %v8136_v35 = vmul.f32 0.5, %v16106_v59  ;;  %v20365_v19 = vadd.f32 0.5, %v8134_v16  ;;  %16127 = vtanh.f32 %v8113_v20 }
0x1adb   :  { %v16110_v58 = vpop.eup %16109  ;;  %v8135_v14 = vmul.f32 0.5, %v16108_v46  ;;  %v20368_v47 = vadd.f32 0.5, %v8133_v39 }
0x1adc   :  { %v16112_v21 = vpop.eup %16111  ;;  %v8138_v33 = vmul.f32 0.5, %v16110_v58  ;;  %v20375_v54 = vadd.f32 0.5, %v8136_v35 }
0x1add   :  { %v16114_v55 = vpop.eup %16113  ;;  %v8137_v27 = vmul.f32 0.5, %v16112_v21  ;;  %v20378_v4 = vadd.f32 0.5, %v8135_v14 }
0x1ade   :  { %v16116_v52 = vpop.eup %16115  ;;  %v8140_v1 = vmul.f32 0.5, %v16114_v55  ;;  %v20383_v12 = vadd.f32 0.5, %v8138_v33 }
0x1adf   :  { %v16118_v23 = vpop.eup %16117  ;;  %v8139_v60 = vmul.f32 0.5, %v16116_v52  ;;  %v20386_v37 = vadd.f32 0.5, %v8137_v27 }
0x1ae0   :  { %v16120_v25 = vpop.eup %16119  ;;  %v8142_v43 = vmul.f32 0.5, %v16118_v23  ;;  %v20391_v16 = vadd.f32 0.5, %v8140_v1 }
0x1ae1   :  { %v16122_v32 = vpop.eup %16121  ;;  %v8141_v59 = vmul.f32 0.5, %v16120_v25  ;;  %v8180_v25 = vmul.f32 %v20356_v41, %v20134_v40  ;;  %v8181_v40 = vmul.f32 %v20368_v47, %v20144_v18 }
0x1ae2   :  { %v16124_v46 = vpop.eup %16123  ;;  %v20399_v35 = vadd.f32 0.5, %v8142_v43 }
0x1ae3   :  { %v16126_v7 = vpop.eup %16125  ;;  %v8143_v58 = vmul.f32 0.5, %v16124_v46 }
0x1ae4   :  { %v16128_v21 = vpop.eup %16127 }
0x1ae5   :  { %v8145_v20 = vmul.f32 0.5, %v16128_v21  ;;  %v20410_v27 = vadd.f32 0.5, %v8143_v58  ;;  %v8186_v58 = vmul.f32 %v20383_v12, %v20158_v3  ;;  %v8188_v3 = vmul.f32 %v20391_v16, %v20168_v34 }
0x1ae6   :  { %v8190_v34 = vmul.f32 %v20399_v35, %v20178_v61 }
0x1ae7   :  { %v20418_v1 = vadd.f32 0.5, %v8145_v20 }
0x1b2a   :  { %v8214_v13 = vpop.permute.xlu1 %8213 }
0x1b2b   :  { %v8260_v2 = vmul.f32 %v8214_v13, %v20356_v41  ;;  %v8212_v11 = vpop.permute.xlu0 %8211  ;;  %v20394_v13 = vadd.f32 0.5, %v8139_v60 }
0x1b2c   :  { %v8259_v62 = vmul.f32 %v8212_v11, %v20358_v49 }
0x1b2d   :  { %8293 = vrot.lane.b32.xlu1 %v8260_v2, %s16744_s30 }
0x1b2e   :  { %v8218_v9 = vpop.permute.xlu1 %8217  ;;  %8291 = vrot.lane.b32.xlu0 %v8259_v62, %s16744_s30  ;;  %v8144_v62 = vmul.f32 0.5, %v16122_v32 }
0x1b2f   :  { %v8262_v10 = vmul.f32 %v8218_v9, %v20365_v19  ;;  %v8216_v26 = vpop.permute.xlu0 %8215  ;;  %v20402_v9 = vadd.f32 0.5, %v8141_v59  ;;  %v8182_v59 = vmul.f32 %v20365_v19, %v20142_v15  ;;  %v8183_v15 = vmul.f32 %v20378_v4, %v20152_v6 }
0x1b30   :  { %v8261_v17 = vmul.f32 %v8216_v26, %v20368_v47  ;;  %v20407_v33 = vadd.f32 0.5, %v8144_v62 }
0x1b31   :  { %8297 = vrot.lane.b32.xlu1 %v8262_v10, %s16744_s30 }
0x1b32   :  { %v8222_v44 = vpop.permute.xlu1 %8221  ;;  %8295 = vrot.lane.b32.xlu0 %v8261_v17, %s16744_s30  ;;  %v8146_v17 = vmul.f32 0.5, %v16126_v7  ;;  %v8192_v61 = vmul.f32 %v20407_v33, %v20188_v56 }
0x1b33   :  { %v8264_v5 = vmul.f32 %v8222_v44, %v20375_v54  ;;  %v8220_v42 = vpop.permute.xlu0 %8219 }
0x1b34   :  { %v8263_v45 = vmul.f32 %v8220_v42, %v20378_v4  ;;  %v20415_v42 = vadd.f32 0.5, %v8146_v17 }
0x1b35   :  { %8301 = vrot.lane.b32.xlu1 %v8264_v5, %s16744_s30 }
0x1b36   :  { %v8226_v24 = vpop.permute.xlu1 %8225  ;;  %8299 = vrot.lane.b32.xlu0 %v8263_v45, %s16744_s30  ;;  %v8194_v56 = vmul.f32 %v20415_v42, %v20198_v30 }
0x1b37   :  { %v8266_v48 = vmul.f32 %v8226_v24, %v20383_v12  ;;  %v8224_v57 = vpop.permute.xlu0 %8223 }
0x1b38   :  { %v8265_v28 = vmul.f32 %v8224_v57, %v20386_v37  ;;  %v8179_v57 = vmul.f32 %v20358_v49, %v20136_v38 }
0x1b39   :  { %8305 = vrot.lane.b32.xlu1 %v8266_v48, %s16744_s30 }
0x1b3a   :  { %v8230_v39 = vpop.permute.xlu1 %8229  ;;  %8303 = vrot.lane.b32.xlu0 %v8265_v28, %s16744_s30 }
0x1b3b   :  { %v8268_v2 = vmul.f32 %v8230_v39, %v20391_v16  ;;  %v8228_v11 = vpop.permute.xlu0 %8227 }
0x1b3c   :  { %v8267_v22 = vmul.f32 %v8228_v11, %v20394_v13  ;;  %v8184_v11 = vmul.f32 %v20375_v54, %v20150_v50  ;;  %v8185_v50 = vmul.f32 %v20386_v37, %v20160_v63  ;;  %v8187_v63 = vmul.f32 %v20394_v13, %v20170_v0 }
0x1b3d   :  { %8309 = vrot.lane.b32.xlu1 %v8268_v2, %s16744_s30  ;;  %v8189_v0 = vmul.f32 %v20402_v9, %v20180_v31  ;;  %v8191_v31 = vmul.f32 %v20410_v27, %v20190_v29  ;;  %v8193_v29 = vmul.f32 %v20418_v1, %v20200_v36 }
0x1b3e   :  { %v8234_v14 = vpop.permute.xlu1 %8233  ;;  %8307 = vrot.lane.b32.xlu0 %v8267_v22, %s16744_s30 }
0x1b3f   :  { %v8270_v10 = vmul.f32 %v8234_v14, %v20399_v35  ;;  %v8232_v26 = vpop.permute.xlu0 %8231 }
0x1b40   :  { %v8269_v53 = vmul.f32 %v8232_v26, %v20402_v9 }
0x1b41   :  { %8313 = vrot.lane.b32.xlu1 %v8270_v10, %s16744_s30 }
0x1b42   :  { %v8238_v55 = vpop.permute.xlu1 %8237  ;;  %8311 = vrot.lane.b32.xlu0 %v8269_v53, %s16744_s30 }
0x1b43   :  { %v8272_v44 = vmul.f32 %v8238_v55, %v20407_v33  ;;  %v8236_v52 = vpop.permute.xlu0 %8235 }
0x1b44   :  { %v8271_v5 = vmul.f32 %v8236_v52, %v20410_v27 }
0x1b45   :  { %8317 = vrot.lane.b32.xlu1 %v8272_v44, %s16744_s30 }
0x1b46   :  { %v8242_v45 = vpop.permute.xlu1 %8241  ;;  %8315 = vrot.lane.b32.xlu0 %v8271_v5, %s16744_s30 }
0x1b47   :  { %v8274_v23 = vmul.f32 %v8242_v45, %v20415_v42  ;;  %v8240_v60 = vpop.permute.xlu0 %8239 }
0x1b48   :  { %v8273_v24 = vmul.f32 %v8240_v60, %v20418_v1 }
0x1b49   :  { %8321 = vrot.lane.b32.xlu1 %v8274_v23, %s16744_s30 }
0x1b4a   :  { %8319 = vrot.lane.b32.xlu0 %v8273_v24, %s16744_s30 }
0x1b9f   :  { %v8294_v48 = vpop.permute.xlu1 %8293 }
0x1ba0   :  { %v20428_v28 = vadd.f32 %v8294_v48, %v8180_v25  ;;  %v8292_v43 = vpop.permute.xlu0 %8291 }
0x1ba1   :  { %v20430_v32 = vadd.f32 %v8292_v43, %v8179_v57 }
0x1ba2   :  { %16129 = vtanh.f32 %v20428_v28 }
0x1ba3   :  { %16131 = vtanh.f32 %v20430_v32  ;;  %v8298_v39 = vpop.permute.xlu1 %8297 }
0x1ba4   :  { %v20438_v46 = vadd.f32 %v8298_v39, %v8182_v59  ;;  %v8296_v2 = vpop.permute.xlu0 %8295 }
0x1ba5   :  { %v20440_v38 = vadd.f32 %v8296_v2, %v8181_v40 }
0x1ba6   :  { %16133 = vtanh.f32 %v20438_v46 }
0x1ba7   :  { %16135 = vtanh.f32 %v20440_v38  ;;  %v8302_v22 = vpop.permute.xlu1 %8301 }
0x1ba8   :  { %v20448_v62 = vadd.f32 %v8302_v22, %v8184_v11  ;;  %v8300_v7 = vpop.permute.xlu0 %8299 }
0x1ba9   :  { %v20450_v18 = vadd.f32 %v8300_v7, %v8183_v15 }
0x1baa   :  { %16137 = vtanh.f32 %v20448_v62 }
0x1bab   :  { %16139 = vtanh.f32 %v20450_v18  ;;  %v8306_v14 = vpop.permute.xlu1 %8305 }
0x1bac   :  { %v16130_v21 = vpop.eup %16129  ;;  %v20458_v10 = vadd.f32 %v8306_v14, %v8186_v58  ;;  %v8304_v6 = vpop.permute.xlu0 %8303 }
0x1bad   :  { %v16132_v26 = vpop.eup %16131  ;;  %v20460_v53 = vadd.f32 %v8304_v6, %v8185_v50  ;;  %8389 = vrot.lane.b32.xlu1 %v16130_v21, %s16744_s30 }
0x1bae   :  { %16141 = vtanh.f32 %v20458_v10  ;;  %8387 = vrot.lane.b32.xlu0 %v16132_v26, %s16744_s30 }
0x1baf   :  { %16143 = vtanh.f32 %v20460_v53  ;;  %v8310_v17 = vpop.permute.xlu1 %8309 }
0x1bb0   :  { %v16134_v20 = vpop.eup %16133  ;;  %v20470_v55 = vadd.f32 %v8310_v17, %v8188_v3  ;;  %v8308_v44 = vpop.permute.xlu0 %8307 }
0x1bb1   :  { %v16136_v52 = vpop.eup %16135  ;;  %v20472_v5 = vadd.f32 %v8308_v44, %v8187_v63  ;;  %8393 = vrot.lane.b32.xlu1 %v16134_v20, %s16744_s30 }
0x1bb2   :  { %16145 = vtanh.f32 %v20470_v55  ;;  %8391 = vrot.lane.b32.xlu0 %v16136_v52, %s16744_s30 }
0x1bb3   :  { %16147 = vtanh.f32 %v20472_v5  ;;  %v8314_v45 = vpop.permute.xlu1 %8313 }
0x1bb4   :  { %v16138_v23 = vpop.eup %16137  ;;  %v20482_v60 = vadd.f32 %v8314_v45, %v8190_v34  ;;  %v8312_v24 = vpop.permute.xlu0 %8311 }
0x1bb5   :  { %v16140_v25 = vpop.eup %16139  ;;  %v20484_v48 = vadd.f32 %v8312_v24, %v8189_v0  ;;  %8397 = vrot.lane.b32.xlu1 %v16138_v23, %s16744_s30 }
0x1bb6   :  { %16149 = vtanh.f32 %v20482_v60  ;;  %8395 = vrot.lane.b32.xlu0 %v16140_v25, %s16744_s30 }
0x1bb7   :  { %16151 = vtanh.f32 %v20484_v48  ;;  %v8318_v57 = vpop.permute.xlu1 %8317 }
0x1bb8   :  { %v16142_v43 = vpop.eup %16141  ;;  %v20494_v59 = vadd.f32 %v8318_v57, %v8192_v61  ;;  %v8316_v39 = vpop.permute.xlu0 %8315 }
0x1bb9   :  { %v16144_v40 = vpop.eup %16143  ;;  %v20496_v2 = vadd.f32 %v8316_v39, %v8191_v31  ;;  %8401 = vrot.lane.b32.xlu1 %v16142_v43, %s16744_s30 }
0x1bba   :  { %16153 = vtanh.f32 %v20494_v59  ;;  %8399 = vrot.lane.b32.xlu0 %v16144_v40, %s16744_s30 }
0x1bbb   :  { %16155 = vtanh.f32 %v20496_v2  ;;  %v8322_v11 = vpop.permute.xlu1 %8321 }
0x1bbc   :  { %v16146_v22 = vpop.eup %16145  ;;  %v20506_v15 = vadd.f32 %v8322_v11, %v8194_v56  ;;  %v8320_v7 = vpop.permute.xlu0 %8319 }
0x1bbd   :  { %v16148_v58 = vpop.eup %16147  ;;  %v20508_v14 = vadd.f32 %v8320_v7, %v8193_v29  ;;  %8405 = vrot.lane.b32.xlu1 %v16146_v22, %s16744_s30 }
0x1bbe   :  { %16157 = vtanh.f32 %v20506_v15  ;;  %8403 = vrot.lane.b32.xlu0 %v16148_v58, %s16744_s30 }
0x1bbf   :  { %16159 = vtanh.f32 %v20508_v14 }
0x1bc0   :  { %v16150_v30 = vpop.eup %16149 }
0x1bc1   :  { %v16152_v50 = vpop.eup %16151  ;;  %8409 = vrot.lane.b32.xlu1 %v16150_v30, %s16744_s30 }
0x1bc2   :  { %8407 = vrot.lane.b32.xlu0 %v16152_v50, %s16744_s30 }
0x1bc4   :  { %v16154_v36 = vpop.eup %16153 }
0x1bc5   :  { %v16156_v21 = vpop.eup %16155  ;;  %8413 = vrot.lane.b32.xlu1 %v16154_v36, %s16744_s30 }
0x1bc6   :  { %8411 = vrot.lane.b32.xlu0 %v16156_v21, %s16744_s30 }
0x1bc8   :  { %v16158_v6 = vpop.eup %16157 }
0x1bc9   :  { %v16160_v26 = vpop.eup %16159  ;;  %8417 = vrot.lane.b32.xlu1 %v16158_v6, %s16744_s30 }
0x1bca   :  { %8415 = vrot.lane.b32.xlu0 %v16160_v26, %s16744_s30 }
0x1c1f   :  { %v8390_v3 = vpop.permute.xlu1 %8389 }
0x1c20   :  { %v8436_v17 = vmul.f32 %v8390_v3, %v20356_v41  ;;  %v8388_v63 = vpop.permute.xlu0 %8387 }
0x1c21   :  { %v8435_v20 = vmul.f32 %v8388_v63, %v20358_v49 }
0x1c22   :  { %8485 = vrot.lane.b32.xlu1 %v8436_v17, %s16745_s0 }
0x1c23   :  { %v8394_v44 = vpop.permute.xlu1 %8393  ;;  %8483 = vrot.lane.b32.xlu0 %v8435_v20, %s16745_s0  ;;  %v20575_v20 = vld [vmem:[%s22463_s6] ss:$0 sm:$0xff] }
0x1c24   :  { %v8438_v52 = vmul.f32 %v8394_v44, %v20365_v19  ;;  %v8392_v34 = vpop.permute.xlu0 %8391 }
0x1c25   :  { %v8437_v45 = vmul.f32 %v8392_v34, %v20368_v47 }
0x1c26   :  { %8489 = vrot.lane.b32.xlu1 %v8438_v52, %s16745_s0 }
0x1c27   :  { %v8398_v0 = vpop.permute.xlu1 %8397  ;;  %8487 = vrot.lane.b32.xlu0 %v8437_v45, %s16745_s0 }
0x1c28   :  { %v8440_v41 = vmul.f32 %v8398_v0, %v20375_v54  ;;  %v8396_v23 = vpop.permute.xlu0 %8395 }
0x1c29   :  { %v8439_v49 = vmul.f32 %v8396_v23, %v20378_v4 }
0x1c2a   :  { %8493 = vrot.lane.b32.xlu1 %v8440_v41, %s16745_s0 }
0x1c2b   :  { %v8402_v24 = vpop.permute.xlu1 %8401  ;;  %8491 = vrot.lane.b32.xlu0 %v8439_v49, %s16745_s0 }
0x1c2c   :  { %v8442_v19 = vmul.f32 %v8402_v24, %v20383_v12  ;;  %v8400_v25 = vpop.permute.xlu0 %8399 }
0x1c2d   :  { %v8441_v47 = vmul.f32 %v8400_v25, %v20386_v37 }
0x1c2e   :  { %8497 = vrot.lane.b32.xlu1 %v8442_v19, %s16745_s0 }
0x1c2f   :  { %v8406_v61 = vpop.permute.xlu1 %8405  ;;  %8495 = vrot.lane.b32.xlu0 %v8441_v47, %s16745_s0 }
0x1c30   :  { %v8444_v54 = vmul.f32 %v8406_v61, %v20391_v16  ;;  %v8404_v57 = vpop.permute.xlu0 %8403 }
0x1c31   :  { %v8443_v4 = vmul.f32 %v8404_v57, %v20394_v13 }
0x1c32   :  { %8501 = vrot.lane.b32.xlu1 %v8444_v54, %s16745_s0 }
0x1c33   :  { %v8410_v31 = vpop.permute.xlu1 %8409  ;;  %8499 = vrot.lane.b32.xlu0 %v8443_v4, %s16745_s0 }
0x1c34   :  { %v8446_v12 = vmul.f32 %v8410_v31, %v20399_v35  ;;  %v8408_v43 = vpop.permute.xlu0 %8407 }
0x1c35   :  { %v8445_v37 = vmul.f32 %v8408_v43, %v20402_v9 }
0x1c36   :  { %8505 = vrot.lane.b32.xlu1 %v8446_v12, %s16745_s0 }
0x1c37   :  { %v8414_v39 = vpop.permute.xlu1 %8413  ;;  %8503 = vrot.lane.b32.xlu0 %v8445_v37, %s16745_s0 }
0x1c38   :  { %v8448_v16 = vmul.f32 %v8414_v39, %v20407_v33  ;;  %v8412_v40 = vpop.permute.xlu0 %8411 }
0x1c39   :  { %v8447_v13 = vmul.f32 %v8412_v40, %v20410_v27 }
0x1c3a   :  { %8509 = vrot.lane.b32.xlu1 %v8448_v16, %s16745_s0 }
0x1c3b   :  { %v8418_v56 = vpop.permute.xlu1 %8417  ;;  %8507 = vrot.lane.b32.xlu0 %v8447_v13, %s16745_s0 }
0x1c3c   :  { %v8450_v35 = vmul.f32 %v8418_v56, %v20415_v42  ;;  %v8416_v11 = vpop.permute.xlu0 %8415 }
0x1c3d   :  { %v8449_v9 = vmul.f32 %v8416_v11, %v20418_v1 }
0x1c3e   :  { %8513 = vrot.lane.b32.xlu1 %v8450_v35, %s16745_s0 }
0x1c3f   :  { %8511 = vrot.lane.b32.xlu0 %v8449_v9, %s16745_s0 }
0x1c94   :  { %v8486_v29 = vpop.permute.xlu1 %8485 }
0x1c95   :  { %v8484_v22 = vpop.permute.xlu0 %8483 }
0x1c96   :  { %14268 = vmatprep.mubr.msk.f32.mxu1 %vm1267_vm1, %v8484_v22 }
0x1c97   :  { %14269 = vmatmul.mubr.msk.f32.vlgmr.msra.gmra.mrb[40].mxu1 %vm1267_vm1, %v8486_v29 }
0x1c98   :  { %v8490_v33 = vpop.permute.xlu1 %8489  ;;  %14639 = vmatpush3.bf16.msra.mxu1 %v19884_v51 }
0x1c99   :  { %v8488_v27 = vpop.permute.xlu0 %8487  ;;  %14641 = vmatprep.subr.bf16.mxu1 %v19925_v8 }
0x1c9a   :  { %14271 = vmatprep.mubr.msk.f32.mxu1 %vm1267_vm1, %v8488_v27 }
0x1c9b   :  { %14272 = vmatmul.mubr.msk.f32.gmra.mrb[42].mxu1 %vm1267_vm1, %v8490_v33 }
0x1c9c   :  { %v8494_v42 = vpop.permute.xlu1 %8493  ;;  %14643 = vmatpush3.bf16.msra.mxu1 %v19925_v8 }
0x1c9d   :  { %v8492_v1 = vpop.permute.xlu0 %8491  ;;  %14645 = vmatprep.subr.bf16.mxu1 %v19884_v51 }
0x1c9e   :  { %14274 = vmatprep.mubr.msk.f32.mxu1 %vm1267_vm1, %v8492_v1 }
0x1c9f   :  { %14275 = vmatmul.mubr.msk.f32.gmra.mrb[44].mxu1 %vm1267_vm1, %v8494_v42 }
0x1ca0   :  { %v8498_v7 = vpop.permute.xlu1 %8497 }
0x1ca1   :  { %v8496_v58 = vpop.permute.xlu0 %8495 }
0x1ca2   :  { %14277 = vmatprep.mubr.msk.f32.mxu1 %vm1267_vm1, %v8496_v58 }
0x1ca3   :  { %14278 = vmatmul.mubr.msk.f32.gmra.mrb[46].mxu1 %vm1267_vm1, %v8498_v7 }
0x1ca4   :  { %v8502_v30 = vpop.permute.xlu1 %8501 }
0x1ca5   :  { %v8500_v50 = vpop.permute.xlu0 %8499 }
0x1ca6   :  { %14280 = vmatprep.mubr.msk.f32.mxu1 %vm1267_vm1, %v8500_v50 }
0x1ca7   :  { %14281 = vmatmul.mubr.msk.f32.gmra.mrb[48].mxu1 %vm1267_vm1, %v8502_v30 }
0x1ca8   :  { %v8506_v36 = vpop.permute.xlu1 %8505 }
0x1ca9   :  { %v8504_v21 = vpop.permute.xlu0 %8503 }
0x1caa   :  { %14283 = vmatprep.mubr.msk.f32.mxu1 %vm1267_vm1, %v8504_v21 }
0x1cab   :  { %14284 = vmatmul.mubr.msk.f32.gmra.mrb[50].mxu1 %vm1267_vm1, %v8506_v36 }
0x1cac   :  { %v8510_v6 = vpop.permute.xlu1 %8509 }
0x1cad   :  { %v8508_v26 = vpop.permute.xlu0 %8507 }
0x1cae   :  { %14286 = vmatprep.mubr.msk.f32.mxu1 %vm1267_vm1, %v8508_v26 }
0x1caf   :  { %14287 = vmatmul.mubr.msk.f32.gmra.mrb[52].mxu1 %vm1267_vm1, %v8510_v6 }
0x1cb0   :  { %v8514_v17 = vpop.permute.xlu1 %8513 }
0x1cb1   :  { %v8512_v3 = vpop.permute.xlu0 %8511 }
0x1cb2   :  { %14289 = vmatprep.mubr.msk.f32.mxu1 %vm1267_vm1, %v8512_v3 }
0x1cb3   :  { %14290 = vmatmul.mubr.msk.f32.gmra.mrb[54].mxu1 %vm1267_vm1, %v8514_v17 }
0x1d6a   :  { %v14270_v63 = vpop.f32.mrb[40].mxu1 }
0x1d6b   :  { %v20578_v44 = vadd.f32 %v20575_v20, %v14270_v63  ;;  %v8613_v52 = vpop.f32.mrb[41].mxu1 }
0x1d6c   :  { %v20581_v34 = vadd.f32 %v20575_v20, %v8613_v52 }
0x1d6d   :  { %16161 = vtanh.f32 %v20578_v44 }
0x1d6e   :  { %16163 = vtanh.f32 %v20581_v34  ;;  %v14273_v45 = vpop.f32.mrb[42].mxu1 }
0x1d6f   :  { %v20586_v0 = vadd.f32 %v20575_v20, %v14273_v45  ;;  %v8623_v41 = vpop.f32.mrb[43].mxu1 }
0x1d70   :  { %v20589_v23 = vadd.f32 %v20575_v20, %v8623_v41  ;;  %v8709_v41 = vmul.f32 0.5, %v20578_v44 }
0x1d71   :  { %16165 = vtanh.f32 %v20586_v0 }
0x1d72   :  { %16167 = vtanh.f32 %v20589_v23  ;;  %v14276_v49 = vpop.f32.mrb[44].mxu1 }
0x1d73   :  { %v20594_v24 = vadd.f32 %v20575_v20, %v14276_v49  ;;  %v8633_v19 = vpop.f32.mrb[45].mxu1  ;;  %v8708_v49 = vmul.f32 0.5, %v20581_v34 }
0x1d74   :  { %v20597_v25 = vadd.f32 %v20575_v20, %v8633_v19  ;;  %v8711_v19 = vmul.f32 0.5, %v20586_v0 }
0x1d75   :  { %16169 = vtanh.f32 %v20594_v24 }
0x1d76   :  { %16171 = vtanh.f32 %v20597_v25  ;;  %v14279_v47 = vpop.f32.mrb[46].mxu1 }
0x1d77   :  { %v16162_v61 = vpop.eup %16161  ;;  %v20602_v54 = vadd.f32 %v20575_v20, %v14279_v47  ;;  %v8643_v57 = vpop.f32.mrb[47].mxu1  ;;  %v8710_v47 = vmul.f32 0.5, %v20589_v23 }
0x1d78   :  { %v16164_v4 = vpop.eup %16163  ;;  %v20605_v31 = vadd.f32 %v20575_v20, %v8643_v57  ;;  %8822 = vrot.lane.b32.xlu1 %v16162_v61, %s16744_s30  ;;  %v8713_v61 = vmul.f32 0.5, %v20594_v24  ;;  %v8712_v57 = vmul.f32 0.5, %v20597_v25 }
0x1d79   :  { %16173 = vtanh.f32 %v20602_v54  ;;  %8820 = vrot.lane.b32.xlu0 %v16164_v4, %s16744_s30  ;;  %v8715_v4 = vmul.f32 0.5, %v20602_v54 }
0x1d7a   :  { %16175 = vtanh.f32 %v20605_v31  ;;  %v14282_v12 = vpop.f32.mrb[48].mxu1  ;;  %v8714_v44 = vmul.f32 0.5, %v20605_v31 }
0x1d7b   :  { %v16166_v43 = vpop.eup %16165  ;;  %v20612_v37 = vadd.f32 %v20575_v20, %v14282_v12  ;;  %v8653_v39 = vpop.f32.mrb[49].mxu1 }
0x1d7c   :  { %v16168_v16 = vpop.eup %16167  ;;  %v20615_v40 = vadd.f32 %v20575_v20, %v8653_v39  ;;  %8826 = vrot.lane.b32.xlu1 %v16166_v43, %s16744_s30 }
0x1d7d   :  { %16177 = vtanh.f32 %v20612_v37  ;;  %8824 = vrot.lane.b32.xlu0 %v16168_v16, %s16744_s30  ;;  %v8717_v0 = vmul.f32 0.5, %v20612_v37 }
0x1d7e   :  { %16179 = vtanh.f32 %v20615_v40  ;;  %v14285_v13 = vpop.f32.mrb[50].mxu1  ;;  %v8716_v23 = vmul.f32 0.5, %v20615_v40 }
0x1d7f   :  { %v16170_v56 = vpop.eup %16169  ;;  %v20622_v35 = vadd.f32 %v20575_v20, %v14285_v13  ;;  %v8663_v11 = vpop.f32.mrb[51].mxu1 }
0x1d80   :  { %v16172_v9 = vpop.eup %16171  ;;  %v20625_v29 = vadd.f32 %v20575_v20, %v8663_v11  ;;  %8830 = vrot.lane.b32.xlu1 %v16170_v56, %s16744_s30 }
0x1d81   :  { %16181 = vtanh.f32 %v20622_v35  ;;  %8828 = vrot.lane.b32.xlu0 %v16172_v9, %s16744_s30  ;;  %v8719_v25 = vmul.f32 0.5, %v20622_v35 }
0x1d82   :  { %16183 = vtanh.f32 %v20625_v29  ;;  %v14288_v22 = vpop.f32.mrb[52].mxu1  ;;  %v8718_v54 = vmul.f32 0.5, %v20625_v29 }
0x1d83   :  { %v16174_v33 = vpop.eup %16173  ;;  %v20632_v27 = vadd.f32 %v20575_v20, %v14288_v22  ;;  %v8673_v42 = vpop.f32.mrb[53].mxu1 }
0x1d84   :  { %v16176_v1 = vpop.eup %16175  ;;  %v20635_v7 = vadd.f32 %v20575_v20, %v8673_v42  ;;  %8834 = vrot.lane.b32.xlu1 %v16174_v33, %s16744_s30 }
0x1d85   :  { %16185 = vtanh.f32 %v20632_v27  ;;  %8832 = vrot.lane.b32.xlu0 %v16176_v1, %s16744_s30  ;;  %v8721_v42 = vmul.f32 0.5, %v20632_v27 }
0x1d86   :  { %16187 = vtanh.f32 %v20635_v7  ;;  %v14291_v58 = vpop.f32.mrb[54].mxu1  ;;  %v8720_v29 = vmul.f32 0.5, %v20635_v7 }
0x1d87   :  { %v16178_v30 = vpop.eup %16177  ;;  %v20642_v50 = vadd.f32 %v20575_v20, %v14291_v58  ;;  %v8683_v36 = vpop.f32.mrb[55].mxu1 }
0x1d88   :  { %v16180_v21 = vpop.eup %16179  ;;  %v20645_v6 = vadd.f32 %v20575_v20, %v8683_v36  ;;  %8838 = vrot.lane.b32.xlu1 %v16178_v30, %s16744_s30 }
0x1d89   :  { %16189 = vtanh.f32 %v20642_v50  ;;  %8836 = vrot.lane.b32.xlu0 %v16180_v21, %s16744_s30 }
0x1d8a   :  { %16191 = vtanh.f32 %v20645_v6 }
0x1d8b   :  { %v16182_v26 = vpop.eup %16181  ;;  %16193 = vtanh.f32 %v8709_v41 }
0x1d8c   :  { %v16184_v3 = vpop.eup %16183  ;;  %8842 = vrot.lane.b32.xlu1 %v16182_v26, %s16744_s30  ;;  %16195 = vtanh.f32 %v8708_v49 }
0x1d8d   :  { %8840 = vrot.lane.b32.xlu0 %v16184_v3, %s16744_s30  ;;  %16197 = vtanh.f32 %v8711_v19 }
0x1d8e   :  { %16199 = vtanh.f32 %v8710_v47 }
0x1d8f   :  { %v16186_v17 = vpop.eup %16185  ;;  %16201 = vtanh.f32 %v8713_v61 }
0x1d90   :  { %v16188_v63 = vpop.eup %16187  ;;  %8846 = vrot.lane.b32.xlu1 %v16186_v17, %s16744_s30  ;;  %16203 = vtanh.f32 %v8712_v57 }
0x1d91   :  { %8844 = vrot.lane.b32.xlu0 %v16188_v63, %s16744_s30  ;;  %16205 = vtanh.f32 %v8715_v4  ;;  %v8723_v63 = vmul.f32 0.5, %v20642_v50 }
0x1d92   :  { %16207 = vtanh.f32 %v8714_v44 }
0x1d93   :  { %v16190_v52 = vpop.eup %16189  ;;  %16209 = vtanh.f32 %v8717_v0 }
0x1d94   :  { %v16192_v45 = vpop.eup %16191  ;;  %8850 = vrot.lane.b32.xlu1 %v16190_v52, %s16744_s30  ;;  %16211 = vtanh.f32 %v8716_v23 }
0x1d95   :  { %8848 = vrot.lane.b32.xlu0 %v16192_v45, %s16744_s30  ;;  %v16194_v12 = vpop.eup %16193  ;;  %16213 = vtanh.f32 %v8719_v25  ;;  %v8722_v45 = vmul.f32 0.5, %v20645_v6 }
0x1d96   :  { %v16196_v34 = vpop.eup %16195  ;;  %v8741_v43 = vmul.f32 0.5, %v16194_v12  ;;  %16215 = vtanh.f32 %v8718_v54 }
0x1d97   :  { %v16198_v39 = vpop.eup %16197  ;;  %v8740_v24 = vmul.f32 0.5, %v16196_v34  ;;  %16217 = vtanh.f32 %v8721_v42 }
0x1d98   :  { %v16200_v16 = vpop.eup %16199  ;;  %v8743_v13 = vmul.f32 0.5, %v16198_v39  ;;  %v20669_v31 = vadd.f32 0.5, %v8741_v43  ;;  %16219 = vtanh.f32 %v8720_v29 }
0x1d99   :  { %v16202_v56 = vpop.eup %16201  ;;  %v8742_v11 = vmul.f32 0.5, %v16200_v16  ;;  %v20671_v37 = vadd.f32 0.5, %v8740_v24  ;;  %16221 = vtanh.f32 %v8723_v63 }
0x1d9a   :  { %v16204_v22 = vpop.eup %16203  ;;  %v8745_v1 = vmul.f32 0.5, %v16202_v56  ;;  %v20678_v58 = vadd.f32 0.5, %v8743_v13  ;;  %16223 = vtanh.f32 %v8722_v45 }
0x1d9b   :  { %v16206_v30 = vpop.eup %16205  ;;  %v8744_v36 = vmul.f32 0.5, %v16204_v22  ;;  %v20681_v26 = vadd.f32 0.5, %v8742_v11 }
0x1d9c   :  { %v16208_v3 = vpop.eup %16207  ;;  %v8747_v52 = vmul.f32 0.5, %v16206_v30  ;;  %v20688_v41 = vadd.f32 0.5, %v8745_v1 }
0x1d9d   :  { %v16210_v49 = vpop.eup %16209  ;;  %v8746_v19 = vmul.f32 0.5, %v16208_v3  ;;  %v20691_v61 = vadd.f32 0.5, %v8744_v36 }
0x1d9e   :  { %v16212_v57 = vpop.eup %16211  ;;  %v8749_v12 = vmul.f32 0.5, %v16210_v49  ;;  %v20696_v6 = vadd.f32 0.5, %v8747_v52 }
0x1d9f   :  { %v16214_v34 = vpop.eup %16213  ;;  %v8748_v0 = vmul.f32 0.5, %v16212_v57  ;;  %v20699_v23 = vadd.f32 0.5, %v8746_v19 }
0x1da0   :  { %v16216_v39 = vpop.eup %16215  ;;  %v8751_v13 = vmul.f32 0.5, %v16214_v34  ;;  %v20704_v54 = vadd.f32 0.5, %v8749_v12 }
0x1da1   :  { %v16218_v56 = vpop.eup %16217  ;;  %v8750_v11 = vmul.f32 0.5, %v16216_v39  ;;  %v20707_v22 = vadd.f32 0.5, %v8748_v0 }
0x1da2   :  { %v8753_v1 = vmul.f32 0.5, %v16218_v56  ;;  %v20712_v29 = vadd.f32 0.5, %v8751_v13 }
0x1da3   :  { %v20715_v3 = vadd.f32 0.5, %v8750_v11 }
0x1da4   :  { %v20720_v45 = vadd.f32 0.5, %v8753_v1 }
0x1dea   :  { %v8823_v9 = vpop.permute.xlu1 %8822 }
0x1deb   :  { %v8869_v40 = vmul.f32 %v8823_v9, %v20669_v31  ;;  %v8821_v33 = vpop.permute.xlu0 %8820 }
0x1dec   :  { %v8868_v35 = vmul.f32 %v8821_v33, %v20671_v37 }
0x1ded   :  { %8902 = vrot.lane.b32.xlu1 %v8869_v40, %s16744_s30  ;;  %v16220_v40 = vpop.eup %16219 }
0x1dee   :  { %v8827_v21 = vpop.permute.xlu1 %8826  ;;  %8900 = vrot.lane.b32.xlu0 %v8868_v35, %s16744_s30  ;;  %v16222_v30 = vpop.eup %16221  ;;  %v8752_v36 = vmul.f32 0.5, %v16220_v40 }
0x1def   :  { %v8871_v27 = vmul.f32 %v8827_v21, %v20678_v58  ;;  %v8825_v17 = vpop.permute.xlu0 %8824  ;;  %v8755_v52 = vmul.f32 0.5, %v16222_v30 }
0x1df0   :  { %v8870_v7 = vmul.f32 %v8825_v17, %v20681_v26 }
0x1df1   :  { %8906 = vrot.lane.b32.xlu1 %v8871_v27, %s16744_s30  ;;  %v16224_v27 = vpop.eup %16223 }
0x1df2   :  { %v8831_v47 = vpop.permute.xlu1 %8830  ;;  %8904 = vrot.lane.b32.xlu0 %v8870_v7, %s16744_s30  ;;  %v8754_v49 = vmul.f32 0.5, %v16224_v27 }
0x1df3   :  { %v8873_v50 = vmul.f32 %v8831_v47, %v20688_v41  ;;  %v8829_v4 = vpop.permute.xlu0 %8828  ;;  %v20723_v47 = vadd.f32 0.5, %v8752_v36 }
0x1df4   :  { %v8872_v44 = vmul.f32 %v8829_v4, %v20691_v61  ;;  %v20731_v34 = vadd.f32 0.5, %v8754_v49 }
0x1df5   :  { %8910 = vrot.lane.b32.xlu1 %v8873_v50, %s16744_s30 }
0x1df6   :  { %v8835_v43 = vpop.permute.xlu1 %8834  ;;  %8908 = vrot.lane.b32.xlu0 %v8872_v44, %s16744_s30  ;;  %v20728_v44 = vadd.f32 0.5, %v8755_v52 }
0x1df7   :  { %v8875_v24 = vmul.f32 %v8835_v43, %v20696_v6  ;;  %v8833_v16 = vpop.permute.xlu0 %8832 }
0x1df8   :  { %v8874_v25 = vmul.f32 %v8833_v16, %v20699_v23 }
0x1df9   :  { %8914 = vrot.lane.b32.xlu1 %v8875_v24, %s16744_s30  ;;  %v8789_v24 = vmul.f32 %v20669_v31, %v20428_v28  ;;  %v8790_v28 = vmul.f32 %v20681_v26, %v20440_v38 }
0x1dfa   :  { %v8839_v9 = vpop.permute.xlu1 %8838  ;;  %8912 = vrot.lane.b32.xlu0 %v8874_v25, %s16744_s30  ;;  %v8788_v25 = vmul.f32 %v20671_v37, %v20430_v32 }
0x1dfb   :  { %v8877_v33 = vmul.f32 %v8839_v9, %v20704_v54  ;;  %v8837_v42 = vpop.permute.xlu0 %8836  ;;  %v8791_v9 = vmul.f32 %v20678_v58, %v20438_v46  ;;  %v8792_v46 = vmul.f32 %v20691_v61, %v20450_v18 }
0x1dfc   :  { %v8876_v35 = vmul.f32 %v8837_v42, %v20707_v22 }
0x1dfd   :  { %8918 = vrot.lane.b32.xlu1 %v8877_v33, %s16744_s30 }
0x1dfe   :  { %v8843_v21 = vpop.permute.xlu1 %8842  ;;  %8916 = vrot.lane.b32.xlu0 %v8876_v35, %s16744_s30  ;;  %v8793_v35 = vmul.f32 %v20688_v41, %v20448_v62  ;;  %v8794_v62 = vmul.f32 %v20699_v23, %v20460_v53  ;;  %v8796_v53 = vmul.f32 %v20707_v22, %v20472_v5  ;;  %v8798_v5 = vmul.f32 %v20715_v3, %v20484_v48 }
0x1dff   :  { %v8879_v17 = vmul.f32 %v8843_v21, %v20712_v29  ;;  %v8841_v63 = vpop.permute.xlu0 %8840  ;;  %v8795_v21 = vmul.f32 %v20696_v6, %v20458_v10  ;;  %v8797_v10 = vmul.f32 %v20704_v54, %v20470_v55  ;;  %v8799_v55 = vmul.f32 %v20712_v29, %v20482_v60 }
0x1e00   :  { %v8878_v7 = vmul.f32 %v8841_v63, %v20715_v3  ;;  %v8801_v60 = vmul.f32 %v20720_v45, %v20494_v59  ;;  %v8800_v48 = vmul.f32 %v20723_v47, %v20496_v2  ;;  %v8803_v59 = vmul.f32 %v20728_v44, %v20506_v15 }
0x1e01   :  { %8922 = vrot.lane.b32.xlu1 %v8879_v17, %s16744_s30  ;;  %v8802_v2 = vmul.f32 %v20731_v34, %v20508_v14 }
0x1e02   :  { %v8847_v19 = vpop.permute.xlu1 %8846  ;;  %8920 = vrot.lane.b32.xlu0 %v8878_v7, %s16744_s30 }
0x1e03   :  { %v8881_v57 = vmul.f32 %v8847_v19, %v20720_v45  ;;  %v8845_v50 = vpop.permute.xlu0 %8844 }
0x1e04   :  { %v8880_v4 = vmul.f32 %v8845_v50, %v20723_v47 }
0x1e05   :  { %8926 = vrot.lane.b32.xlu1 %v8881_v57, %s16744_s30 }
0x1e06   :  { %v8851_v12 = vpop.permute.xlu1 %8850  ;;  %8924 = vrot.lane.b32.xlu0 %v8880_v4, %s16744_s30 }
0x1e07   :  { %v8883_v0 = vmul.f32 %v8851_v12, %v20728_v44  ;;  %v8849_v43 = vpop.permute.xlu0 %8848 }
0x1e08   :  { %v8882_v39 = vmul.f32 %v8849_v43, %v20731_v34 }
0x1e09   :  { %8930 = vrot.lane.b32.xlu1 %v8883_v0, %s16744_s30 }
0x1e0a   :  { %8928 = vrot.lane.b32.xlu0 %v8882_v39, %s16744_s30 }
0x1e5f   :  { %v8903_v16 = vpop.permute.xlu1 %8902 }
0x1e60   :  { %v20741_v13 = vadd.f32 %v8903_v16, %v8789_v24  ;;  %v8901_v56 = vpop.permute.xlu0 %8900 }
0x1e61   :  { %v20743_v11 = vadd.f32 %v8901_v56, %v8788_v25 }
0x1e62   :  { %16225 = vtanh.f32 %v20741_v13 }
0x1e63   :  { %16227 = vtanh.f32 %v20743_v11  ;;  %v8907_v40 = vpop.permute.xlu1 %8906 }
0x1e64   :  { %v20751_v33 = vadd.f32 %v8907_v40, %v8791_v9  ;;  %v8905_v42 = vpop.permute.xlu0 %8904 }
0x1e65   :  { %v20753_v32 = vadd.f32 %v8905_v42, %v8790_v28 }
0x1e66   :  { %16229 = vtanh.f32 %v20751_v33 }
0x1e67   :  { %16231 = vtanh.f32 %v20753_v32  ;;  %v8911_v1 = vpop.permute.xlu1 %8910 }
0x1e68   :  { %v20761_v30 = vadd.f32 %v8911_v1, %v8793_v35  ;;  %v8909_v36 = vpop.permute.xlu0 %8908 }
0x1e69   :  { %v20763_v38 = vadd.f32 %v8909_v36, %v8792_v46 }
0x1e6a   :  { %16233 = vtanh.f32 %v20761_v30 }
0x1e6b   :  { %16235 = vtanh.f32 %v20763_v38  ;;  %v8915_v27 = vpop.permute.xlu1 %8914 }
0x1e6c   :  { %v16226_v17 = vpop.eup %16225  ;;  %v20771_v63 = vadd.f32 %v8915_v27, %v8795_v21  ;;  %v8913_v18 = vpop.permute.xlu0 %8912 }
0x1e6d   :  { %v16228_v7 = vpop.eup %16227  ;;  %v20773_v52 = vadd.f32 %v8913_v18, %v8794_v62  ;;  %8998 = vrot.lane.b32.xlu1 %v16226_v17, %s16744_s30 }
0x1e6e   :  { %16237 = vtanh.f32 %v20771_v63  ;;  %8996 = vrot.lane.b32.xlu0 %v16228_v7, %s16744_s30 }
0x1e6f   :  { %16239 = vtanh.f32 %v20773_v52  ;;  %v8919_v49 = vpop.permute.xlu1 %8918 }
0x1e70   :  { %v16230_v19 = vpop.eup %16229  ;;  %v20783_v57 = vadd.f32 %v8919_v49, %v8797_v10  ;;  %v8917_v50 = vpop.permute.xlu0 %8916 }
0x1e71   :  { %v16232_v4 = vpop.eup %16231  ;;  %v20785_v12 = vadd.f32 %v8917_v50, %v8796_v53  ;;  %9002 = vrot.lane.b32.xlu1 %v16230_v19, %s16744_s30 }
0x1e72   :  { %16241 = vtanh.f32 %v20783_v57  ;;  %9000 = vrot.lane.b32.xlu0 %v16232_v4, %s16744_s30 }
0x1e73   :  { %16243 = vtanh.f32 %v20785_v12  ;;  %v8923_v0 = vpop.permute.xlu1 %8922 }
0x1e74   :  { %v16234_v43 = vpop.eup %16233  ;;  %v20795_v39 = vadd.f32 %v8923_v0, %v8799_v55  ;;  %v8921_v24 = vpop.permute.xlu0 %8920 }
0x1e75   :  { %v16236_v16 = vpop.eup %16235  ;;  %v20797_v25 = vadd.f32 %v8921_v24, %v8798_v5  ;;  %9006 = vrot.lane.b32.xlu1 %v16234_v43, %s16744_s30 }
0x1e76   :  { %16245 = vtanh.f32 %v20795_v39  ;;  %9004 = vrot.lane.b32.xlu0 %v16236_v16, %s16744_s30 }
0x1e77   :  { %16247 = vtanh.f32 %v20797_v25  ;;  %v8927_v56 = vpop.permute.xlu1 %8926 }
0x1e78   :  { %v16238_v9 = vpop.eup %16237  ;;  %v20807_v40 = vadd.f32 %v8927_v56, %v8801_v60  ;;  %v8925_v28 = vpop.permute.xlu0 %8924 }
0x1e79   :  { %v16240_v42 = vpop.eup %16239  ;;  %v20809_v35 = vadd.f32 %v8925_v28, %v8800_v48  ;;  %9010 = vrot.lane.b32.xlu1 %v16238_v9, %s16744_s30 }
0x1e7a   :  { %16249 = vtanh.f32 %v20807_v40  ;;  %9008 = vrot.lane.b32.xlu0 %v16240_v42, %s16744_s30 }
0x1e7b   :  { %16251 = vtanh.f32 %v20809_v35  ;;  %v8931_v1 = vpop.permute.xlu1 %8930 }
0x1e7c   :  { %v16242_v46 = vpop.eup %16241  ;;  %v20819_v36 = vadd.f32 %v8931_v1, %v8803_v59  ;;  %v8929_v21 = vpop.permute.xlu0 %8928 }
0x1e7d   :  { %v16244_v27 = vpop.eup %16243  ;;  %v20821_v62 = vadd.f32 %v8929_v21, %v8802_v2  ;;  %9014 = vrot.lane.b32.xlu1 %v16242_v46, %s16744_s30 }
0x1e7e   :  { %16253 = vtanh.f32 %v20819_v36  ;;  %9012 = vrot.lane.b32.xlu0 %v16244_v27, %s16744_s30 }
0x1e7f   :  { %16255 = vtanh.f32 %v20821_v62 }
0x1e80   :  { %v16246_v15 = vpop.eup %16245 }
0x1e81   :  { %v16248_v17 = vpop.eup %16247  ;;  %9018 = vrot.lane.b32.xlu1 %v16246_v15, %s16744_s30 }
0x1e82   :  { %9016 = vrot.lane.b32.xlu0 %v16248_v17, %s16744_s30 }
0x1e84   :  { %v16250_v14 = vpop.eup %16249 }
0x1e85   :  { %v16252_v18 = vpop.eup %16251  ;;  %9022 = vrot.lane.b32.xlu1 %v16250_v14, %s16744_s30 }
0x1e86   :  { %9020 = vrot.lane.b32.xlu0 %v16252_v18, %s16744_s30 }
0x1e88   :  { %v16254_v7 = vpop.eup %16253 }
0x1e89   :  { %v16256_v10 = vpop.eup %16255  ;;  %9026 = vrot.lane.b32.xlu1 %v16254_v7, %s16744_s30 }
0x1e8a   :  { %9024 = vrot.lane.b32.xlu0 %v16256_v10, %s16744_s30 }
0x1edf   :  { %v8999_v49 = vpop.permute.xlu1 %8998 }
0x1ee0   :  { %v9045_v53 = vmul.f32 %v8999_v49, %v20669_v31  ;;  %v8997_v19 = vpop.permute.xlu0 %8996 }
0x1ee1   :  { %v9044_v50 = vmul.f32 %v8997_v19, %v20671_v37 }
0x1ee2   :  { %9094 = vrot.lane.b32.xlu1 %v9045_v53, %s16745_s0 }
0x1ee3   :  { %v9003_v4 = vpop.permute.xlu1 %9002  ;;  %9092 = vrot.lane.b32.xlu0 %v9044_v50, %s16745_s0 }
0x1ee4   :  { %v9047_v55 = vmul.f32 %v9003_v4, %v20678_v58  ;;  %v9001_v0 = vpop.permute.xlu0 %9000 }
0x1ee5   :  { %v9046_v5 = vmul.f32 %v9001_v0, %v20681_v26 }
0x1ee6   :  { %9098 = vrot.lane.b32.xlu1 %v9047_v55, %s16745_s0 }
0x1ee7   :  { %v9007_v43 = vpop.permute.xlu1 %9006  ;;  %9096 = vrot.lane.b32.xlu0 %v9046_v5, %s16745_s0 }
0x1ee8   :  { %v9049_v31 = vmul.f32 %v9007_v43, %v20688_v41  ;;  %v9005_v24 = vpop.permute.xlu0 %9004 }
0x1ee9   :  { %v9048_v37 = vmul.f32 %v9005_v24, %v20691_v61 }
0x1eea   :  { %9102 = vrot.lane.b32.xlu1 %v9049_v31, %s16745_s0 }
0x1eeb   :  { %v9011_v16 = vpop.permute.xlu1 %9010  ;;  %9100 = vrot.lane.b32.xlu0 %v9048_v37, %s16745_s0 }
0x1eec   :  { %v9051_v58 = vmul.f32 %v9011_v16, %v20696_v6  ;;  %v9009_v60 = vpop.permute.xlu0 %9008 }
0x1eed   :  { %v9050_v26 = vmul.f32 %v9009_v60, %v20699_v23 }
0x1eee   :  { %9106 = vrot.lane.b32.xlu1 %v9051_v58, %s16745_s0 }
0x1eef   :  { %v9015_v56 = vpop.permute.xlu1 %9014  ;;  %9104 = vrot.lane.b32.xlu0 %v9050_v26, %s16745_s0 }
0x1ef0   :  { %v9053_v41 = vmul.f32 %v9015_v56, %v20704_v54  ;;  %v9013_v48 = vpop.permute.xlu0 %9012 }
0x1ef1   :  { %v9052_v61 = vmul.f32 %v9013_v48, %v20707_v22 }
0x1ef2   :  { %9110 = vrot.lane.b32.xlu1 %v9053_v41, %s16745_s0 }
0x1ef3   :  { %v9019_v9 = vpop.permute.xlu1 %9018  ;;  %9108 = vrot.lane.b32.xlu0 %v9052_v61, %s16745_s0 }
0x1ef4   :  { %v9055_v6 = vmul.f32 %v9019_v9, %v20712_v29  ;;  %v9017_v28 = vpop.permute.xlu0 %9016 }
0x1ef5   :  { %v9054_v23 = vmul.f32 %v9017_v28, %v20715_v3 }
0x1ef6   :  { %9114 = vrot.lane.b32.xlu1 %v9055_v6, %s16745_s0 }
0x1ef7   :  { %v9023_v42 = vpop.permute.xlu1 %9022  ;;  %9112 = vrot.lane.b32.xlu0 %v9054_v23, %s16745_s0 }
0x1ef8   :  { %v9057_v54 = vmul.f32 %v9023_v42, %v20720_v45  ;;  %v9021_v59 = vpop.permute.xlu0 %9020 }
0x1ef9   :  { %v9056_v22 = vmul.f32 %v9021_v59, %v20723_v47 }
0x1efa   :  { %9118 = vrot.lane.b32.xlu1 %v9057_v54, %s16745_s0 }
0x1efb   :  { %v9027_v1 = vpop.permute.xlu1 %9026  ;;  %9116 = vrot.lane.b32.xlu0 %v9056_v22, %s16745_s0 }
0x1efc   :  { %v9059_v29 = vmul.f32 %v9027_v1, %v20728_v44  ;;  %v9025_v2 = vpop.permute.xlu0 %9024 }
0x1efd   :  { %v9058_v3 = vmul.f32 %v9025_v2, %v20731_v34 }
0x1efe   :  { %9122 = vrot.lane.b32.xlu1 %v9059_v29, %s16745_s0 }
0x1eff   :  { %9120 = vrot.lane.b32.xlu0 %v9058_v3, %s16745_s0 }
0x1f54   :  { %v9095_v46 = vpop.permute.xlu1 %9094 }
0x1f55   :  { %v9093_v21 = vpop.permute.xlu0 %9092 }
0x1f56   :  { %14300 = vmatprep.mubr.msk.f32.mxu1 %vm1267_vm1, %v9093_v21 }
0x1f57   :  { %14301 = vmatmul.mubr.msk.f32.vlgmr.msra.gmra.mrb[56].mxu1 %vm1267_vm1, %v9095_v46 }
0x1f58   :  { %v9099_v45 = vpop.permute.xlu1 %9098  ;;  %14647 = vmatpush3.bf16.msra.mxu1 %v19884_v51 }
0x1f59   :  { %v9097_v47 = vpop.permute.xlu0 %9096  ;;  %14649 = vmatprep.subr.bf16.mxu1 %v19925_v8 }
0x1f5a   :  { %14303 = vmatprep.mubr.msk.f32.mxu1 %vm1267_vm1, %v9097_v47 }
0x1f5b   :  { %14304 = vmatmul.mubr.msk.f32.gmra.mrb[58].mxu1 %vm1267_vm1, %v9099_v45 }
0x1f5c   :  { %v9103_v44 = vpop.permute.xlu1 %9102  ;;  %14651 = vmatpush3.bf16.msra.mxu1 %v19925_v8 }
0x1f5d   :  { %v9101_v34 = vpop.permute.xlu0 %9100  ;;  %14653 = vmatprep.subr.bf16.mxu1 %v19884_v51 }
0x1f5e   :  { %14306 = vmatprep.mubr.msk.f32.mxu1 %vm1267_vm1, %v9101_v34 }
0x1f5f   :  { %14307 = vmatmul.mubr.msk.f32.gmra.mrb[60].mxu1 %vm1267_vm1, %v9103_v44 }
0x1f60   :  { %v9107_v27 = vpop.permute.xlu1 %9106 }
0x1f61   :  { %v9105_v15 = vpop.permute.xlu0 %9104 }
0x1f62   :  { %14309 = vmatprep.mubr.msk.f32.mxu1 %vm1267_vm1, %v9105_v15 }
0x1f63   :  { %14310 = vmatmul.mubr.msk.f32.gmra.mrb[62].mxu1 %vm1267_vm1, %v9107_v27 }
0x1f64   :  { %v9111_v17 = vpop.permute.xlu1 %9110 }
0x1f65   :  { %v9109_v14 = vpop.permute.xlu0 %9108 }
0x1f66   :  { %14312 = vmatprep.mubr.msk.f32.mxu1 %vm1267_vm1, %v9109_v14 }
0x1f67   :  { %14313 = vmatmul.mubr.msk.f32.gmra.mrb[64].mxu1 %vm1267_vm1, %v9111_v17 }
0x1f68   :  { %v9115_v18 = vpop.permute.xlu1 %9114 }
0x1f69   :  { %v9113_v7 = vpop.permute.xlu0 %9112 }
0x1f6a   :  { %14315 = vmatprep.mubr.msk.f32.mxu1 %vm1267_vm1, %v9113_v7 }
0x1f6b   :  { %14316 = vmatmul.mubr.msk.f32.gmra.mrb[66].mxu1 %vm1267_vm1, %v9115_v18 }
0x1f6c   :  { %v9119_v10 = vpop.permute.xlu1 %9118 }
0x1f6d   :  { %v9117_v49 = vpop.permute.xlu0 %9116 }
0x1f6e   :  { %14318 = vmatprep.mubr.msk.f32.mxu1 %vm1267_vm1, %v9117_v49 }
0x1f6f   :  { %14319 = vmatmul.mubr.msk.f32.gmra.mrb[68].mxu1 %vm1267_vm1, %v9119_v10 }
0x1f70   :  { %v9123_v19 = vpop.permute.xlu1 %9122 }
0x1f71   :  { %v9121_v53 = vpop.permute.xlu0 %9120 }
0x1f72   :  { %14321 = vmatprep.mubr.msk.f32.mxu1 %vm1267_vm1, %v9121_v53 }
0x1f73   :  { %14322 = vmatmul.mubr.msk.f32.gmra.mrb[70].mxu1 %vm1267_vm1, %v9123_v19 }
0x202a   :  { %v14302_v50 = vpop.f32.mrb[56].mxu1 }
0x202b   :  { %v20886_v4 = vadd.f32 %v20575_v20, %v14302_v50  ;;  %v9222_v55 = vpop.f32.mrb[57].mxu1 }
0x202c   :  { %v20889_v0 = vadd.f32 %v20575_v20, %v9222_v55 }
0x202d   :  { %16257 = vtanh.f32 %v20886_v4 }
0x202e   :  { %16259 = vtanh.f32 %v20889_v0  ;;  %v14305_v5 = vpop.f32.mrb[58].mxu1 }
0x202f   :  { %v20894_v43 = vadd.f32 %v20575_v20, %v14305_v5  ;;  %v9232_v31 = vpop.f32.mrb[59].mxu1  ;;  %v9318_v5 = vmul.f32 0.5, %v20886_v4 }
0x2030   :  { %v20897_v24 = vadd.f32 %v20575_v20, %v9232_v31  ;;  %v9317_v31 = vmul.f32 0.5, %v20889_v0 }
0x2031   :  { %16261 = vtanh.f32 %v20894_v43 }
0x2032   :  { %16263 = vtanh.f32 %v20897_v24  ;;  %v14308_v37 = vpop.f32.mrb[60].mxu1 }
0x2033   :  { %v20902_v16 = vadd.f32 %v20575_v20, %v14308_v37  ;;  %v9242_v58 = vpop.f32.mrb[61].mxu1  ;;  %v9320_v37 = vmul.f32 0.5, %v20894_v43 }
0x2034   :  { %v20905_v60 = vadd.f32 %v20575_v20, %v9242_v58  ;;  %v9319_v58 = vmul.f32 0.5, %v20897_v24 }
0x2035   :  { %16265 = vtanh.f32 %v20902_v16 }
0x2036   :  { %16267 = vtanh.f32 %v20905_v60  ;;  %v14311_v26 = vpop.f32.mrb[62].mxu1 }
0x2037   :  { %v16258_v56 = vpop.eup %16257  ;;  %v20910_v41 = vadd.f32 %v20575_v20, %v14311_v26  ;;  %v9252_v48 = vpop.f32.mrb[63].mxu1  ;;  %v9322_v26 = vmul.f32 0.5, %v20902_v16 }
0x2038   :  { %v16260_v61 = vpop.eup %16259  ;;  %v20913_v9 = vadd.f32 %v20575_v20, %v9252_v48  ;;  %9431 = vrot.lane.b32.xlu1 %v16258_v56, %s16744_s30  ;;  %v9321_v56 = vmul.f32 0.5, %v20905_v60 }
0x2039   :  { %16269 = vtanh.f32 %v20910_v41  ;;  %9429 = vrot.lane.b32.xlu0 %v16260_v61, %s16744_s30  ;;  %v9324_v48 = vmul.f32 0.5, %v20910_v41 }
0x203a   :  { %16271 = vtanh.f32 %v20913_v9  ;;  %v14314_v6 = vpop.f32.mrb[64].mxu1  ;;  %v9323_v4 = vmul.f32 0.5, %v20913_v9 }
0x203b   :  { %v16262_v28 = vpop.eup %16261  ;;  %v20920_v23 = vadd.f32 %v20575_v20, %v14314_v6  ;;  %v9262_v42 = vpop.f32.mrb[65].mxu1 }
0x203c   :  { %v16264_v54 = vpop.eup %16263  ;;  %v20923_v59 = vadd.f32 %v20575_v20, %v9262_v42  ;;  %9435 = vrot.lane.b32.xlu1 %v16262_v28, %s16744_s30 }
0x203d   :  { %16273 = vtanh.f32 %v20920_v23  ;;  %9433 = vrot.lane.b32.xlu0 %v16264_v54, %s16744_s30  ;;  %v9326_v43 = vmul.f32 0.5, %v20920_v23 }
0x203e   :  { %16275 = vtanh.f32 %v20923_v59  ;;  %v14317_v22 = vpop.f32.mrb[66].mxu1  ;;  %v9325_v24 = vmul.f32 0.5, %v20923_v59 }
0x203f   :  { %v16266_v1 = vpop.eup %16265  ;;  %v20930_v29 = vadd.f32 %v20575_v20, %v14317_v22  ;;  %v9272_v2 = vpop.f32.mrb[67].mxu1 }
0x2040   :  { %v16268_v3 = vpop.eup %16267  ;;  %v20933_v46 = vadd.f32 %v20575_v20, %v9272_v2  ;;  %9439 = vrot.lane.b32.xlu1 %v16266_v1, %s16744_s30 }
0x2041   :  { %16277 = vtanh.f32 %v20930_v29  ;;  %9437 = vrot.lane.b32.xlu0 %v16268_v3, %s16744_s30  ;;  %v9328_v60 = vmul.f32 0.5, %v20930_v29 }
0x2042   :  { %16279 = vtanh.f32 %v20933_v46  ;;  %v14320_v21 = vpop.f32.mrb[68].mxu1  ;;  %v9327_v41 = vmul.f32 0.5, %v20933_v46 }
0x2043   :  { %v16270_v45 = vpop.eup %16269  ;;  %v20940_v47 = vadd.f32 %v20575_v20, %v14320_v21  ;;  %v9282_v44 = vpop.f32.mrb[69].mxu1 }
0x2044   :  { %v16272_v34 = vpop.eup %16271  ;;  %v20943_v27 = vadd.f32 %v20575_v20, %v9282_v44  ;;  %9443 = vrot.lane.b32.xlu1 %v16270_v45, %s16744_s30 }
0x2045   :  { %16281 = vtanh.f32 %v20940_v47  ;;  %9441 = vrot.lane.b32.xlu0 %v16272_v34, %s16744_s30  ;;  %v9330_v45 = vmul.f32 0.5, %v20940_v47 }
0x2046   :  { %16283 = vtanh.f32 %v20943_v27  ;;  %v14323_v15 = vpop.f32.mrb[70].mxu1  ;;  %v9329_v46 = vmul.f32 0.5, %v20943_v27 }
0x2047   :  { %v16274_v17 = vpop.eup %16273  ;;  %v20950_v14 = vadd.f32 %v20575_v20, %v14323_v15  ;;  %v9292_v18 = vpop.f32.mrb[71].mxu1 }
0x2048   :  { %v16276_v7 = vpop.eup %16275  ;;  %v20953_v10 = vadd.f32 %v20575_v20, %v9292_v18  ;;  %9447 = vrot.lane.b32.xlu1 %v16274_v17, %s16744_s30 }
0x2049   :  { %16285 = vtanh.f32 %v20950_v14  ;;  %9445 = vrot.lane.b32.xlu0 %v16276_v7, %s16744_s30 }
0x204a   :  { %16287 = vtanh.f32 %v20953_v10 }
0x204b   :  { %v16278_v49 = vpop.eup %16277  ;;  %16289 = vtanh.f32 %v9318_v5 }
0x204c   :  { %v16280_v53 = vpop.eup %16279  ;;  %9451 = vrot.lane.b32.xlu1 %v16278_v49, %s16744_s30  ;;  %16291 = vtanh.f32 %v9317_v31 }
0x204d   :  { %9449 = vrot.lane.b32.xlu0 %v16280_v53, %s16744_s30  ;;  %16293 = vtanh.f32 %v9320_v37 }
0x204e   :  { %16295 = vtanh.f32 %v9319_v58 }
0x204f   :  { %v16282_v19 = vpop.eup %16281  ;;  %16297 = vtanh.f32 %v9322_v26 }
0x2050   :  { %v16284_v50 = vpop.eup %16283  ;;  %9455 = vrot.lane.b32.xlu1 %v16282_v19, %s16744_s30  ;;  %16299 = vtanh.f32 %v9321_v56  ;;  %v9332_v19 = vmul.f32 0.5, %v20950_v14 }
0x2051   :  { %9453 = vrot.lane.b32.xlu0 %v16284_v50, %s16744_s30  ;;  %16301 = vtanh.f32 %v9324_v48 }
0x2052   :  { %16303 = vtanh.f32 %v9323_v4 }
0x2053   :  { %v16286_v20 = vpop.eup %16285  ;;  %16305 = vtanh.f32 %v9326_v43 }
0x2054   :  { %v16288_v55 = vpop.eup %16287  ;;  %9459 = vrot.lane.b32.xlu1 %v16286_v20, %s16744_s30  ;;  %16307 = vtanh.f32 %v9325_v24  ;;  %v9331_v20 = vmul.f32 0.5, %v20953_v10 }
0x2055   :  { %9457 = vrot.lane.b32.xlu0 %v16288_v55, %s16744_s30  ;;  %v16290_v61 = vpop.eup %16289  ;;  %16309 = vtanh.f32 %v9328_v60 }
0x2056   :  { %v16292_v0 = vpop.eup %16291  ;;  %v9350_v6 = vmul.f32 0.5, %v16290_v61  ;;  %16311 = vtanh.f32 %v9327_v41 }
0x2057   :  { %v16294_v28 = vpop.eup %16293  ;;  %v9349_v16 = vmul.f32 0.5, %v16292_v0  ;;  %16313 = vtanh.f32 %v9330_v45 }
0x2058   :  { %v16296_v42 = vpop.eup %16295  ;;  %v9352_v54 = vmul.f32 0.5, %v16294_v28  ;;  %v20977_v9 = vadd.f32 0.5, %v9350_v6  ;;  %16315 = vtanh.f32 %v9329_v46 }
0x2059   :  { %v16298_v22 = vpop.eup %16297  ;;  %v9351_v1 = vmul.f32 0.5, %v16296_v42  ;;  %v20979_v23 = vadd.f32 0.5, %v9349_v16  ;;  %16317 = vtanh.f32 %v9332_v19 }
0x205a   :  { %v16300_v3 = vpop.eup %16299  ;;  %v9354_v44 = vmul.f32 0.5, %v16298_v22  ;;  %v20986_v34 = vadd.f32 0.5, %v9352_v54  ;;  %16319 = vtanh.f32 %v9331_v20 }
0x205b   :  { %v16302_v15 = vpop.eup %16301  ;;  %v9353_v17 = vmul.f32 0.5, %v16300_v3  ;;  %v20989_v7 = vadd.f32 0.5, %v9351_v1 }
0x205c   :  { %v16304_v49 = vpop.eup %16303  ;;  %v9356_v50 = vmul.f32 0.5, %v16302_v15  ;;  %v20996_v55 = vadd.f32 0.5, %v9354_v44 }
0x205d   :  { %v16306_v5 = vpop.eup %16305  ;;  %v9355_v31 = vmul.f32 0.5, %v16304_v49  ;;  %v20999_v58 = vadd.f32 0.5, %v9353_v17 }
0x205e   :  { %v16308_v26 = vpop.eup %16307  ;;  %v9358_v4 = vmul.f32 0.5, %v16306_v5  ;;  %v21004_v10 = vadd.f32 0.5, %v9356_v50 }
0x205f   :  { %v16310_v61 = vpop.eup %16309  ;;  %v9357_v0 = vmul.f32 0.5, %v16308_v26  ;;  %v21007_v6 = vadd.f32 0.5, %v9355_v31 }
0x2060   :  { %v16312_v24 = vpop.eup %16311  ;;  %v9360_v60 = vmul.f32 0.5, %v16310_v61  ;;  %v21012_v54 = vadd.f32 0.5, %v9358_v4 }
0x2061   :  { %v16314_v41 = vpop.eup %16313  ;;  %v9359_v22 = vmul.f32 0.5, %v16312_v24  ;;  %v9398_v24 = vmul.f32 %v20977_v9, %v20741_v13  ;;  %v9399_v13 = vmul.f32 %v20989_v7, %v20753_v32 }
0x2062   :  { %v16316_v3 = vpop.eup %16315  ;;  %v21020_v44 = vadd.f32 0.5, %v9360_v60 }
0x2063   :  { %v16318_v46 = vpop.eup %16317  ;;  %v9361_v15 = vmul.f32 0.5, %v16316_v3 }
0x2064   :  { %v16320_v49 = vpop.eup %16319 }
0x2065   :  { %v9363_v20 = vmul.f32 0.5, %v16320_v49  ;;  %v21031_v31 = vadd.f32 0.5, %v9361_v15  ;;  %v9404_v15 = vmul.f32 %v21004_v10, %v20771_v63  ;;  %v9406_v63 = vmul.f32 %v21012_v54, %v20783_v57 }
0x2066   :  { %v9408_v57 = vmul.f32 %v21020_v44, %v20795_v39 }
0x2067   :  { %v21039_v4 = vadd.f32 0.5, %v9363_v20 }
0x20aa   :  { %v9432_v2 = vpop.permute.xlu1 %9431 }
0x20ab   :  { %v9478_v59 = vmul.f32 %v9432_v2, %v20977_v9  ;;  %v9430_v21 = vpop.permute.xlu0 %9429  ;;  %v21015_v2 = vadd.f32 0.5, %v9357_v0 }
0x20ac   :  { %v9477_v29 = vmul.f32 %v9430_v21, %v20979_v23 }
0x20ad   :  { %9511 = vrot.lane.b32.xlu1 %v9478_v59, %s16744_s30 }
0x20ae   :  { %v9436_v18 = vpop.permute.xlu1 %9435  ;;  %9509 = vrot.lane.b32.xlu0 %v9477_v29, %s16744_s30  ;;  %v9362_v29 = vmul.f32 0.5, %v16314_v41 }
0x20af   :  { %v9480_v47 = vmul.f32 %v9436_v18, %v20986_v34  ;;  %v9434_v53 = vpop.permute.xlu0 %9433  ;;  %v21023_v18 = vadd.f32 0.5, %v9359_v22  ;;  %v9400_v22 = vmul.f32 %v20986_v34, %v20751_v33  ;;  %v9401_v33 = vmul.f32 %v20999_v58, %v20763_v38 }
0x20b0   :  { %v9479_v27 = vmul.f32 %v9434_v53, %v20989_v7  ;;  %v21028_v50 = vadd.f32 0.5, %v9362_v29 }
0x20b1   :  { %9515 = vrot.lane.b32.xlu1 %v9480_v47, %s16744_s30 }
0x20b2   :  { %v9440_v37 = vpop.permute.xlu1 %9439  ;;  %9513 = vrot.lane.b32.xlu0 %v9479_v27, %s16744_s30  ;;  %v9364_v27 = vmul.f32 0.5, %v16318_v46  ;;  %v9410_v39 = vmul.f32 %v21028_v50, %v20807_v40 }
0x20b3   :  { %v9482_v14 = vmul.f32 %v9440_v37, %v20996_v55  ;;  %v9438_v56 = vpop.permute.xlu0 %9437 }
0x20b4   :  { %v9481_v48 = vmul.f32 %v9438_v56, %v20999_v58  ;;  %v21036_v56 = vadd.f32 0.5, %v9364_v27 }
0x20b5   :  { %9519 = vrot.lane.b32.xlu1 %v9482_v14, %s16744_s30 }
0x20b6   :  { %v9444_v43 = vpop.permute.xlu1 %9443  ;;  %9517 = vrot.lane.b32.xlu0 %v9481_v48, %s16744_s30  ;;  %v9412_v40 = vmul.f32 %v21036_v56, %v20819_v36 }
0x20b7   :  { %v9484_v28 = vmul.f32 %v9444_v43, %v21004_v10  ;;  %v9442_v16 = vpop.permute.xlu0 %9441 }
0x20b8   :  { %v9483_v42 = vmul.f32 %v9442_v16, %v21007_v6  ;;  %v9397_v16 = vmul.f32 %v20979_v23, %v20743_v11 }
0x20b9   :  { %9523 = vrot.lane.b32.xlu1 %v9484_v28, %s16744_s30 }
0x20ba   :  { %v9448_v1 = vpop.permute.xlu1 %9447  ;;  %9521 = vrot.lane.b32.xlu0 %v9483_v42, %s16744_s30 }
0x20bb   :  { %v9486_v59 = vmul.f32 %v9448_v1, %v21012_v54  ;;  %v9446_v21 = vpop.permute.xlu0 %9445 }
0x20bc   :  { %v9485_v45 = vmul.f32 %v9446_v21, %v21015_v2  ;;  %v9402_v21 = vmul.f32 %v20996_v55, %v20761_v30  ;;  %v9403_v30 = vmul.f32 %v21007_v6, %v20773_v52  ;;  %v9405_v52 = vmul.f32 %v21015_v2, %v20785_v12 }
0x20bd   :  { %9527 = vrot.lane.b32.xlu1 %v9486_v59, %s16744_s30  ;;  %v9407_v12 = vmul.f32 %v21023_v18, %v20797_v25  ;;  %v9409_v25 = vmul.f32 %v21031_v31, %v20809_v35  ;;  %v9411_v35 = vmul.f32 %v21039_v4, %v20821_v62 }
0x20be   :  { %v9452_v17 = vpop.permute.xlu1 %9451  ;;  %9525 = vrot.lane.b32.xlu0 %v9485_v45, %s16744_s30 }
0x20bf   :  { %v9488_v47 = vmul.f32 %v9452_v17, %v21020_v44  ;;  %v9450_v53 = vpop.permute.xlu0 %9449 }
0x20c0   :  { %v9487_v19 = vmul.f32 %v9450_v53, %v21023_v18 }
0x20c1   :  { %9531 = vrot.lane.b32.xlu1 %v9488_v47, %s16744_s30 }
0x20c2   :  { %v9456_v5 = vpop.permute.xlu1 %9455  ;;  %9529 = vrot.lane.b32.xlu0 %v9487_v19, %s16744_s30 }
0x20c3   :  { %v9490_v37 = vmul.f32 %v9456_v5, %v21028_v50  ;;  %v9454_v26 = vpop.permute.xlu0 %9453 }
0x20c4   :  { %v9489_v14 = vmul.f32 %v9454_v26, %v21031_v31 }
0x20c5   :  { %9535 = vrot.lane.b32.xlu1 %v9490_v37, %s16744_s30 }
0x20c6   :  { %v9460_v48 = vpop.permute.xlu1 %9459  ;;  %9533 = vrot.lane.b32.xlu0 %v9489_v14, %s16744_s30 }
0x20c7   :  { %v9492_v61 = vmul.f32 %v9460_v48, %v21036_v56  ;;  %v9458_v0 = vpop.permute.xlu0 %9457 }
0x20c8   :  { %v9491_v43 = vmul.f32 %v9458_v0, %v21039_v4 }
0x20c9   :  { %9539 = vrot.lane.b32.xlu1 %v9492_v61, %s16744_s30 }
0x20ca   :  { %9537 = vrot.lane.b32.xlu0 %v9491_v43, %s16744_s30 }
0x211f   :  { %v9512_v28 = vpop.permute.xlu1 %9511 }
0x2120   :  { %v21049_v42 = vadd.f32 %v9512_v28, %v9398_v24  ;;  %v9510_v60 = vpop.permute.xlu0 %9509 }
0x2121   :  { %v21051_v41 = vadd.f32 %v9510_v60, %v9397_v16 }
0x2122   :  { %16321 = vtanh.f32 %v21049_v42 }
0x2123   :  { %16323 = vtanh.f32 %v21051_v41  ;;  %v9516_v1 = vpop.permute.xlu1 %9515 }
0x2124   :  { %v21059_v3 = vadd.f32 %v9516_v1, %v9400_v22  ;;  %v9514_v59 = vpop.permute.xlu0 %9513 }
0x2125   :  { %v21061_v11 = vadd.f32 %v9514_v59, %v9399_v13 }
0x2126   :  { %16325 = vtanh.f32 %v21059_v3 }
0x2127   :  { %16327 = vtanh.f32 %v21061_v11  ;;  %v9520_v45 = vpop.permute.xlu1 %9519 }
0x2128   :  { %v21069_v29 = vadd.f32 %v9520_v45, %v9402_v21  ;;  %v9518_v46 = vpop.permute.xlu0 %9517 }
0x2129   :  { %v21071_v32 = vadd.f32 %v9518_v46, %v9401_v33 }
0x212a   :  { %16329 = vtanh.f32 %v21069_v29 }
0x212b   :  { %16331 = vtanh.f32 %v21071_v32  ;;  %v9524_v17 = vpop.permute.xlu1 %9523 }
0x212c   :  { %v16322_v49 = vpop.eup %16321  ;;  %v21079_v47 = vadd.f32 %v9524_v17, %v9404_v15  ;;  %v9522_v38 = vpop.permute.xlu0 %9521 }
0x212d   :  { %v16324_v53 = vpop.eup %16323  ;;  %v21081_v19 = vadd.f32 %v9522_v38, %v9403_v30  ;;  %9607 = vrot.lane.b32.xlu1 %v16322_v49, %s16744_s30 }
0x212e   :  { %16333 = vtanh.f32 %v21079_v47  ;;  %9605 = vrot.lane.b32.xlu0 %v16324_v53, %s16744_s30 }
0x212f   :  { %16335 = vtanh.f32 %v21081_v19  ;;  %v9528_v27 = vpop.permute.xlu1 %9527 }
0x2130   :  { %v16326_v20 = vpop.eup %16325  ;;  %v21091_v5 = vadd.f32 %v9528_v27, %v9406_v63  ;;  %v9526_v37 = vpop.permute.xlu0 %9525 }
0x2131   :  { %v16328_v26 = vpop.eup %16327  ;;  %v21093_v14 = vadd.f32 %v9526_v37, %v9405_v52  ;;  %9611 = vrot.lane.b32.xlu1 %v16326_v20, %s16744_s30 }
0x2132   :  { %16337 = vtanh.f32 %v21091_v5  ;;  %9609 = vrot.lane.b32.xlu0 %v16328_v26, %s16744_s30 }
0x2133   :  { %16339 = vtanh.f32 %v21093_v14  ;;  %v9532_v48 = vpop.permute.xlu1 %9531 }
0x2134   :  { %v16330_v61 = vpop.eup %16329  ;;  %v21103_v0 = vadd.f32 %v9532_v48, %v9408_v57  ;;  %v9530_v43 = vpop.permute.xlu0 %9529 }
0x2135   :  { %v16332_v24 = vpop.eup %16331  ;;  %v21105_v28 = vadd.f32 %v9530_v43, %v9407_v12  ;;  %9615 = vrot.lane.b32.xlu1 %v16330_v61, %s16744_s30 }
0x2136   :  { %16341 = vtanh.f32 %v21103_v0  ;;  %9613 = vrot.lane.b32.xlu0 %v16332_v24, %s16744_s30 }
0x2137   :  { %16343 = vtanh.f32 %v21105_v28  ;;  %v9536_v16 = vpop.permute.xlu1 %9535 }
0x2138   :  { %v16334_v60 = vpop.eup %16333  ;;  %v21115_v22 = vadd.f32 %v9536_v16, %v9410_v39  ;;  %v9534_v1 = vpop.permute.xlu0 %9533 }
0x2139   :  { %v16336_v13 = vpop.eup %16335  ;;  %v21117_v59 = vadd.f32 %v9534_v1, %v9409_v25  ;;  %9619 = vrot.lane.b32.xlu1 %v16334_v60, %s16744_s30 }
0x213a   :  { %16345 = vtanh.f32 %v21115_v22  ;;  %9617 = vrot.lane.b32.xlu0 %v16336_v13, %s16744_s30 }
0x213b   :  { %16347 = vtanh.f32 %v21117_v59  ;;  %v9540_v21 = vpop.permute.xlu1 %9539 }
0x213c   :  { %v16338_v45 = vpop.eup %16337  ;;  %v21127_v33 = vadd.f32 %v9540_v21, %v9412_v40  ;;  %v9538_v46 = vpop.permute.xlu0 %9537 }
0x213d   :  { %v16340_v15 = vpop.eup %16339  ;;  %v21129_v17 = vadd.f32 %v9538_v46, %v9411_v35  ;;  %9623 = vrot.lane.b32.xlu1 %v16338_v45, %s16744_s30 }
0x213e   :  { %16349 = vtanh.f32 %v21127_v33  ;;  %9621 = vrot.lane.b32.xlu0 %v16340_v15, %s16744_s30 }
0x213f   :  { %16351 = vtanh.f32 %v21129_v17 }
0x2140   :  { %v16342_v36 = vpop.eup %16341 }
0x2141   :  { %v16344_v30 = vpop.eup %16343  ;;  %9627 = vrot.lane.b32.xlu1 %v16342_v36, %s16744_s30 }
0x2142   :  { %9625 = vrot.lane.b32.xlu0 %v16344_v30, %s16744_s30 }
0x2144   :  { %v16346_v62 = vpop.eup %16345 }
0x2145   :  { %v16348_v49 = vpop.eup %16347  ;;  %9631 = vrot.lane.b32.xlu1 %v16346_v62, %s16744_s30 }
0x2146   :  { %9629 = vrot.lane.b32.xlu0 %v16348_v49, %s16744_s30 }
0x2148   :  { %v16350_v38 = vpop.eup %16349 }
0x2149   :  { %v16352_v53 = vpop.eup %16351  ;;  %9635 = vrot.lane.b32.xlu1 %v16350_v38, %s16744_s30 }
0x214a   :  { %9633 = vrot.lane.b32.xlu0 %v16352_v53, %s16744_s30 }
0x219f   :  { %v9608_v63 = vpop.permute.xlu1 %9607 }
0x21a0   :  { %v9654_v27 = vmul.f32 %v9608_v63, %v20977_v9  ;;  %v9606_v52 = vpop.permute.xlu0 %9605 }
0x21a1   :  { %v9653_v20 = vmul.f32 %v9606_v52, %v20979_v23 }
0x21a2   :  { %9703 = vrot.lane.b32.xlu1 %v9654_v27, %s16745_s0 }
0x21a3   :  { %v9612_v37 = vpop.permute.xlu1 %9611  ;;  %9701 = vrot.lane.b32.xlu0 %v9653_v20, %s16745_s0  ;;  %v21196_v20 = vld [vmem:[%s22463_s6] ss:$0 sm:$0xff] }
0x21a4   :  { %v9656_v26 = vmul.f32 %v9612_v37, %v20986_v34  ;;  %v9610_v57 = vpop.permute.xlu0 %9609 }
0x21a5   :  { %v9655_v48 = vmul.f32 %v9610_v57, %v20989_v7 }
0x21a6   :  { %9707 = vrot.lane.b32.xlu1 %v9656_v26, %s16745_s0 }
0x21a7   :  { %v9616_v12 = vpop.permute.xlu1 %9615  ;;  %9705 = vrot.lane.b32.xlu0 %v9655_v48, %s16745_s0 }
0x21a8   :  { %v9658_v9 = vmul.f32 %v9616_v12, %v20996_v55  ;;  %v9614_v61 = vpop.permute.xlu0 %9613 }
0x21a9   :  { %v9657_v23 = vmul.f32 %v9614_v61, %v20999_v58 }
0x21aa   :  { %9711 = vrot.lane.b32.xlu1 %v9658_v9, %s16745_s0 }
0x21ab   :  { %v9620_v43 = vpop.permute.xlu1 %9619  ;;  %9709 = vrot.lane.b32.xlu0 %v9657_v23, %s16745_s0 }
0x21ac   :  { %v9660_v34 = vmul.f32 %v9620_v43, %v21004_v10  ;;  %v9618_v24 = vpop.permute.xlu0 %9617 }
0x21ad   :  { %v9659_v7 = vmul.f32 %v9618_v24, %v21007_v6 }
0x21ae   :  { %9715 = vrot.lane.b32.xlu1 %v9660_v34, %s16745_s0 }
0x21af   :  { %v9624_v39 = vpop.permute.xlu1 %9623  ;;  %9713 = vrot.lane.b32.xlu0 %v9659_v7, %s16745_s0 }
0x21b0   :  { %v9662_v55 = vmul.f32 %v9624_v39, %v21012_v54  ;;  %v9622_v16 = vpop.permute.xlu0 %9621 }
0x21b1   :  { %v9661_v58 = vmul.f32 %v9622_v16, %v21015_v2 }
0x21b2   :  { %9719 = vrot.lane.b32.xlu1 %v9662_v55, %s16745_s0 }
0x21b3   :  { %v9628_v25 = vpop.permute.xlu1 %9627  ;;  %9717 = vrot.lane.b32.xlu0 %v9661_v58, %s16745_s0 }
0x21b4   :  { %v9664_v10 = vmul.f32 %v9628_v25, %v21020_v44  ;;  %v9626_v60 = vpop.permute.xlu0 %9625 }
0x21b5   :  { %v9663_v6 = vmul.f32 %v9626_v60, %v21023_v18 }
0x21b6   :  { %9723 = vrot.lane.b32.xlu1 %v9664_v10, %s16745_s0 }
0x21b7   :  { %v9632_v1 = vpop.permute.xlu1 %9631  ;;  %9721 = vrot.lane.b32.xlu0 %v9663_v6, %s16745_s0 }
0x21b8   :  { %v9666_v54 = vmul.f32 %v9632_v1, %v21028_v50  ;;  %v9630_v13 = vpop.permute.xlu0 %9629 }
0x21b9   :  { %v9665_v2 = vmul.f32 %v9630_v13, %v21031_v31 }
0x21ba   :  { %9727 = vrot.lane.b32.xlu1 %v9666_v54, %s16745_s0 }
0x21bb   :  { %v9636_v40 = vpop.permute.xlu1 %9635  ;;  %9725 = vrot.lane.b32.xlu0 %v9665_v2, %s16745_s0 }
0x21bc   :  { %v9668_v44 = vmul.f32 %v9636_v40, %v21036_v56  ;;  %v9634_v21 = vpop.permute.xlu0 %9633 }
0x21bd   :  { %v9667_v18 = vmul.f32 %v9634_v21, %v21039_v4 }
0x21be   :  { %9731 = vrot.lane.b32.xlu1 %v9668_v44, %s16745_s0 }
0x21bf   :  { %9729 = vrot.lane.b32.xlu0 %v9667_v18, %s16745_s0 }
0x2214   :  { %v9704_v35 = vpop.permute.xlu1 %9703 }
0x2215   :  { %v9702_v45 = vpop.permute.xlu0 %9701 }
0x2216   :  { %14332 = vmatprep.mubr.msk.f32.mxu1 %vm1267_vm1, %v9702_v45 }
0x2217   :  { %14333 = vmatmul.mubr.msk.f32.vlgmr.msra.gmra.mrb[72].mxu1 %vm1267_vm1, %v9704_v35 }
0x2218   :  { %v9708_v50 = vpop.permute.xlu1 %9707  ;;  %14655 = vmatpush3.bf16.msra.mxu1 %v19884_v51 }
0x2219   :  { %v9706_v31 = vpop.permute.xlu0 %9705  ;;  %14657 = vmatprep.subr.bf16.mxu1 %v19925_v8 }
0x221a   :  { %14335 = vmatprep.mubr.msk.f32.mxu1 %vm1267_vm1, %v9706_v31 }
0x221b   :  { %14336 = vmatmul.mubr.msk.f32.gmra.mrb[74].mxu1 %vm1267_vm1, %v9708_v50 }
0x221c   :  { %v9712_v56 = vpop.permute.xlu1 %9711  ;;  %14659 = vmatpush3.bf16.msra.mxu1 %v19925_v8 }
0x221d   :  { %v9710_v4 = vpop.permute.xlu0 %9709  ;;  %14661 = vmatprep.subr.bf16.mxu1 %v19884_v51 }
0x221e   :  { %14338 = vmatprep.mubr.msk.f32.mxu1 %vm1267_vm1, %v9710_v4 }
0x221f   :  { %14339 = vmatmul.mubr.msk.f32.gmra.mrb[76].mxu1 %vm1267_vm1, %v9712_v56 }
0x2220   :  { %v9716_v46 = vpop.permute.xlu1 %9715 }
0x2221   :  { %v9714_v15 = vpop.permute.xlu0 %9713 }
0x2222   :  { %14341 = vmatprep.mubr.msk.f32.mxu1 %vm1267_vm1, %v9714_v15 }
0x2223   :  { %14342 = vmatmul.mubr.msk.f32.gmra.mrb[78].mxu1 %vm1267_vm1, %v9716_v46 }
0x2224   :  { %v9720_v36 = vpop.permute.xlu1 %9719 }
0x2225   :  { %v9718_v30 = vpop.permute.xlu0 %9717 }
0x2226   :  { %14344 = vmatprep.mubr.msk.f32.mxu1 %vm1267_vm1, %v9718_v30 }
0x2227   :  { %14345 = vmatmul.mubr.msk.f32.gmra.mrb[80].mxu1 %vm1267_vm1, %v9720_v36 }
0x2228   :  { %v9724_v62 = vpop.permute.xlu1 %9723 }
0x2229   :  { %v9722_v49 = vpop.permute.xlu0 %9721 }
0x222a   :  { %14347 = vmatprep.mubr.msk.f32.mxu1 %vm1267_vm1, %v9722_v49 }
0x222b   :  { %14348 = vmatmul.mubr.msk.f32.gmra.mrb[82].mxu1 %vm1267_vm1, %v9724_v62 }
0x222c   :  { %v9728_v38 = vpop.permute.xlu1 %9727 }
0x222d   :  { %v9726_v53 = vpop.permute.xlu0 %9725 }
0x222e   :  { %14350 = vmatprep.mubr.msk.f32.mxu1 %vm1267_vm1, %v9726_v53 }
0x222f   :  { %14351 = vmatmul.mubr.msk.f32.gmra.mrb[84].mxu1 %vm1267_vm1, %v9728_v38 }
0x2230   :  { %v9732_v27 = vpop.permute.xlu1 %9731 }
0x2231   :  { %v9730_v63 = vpop.permute.xlu0 %9729 }
0x2232   :  { %14353 = vmatprep.mubr.msk.f32.mxu1 %vm1267_vm1, %v9730_v63 }
0x2233   :  { %14354 = vmatmul.mubr.msk.f32.gmra.mrb[86].mxu1 %vm1267_vm1, %v9732_v27 }
0x22ea   :  { %v14334_v52 = vpop.f32.mrb[72].mxu1 }
0x22eb   :  { %v21199_v37 = vadd.f32 %v21196_v20, %v14334_v52  ;;  %v9831_v26 = vpop.f32.mrb[73].mxu1 }
0x22ec   :  { %v21202_v57 = vadd.f32 %v21196_v20, %v9831_v26 }
0x22ed   :  { %16353 = vtanh.f32 %v21199_v37 }
0x22ee   :  { %16355 = vtanh.f32 %v21202_v57  ;;  %v14337_v48 = vpop.f32.mrb[74].mxu1 }
0x22ef   :  { %v21207_v12 = vadd.f32 %v21196_v20, %v14337_v48  ;;  %v9841_v9 = vpop.f32.mrb[75].mxu1 }
0x22f0   :  { %v21210_v61 = vadd.f32 %v21196_v20, %v9841_v9  ;;  %v9927_v9 = vmul.f32 0.5, %v21199_v37 }
0x22f1   :  { %16357 = vtanh.f32 %v21207_v12 }
0x22f2   :  { %16359 = vtanh.f32 %v21210_v61  ;;  %v14340_v23 = vpop.f32.mrb[76].mxu1 }
0x22f3   :  { %v21215_v43 = vadd.f32 %v21196_v20, %v14340_v23  ;;  %v9851_v34 = vpop.f32.mrb[77].mxu1  ;;  %v9926_v23 = vmul.f32 0.5, %v21202_v57 }
0x22f4   :  { %v21218_v24 = vadd.f32 %v21196_v20, %v9851_v34  ;;  %v9929_v34 = vmul.f32 0.5, %v21207_v12 }
0x22f5   :  { %16361 = vtanh.f32 %v21215_v43 }
0x22f6   :  { %16363 = vtanh.f32 %v21218_v24  ;;  %v14343_v7 = vpop.f32.mrb[78].mxu1 }
0x22f7   :  { %v16354_v39 = vpop.eup %16353  ;;  %v21223_v55 = vadd.f32 %v21196_v20, %v14343_v7  ;;  %v9861_v16 = vpop.f32.mrb[79].mxu1  ;;  %v9928_v7 = vmul.f32 0.5, %v21210_v61 }
0x22f8   :  { %v16356_v58 = vpop.eup %16355  ;;  %v21226_v25 = vadd.f32 %v21196_v20, %v9861_v16  ;;  %10040 = vrot.lane.b32.xlu1 %v16354_v39, %s16744_s30  ;;  %v9931_v39 = vmul.f32 0.5, %v21215_v43  ;;  %v9930_v16 = vmul.f32 0.5, %v21218_v24 }
0x22f9   :  { %16365 = vtanh.f32 %v21223_v55  ;;  %10038 = vrot.lane.b32.xlu0 %v16356_v58, %s16744_s30  ;;  %v9933_v58 = vmul.f32 0.5, %v21223_v55 }
0x22fa   :  { %16367 = vtanh.f32 %v21226_v25  ;;  %v14346_v10 = vpop.f32.mrb[80].mxu1  ;;  %v9932_v37 = vmul.f32 0.5, %v21226_v25 }
0x22fb   :  { %v16358_v60 = vpop.eup %16357  ;;  %v21233_v6 = vadd.f32 %v21196_v20, %v14346_v10  ;;  %v9871_v1 = vpop.f32.mrb[81].mxu1 }
0x22fc   :  { %v16360_v54 = vpop.eup %16359  ;;  %v21236_v13 = vadd.f32 %v21196_v20, %v9871_v1  ;;  %10044 = vrot.lane.b32.xlu1 %v16358_v60, %s16744_s30 }
0x22fd   :  { %16369 = vtanh.f32 %v21233_v6  ;;  %10042 = vrot.lane.b32.xlu0 %v16360_v54, %s16744_s30  ;;  %v9935_v12 = vmul.f32 0.5, %v21233_v6 }
0x22fe   :  { %16371 = vtanh.f32 %v21236_v13  ;;  %v14349_v2 = vpop.f32.mrb[82].mxu1  ;;  %v9934_v61 = vmul.f32 0.5, %v21236_v13 }
0x22ff   :  { %v16362_v40 = vpop.eup %16361  ;;  %v21243_v44 = vadd.f32 %v21196_v20, %v14349_v2  ;;  %v9881_v21 = vpop.f32.mrb[83].mxu1 }
0x2300   :  { %v16364_v18 = vpop.eup %16363  ;;  %v21246_v35 = vadd.f32 %v21196_v20, %v9881_v21  ;;  %10048 = vrot.lane.b32.xlu1 %v16362_v40, %s16744_s30 }
0x2301   :  { %16373 = vtanh.f32 %v21243_v44  ;;  %10046 = vrot.lane.b32.xlu0 %v16364_v18, %s16744_s30  ;;  %v9937_v24 = vmul.f32 0.5, %v21243_v44 }
0x2302   :  { %16375 = vtanh.f32 %v21246_v35  ;;  %v14352_v45 = vpop.f32.mrb[84].mxu1  ;;  %v9936_v55 = vmul.f32 0.5, %v21246_v35 }
0x2303   :  { %v16366_v50 = vpop.eup %16365  ;;  %v21253_v31 = vadd.f32 %v21196_v20, %v14352_v45  ;;  %v9891_v56 = vpop.f32.mrb[85].mxu1 }
0x2304   :  { %v16368_v4 = vpop.eup %16367  ;;  %v21256_v46 = vadd.f32 %v21196_v20, %v9891_v56  ;;  %10052 = vrot.lane.b32.xlu1 %v16366_v50, %s16744_s30 }
0x2305   :  { %16377 = vtanh.f32 %v21253_v31  ;;  %10050 = vrot.lane.b32.xlu0 %v16368_v4, %s16744_s30  ;;  %v9939_v56 = vmul.f32 0.5, %v21253_v31 }
0x2306   :  { %16379 = vtanh.f32 %v21256_v46  ;;  %v14355_v15 = vpop.f32.mrb[86].mxu1  ;;  %v9938_v35 = vmul.f32 0.5, %v21256_v46 }
0x2307   :  { %v16370_v36 = vpop.eup %16369  ;;  %v21263_v30 = vadd.f32 %v21196_v20, %v14355_v15  ;;  %v9901_v62 = vpop.f32.mrb[87].mxu1 }
0x2308   :  { %v16372_v49 = vpop.eup %16371  ;;  %v21266_v38 = vadd.f32 %v21196_v20, %v9901_v62  ;;  %10056 = vrot.lane.b32.xlu1 %v16370_v36, %s16744_s30 }
0x2309   :  { %16381 = vtanh.f32 %v21263_v30  ;;  %10054 = vrot.lane.b32.xlu0 %v16372_v49, %s16744_s30 }
0x230a   :  { %16383 = vtanh.f32 %v21266_v38 }
0x230b   :  { %v16374_v53 = vpop.eup %16373  ;;  %16385 = vtanh.f32 %v9927_v9 }
0x230c   :  { %v16376_v63 = vpop.eup %16375  ;;  %10060 = vrot.lane.b32.xlu1 %v16374_v53, %s16744_s30  ;;  %16387 = vtanh.f32 %v9926_v23 }
0x230d   :  { %10058 = vrot.lane.b32.xlu0 %v16376_v63, %s16744_s30  ;;  %16389 = vtanh.f32 %v9929_v34 }
0x230e   :  { %16391 = vtanh.f32 %v9928_v7 }
0x230f   :  { %v16378_v27 = vpop.eup %16377  ;;  %16393 = vtanh.f32 %v9931_v39 }
0x2310   :  { %v16380_v52 = vpop.eup %16379  ;;  %10064 = vrot.lane.b32.xlu1 %v16378_v27, %s16744_s30  ;;  %16395 = vtanh.f32 %v9930_v16 }
0x2311   :  { %10062 = vrot.lane.b32.xlu0 %v16380_v52, %s16744_s30  ;;  %16397 = vtanh.f32 %v9933_v58  ;;  %v9941_v52 = vmul.f32 0.5, %v21263_v30 }
0x2312   :  { %16399 = vtanh.f32 %v9932_v37 }
0x2313   :  { %v16382_v26 = vpop.eup %16381  ;;  %16401 = vtanh.f32 %v9935_v12 }
0x2314   :  { %v16384_v48 = vpop.eup %16383  ;;  %10068 = vrot.lane.b32.xlu1 %v16382_v26, %s16744_s30  ;;  %16403 = vtanh.f32 %v9934_v61 }
0x2315   :  { %10066 = vrot.lane.b32.xlu0 %v16384_v48, %s16744_s30  ;;  %v16386_v10 = vpop.eup %16385  ;;  %16405 = vtanh.f32 %v9937_v24  ;;  %v9940_v48 = vmul.f32 0.5, %v21266_v38 }
0x2316   :  { %v16388_v57 = vpop.eup %16387  ;;  %v9959_v60 = vmul.f32 0.5, %v16386_v10  ;;  %16407 = vtanh.f32 %v9936_v55 }
0x2317   :  { %v16390_v1 = vpop.eup %16389  ;;  %v9958_v43 = vmul.f32 0.5, %v16388_v57  ;;  %16409 = vtanh.f32 %v9939_v56 }
0x2318   :  { %v16392_v54 = vpop.eup %16391  ;;  %v9961_v2 = vmul.f32 0.5, %v16390_v1  ;;  %v21290_v25 = vadd.f32 0.5, %v9959_v60  ;;  %16411 = vtanh.f32 %v9938_v35 }
0x2319   :  { %v16394_v40 = vpop.eup %16393  ;;  %v9960_v21 = vmul.f32 0.5, %v16392_v54  ;;  %v21292_v6 = vadd.f32 0.5, %v9958_v43  ;;  %16413 = vtanh.f32 %v9941_v52 }
0x231a   :  { %v16396_v45 = vpop.eup %16395  ;;  %v9963_v4 = vmul.f32 0.5, %v16394_v40  ;;  %v21299_v15 = vadd.f32 0.5, %v9961_v2  ;;  %16415 = vtanh.f32 %v9940_v48 }
0x231b   :  { %v16398_v36 = vpop.eup %16397  ;;  %v9962_v62 = vmul.f32 0.5, %v16396_v45  ;;  %v21302_v53 = vadd.f32 0.5, %v9960_v21 }
0x231c   :  { %v16400_v63 = vpop.eup %16399  ;;  %v9965_v26 = vmul.f32 0.5, %v16398_v36  ;;  %v21309_v9 = vadd.f32 0.5, %v9963_v4 }
0x231d   :  { %v16402_v23 = vpop.eup %16401  ;;  %v9964_v34 = vmul.f32 0.5, %v16400_v63  ;;  %v21312_v39 = vadd.f32 0.5, %v9962_v62 }
0x231e   :  { %v16404_v16 = vpop.eup %16403  ;;  %v9967_v10 = vmul.f32 0.5, %v16402_v23  ;;  %v21317_v38 = vadd.f32 0.5, %v9965_v26 }
0x231f   :  { %v16406_v57 = vpop.eup %16405  ;;  %v9966_v12 = vmul.f32 0.5, %v16404_v16  ;;  %v21320_v61 = vadd.f32 0.5, %v9964_v34 }
0x2320   :  { %v16408_v1 = vpop.eup %16407  ;;  %v9969_v2 = vmul.f32 0.5, %v16406_v57  ;;  %v21325_v55 = vadd.f32 0.5, %v9967_v10 }
0x2321   :  { %v16410_v40 = vpop.eup %16409  ;;  %v9968_v21 = vmul.f32 0.5, %v16408_v1  ;;  %v21328_v45 = vadd.f32 0.5, %v9966_v12 }
0x2322   :  { %v9971_v4 = vmul.f32 0.5, %v16410_v40  ;;  %v21333_v35 = vadd.f32 0.5, %v9969_v2 }
0x2323   :  { %v21336_v63 = vadd.f32 0.5, %v9968_v21 }
0x2324   :  { %v21341_v48 = vadd.f32 0.5, %v9971_v4 }
0x236a   :  { %v10041_v18 = vpop.permute.xlu1 %10040 }
0x236b   :  { %v10087_v13 = vmul.f32 %v10041_v18, %v21290_v25  ;;  %v10039_v50 = vpop.permute.xlu0 %10038 }
0x236c   :  { %v10086_v44 = vmul.f32 %v10039_v50, %v21292_v6 }
0x236d   :  { %10120 = vrot.lane.b32.xlu1 %v10087_v13, %s16744_s30  ;;  %v16412_v13 = vpop.eup %16411 }
0x236e   :  { %v10045_v49 = vpop.permute.xlu1 %10044  ;;  %10118 = vrot.lane.b32.xlu0 %v10086_v44, %s16744_s30  ;;  %v16414_v36 = vpop.eup %16413  ;;  %v9970_v62 = vmul.f32 0.5, %v16412_v13 }
0x236f   :  { %v10089_v31 = vmul.f32 %v10045_v49, %v21299_v15  ;;  %v10043_v27 = vpop.permute.xlu0 %10042  ;;  %v9973_v26 = vmul.f32 0.5, %v16414_v36 }
0x2370   :  { %v10088_v46 = vmul.f32 %v10043_v27, %v21302_v53 }
0x2371   :  { %10124 = vrot.lane.b32.xlu1 %v10089_v31, %s16744_s30  ;;  %v16416_v31 = vpop.eup %16415 }
0x2372   :  { %v10049_v7 = vpop.permute.xlu1 %10048  ;;  %10122 = vrot.lane.b32.xlu0 %v10088_v46, %s16744_s30  ;;  %v9972_v23 = vmul.f32 0.5, %v16416_v31 }
0x2373   :  { %v10091_v30 = vmul.f32 %v10049_v7, %v21309_v9  ;;  %v10047_v58 = vpop.permute.xlu0 %10046  ;;  %v21344_v7 = vadd.f32 0.5, %v9970_v62 }
0x2374   :  { %v10090_v37 = vmul.f32 %v10047_v58, %v21312_v39  ;;  %v21352_v57 = vadd.f32 0.5, %v9972_v23 }
0x2375   :  { %10128 = vrot.lane.b32.xlu1 %v10091_v30, %s16744_s30 }
0x2376   :  { %v10053_v60 = vpop.permute.xlu1 %10052  ;;  %10126 = vrot.lane.b32.xlu0 %v10090_v37, %s16744_s30  ;;  %v21349_v37 = vadd.f32 0.5, %v9973_v26 }
0x2377   :  { %v10093_v43 = vmul.f32 %v10053_v60, %v21317_v38  ;;  %v10051_v54 = vpop.permute.xlu0 %10050 }
0x2378   :  { %v10092_v24 = vmul.f32 %v10051_v54, %v21320_v61 }
0x2379   :  { %10132 = vrot.lane.b32.xlu1 %v10093_v43, %s16744_s30  ;;  %v10007_v43 = vmul.f32 %v21290_v25, %v21049_v42  ;;  %v10008_v42 = vmul.f32 %v21302_v53, %v21061_v11 }
0x237a   :  { %v10057_v18 = vpop.permute.xlu1 %10056  ;;  %10130 = vrot.lane.b32.xlu0 %v10092_v24, %s16744_s30  ;;  %v10006_v24 = vmul.f32 %v21292_v6, %v21051_v41 }
0x237b   :  { %v10095_v50 = vmul.f32 %v10057_v18, %v21325_v55  ;;  %v10055_v56 = vpop.permute.xlu0 %10054  ;;  %v10009_v18 = vmul.f32 %v21299_v15, %v21059_v3  ;;  %v10010_v3 = vmul.f32 %v21312_v39, %v21071_v32 }
0x237c   :  { %v10094_v44 = vmul.f32 %v10055_v56, %v21328_v45 }
0x237d   :  { %10136 = vrot.lane.b32.xlu1 %v10095_v50, %s16744_s30 }
0x237e   :  { %v10061_v49 = vpop.permute.xlu1 %10060  ;;  %10134 = vrot.lane.b32.xlu0 %v10094_v44, %s16744_s30  ;;  %v10011_v44 = vmul.f32 %v21309_v9, %v21069_v29  ;;  %v10012_v29 = vmul.f32 %v21320_v61, %v21081_v19  ;;  %v10014_v19 = vmul.f32 %v21328_v45, %v21093_v14  ;;  %v10016_v14 = vmul.f32 %v21336_v63, %v21105_v28 }
0x237f   :  { %v10097_v27 = vmul.f32 %v10061_v49, %v21333_v35  ;;  %v10059_v52 = vpop.permute.xlu0 %10058  ;;  %v10013_v49 = vmul.f32 %v21317_v38, %v21079_v47  ;;  %v10015_v47 = vmul.f32 %v21325_v55, %v21091_v5  ;;  %v10017_v5 = vmul.f32 %v21333_v35, %v21103_v0 }
0x2380   :  { %v10096_v46 = vmul.f32 %v10059_v52, %v21336_v63  ;;  %v10019_v0 = vmul.f32 %v21341_v48, %v21115_v22  ;;  %v10018_v28 = vmul.f32 %v21344_v7, %v21117_v59  ;;  %v10021_v22 = vmul.f32 %v21349_v37, %v21127_v33 }
0x2381   :  { %10140 = vrot.lane.b32.xlu1 %v10097_v27, %s16744_s30  ;;  %v10020_v59 = vmul.f32 %v21352_v57, %v21129_v17 }
0x2382   :  { %v10065_v34 = vpop.permute.xlu1 %10064  ;;  %10138 = vrot.lane.b32.xlu0 %v10096_v46, %s16744_s30 }
0x2383   :  { %v10099_v16 = vmul.f32 %v10065_v34, %v21341_v48  ;;  %v10063_v30 = vpop.permute.xlu0 %10062 }
0x2384   :  { %v10098_v58 = vmul.f32 %v10063_v30, %v21344_v7 }
0x2385   :  { %10144 = vrot.lane.b32.xlu1 %v10099_v16, %s16744_s30 }
0x2386   :  { %v10069_v10 = vpop.permute.xlu1 %10068  ;;  %10142 = vrot.lane.b32.xlu0 %v10098_v58, %s16744_s30 }
0x2387   :  { %v10101_v12 = vmul.f32 %v10069_v10, %v21349_v37  ;;  %v10067_v60 = vpop.permute.xlu0 %10066 }
0x2388   :  { %v10100_v1 = vmul.f32 %v10067_v60, %v21352_v57 }
0x2389   :  { %10148 = vrot.lane.b32.xlu1 %v10101_v12, %s16744_s30 }
0x238a   :  { %10146 = vrot.lane.b32.xlu0 %v10100_v1, %s16744_s30 }
0x23df   :  { %v10121_v54 = vpop.permute.xlu1 %10120 }
0x23e0   :  { %v21362_v2 = vadd.f32 %v10121_v54, %v10007_v43  ;;  %v10119_v40 = vpop.permute.xlu0 %10118 }
0x23e1   :  { %v21364_v21 = vadd.f32 %v10119_v40, %v10006_v24 }
0x23e2   :  { %16417 = vtanh.f32 %v21362_v2 }
0x23e3   :  { %16419 = vtanh.f32 %v21364_v21  ;;  %v10125_v13 = vpop.permute.xlu1 %10124 }
0x23e4   :  { %v21372_v50 = vadd.f32 %v10125_v13, %v10009_v18  ;;  %v10123_v56 = vpop.permute.xlu0 %10122 }
0x23e5   :  { %v21374_v41 = vadd.f32 %v10123_v56, %v10008_v42 }
0x23e6   :  { %16421 = vtanh.f32 %v21372_v50 }
0x23e7   :  { %16423 = vtanh.f32 %v21374_v41  ;;  %v10129_v4 = vpop.permute.xlu1 %10128 }
0x23e8   :  { %v21382_v36 = vadd.f32 %v10129_v4, %v10011_v44  ;;  %v10127_v62 = vpop.permute.xlu0 %10126 }
0x23e9   :  { %v21384_v11 = vadd.f32 %v10127_v62, %v10010_v3 }
0x23ea   :  { %16425 = vtanh.f32 %v21382_v36 }
0x23eb   :  { %16427 = vtanh.f32 %v21384_v11  ;;  %v10133_v31 = vpop.permute.xlu1 %10132 }
0x23ec   :  { %v16418_v27 = vpop.eup %16417  ;;  %v21392_v52 = vadd.f32 %v10133_v31, %v10013_v49  ;;  %v10131_v32 = vpop.permute.xlu0 %10130 }
0x23ed   :  { %v16420_v46 = vpop.eup %16419  ;;  %v21394_v26 = vadd.f32 %v10131_v32, %v10012_v29  ;;  %10216 = vrot.lane.b32.xlu1 %v16418_v27, %s16744_s30 }
0x23ee   :  { %16429 = vtanh.f32 %v21392_v52  ;;  %10214 = vrot.lane.b32.xlu0 %v16420_v46, %s16744_s30 }
0x23ef   :  { %16431 = vtanh.f32 %v21394_v26  ;;  %v10137_v23 = vpop.permute.xlu1 %10136 }
0x23f0   :  { %v16422_v34 = vpop.eup %16421  ;;  %v21404_v16 = vadd.f32 %v10137_v23, %v10015_v47  ;;  %v10135_v30 = vpop.permute.xlu0 %10134 }
0x23f1   :  { %v16424_v58 = vpop.eup %16423  ;;  %v21406_v10 = vadd.f32 %v10135_v30, %v10014_v19  ;;  %10220 = vrot.lane.b32.xlu1 %v16422_v34, %s16744_s30 }
0x23f2   :  { %16433 = vtanh.f32 %v21404_v16  ;;  %10218 = vrot.lane.b32.xlu0 %v16424_v58, %s16744_s30 }
0x23f3   :  { %16435 = vtanh.f32 %v21406_v10  ;;  %v10141_v12 = vpop.permute.xlu1 %10140 }
0x23f4   :  { %v16426_v60 = vpop.eup %16425  ;;  %v21416_v1 = vadd.f32 %v10141_v12, %v10017_v5  ;;  %v10139_v43 = vpop.permute.xlu0 %10138 }
0x23f5   :  { %v16428_v54 = vpop.eup %16427  ;;  %v21418_v24 = vadd.f32 %v10139_v43, %v10016_v14  ;;  %10224 = vrot.lane.b32.xlu1 %v16426_v60, %s16744_s30 }
0x23f6   :  { %16437 = vtanh.f32 %v21416_v1  ;;  %10222 = vrot.lane.b32.xlu0 %v16428_v54, %s16744_s30 }
0x23f7   :  { %16439 = vtanh.f32 %v21418_v24  ;;  %v10145_v40 = vpop.permute.xlu1 %10144 }
0x23f8   :  { %v16430_v18 = vpop.eup %16429  ;;  %v21428_v13 = vadd.f32 %v10145_v40, %v10019_v0  ;;  %v10143_v42 = vpop.permute.xlu0 %10142 }
0x23f9   :  { %v16432_v56 = vpop.eup %16431  ;;  %v21430_v44 = vadd.f32 %v10143_v42, %v10018_v28  ;;  %10228 = vrot.lane.b32.xlu1 %v16430_v18, %s16744_s30 }
0x23fa   :  { %16441 = vtanh.f32 %v21428_v13  ;;  %10226 = vrot.lane.b32.xlu0 %v16432_v56, %s16744_s30 }
0x23fb   :  { %16443 = vtanh.f32 %v21430_v44  ;;  %v10149_v4 = vpop.permute.xlu1 %10148 }
0x23fc   :  { %v16434_v3 = vpop.eup %16433  ;;  %v21440_v62 = vadd.f32 %v10149_v4, %v10021_v22  ;;  %v10147_v49 = vpop.permute.xlu0 %10146 }
0x23fd   :  { %v16436_v31 = vpop.eup %16435  ;;  %v21442_v29 = vadd.f32 %v10147_v49, %v10020_v59  ;;  %10232 = vrot.lane.b32.xlu1 %v16434_v3, %s16744_s30 }
0x23fe   :  { %16445 = vtanh.f32 %v21440_v62  ;;  %10230 = vrot.lane.b32.xlu0 %v16436_v31, %s16744_s30 }
0x23ff   :  { %16447 = vtanh.f32 %v21442_v29 }
0x2400   :  { %v16438_v33 = vpop.eup %16437 }
0x2401   :  { %v16440_v27 = vpop.eup %16439  ;;  %10236 = vrot.lane.b32.xlu1 %v16438_v33, %s16744_s30 }
0x2402   :  { %10234 = vrot.lane.b32.xlu0 %v16440_v27, %s16744_s30 }
0x2404   :  { %v16442_v17 = vpop.eup %16441 }
0x2405   :  { %v16444_v32 = vpop.eup %16443  ;;  %10240 = vrot.lane.b32.xlu1 %v16442_v17, %s16744_s30 }
0x2406   :  { %10238 = vrot.lane.b32.xlu0 %v16444_v32, %s16744_s30 }
0x2408   :  { %v16446_v46 = vpop.eup %16445 }
0x2409   :  { %v16448_v47 = vpop.eup %16447  ;;  %10244 = vrot.lane.b32.xlu1 %v16446_v46, %s16744_s30 }
0x240a   :  { %10242 = vrot.lane.b32.xlu0 %v16448_v47, %s16744_s30 }
0x245f   :  { %v10217_v23 = vpop.permute.xlu1 %10216 }
0x2460   :  { %v10263_v19 = vmul.f32 %v10217_v23, %v21290_v25  ;;  %v10215_v34 = vpop.permute.xlu0 %10214 }
0x2461   :  { %v10262_v30 = vmul.f32 %v10215_v34, %v21292_v6 }
0x2462   :  { %10312 = vrot.lane.b32.xlu1 %v10263_v19, %s16745_s0 }
0x2463   :  { %v10221_v58 = vpop.permute.xlu1 %10220  ;;  %10310 = vrot.lane.b32.xlu0 %v10262_v30, %s16745_s0 }
0x2464   :  { %v10265_v5 = vmul.f32 %v10221_v58, %v21299_v15  ;;  %v10219_v12 = vpop.permute.xlu0 %10218 }
0x2465   :  { %v10264_v14 = vmul.f32 %v10219_v12, %v21302_v53 }
0x2466   :  { %10316 = vrot.lane.b32.xlu1 %v10265_v5, %s16745_s0 }
0x2467   :  { %v10225_v60 = vpop.permute.xlu1 %10224  ;;  %10314 = vrot.lane.b32.xlu0 %v10264_v14, %s16745_s0 }
0x2468   :  { %v10267_v25 = vmul.f32 %v10225_v60, %v21309_v9  ;;  %v10223_v43 = vpop.permute.xlu0 %10222 }
0x2469   :  { %v10266_v6 = vmul.f32 %v10223_v43, %v21312_v39 }
0x246a   :  { %10320 = vrot.lane.b32.xlu1 %v10267_v25, %s16745_s0 }
0x246b   :  { %v10229_v54 = vpop.permute.xlu1 %10228  ;;  %10318 = vrot.lane.b32.xlu0 %v10266_v6, %s16745_s0 }
0x246c   :  { %v10269_v15 = vmul.f32 %v10229_v54, %v21317_v38  ;;  %v10227_v0 = vpop.permute.xlu0 %10226 }
0x246d   :  { %v10268_v53 = vmul.f32 %v10227_v0, %v21320_v61 }
0x246e   :  { %10324 = vrot.lane.b32.xlu1 %v10269_v15, %s16745_s0 }
0x246f   :  { %v10233_v40 = vpop.permute.xlu1 %10232  ;;  %10322 = vrot.lane.b32.xlu0 %v10268_v53, %s16745_s0 }
0x2470   :  { %v10271_v9 = vmul.f32 %v10233_v40, %v21325_v55  ;;  %v10231_v28 = vpop.permute.xlu0 %10230 }
0x2471   :  { %v10270_v39 = vmul.f32 %v10231_v28, %v21328_v45 }
0x2472   :  { %10328 = vrot.lane.b32.xlu1 %v10271_v9, %s16745_s0 }
0x2473   :  { %v10237_v18 = vpop.permute.xlu1 %10236  ;;  %10326 = vrot.lane.b32.xlu0 %v10270_v39, %s16745_s0 }
0x2474   :  { %v10273_v38 = vmul.f32 %v10237_v18, %v21333_v35  ;;  %v10235_v42 = vpop.permute.xlu0 %10234 }
0x2475   :  { %v10272_v61 = vmul.f32 %v10235_v42, %v21336_v63 }
0x2476   :  { %10332 = vrot.lane.b32.xlu1 %v10273_v38, %s16745_s0 }
0x2477   :  { %v10241_v56 = vpop.permute.xlu1 %10240  ;;  %10330 = vrot.lane.b32.xlu0 %v10272_v61, %s16745_s0 }
0x2478   :  { %v10275_v55 = vmul.f32 %v10241_v56, %v21341_v48  ;;  %v10239_v22 = vpop.permute.xlu0 %10238 }
0x2479   :  { %v10274_v45 = vmul.f32 %v10239_v22, %v21344_v7 }
0x247a   :  { %10336 = vrot.lane.b32.xlu1 %v10275_v55, %s16745_s0 }
0x247b   :  { %v10245_v4 = vpop.permute.xlu1 %10244  ;;  %10334 = vrot.lane.b32.xlu0 %v10274_v45, %s16745_s0 }
0x247c   :  { %v10277_v35 = vmul.f32 %v10245_v4, %v21349_v37  ;;  %v10243_v59 = vpop.permute.xlu0 %10242 }
0x247d   :  { %v10276_v63 = vmul.f32 %v10243_v59, %v21352_v57 }
0x247e   :  { %10340 = vrot.lane.b32.xlu1 %v10277_v35, %s16745_s0 }
0x247f   :  { %10338 = vrot.lane.b32.xlu0 %v10276_v63, %s16745_s0 }
0x24d4   :  { %v10313_v3 = vpop.permute.xlu1 %10312 }
0x24d5   :  { %v10311_v49 = vpop.permute.xlu0 %10310 }
0x24d6   :  { %14364 = vmatprep.mubr.msk.f32.mxu1 %vm1267_vm1, %v10311_v49 }
0x24d7   :  { %14365 = vmatmul.mubr.msk.f32.vlgmr.msra.gmra.mrb[88].mxu1 %vm1267_vm1, %v10313_v3 }
0x24d8   :  { %v10317_v48 = vpop.permute.xlu1 %10316  ;;  %14663 = vmatpush3.bf16.msra.mxu1 %v19884_v51 }
0x24d9   :  { %v10315_v7 = vpop.permute.xlu0 %10314  ;;  %14665 = vmatprep.subr.bf16.mxu1 %v19925_v8 }
0x24da   :  { %14367 = vmatprep.mubr.msk.f32.mxu1 %vm1267_vm1, %v10315_v7 }
0x24db   :  { %14368 = vmatmul.mubr.msk.f32.gmra.mrb[90].mxu1 %vm1267_vm1, %v10317_v48 }
0x24dc   :  { %v10321_v37 = vpop.permute.xlu1 %10320  ;;  %14667 = vmatpush3.bf16.msra.mxu1 %v19925_v8 }
0x24dd   :  { %v10319_v57 = vpop.permute.xlu0 %10318  ;;  %14669 = vmatprep.subr.bf16.mxu1 %v19884_v51 }
0x24de   :  { %14370 = vmatprep.mubr.msk.f32.mxu1 %vm1267_vm1, %v10319_v57 }
0x24df   :  { %14371 = vmatmul.mubr.msk.f32.gmra.mrb[92].mxu1 %vm1267_vm1, %v10321_v37 }
0x24e0   :  { %v10325_v31 = vpop.permute.xlu1 %10324 }
0x24e1   :  { %v10323_v33 = vpop.permute.xlu0 %10322 }
0x24e2   :  { %14373 = vmatprep.mubr.msk.f32.mxu1 %vm1267_vm1, %v10323_v33 }
0x24e3   :  { %14374 = vmatmul.mubr.msk.f32.gmra.mrb[94].mxu1 %vm1267_vm1, %v10325_v31 }
0x24e4   :  { %v10329_v27 = vpop.permute.xlu1 %10328 }
0x24e5   :  { %v10327_v17 = vpop.permute.xlu0 %10326 }
0x24e6   :  { %14376 = vmatprep.mubr.msk.f32.mxu1 %vm1267_vm1, %v10327_v17 }
0x24e7   :  { %14377 = vmatmul.mubr.msk.f32.gmra.mrb[96].mxu1 %vm1267_vm1, %v10329_v27 }
0x24e8   :  { %v10333_v32 = vpop.permute.xlu1 %10332 }
0x24e9   :  { %v10331_v46 = vpop.permute.xlu0 %10330 }
0x24ea   :  { %14379 = vmatprep.mubr.msk.f32.mxu1 %vm1267_vm1, %v10331_v46 }
0x24eb   :  { %14380 = vmatmul.mubr.msk.f32.gmra.mrb[98].mxu1 %vm1267_vm1, %v10333_v32 }
0x24ec   :  { %v10337_v47 = vpop.permute.xlu1 %10336 }
0x24ed   :  { %v10335_v23 = vpop.permute.xlu0 %10334 }
0x24ee   :  { %14382 = vmatprep.mubr.msk.f32.mxu1 %vm1267_vm1, %v10335_v23 }
0x24ef   :  { %14383 = vmatmul.mubr.msk.f32.gmra.mrb[100].mxu1 %vm1267_vm1, %v10337_v47 }
0x24f0   :  { %v10341_v34 = vpop.permute.xlu1 %10340 }
0x24f1   :  { %v10339_v19 = vpop.permute.xlu0 %10338 }
0x24f2   :  { %14385 = vmatprep.mubr.msk.f32.mxu1 %vm1267_vm1, %v10339_v19 }
0x24f3   :  { %14386 = vmatmul.mubr.msk.f32.gmra.mrb[102].mxu1 %vm1267_vm1, %v10341_v34 }
0x25aa   :  { %v14366_v30 = vpop.f32.mrb[88].mxu1 }
0x25ab   :  { %v21507_v58 = vadd.f32 %v21196_v20, %v14366_v30  ;;  %v10440_v5 = vpop.f32.mrb[89].mxu1 }
0x25ac   :  { %v21510_v12 = vadd.f32 %v21196_v20, %v10440_v5 }
0x25ad   :  { %16449 = vtanh.f32 %v21507_v58 }
0x25ae   :  { %16451 = vtanh.f32 %v21510_v12  ;;  %v14369_v14 = vpop.f32.mrb[90].mxu1 }
0x25af   :  { %v21515_v60 = vadd.f32 %v21196_v20, %v14369_v14  ;;  %v10450_v25 = vpop.f32.mrb[91].mxu1  ;;  %v10536_v14 = vmul.f32 0.5, %v21507_v58 }
0x25b0   :  { %v21518_v43 = vadd.f32 %v21196_v20, %v10450_v25  ;;  %v10535_v25 = vmul.f32 0.5, %v21510_v12 }
0x25b1   :  { %16453 = vtanh.f32 %v21515_v60 }
0x25b2   :  { %16455 = vtanh.f32 %v21518_v43  ;;  %v14372_v6 = vpop.f32.mrb[92].mxu1 }
0x25b3   :  { %v21523_v54 = vadd.f32 %v21196_v20, %v14372_v6  ;;  %v10460_v15 = vpop.f32.mrb[93].mxu1  ;;  %v10538_v6 = vmul.f32 0.5, %v21515_v60 }
0x25b4   :  { %v21526_v0 = vadd.f32 %v21196_v20, %v10460_v15  ;;  %v10537_v15 = vmul.f32 0.5, %v21518_v43 }
0x25b5   :  { %16457 = vtanh.f32 %v21523_v54 }
0x25b6   :  { %16459 = vtanh.f32 %v21526_v0  ;;  %v14375_v53 = vpop.f32.mrb[94].mxu1 }
0x25b7   :  { %v16450_v40 = vpop.eup %16449  ;;  %v21531_v9 = vadd.f32 %v21196_v20, %v14375_v53  ;;  %v10470_v28 = vpop.f32.mrb[95].mxu1  ;;  %v10540_v53 = vmul.f32 0.5, %v21523_v54 }
0x25b8   :  { %v16452_v39 = vpop.eup %16451  ;;  %v21534_v18 = vadd.f32 %v21196_v20, %v10470_v28  ;;  %10649 = vrot.lane.b32.xlu1 %v16450_v40, %s16744_s30  ;;  %v10539_v40 = vmul.f32 0.5, %v21526_v0 }
0x25b9   :  { %16461 = vtanh.f32 %v21531_v9  ;;  %10647 = vrot.lane.b32.xlu0 %v16452_v39, %s16744_s30  ;;  %v10542_v28 = vmul.f32 0.5, %v21531_v9 }
0x25ba   :  { %16463 = vtanh.f32 %v21534_v18  ;;  %v14378_v38 = vpop.f32.mrb[96].mxu1  ;;  %v10541_v58 = vmul.f32 0.5, %v21534_v18 }
0x25bb   :  { %v16454_v42 = vpop.eup %16453  ;;  %v21541_v61 = vadd.f32 %v21196_v20, %v14378_v38  ;;  %v10480_v56 = vpop.f32.mrb[97].mxu1 }
0x25bc   :  { %v16456_v55 = vpop.eup %16455  ;;  %v21544_v22 = vadd.f32 %v21196_v20, %v10480_v56  ;;  %10653 = vrot.lane.b32.xlu1 %v16454_v42, %s16744_s30 }
0x25bd   :  { %16465 = vtanh.f32 %v21541_v61  ;;  %10651 = vrot.lane.b32.xlu0 %v16456_v55, %s16744_s30  ;;  %v10544_v60 = vmul.f32 0.5, %v21541_v61 }
0x25be   :  { %16467 = vtanh.f32 %v21544_v22  ;;  %v14381_v45 = vpop.f32.mrb[98].mxu1  ;;  %v10543_v43 = vmul.f32 0.5, %v21544_v22 }
0x25bf   :  { %v16458_v4 = vpop.eup %16457  ;;  %v21551_v35 = vadd.f32 %v21196_v20, %v14381_v45  ;;  %v10490_v59 = vpop.f32.mrb[99].mxu1 }
0x25c0   :  { %v16460_v63 = vpop.eup %16459  ;;  %v21554_v3 = vadd.f32 %v21196_v20, %v10490_v59  ;;  %10657 = vrot.lane.b32.xlu1 %v16458_v4, %s16744_s30 }
0x25c1   :  { %16469 = vtanh.f32 %v21551_v35  ;;  %10655 = vrot.lane.b32.xlu0 %v16460_v63, %s16744_s30  ;;  %v10546_v0 = vmul.f32 0.5, %v21551_v35 }
0x25c2   :  { %16471 = vtanh.f32 %v21554_v3  ;;  %v14384_v49 = vpop.f32.mrb[100].mxu1  ;;  %v10545_v9 = vmul.f32 0.5, %v21554_v3 }
0x25c3   :  { %v16462_v48 = vpop.eup %16461  ;;  %v21561_v7 = vadd.f32 %v21196_v20, %v14384_v49  ;;  %v10500_v37 = vpop.f32.mrb[101].mxu1 }
0x25c4   :  { %v16464_v57 = vpop.eup %16463  ;;  %v21564_v31 = vadd.f32 %v21196_v20, %v10500_v37  ;;  %10661 = vrot.lane.b32.xlu1 %v16462_v48, %s16744_s30 }
0x25c5   :  { %16473 = vtanh.f32 %v21561_v7  ;;  %10659 = vrot.lane.b32.xlu0 %v16464_v57, %s16744_s30  ;;  %v10548_v48 = vmul.f32 0.5, %v21561_v7 }
0x25c6   :  { %16475 = vtanh.f32 %v21564_v31  ;;  %v14387_v33 = vpop.f32.mrb[102].mxu1  ;;  %v10547_v3 = vmul.f32 0.5, %v21564_v31 }
0x25c7   :  { %v16466_v27 = vpop.eup %16465  ;;  %v21571_v17 = vadd.f32 %v21196_v20, %v14387_v33  ;;  %v10510_v32 = vpop.f32.mrb[103].mxu1 }
0x25c8   :  { %v16468_v46 = vpop.eup %16467  ;;  %v21574_v47 = vadd.f32 %v21196_v20, %v10510_v32  ;;  %10665 = vrot.lane.b32.xlu1 %v16466_v27, %s16744_s30 }
0x25c9   :  { %16477 = vtanh.f32 %v21571_v17  ;;  %10663 = vrot.lane.b32.xlu0 %v16468_v46, %s16744_s30 }
0x25ca   :  { %16479 = vtanh.f32 %v21574_v47 }
0x25cb   :  { %v16470_v23 = vpop.eup %16469  ;;  %16481 = vtanh.f32 %v10536_v14 }
0x25cc   :  { %v16472_v19 = vpop.eup %16471  ;;  %10669 = vrot.lane.b32.xlu1 %v16470_v23, %s16744_s30  ;;  %16483 = vtanh.f32 %v10535_v25 }
0x25cd   :  { %10667 = vrot.lane.b32.xlu0 %v16472_v19, %s16744_s30  ;;  %16485 = vtanh.f32 %v10538_v6 }
0x25ce   :  { %16487 = vtanh.f32 %v10537_v15 }
0x25cf   :  { %v16474_v34 = vpop.eup %16473  ;;  %16489 = vtanh.f32 %v10540_v53 }
0x25d0   :  { %v16476_v30 = vpop.eup %16475  ;;  %10673 = vrot.lane.b32.xlu1 %v16474_v34, %s16744_s30  ;;  %16491 = vtanh.f32 %v10539_v40  ;;  %v10550_v34 = vmul.f32 0.5, %v21571_v17 }
0x25d1   :  { %10671 = vrot.lane.b32.xlu0 %v16476_v30, %s16744_s30  ;;  %16493 = vtanh.f32 %v10542_v28 }
0x25d2   :  { %16495 = vtanh.f32 %v10541_v58 }
0x25d3   :  { %v16478_v20 = vpop.eup %16477  ;;  %16497 = vtanh.f32 %v10544_v60 }
0x25d4   :  { %v16480_v5 = vpop.eup %16479  ;;  %10677 = vrot.lane.b32.xlu1 %v16478_v20, %s16744_s30  ;;  %16499 = vtanh.f32 %v10543_v43  ;;  %v10549_v20 = vmul.f32 0.5, %v21574_v47 }
0x25d5   :  { %10675 = vrot.lane.b32.xlu0 %v16480_v5, %s16744_s30  ;;  %v16482_v39 = vpop.eup %16481  ;;  %16501 = vtanh.f32 %v10546_v0 }
0x25d6   :  { %v16484_v12 = vpop.eup %16483  ;;  %v10568_v38 = vmul.f32 0.5, %v16482_v39  ;;  %16503 = vtanh.f32 %v10545_v9 }
0x25d7   :  { %v16486_v42 = vpop.eup %16485  ;;  %v10567_v54 = vmul.f32 0.5, %v16484_v12  ;;  %16505 = vtanh.f32 %v10548_v48 }
0x25d8   :  { %v16488_v56 = vpop.eup %16487  ;;  %v10570_v55 = vmul.f32 0.5, %v16486_v42  ;;  %v21598_v18 = vadd.f32 0.5, %v10568_v38  ;;  %16507 = vtanh.f32 %v10547_v3 }
0x25d9   :  { %v16490_v45 = vpop.eup %16489  ;;  %v10569_v4 = vmul.f32 0.5, %v16488_v56  ;;  %v21600_v61 = vadd.f32 0.5, %v10567_v54  ;;  %16509 = vtanh.f32 %v10550_v34 }
0x25da   :  { %v16492_v63 = vpop.eup %16491  ;;  %v10572_v37 = vmul.f32 0.5, %v16490_v45  ;;  %v21607_v57 = vadd.f32 0.5, %v10570_v55  ;;  %16511 = vtanh.f32 %v10549_v20 }
0x25db   :  { %v16494_v33 = vpop.eup %16493  ;;  %v10571_v27 = vmul.f32 0.5, %v16492_v63  ;;  %v21610_v46 = vadd.f32 0.5, %v10569_v4 }
0x25dc   :  { %v16496_v23 = vpop.eup %16495  ;;  %v10574_v30 = vmul.f32 0.5, %v16494_v33  ;;  %v21617_v5 = vadd.f32 0.5, %v10572_v37 }
0x25dd   :  { %v16498_v14 = vpop.eup %16497  ;;  %v10573_v25 = vmul.f32 0.5, %v16496_v23  ;;  %v21620_v15 = vadd.f32 0.5, %v10571_v27 }
0x25de   :  { %v16500_v53 = vpop.eup %16499  ;;  %v10576_v58 = vmul.f32 0.5, %v16498_v14  ;;  %v21625_v47 = vadd.f32 0.5, %v10574_v30 }
0x25df   :  { %v16502_v39 = vpop.eup %16501  ;;  %v10575_v12 = vmul.f32 0.5, %v16500_v53  ;;  %v21628_v38 = vadd.f32 0.5, %v10573_v25 }
0x25e0   :  { %v16504_v43 = vpop.eup %16503  ;;  %v10578_v0 = vmul.f32 0.5, %v16502_v39  ;;  %v21633_v55 = vadd.f32 0.5, %v10576_v58 }
0x25e1   :  { %v16506_v9 = vpop.eup %16505  ;;  %v10577_v45 = vmul.f32 0.5, %v16504_v43  ;;  %v10616_v43 = vmul.f32 %v21598_v18, %v21362_v2  ;;  %v10617_v2 = vmul.f32 %v21610_v46, %v21374_v41 }
0x25e2   :  { %v16508_v63 = vpop.eup %16507  ;;  %v21641_v37 = vadd.f32 0.5, %v10578_v0 }
0x25e3   :  { %v16510_v3 = vpop.eup %16509  ;;  %v10579_v33 = vmul.f32 0.5, %v16508_v63 }
0x25e4   :  { %v16512_v23 = vpop.eup %16511 }
0x25e5   :  { %v10581_v20 = vmul.f32 0.5, %v16512_v23  ;;  %v21652_v25 = vadd.f32 0.5, %v10579_v33  ;;  %v10622_v33 = vmul.f32 %v21625_v47, %v21392_v52  ;;  %v10624_v52 = vmul.f32 %v21633_v55, %v21404_v16 }
0x25e6   :  { %v10626_v16 = vmul.f32 %v21641_v37, %v21416_v1 }
0x25e7   :  { %v21660_v58 = vadd.f32 0.5, %v10581_v20 }
0x262a   :  { %v10650_v59 = vpop.permute.xlu1 %10649 }
0x262b   :  { %v10696_v22 = vmul.f32 %v10650_v59, %v21598_v18  ;;  %v10648_v49 = vpop.permute.xlu0 %10647  ;;  %v21636_v59 = vadd.f32 0.5, %v10575_v12 }
0x262c   :  { %v10695_v35 = vmul.f32 %v10648_v49, %v21600_v61 }
0x262d   :  { %10729 = vrot.lane.b32.xlu1 %v10696_v22, %s16744_s30 }
0x262e   :  { %v10654_v32 = vpop.permute.xlu1 %10653  ;;  %10727 = vrot.lane.b32.xlu0 %v10695_v35, %s16744_s30  ;;  %v10580_v35 = vmul.f32 0.5, %v16506_v9 }
0x262f   :  { %v10698_v7 = vmul.f32 %v10654_v32, %v21607_v57  ;;  %v10652_v19 = vpop.permute.xlu0 %10651  ;;  %v21644_v32 = vadd.f32 0.5, %v10577_v45  ;;  %v10618_v45 = vmul.f32 %v21607_v57, %v21372_v50  ;;  %v10619_v50 = vmul.f32 %v21620_v15, %v21384_v11 }
0x2630   :  { %v10697_v31 = vmul.f32 %v10652_v19, %v21610_v46  ;;  %v21649_v30 = vadd.f32 0.5, %v10580_v35 }
0x2631   :  { %10733 = vrot.lane.b32.xlu1 %v10698_v7, %s16744_s30 }
0x2632   :  { %v10658_v6 = vpop.permute.xlu1 %10657  ;;  %10731 = vrot.lane.b32.xlu0 %v10697_v31, %s16744_s30  ;;  %v10582_v31 = vmul.f32 0.5, %v16510_v3  ;;  %v10628_v1 = vmul.f32 %v21649_v30, %v21428_v13 }
0x2633   :  { %v10700_v17 = vmul.f32 %v10658_v6, %v21617_v5  ;;  %v10656_v40 = vpop.permute.xlu0 %10655 }
0x2634   :  { %v10699_v28 = vmul.f32 %v10656_v40, %v21620_v15  ;;  %v21657_v40 = vadd.f32 0.5, %v10582_v31 }
0x2635   :  { %10737 = vrot.lane.b32.xlu1 %v10700_v17, %s16744_s30 }
0x2636   :  { %v10662_v60 = vpop.permute.xlu1 %10661  ;;  %10735 = vrot.lane.b32.xlu0 %v10699_v28, %s16744_s30  ;;  %v10630_v13 = vmul.f32 %v21657_v40, %v21440_v62 }
0x2637   :  { %v10702_v42 = vmul.f32 %v10662_v60, %v21625_v47  ;;  %v10660_v54 = vpop.permute.xlu0 %10659 }
0x2638   :  { %v10701_v56 = vmul.f32 %v10660_v54, %v21628_v38  ;;  %v10615_v54 = vmul.f32 %v21600_v61, %v21364_v21 }
0x2639   :  { %10741 = vrot.lane.b32.xlu1 %v10702_v42, %s16744_s30 }
0x263a   :  { %v10666_v4 = vpop.permute.xlu1 %10665  ;;  %10739 = vrot.lane.b32.xlu0 %v10701_v56, %s16744_s30 }
0x263b   :  { %v10704_v22 = vmul.f32 %v10666_v4, %v21633_v55  ;;  %v10664_v49 = vpop.permute.xlu0 %10663 }
0x263c   :  { %v10703_v48 = vmul.f32 %v10664_v49, %v21636_v59  ;;  %v10620_v49 = vmul.f32 %v21617_v5, %v21382_v36  ;;  %v10621_v36 = vmul.f32 %v21628_v38, %v21394_v26  ;;  %v10623_v26 = vmul.f32 %v21636_v59, %v21406_v10 }
0x263d   :  { %10745 = vrot.lane.b32.xlu1 %v10704_v22, %s16744_s30  ;;  %v10625_v10 = vmul.f32 %v21644_v32, %v21418_v24  ;;  %v10627_v24 = vmul.f32 %v21652_v25, %v21430_v44  ;;  %v10629_v44 = vmul.f32 %v21660_v58, %v21442_v29 }
0x263e   :  { %v10670_v27 = vpop.permute.xlu1 %10669  ;;  %10743 = vrot.lane.b32.xlu0 %v10703_v48, %s16744_s30 }
0x263f   :  { %v10706_v7 = vmul.f32 %v10670_v27, %v21641_v37  ;;  %v10668_v19 = vpop.permute.xlu0 %10667 }
0x2640   :  { %v10705_v34 = vmul.f32 %v10668_v19, %v21644_v32 }
0x2641   :  { %10749 = vrot.lane.b32.xlu1 %v10706_v7, %s16744_s30 }
0x2642   :  { %v10674_v14 = vpop.permute.xlu1 %10673  ;;  %10747 = vrot.lane.b32.xlu0 %v10705_v34, %s16744_s30 }
0x2643   :  { %v10708_v6 = vmul.f32 %v10674_v14, %v21649_v30  ;;  %v10672_v53 = vpop.permute.xlu0 %10671 }
0x2644   :  { %v10707_v17 = vmul.f32 %v10672_v53, %v21652_v25 }
0x2645   :  { %10753 = vrot.lane.b32.xlu1 %v10708_v6, %s16744_s30 }
0x2646   :  { %v10678_v28 = vpop.permute.xlu1 %10677  ;;  %10751 = vrot.lane.b32.xlu0 %v10707_v17, %s16744_s30 }
0x2647   :  { %v10710_v39 = vmul.f32 %v10678_v28, %v21657_v40  ;;  %v10676_v12 = vpop.permute.xlu0 %10675 }
0x2648   :  { %v10709_v60 = vmul.f32 %v10676_v12, %v21660_v58 }
0x2649   :  { %10757 = vrot.lane.b32.xlu1 %v10710_v39, %s16744_s30 }
0x264a   :  { %10755 = vrot.lane.b32.xlu0 %v10709_v60, %s16744_s30 }
0x269f   :  { %v10730_v42 = vpop.permute.xlu1 %10729 }
0x26a0   :  { %v21670_v56 = vadd.f32 %v10730_v42, %v10616_v43  ;;  %v10728_v0 = vpop.permute.xlu0 %10727 }
0x26a1   :  { %v21672_v9 = vadd.f32 %v10728_v0, %v10615_v54 }
0x26a2   :  { %16513 = vtanh.f32 %v21670_v56 }
0x26a3   :  { %16515 = vtanh.f32 %v21672_v9  ;;  %v10734_v4 = vpop.permute.xlu1 %10733 }
0x26a4   :  { %v21680_v63 = vadd.f32 %v10734_v4, %v10618_v45  ;;  %v10732_v22 = vpop.permute.xlu0 %10731 }
0x26a5   :  { %v21682_v21 = vadd.f32 %v10732_v22, %v10617_v2 }
0x26a6   :  { %16517 = vtanh.f32 %v21680_v63 }
0x26a7   :  { %16519 = vtanh.f32 %v21682_v21  ;;  %v10738_v48 = vpop.permute.xlu1 %10737 }
0x26a8   :  { %v21690_v35 = vadd.f32 %v10738_v48, %v10620_v49  ;;  %v10736_v3 = vpop.permute.xlu0 %10735 }
0x26a9   :  { %v21692_v41 = vadd.f32 %v10736_v3, %v10619_v50 }
0x26aa   :  { %16521 = vtanh.f32 %v21690_v35 }
0x26ab   :  { %16523 = vtanh.f32 %v21692_v41  ;;  %v10742_v27 = vpop.permute.xlu1 %10741 }
0x26ac   :  { %v16514_v23 = vpop.eup %16513  ;;  %v21700_v7 = vadd.f32 %v10742_v27, %v10622_v33  ;;  %v10740_v11 = vpop.permute.xlu0 %10739 }
0x26ad   :  { %v16516_v19 = vpop.eup %16515  ;;  %v21702_v34 = vadd.f32 %v10740_v11, %v10621_v36  ;;  %10825 = vrot.lane.b32.xlu1 %v16514_v23, %s16744_s30 }
0x26ae   :  { %16525 = vtanh.f32 %v21700_v7  ;;  %10823 = vrot.lane.b32.xlu0 %v16516_v19, %s16744_s30 }
0x26af   :  { %16527 = vtanh.f32 %v21702_v34  ;;  %v10746_v31 = vpop.permute.xlu1 %10745 }
0x26b0   :  { %v16518_v20 = vpop.eup %16517  ;;  %v21712_v14 = vadd.f32 %v10746_v31, %v10624_v52  ;;  %v10744_v6 = vpop.permute.xlu0 %10743 }
0x26b1   :  { %v16520_v53 = vpop.eup %16519  ;;  %v21714_v17 = vadd.f32 %v10744_v6, %v10623_v26  ;;  %10829 = vrot.lane.b32.xlu1 %v16518_v20, %s16744_s30 }
0x26b2   :  { %16529 = vtanh.f32 %v21712_v14  ;;  %10827 = vrot.lane.b32.xlu0 %v16520_v53, %s16744_s30 }
0x26b3   :  { %16531 = vtanh.f32 %v21714_v17  ;;  %v10750_v28 = vpop.permute.xlu1 %10749 }
0x26b4   :  { %v16522_v39 = vpop.eup %16521  ;;  %v21724_v12 = vadd.f32 %v10750_v28, %v10626_v16  ;;  %v10748_v60 = vpop.permute.xlu0 %10747 }
0x26b5   :  { %v16524_v43 = vpop.eup %16523  ;;  %v21726_v42 = vadd.f32 %v10748_v60, %v10625_v10  ;;  %10833 = vrot.lane.b32.xlu1 %v16522_v39, %s16744_s30 }
0x26b6   :  { %16533 = vtanh.f32 %v21724_v12  ;;  %10831 = vrot.lane.b32.xlu0 %v16524_v43, %s16744_s30 }
0x26b7   :  { %16535 = vtanh.f32 %v21726_v42  ;;  %v10754_v54 = vpop.permute.xlu1 %10753 }
0x26b8   :  { %v16526_v0 = vpop.eup %16525  ;;  %v21736_v45 = vadd.f32 %v10754_v54, %v10628_v1  ;;  %v10752_v4 = vpop.permute.xlu0 %10751 }
0x26b9   :  { %v16528_v2 = vpop.eup %16527  ;;  %v21738_v22 = vadd.f32 %v10752_v4, %v10627_v24  ;;  %10837 = vrot.lane.b32.xlu1 %v16526_v0, %s16744_s30 }
0x26ba   :  { %16537 = vtanh.f32 %v21736_v45  ;;  %10835 = vrot.lane.b32.xlu0 %v16528_v2, %s16744_s30 }
0x26bb   :  { %16539 = vtanh.f32 %v21738_v22  ;;  %v10758_v49 = vpop.permute.xlu1 %10757 }
0x26bc   :  { %v16530_v48 = vpop.eup %16529  ;;  %v21748_v50 = vadd.f32 %v10758_v49, %v10630_v13  ;;  %v10756_v3 = vpop.permute.xlu0 %10755 }
0x26bd   :  { %v16532_v33 = vpop.eup %16531  ;;  %v21750_v27 = vadd.f32 %v10756_v3, %v10629_v44  ;;  %10841 = vrot.lane.b32.xlu1 %v16530_v48, %s16744_s30 }
0x26be   :  { %16541 = vtanh.f32 %v21748_v50  ;;  %10839 = vrot.lane.b32.xlu0 %v16532_v33, %s16744_s30 }
0x26bf   :  { %16543 = vtanh.f32 %v21750_v27 }
0x26c0   :  { %v16534_v62 = vpop.eup %16533 }
0x26c1   :  { %v16536_v36 = vpop.eup %16535  ;;  %10845 = vrot.lane.b32.xlu1 %v16534_v62, %s16744_s30 }
0x26c2   :  { %10843 = vrot.lane.b32.xlu0 %v16536_v36, %s16744_s30 }
0x26c4   :  { %v16538_v29 = vpop.eup %16537 }
0x26c5   :  { %v16540_v23 = vpop.eup %16539  ;;  %10849 = vrot.lane.b32.xlu1 %v16538_v29, %s16744_s30 }
0x26c6   :  { %10847 = vrot.lane.b32.xlu0 %v16540_v23, %s16744_s30 }
0x26c8   :  { %v16542_v11 = vpop.eup %16541 }
0x26c9   :  { %v16544_v19 = vpop.eup %16543  ;;  %10853 = vrot.lane.b32.xlu1 %v16542_v11, %s16744_s30 }
0x26ca   :  { %10851 = vrot.lane.b32.xlu0 %v16544_v19, %s16744_s30 }
0x271f   :  { %v10826_v52 = vpop.permute.xlu1 %10825 }
0x2720   :  { %v10872_v31 = vmul.f32 %v10826_v52, %v21598_v18  ;;  %v10824_v26 = vpop.permute.xlu0 %10823 }
0x2721   :  { %v10871_v20 = vmul.f32 %v10824_v26, %v21600_v61 }
0x2722   :  { %10921 = vrot.lane.b32.xlu1 %v10872_v31, %s16745_s0  ;;  %v21816_v31 = vld [vmem:[%s22463_s6] ss:$0 sm:$0xff] }
0x2723   :  { %v10830_v6 = vpop.permute.xlu1 %10829  ;;  %10919 = vrot.lane.b32.xlu0 %v10871_v20, %s16745_s0 }
0x2724   :  { %v10874_v53 = vmul.f32 %v10830_v6, %v21607_v57  ;;  %v10828_v16 = vpop.permute.xlu0 %10827 }
0x2725   :  { %v10873_v28 = vmul.f32 %v10828_v16, %v21610_v46 }
0x2726   :  { %10925 = vrot.lane.b32.xlu1 %v10874_v53, %s16745_s0 }
0x2727   :  { %v10834_v10 = vpop.permute.xlu1 %10833  ;;  %10923 = vrot.lane.b32.xlu0 %v10873_v28, %s16745_s0 }
0x2728   :  { %v10876_v18 = vmul.f32 %v10834_v10, %v21617_v5  ;;  %v10832_v39 = vpop.permute.xlu0 %10831 }
0x2729   :  { %v10875_v61 = vmul.f32 %v10832_v39, %v21620_v15 }
0x272a   :  { %10929 = vrot.lane.b32.xlu1 %v10876_v18, %s16745_s0 }
0x272b   :  { %v10838_v60 = vpop.permute.xlu1 %10837  ;;  %10927 = vrot.lane.b32.xlu0 %v10875_v61, %s16745_s0 }
0x272c   :  { %v10878_v57 = vmul.f32 %v10838_v60, %v21625_v47  ;;  %v10836_v43 = vpop.permute.xlu0 %10835 }
0x272d   :  { %v10877_v46 = vmul.f32 %v10836_v43, %v21628_v38 }
0x272e   :  { %10933 = vrot.lane.b32.xlu1 %v10878_v57, %s16745_s0 }
0x272f   :  { %v10842_v1 = vpop.permute.xlu1 %10841  ;;  %10931 = vrot.lane.b32.xlu0 %v10877_v46, %s16745_s0 }
0x2730   :  { %v10880_v5 = vmul.f32 %v10842_v1, %v21633_v55  ;;  %v10840_v54 = vpop.permute.xlu0 %10839 }
0x2731   :  { %v10879_v15 = vmul.f32 %v10840_v54, %v21636_v59 }
0x2732   :  { %10937 = vrot.lane.b32.xlu1 %v10880_v5, %s16745_s0 }
0x2733   :  { %v10846_v24 = vpop.permute.xlu1 %10845  ;;  %10935 = vrot.lane.b32.xlu0 %v10879_v15, %s16745_s0 }
0x2734   :  { %v10882_v47 = vmul.f32 %v10846_v24, %v21641_v37  ;;  %v10844_v0 = vpop.permute.xlu0 %10843 }
0x2735   :  { %v10881_v38 = vmul.f32 %v10844_v0, %v21644_v32 }
0x2736   :  { %10941 = vrot.lane.b32.xlu1 %v10882_v47, %s16745_s0 }
0x2737   :  { %v10850_v4 = vpop.permute.xlu1 %10849  ;;  %10939 = vrot.lane.b32.xlu0 %v10881_v38, %s16745_s0 }
0x2738   :  { %v10884_v55 = vmul.f32 %v10850_v4, %v21649_v30  ;;  %v10848_v2 = vpop.permute.xlu0 %10847 }
0x2739   :  { %v10883_v59 = vmul.f32 %v10848_v2, %v21652_v25 }
0x273a   :  { %10945 = vrot.lane.b32.xlu1 %v10884_v55, %s16745_s0 }
0x273b   :  { %v10854_v13 = vpop.permute.xlu1 %10853  ;;  %10943 = vrot.lane.b32.xlu0 %v10883_v59, %s16745_s0 }
0x273c   :  { %v10886_v37 = vmul.f32 %v10854_v13, %v21657_v40  ;;  %v10852_v49 = vpop.permute.xlu0 %10851 }
0x273d   :  { %v10885_v32 = vmul.f32 %v10852_v49, %v21660_v58 }
0x273e   :  { %10949 = vrot.lane.b32.xlu1 %v10886_v37, %s16745_s0 }
0x273f   :  { %10947 = vrot.lane.b32.xlu0 %v10885_v32, %s16745_s0 }
0x2794   :  { %v10922_v44 = vpop.permute.xlu1 %10921 }
0x2795   :  { %v10920_v48 = vpop.permute.xlu0 %10919 }
0x2796   :  { %14396 = vmatprep.mubr.msk.f32.mxu1 %vm1267_vm1, %v10920_v48 }
0x2797   :  { %14397 = vmatmul.mubr.msk.f32.vlgmr.msra.gmra.mrb[104].mxu1 %vm1267_vm1, %v10922_v44 }
0x2798   :  { %v10926_v30 = vpop.permute.xlu1 %10925  ;;  %14671 = vmatpush3.bf16.msra.mxu1 %v19884_v51 }
0x2799   :  { %v10924_v25 = vpop.permute.xlu0 %10923  ;;  %14673 = vmatprep.subr.bf16.mxu1 %v19925_v8 }
0x279a   :  { %14399 = vmatprep.mubr.msk.f32.mxu1 %vm1267_vm1, %v10924_v25 }
0x279b   :  { %14400 = vmatmul.mubr.msk.f32.gmra.mrb[106].mxu1 %vm1267_vm1, %v10926_v30 }
0x279c   :  { %v10930_v40 = vpop.permute.xlu1 %10929  ;;  %14675 = vmatpush3.bf16.msra.mxu1 %v19925_v8 }
0x279d   :  { %v10928_v58 = vpop.permute.xlu0 %10927 }
0x279e   :  { %14402 = vmatprep.mubr.msk.f32.mxu1 %vm1267_vm1, %v10928_v58 }
0x279f   :  { %14403 = vmatmul.mubr.msk.f32.gmra.mrb[108].mxu1 %vm1267_vm1, %v10930_v40 }
0x27a0   :  { %v10934_v3 = vpop.permute.xlu1 %10933 }
0x27a1   :  { %v10932_v33 = vpop.permute.xlu0 %10931 }
0x27a2   :  { %14405 = vmatprep.mubr.msk.f32.mxu1 %vm1267_vm1, %v10932_v33 }
0x27a3   :  { %14406 = vmatmul.mubr.msk.f32.gmra.mrb[110].mxu1 %vm1267_vm1, %v10934_v3 }
0x27a4   :  { %v10938_v51 = vpop.permute.xlu1 %10937 }
0x27a5   :  { %v10936_v62 = vpop.permute.xlu0 %10935 }
0x27a6   :  { %14408 = vmatprep.mubr.msk.f32.mxu1 %vm1267_vm1, %v10936_v62 }
0x27a7   :  { %14409 = vmatmul.mubr.msk.f32.gmra.mrb[112].mxu1 %vm1267_vm1, %v10938_v51 }
0x27a8   :  { %v10942_v36 = vpop.permute.xlu1 %10941 }
0x27a9   :  { %v10940_v29 = vpop.permute.xlu0 %10939 }
0x27aa   :  { %14411 = vmatprep.mubr.msk.f32.mxu1 %vm1267_vm1, %v10940_v29 }
0x27ab   :  { %14412 = vmatmul.mubr.msk.f32.gmra.mrb[114].mxu1 %vm1267_vm1, %v10942_v36 }
0x27ac   :  { %v10946_v8 = vpop.permute.xlu1 %10945 }
0x27ad   :  { %v10944_v23 = vpop.permute.xlu0 %10943 }
0x27ae   :  { %14414 = vmatprep.mubr.msk.f32.mxu1 %vm1267_vm1, %v10944_v23 }
0x27af   :  { %14415 = vmatmul.mubr.msk.f32.gmra.mrb[116].mxu1 %vm1267_vm1, %v10946_v8 }
0x27b0   :  { %v10950_v19 = vpop.permute.xlu1 %10949 }
0x27b1   :  { %v10948_v11 = vpop.permute.xlu0 %10947 }
0x27b2   :  { %14417 = vmatprep.mubr.msk.f32.mxu1 %vm1267_vm1, %v10948_v11 }
0x27b3   :  { %14418 = vmatmul.mubr.msk.f32.gmra.mrb[118].mxu1 %vm1267_vm1, %v10950_v19 }
0x286a   :  { %v14398_v52 = vpop.f32.mrb[104].mxu1 }
0x286b   :  { %v21819_v26 = vadd.f32 %v21816_v31, %v14398_v52  ;;  %v11049_v20 = vpop.f32.mrb[105].mxu1 }
0x286c   :  { %v21822_v6 = vadd.f32 %v21816_v31, %v11049_v20 }
0x286d   :  { %16545 = vtanh.f32 %v21819_v26  ;;  %v11145_v20 = vmul.f32 0.5, %v21819_v26 }
0x286e   :  { %16547 = vtanh.f32 %v21822_v6  ;;  %v14401_v53 = vpop.f32.mrb[106].mxu1 }
0x286f   :  { %v21827_v16 = vadd.f32 %v21816_v31, %v14401_v53  ;;  %v11059_v28 = vpop.f32.mrb[107].mxu1  ;;  %v11144_v53 = vmul.f32 0.5, %v21822_v6 }
0x2870   :  { %v21830_v10 = vadd.f32 %v21816_v31, %v11059_v28 }
0x2871   :  { %16549 = vtanh.f32 %v21827_v16  ;;  %v11147_v28 = vmul.f32 0.5, %v21827_v16 }
0x2872   :  { %16551 = vtanh.f32 %v21830_v10  ;;  %v14404_v18 = vpop.f32.mrb[108].mxu1 }
0x2873   :  { %v21835_v39 = vadd.f32 %v21816_v31, %v14404_v18  ;;  %v11069_v61 = vpop.f32.mrb[109].mxu1  ;;  %v11146_v18 = vmul.f32 0.5, %v21830_v10 }
0x2874   :  { %v21838_v60 = vadd.f32 %v21816_v31, %v11069_v61 }
0x2875   :  { %16553 = vtanh.f32 %v21835_v39  ;;  %v11149_v61 = vmul.f32 0.5, %v21835_v39 }
0x2876   :  { %16555 = vtanh.f32 %v21838_v60  ;;  %v14407_v57 = vpop.f32.mrb[110].mxu1 }
0x2877   :  { %v16546_v43 = vpop.eup %16545  ;;  %v21843_v46 = vadd.f32 %v21816_v31, %v14407_v57  ;;  %v11079_v1 = vpop.f32.mrb[111].mxu1  ;;  %v11148_v57 = vmul.f32 0.5, %v21838_v60 }
0x2878   :  { %v16548_v5 = vpop.eup %16547  ;;  %v21846_v54 = vadd.f32 %v21816_v31, %v11079_v1  ;;  %11258 = vrot.lane.b32.xlu1 %v16546_v43, %s16744_s30 }
0x2879   :  { %16557 = vtanh.f32 %v21843_v46  ;;  %11256 = vrot.lane.b32.xlu0 %v16548_v5, %s16744_s30  ;;  %v11151_v43 = vmul.f32 0.5, %v21843_v46 }
0x287a   :  { %16559 = vtanh.f32 %v21846_v54  ;;  %v14410_v15 = vpop.f32.mrb[112].mxu1  ;;  %v11150_v26 = vmul.f32 0.5, %v21846_v54 }
0x287b   :  { %v16550_v24 = vpop.eup %16549  ;;  %v21853_v47 = vadd.f32 %v21816_v31, %v14410_v15  ;;  %v11089_v0 = vpop.f32.mrb[113].mxu1 }
0x287c   :  { %v16552_v38 = vpop.eup %16551  ;;  %v21856_v4 = vadd.f32 %v21816_v31, %v11089_v0  ;;  %11262 = vrot.lane.b32.xlu1 %v16550_v24, %s16744_s30 }
0x287d   :  { %16561 = vtanh.f32 %v21853_v47  ;;  %11260 = vrot.lane.b32.xlu0 %v16552_v38, %s16744_s30  ;;  %v11153_v16 = vmul.f32 0.5, %v21853_v47 }
0x287e   :  { %16563 = vtanh.f32 %v21856_v4  ;;  %v14413_v55 = vpop.f32.mrb[114].mxu1  ;;  %v11152_v10 = vmul.f32 0.5, %v21856_v4 }
0x287f   :  { %v16554_v2 = vpop.eup %16553  ;;  %v21863_v59 = vadd.f32 %v21816_v31, %v14413_v55  ;;  %v11099_v13 = vpop.f32.mrb[115].mxu1 }
0x2880   :  { %v16556_v37 = vpop.eup %16555  ;;  %v21866_v49 = vadd.f32 %v21816_v31, %v11099_v13  ;;  %11266 = vrot.lane.b32.xlu1 %v16554_v2, %s16744_s30 }
0x2881   :  { %16565 = vtanh.f32 %v21863_v59  ;;  %11264 = vrot.lane.b32.xlu0 %v16556_v37, %s16744_s30  ;;  %v11155_v60 = vmul.f32 0.5, %v21863_v59 }
0x2882   :  { %16567 = vtanh.f32 %v21866_v49  ;;  %v14416_v32 = vpop.f32.mrb[116].mxu1  ;;  %v11154_v46 = vmul.f32 0.5, %v21866_v49 }
0x2883   :  { %v16558_v44 = vpop.eup %16557  ;;  %v21873_v48 = vadd.f32 %v21816_v31, %v14416_v32  ;;  %v11109_v30 = vpop.f32.mrb[117].mxu1 }
0x2884   :  { %v16560_v25 = vpop.eup %16559  ;;  %v21876_v40 = vadd.f32 %v21816_v31, %v11109_v30  ;;  %11270 = vrot.lane.b32.xlu1 %v16558_v44, %s16744_s30 }
0x2885   :  { %16569 = vtanh.f32 %v21873_v48  ;;  %11268 = vrot.lane.b32.xlu0 %v16560_v25, %s16744_s30  ;;  %v11157_v32 = vmul.f32 0.5, %v21873_v48 }
0x2886   :  { %16571 = vtanh.f32 %v21876_v40  ;;  %v14419_v58 = vpop.f32.mrb[118].mxu1  ;;  %v11156_v49 = vmul.f32 0.5, %v21876_v40 }
0x2887   :  { %v16562_v3 = vpop.eup %16561  ;;  %v21883_v33 = vadd.f32 %v21816_v31, %v14419_v58  ;;  %v11119_v51 = vpop.f32.mrb[119].mxu1 }
0x2888   :  { %v16564_v62 = vpop.eup %16563  ;;  %v21886_v36 = vadd.f32 %v21816_v31, %v11119_v51  ;;  %11274 = vrot.lane.b32.xlu1 %v16562_v3, %s16744_s30 }
0x2889   :  { %16573 = vtanh.f32 %v21883_v33  ;;  %11272 = vrot.lane.b32.xlu0 %v16564_v62, %s16744_s30 }
0x288a   :  { %16575 = vtanh.f32 %v21886_v36 }
0x288b   :  { %v16566_v29 = vpop.eup %16565  ;;  %16577 = vtanh.f32 %v11145_v20 }
0x288c   :  { %v16568_v8 = vpop.eup %16567  ;;  %11278 = vrot.lane.b32.xlu1 %v16566_v29, %s16744_s30  ;;  %16579 = vtanh.f32 %v11144_v53 }
0x288d   :  { %11276 = vrot.lane.b32.xlu0 %v16568_v8, %s16744_s30  ;;  %16581 = vtanh.f32 %v11147_v28  ;;  %v11159_v8 = vmul.f32 0.5, %v21883_v33 }
0x288e   :  { %16583 = vtanh.f32 %v11146_v18 }
0x288f   :  { %v16570_v23 = vpop.eup %16569  ;;  %16585 = vtanh.f32 %v11149_v61 }
0x2890   :  { %v16572_v11 = vpop.eup %16571  ;;  %11282 = vrot.lane.b32.xlu1 %v16570_v23, %s16744_s30  ;;  %16587 = vtanh.f32 %v11148_v57 }
0x2891   :  { %11280 = vrot.lane.b32.xlu0 %v16572_v11, %s16744_s30  ;;  %16589 = vtanh.f32 %v11151_v43  ;;  %v11158_v11 = vmul.f32 0.5, %v21886_v36 }
0x2892   :  { %16591 = vtanh.f32 %v11150_v26 }
0x2893   :  { %v16574_v19 = vpop.eup %16573  ;;  %16593 = vtanh.f32 %v11153_v16 }
0x2894   :  { %v16576_v52 = vpop.eup %16575  ;;  %11286 = vrot.lane.b32.xlu1 %v16574_v19, %s16744_s30  ;;  %16595 = vtanh.f32 %v11152_v10 }
0x2895   :  { %11284 = vrot.lane.b32.xlu0 %v16576_v52, %s16744_s30  ;;  %v16578_v1 = vpop.eup %16577  ;;  %16597 = vtanh.f32 %v11155_v60 }
0x2896   :  { %v16580_v6 = vpop.eup %16579  ;;  %v11177_v5 = vmul.f32 0.5, %v16578_v1  ;;  %16599 = vtanh.f32 %v11154_v46 }
0x2897   :  { %v16582_v15 = vpop.eup %16581  ;;  %v11176_v39 = vmul.f32 0.5, %v16580_v6  ;;  %16601 = vtanh.f32 %v11157_v32 }
0x2898   :  { %v16584_v24 = vpop.eup %16583  ;;  %v11179_v0 = vmul.f32 0.5, %v16582_v15  ;;  %v21910_v54 = vadd.f32 0.5, %v11177_v5  ;;  %16603 = vtanh.f32 %v11156_v49 }
0x2899   :  { %v16586_v38 = vpop.eup %16585  ;;  %v11178_v55 = vmul.f32 0.5, %v16584_v24  ;;  %v21912_v47 = vadd.f32 0.5, %v11176_v39  ;;  %16605 = vtanh.f32 %v11159_v8 }
0x289a   :  { %v16588_v13 = vpop.eup %16587  ;;  %v11181_v44 = vmul.f32 0.5, %v16586_v38  ;;  %v21919_v30 = vadd.f32 0.5, %v11179_v0  ;;  %16607 = vtanh.f32 %v11158_v11 }
0x289b   :  { %v16590_v25 = vpop.eup %16589  ;;  %v11180_v58 = vmul.f32 0.5, %v16588_v13  ;;  %v21922_v51 = vadd.f32 0.5, %v11178_v55 }
0x289c   :  { %v16592_v62 = vpop.eup %16591  ;;  %v11183_v23 = vmul.f32 0.5, %v16590_v25  ;;  %v21929_v19 = vadd.f32 0.5, %v11181_v44 }
0x289d   :  { %v16594_v52 = vpop.eup %16593  ;;  %v11182_v20 = vmul.f32 0.5, %v16592_v62  ;;  %v21932_v28 = vadd.f32 0.5, %v11180_v58 }
0x289e   :  { %v16596_v18 = vpop.eup %16595  ;;  %v11185_v43 = vmul.f32 0.5, %v16594_v52  ;;  %v21937_v36 = vadd.f32 0.5, %v11183_v23 }
0x289f   :  { %v16598_v26 = vpop.eup %16597  ;;  %v11184_v1 = vmul.f32 0.5, %v16596_v18  ;;  %v21940_v16 = vadd.f32 0.5, %v11182_v20 }
0x28a0   :  { %v16600_v5 = vpop.eup %16599  ;;  %v11187_v24 = vmul.f32 0.5, %v16598_v26  ;;  %v21945_v60 = vadd.f32 0.5, %v11185_v43 }
0x28a1   :  { %v16602_v0 = vpop.eup %16601  ;;  %v11186_v46 = vmul.f32 0.5, %v16600_v5  ;;  %v21948_v55 = vadd.f32 0.5, %v11184_v1 }
0x28a2   :  { %v11189_v32 = vmul.f32 0.5, %v16602_v0  ;;  %v11227_v0 = vmul.f32 %v21919_v30, %v21680_v63  ;;  %v11228_v63 = vmul.f32 %v21932_v28, %v21692_v41 }
0x28a3   :  { %v21956_v58 = vadd.f32 0.5, %v11186_v46 }
0x28ea   :  { %v11259_v2 = vpop.permute.xlu1 %11258 }
0x28eb   :  { %v11305_v4 = vmul.f32 %v11259_v2, %v21910_v54  ;;  %v11257_v37 = vpop.permute.xlu0 %11256  ;;  %v16604_v2 = vpop.eup %16603 }
0x28ec   :  { %v11304_v59 = vmul.f32 %v11257_v37, %v21912_v47  ;;  %v16606_v44 = vpop.eup %16605  ;;  %v11188_v49 = vmul.f32 0.5, %v16604_v2 }
0x28ed   :  { %11338 = vrot.lane.b32.xlu1 %v11305_v4, %s16744_s30  ;;  %v11191_v8 = vmul.f32 0.5, %v16606_v44  ;;  %v11231_v44 = vmul.f32 %v21937_v36, %v21700_v7  ;;  %v11233_v7 = vmul.f32 %v21945_v60, %v21712_v14 }
0x28ee   :  { %v11263_v3 = vpop.permute.xlu1 %11262  ;;  %11336 = vrot.lane.b32.xlu0 %v11304_v59, %s16744_s30  ;;  %v21953_v59 = vadd.f32 0.5, %v11187_v24  ;;  %v21964_v52 = vadd.f32 0.5, %v11188_v49 }
0x28ef   :  { %v11307_v48 = vmul.f32 %v11263_v3, %v21919_v30  ;;  %v11261_v29 = vpop.permute.xlu0 %11260  ;;  %v16608_v3 = vpop.eup %16607 }
0x28f0   :  { %v11306_v40 = vmul.f32 %v11261_v29, %v21922_v51  ;;  %v11190_v23 = vmul.f32 0.5, %v16608_v3  ;;  %v11235_v14 = vmul.f32 %v21953_v59, %v21724_v12 }
0x28f1   :  { %11342 = vrot.lane.b32.xlu1 %v11307_v48, %s16744_s30 }
0x28f2   :  { %v11267_v53 = vpop.permute.xlu1 %11266  ;;  %11340 = vrot.lane.b32.xlu0 %v11306_v40, %s16744_s30  ;;  %v21961_v40 = vadd.f32 0.5, %v11189_v32 }
0x28f3   :  { %v11309_v33 = vmul.f32 %v11267_v53, %v21929_v19  ;;  %v11265_v61 = vpop.permute.xlu0 %11264 }
0x28f4   :  { %v11308_v57 = vmul.f32 %v11265_v61, %v21932_v28  ;;  %v11237_v12 = vmul.f32 %v21961_v40, %v21736_v45 }
0x28f5   :  { %11346 = vrot.lane.b32.xlu1 %v11309_v33, %s16744_s30  ;;  %v21969_v33 = vadd.f32 0.5, %v11191_v8 }
0x28f6   :  { %v11271_v6 = vpop.permute.xlu1 %11270  ;;  %11344 = vrot.lane.b32.xlu0 %v11308_v57, %s16744_s30  ;;  %v21972_v57 = vadd.f32 0.5, %v11190_v23 }
0x28f7   :  { %v11311_v10 = vmul.f32 %v11271_v6, %v21937_v36  ;;  %v11269_v15 = vpop.permute.xlu0 %11268  ;;  %v11225_v6 = vmul.f32 %v21910_v54, %v21670_v56  ;;  %v11226_v56 = vmul.f32 %v21922_v51, %v21682_v21  ;;  %v11239_v45 = vmul.f32 %v21969_v33, %v21748_v50 }
0x28f8   :  { %v11310_v39 = vmul.f32 %v11269_v15, %v21940_v16 }
0x28f9   :  { %11350 = vrot.lane.b32.xlu1 %v11311_v10, %s16744_s30  ;;  %v11224_v10 = vmul.f32 %v21912_v47, %v21672_v9 }
0x28fa   :  { %v11275_v38 = vpop.permute.xlu1 %11274  ;;  %11348 = vrot.lane.b32.xlu0 %v11310_v39, %s16744_s30 }
0x28fb   :  { %v11313_v13 = vmul.f32 %v11275_v38, %v21945_v60  ;;  %v11273_v4 = vpop.permute.xlu0 %11272 }
0x28fc   :  { %v11312_v37 = vmul.f32 %v11273_v4, %v21948_v55 }
0x28fd   :  { %11354 = vrot.lane.b32.xlu1 %v11313_v13, %s16744_s30  ;;  %v11229_v13 = vmul.f32 %v21929_v19, %v21690_v35  ;;  %v11230_v35 = vmul.f32 %v21940_v16, %v21702_v34  ;;  %v11232_v34 = vmul.f32 %v21948_v55, %v21714_v17  ;;  %v11234_v17 = vmul.f32 %v21956_v58, %v21726_v42 }
0x28fe   :  { %v11279_v25 = vpop.permute.xlu1 %11278  ;;  %11352 = vrot.lane.b32.xlu0 %v11312_v37, %s16744_s30  ;;  %v11236_v42 = vmul.f32 %v21964_v52, %v21738_v22  ;;  %v11238_v22 = vmul.f32 %v21972_v57, %v21750_v27 }
0x28ff   :  { %v11315_v62 = vmul.f32 %v11279_v25, %v21953_v59  ;;  %v11277_v48 = vpop.permute.xlu0 %11276 }
0x2900   :  { %v11314_v29 = vmul.f32 %v11277_v48, %v21956_v58 }
0x2901   :  { %11358 = vrot.lane.b32.xlu1 %v11315_v62, %s16744_s30 }
0x2902   :  { %v11283_v11 = vpop.permute.xlu1 %11282  ;;  %11356 = vrot.lane.b32.xlu0 %v11314_v29, %s16744_s30 }
0x2903   :  { %v11317_v20 = vmul.f32 %v11283_v11, %v21961_v40  ;;  %v11281_v53 = vpop.permute.xlu0 %11280 }
0x2904   :  { %v11316_v18 = vmul.f32 %v11281_v53, %v21964_v52 }
0x2905   :  { %11362 = vrot.lane.b32.xlu1 %v11317_v20, %s16744_s30 }
0x2906   :  { %v11287_v61 = vpop.permute.xlu1 %11286  ;;  %11360 = vrot.lane.b32.xlu0 %v11316_v18, %s16744_s30 }
0x2907   :  { %v11319_v43 = vmul.f32 %v11287_v61, %v21969_v33  ;;  %v11285_v26 = vpop.permute.xlu0 %11284 }
0x2908   :  { %v11318_v1 = vmul.f32 %v11285_v26, %v21972_v57 }
0x2909   :  { %11366 = vrot.lane.b32.xlu1 %v11319_v43, %s16744_s30 }
0x290a   :  { %11364 = vrot.lane.b32.xlu0 %v11318_v1, %s16744_s30 }
0x295f   :  { %v11339_v5 = vpop.permute.xlu1 %11338 }
0x2960   :  { %v21982_v15 = vadd.f32 %v11339_v5, %v11225_v6  ;;  %v11337_v39 = vpop.permute.xlu0 %11336 }
0x2961   :  { %v21984_v24 = vadd.f32 %v11337_v39, %v11224_v10 }
0x2962   :  { %16609 = vtanh.f32 %v21982_v15 }
0x2963   :  { %16611 = vtanh.f32 %v21984_v24  ;;  %v11343_v46 = vpop.permute.xlu1 %11342 }
0x2964   :  { %v21992_v38 = vadd.f32 %v11343_v46, %v11227_v0  ;;  %v11341_v2 = vpop.permute.xlu0 %11340 }
0x2965   :  { %v21994_v9 = vadd.f32 %v11341_v2, %v11226_v56 }
0x2966   :  { %16613 = vtanh.f32 %v21992_v38 }
0x2967   :  { %16615 = vtanh.f32 %v21994_v9  ;;  %v11347_v4 = vpop.permute.xlu1 %11346 }
0x2968   :  { %v22002_v37 = vadd.f32 %v11347_v4, %v11229_v13  ;;  %v11345_v32 = vpop.permute.xlu0 %11344 }
0x2969   :  { %v22004_v21 = vadd.f32 %v11345_v32, %v11228_v63 }
0x296a   :  { %16617 = vtanh.f32 %v22002_v37 }
0x296b   :  { %16619 = vtanh.f32 %v22004_v21  ;;  %v11351_v49 = vpop.permute.xlu1 %11350 }
0x296c   :  { %v16610_v25 = vpop.eup %16609  ;;  %v22012_v3 = vadd.f32 %v11351_v49, %v11231_v44  ;;  %v11349_v41 = vpop.permute.xlu0 %11348 }
0x296d   :  { %v16612_v62 = vpop.eup %16611  ;;  %v22014_v48 = vadd.f32 %v11349_v41, %v11230_v35  ;;  %11434 = vrot.lane.b32.xlu1 %v16610_v25, %s16744_s30 }
0x296e   :  { %16621 = vtanh.f32 %v22012_v3  ;;  %11432 = vrot.lane.b32.xlu0 %v16612_v62, %s16744_s30 }
0x296f   :  { %16623 = vtanh.f32 %v22014_v48  ;;  %v11355_v29 = vpop.permute.xlu1 %11354 }
0x2970   :  { %v16614_v8 = vpop.eup %16613  ;;  %v22024_v23 = vadd.f32 %v11355_v29, %v11233_v7  ;;  %v11353_v11 = vpop.permute.xlu0 %11352 }
0x2971   :  { %v16616_v20 = vpop.eup %16615  ;;  %v22026_v53 = vadd.f32 %v11353_v11, %v11232_v34  ;;  %11438 = vrot.lane.b32.xlu1 %v16614_v8, %s16744_s30 }
0x2972   :  { %16625 = vtanh.f32 %v22024_v23  ;;  %11436 = vrot.lane.b32.xlu0 %v16616_v20, %s16744_s30 }
0x2973   :  { %16627 = vtanh.f32 %v22026_v53  ;;  %v11359_v18 = vpop.permute.xlu1 %11358 }
0x2974   :  { %v16618_v61 = vpop.eup %16617  ;;  %v22036_v43 = vadd.f32 %v11359_v18, %v11235_v14  ;;  %v11357_v26 = vpop.permute.xlu0 %11356 }
0x2975   :  { %v16620_v1 = vpop.eup %16619  ;;  %v22038_v6 = vadd.f32 %v11357_v26, %v11234_v17  ;;  %11442 = vrot.lane.b32.xlu1 %v16618_v61, %s16744_s30 }
0x2976   :  { %16629 = vtanh.f32 %v22036_v43  ;;  %11440 = vrot.lane.b32.xlu0 %v16620_v1, %s16744_s30 }
0x2977   :  { %16631 = vtanh.f32 %v22038_v6  ;;  %v11363_v5 = vpop.permute.xlu1 %11362 }
0x2978   :  { %v16622_v10 = vpop.eup %16621  ;;  %v22048_v39 = vadd.f32 %v11363_v5, %v11237_v12  ;;  %v11361_v0 = vpop.permute.xlu0 %11360 }
0x2979   :  { %v16624_v46 = vpop.eup %16623  ;;  %v22050_v56 = vadd.f32 %v11361_v0, %v11236_v42  ;;  %11446 = vrot.lane.b32.xlu1 %v16622_v10, %s16744_s30 }
0x297a   :  { %16633 = vtanh.f32 %v22048_v39  ;;  %11444 = vrot.lane.b32.xlu0 %v16624_v46, %s16744_s30 }
0x297b   :  { %16635 = vtanh.f32 %v22050_v56  ;;  %v11367_v2 = vpop.permute.xlu1 %11366 }
0x297c   :  { %v16626_v13 = vpop.eup %16625  ;;  %v22060_v4 = vadd.f32 %v11367_v2, %v11239_v45  ;;  %v11365_v63 = vpop.permute.xlu0 %11364 }
0x297d   :  { %v16628_v32 = vpop.eup %16627  ;;  %v22062_v44 = vadd.f32 %v11365_v63, %v11238_v22  ;;  %11450 = vrot.lane.b32.xlu1 %v16626_v13, %s16744_s30 }
0x297e   :  { %16637 = vtanh.f32 %v22060_v4  ;;  %11448 = vrot.lane.b32.xlu0 %v16628_v32, %s16744_s30 }
0x297f   :  { %16639 = vtanh.f32 %v22062_v44 }
0x2980   :  { %v16630_v50 = vpop.eup %16629 }
0x2981   :  { %v16632_v49 = vpop.eup %16631  ;;  %11454 = vrot.lane.b32.xlu1 %v16630_v50, %s16744_s30 }
0x2982   :  { %11452 = vrot.lane.b32.xlu0 %v16632_v49, %s16744_s30 }
0x2984   :  { %v16634_v27 = vpop.eup %16633 }
0x2985   :  { %v16636_v35 = vpop.eup %16635  ;;  %11458 = vrot.lane.b32.xlu1 %v16634_v27, %s16744_s30 }
0x2986   :  { %11456 = vrot.lane.b32.xlu0 %v16636_v35, %s16744_s30 }
0x2988   :  { %v16638_v25 = vpop.eup %16637 }
0x2989   :  { %v16640_v41 = vpop.eup %16639  ;;  %11462 = vrot.lane.b32.xlu1 %v16638_v25, %s16744_s30 }
0x298a   :  { %11460 = vrot.lane.b32.xlu0 %v16640_v41, %s16744_s30 }
0x29df   :  { %v11435_v62 = vpop.permute.xlu1 %11434 }
0x29e0   :  { %v11481_v7 = vmul.f32 %v11435_v62, %v21910_v54  ;;  %v11433_v29 = vpop.permute.xlu0 %11432 }
0x29e1   :  { %v11480_v34 = vmul.f32 %v11433_v29, %v21912_v47 }
0x29e2   :  { %11530 = vrot.lane.b32.xlu1 %v11481_v7, %s16745_s0 }
0x29e3   :  { %v11439_v8 = vpop.permute.xlu1 %11438  ;;  %11528 = vrot.lane.b32.xlu0 %v11480_v34, %s16745_s0 }
0x29e4   :  { %v11483_v11 = vmul.f32 %v11439_v8, %v21919_v30  ;;  %v11437_v20 = vpop.permute.xlu0 %11436 }
0x29e5   :  { %v11482_v14 = vmul.f32 %v11437_v20, %v21922_v51 }
0x29e6   :  { %11534 = vrot.lane.b32.xlu1 %v11483_v11, %s16745_s0 }
0x29e7   :  { %v11443_v18 = vpop.permute.xlu1 %11442  ;;  %11532 = vrot.lane.b32.xlu0 %v11482_v14, %s16745_s0 }
0x29e8   :  { %v11485_v54 = vmul.f32 %v11443_v18, %v21929_v19  ;;  %v11441_v17 = vpop.permute.xlu0 %11440 }
0x29e9   :  { %v11484_v47 = vmul.f32 %v11441_v17, %v21932_v28 }
0x29ea   :  { %11538 = vrot.lane.b32.xlu1 %v11485_v54, %s16745_s0 }
0x29eb   :  { %v11447_v61 = vpop.permute.xlu1 %11446  ;;  %11536 = vrot.lane.b32.xlu0 %v11484_v47, %s16745_s0 }
0x29ec   :  { %v11487_v30 = vmul.f32 %v11447_v61, %v21937_v36  ;;  %v11445_v26 = vpop.permute.xlu0 %11444 }
0x29ed   :  { %v11486_v51 = vmul.f32 %v11445_v26, %v21940_v16 }
0x29ee   :  { %11542 = vrot.lane.b32.xlu1 %v11487_v30, %s16745_s0 }
0x29ef   :  { %v11451_v1 = vpop.permute.xlu1 %11450  ;;  %11540 = vrot.lane.b32.xlu0 %v11486_v51, %s16745_s0 }
0x29f0   :  { %v11489_v19 = vmul.f32 %v11451_v1, %v21945_v60  ;;  %v11449_v12 = vpop.permute.xlu0 %11448 }
0x29f1   :  { %v11488_v28 = vmul.f32 %v11449_v12, %v21948_v55 }
0x29f2   :  { %11546 = vrot.lane.b32.xlu1 %v11489_v19, %s16745_s0 }
0x29f3   :  { %v11455_v5 = vpop.permute.xlu1 %11454  ;;  %11544 = vrot.lane.b32.xlu0 %v11488_v28, %s16745_s0 }
0x29f4   :  { %v11491_v36 = vmul.f32 %v11455_v5, %v21953_v59  ;;  %v11453_v42 = vpop.permute.xlu0 %11452 }
0x29f5   :  { %v11490_v16 = vmul.f32 %v11453_v42, %v21956_v58 }
0x29f6   :  { %11550 = vrot.lane.b32.xlu1 %v11491_v36, %s16745_s0 }
0x29f7   :  { %v11459_v10 = vpop.permute.xlu1 %11458  ;;  %11548 = vrot.lane.b32.xlu0 %v11490_v16, %s16745_s0 }
0x29f8   :  { %v11493_v60 = vmul.f32 %v11459_v10, %v21961_v40  ;;  %v11457_v0 = vpop.permute.xlu0 %11456 }
0x29f9   :  { %v11492_v55 = vmul.f32 %v11457_v0, %v21964_v52 }
0x29fa   :  { %11554 = vrot.lane.b32.xlu1 %v11493_v60, %s16745_s0 }
0x29fb   :  { %v11463_v46 = vpop.permute.xlu1 %11462  ;;  %11552 = vrot.lane.b32.xlu0 %v11492_v55, %s16745_s0 }
0x29fc   :  { %v11495_v59 = vmul.f32 %v11463_v46, %v21969_v33  ;;  %v11461_v45 = vpop.permute.xlu0 %11460 }
0x29fd   :  { %v11494_v58 = vmul.f32 %v11461_v45, %v21972_v57 }
0x29fe   :  { %11558 = vrot.lane.b32.xlu1 %v11495_v59, %s16745_s0 }
0x29ff   :  { %11556 = vrot.lane.b32.xlu0 %v11494_v58, %s16745_s0 }
0x2a54   :  { %v11531_v2 = vpop.permute.xlu1 %11530 }
0x2a55   :  { %v11529_v22 = vpop.permute.xlu0 %11528 }
0x2a56   :  { %14428 = vmatprep.mubr.msk.f32.mxu1 %vm1267_vm1, %v11529_v22 }
0x2a57   :  { %14429 = vmatmul.mubr.msk.f32.vlgmr.msra.gmra.mrb[120].mxu1 %vm1267_vm1, %v11531_v2 }
0x2a58   :  { %v11535_v40 = vpop.permute.xlu1 %11534 }
0x2a59   :  { %v11533_v52 = vpop.permute.xlu0 %11532 }
0x2a5a   :  { %14431 = vmatprep.mubr.msk.f32.mxu1 %vm1267_vm1, %v11533_v52 }
0x2a5b   :  { %14432 = vmatmul.mubr.msk.f32.gmra.mrb[122].mxu1 %vm1267_vm1, %v11535_v40 }
0x2a5c   :  { %v11539_v33 = vpop.permute.xlu1 %11538 }
0x2a5d   :  { %v11537_v13 = vpop.permute.xlu0 %11536 }
0x2a5e   :  { %14434 = vmatprep.mubr.msk.f32.mxu1 %vm1267_vm1, %v11537_v13 }
0x2a5f   :  { %14435 = vmatmul.mubr.msk.f32.gmra.mrb[124].mxu1 %vm1267_vm1, %v11539_v33 }
0x2a60   :  { %v11543_v57 = vpop.permute.xlu1 %11542 }
0x2a61   :  { %v11541_v63 = vpop.permute.xlu0 %11540 }
0x2a62   :  { %14437 = vmatprep.mubr.msk.f32.mxu1 %vm1267_vm1, %v11541_v63 }
0x2a63   :  { %14438 = vmatmul.mubr.msk.f32.gmra.mrb[126].mxu1 %vm1267_vm1, %v11543_v57 }
0x2a64   :  { %v11547_v32 = vpop.permute.xlu1 %11546 }
0x2a65   :  { %v11545_v50 = vpop.permute.xlu0 %11544 }
0x2a66   :  { %14440 = vmatprep.mubr.msk.f32.mxu1 %vm1267_vm1, %v11545_v50 }
0x2a67   :  { %14441 = vmatmul.mubr.msk.f32.gmra.mrb[128].mxu1 %vm1267_vm1, %v11547_v32 }
0x2a68   :  { %v11551_v49 = vpop.permute.xlu1 %11550 }
0x2a69   :  { %v11549_v27 = vpop.permute.xlu0 %11548 }
0x2a6a   :  { %14443 = vmatprep.mubr.msk.f32.mxu1 %vm1267_vm1, %v11549_v27 }
0x2a6b   :  { %14444 = vmatmul.mubr.msk.f32.gmra.mrb[130].mxu1 %vm1267_vm1, %v11551_v49 }
0x2a6c   :  { %v11555_v35 = vpop.permute.xlu1 %11554 }
0x2a6d   :  { %v11553_v25 = vpop.permute.xlu0 %11552 }
0x2a6e   :  { %14446 = vmatprep.mubr.msk.f32.mxu1 %vm1267_vm1, %v11553_v25 }
0x2a6f   :  { %14447 = vmatmul.mubr.msk.f32.gmra.mrb[132].mxu1 %vm1267_vm1, %v11555_v35 }
0x2a70   :  { %v11559_v62 = vpop.permute.xlu1 %11558 }
0x2a71   :  { %v11557_v41 = vpop.permute.xlu0 %11556 }
0x2a72   :  { %14449 = vmatprep.mubr.msk.f32.mxu1 %vm1267_vm1, %v11557_v41 }
0x2a73   :  { %14450 = vmatmul.mubr.msk.f32.gmra.mrb[134].mxu1 %vm1267_vm1, %v11559_v62 }
0x2b2a   :  { %v14430_v7 = vpop.f32.mrb[120].mxu1 }
0x2b2b   :  { %v22123_v29 = vadd.f32 %v21816_v31, %v14430_v7  ;;  %v11658_v34 = vpop.f32.mrb[121].mxu1 }
0x2b2c   :  { %v22126_v8 = vadd.f32 %v21816_v31, %v11658_v34 }
0x2b2d   :  { %16641 = vtanh.f32 %v22123_v29  ;;  %v11754_v7 = vmul.f32 0.5, %v22123_v29 }
0x2b2e   :  { %16643 = vtanh.f32 %v22126_v8  ;;  %v14433_v11 = vpop.f32.mrb[122].mxu1  ;;  %v11753_v34 = vmul.f32 0.5, %v22126_v8 }
0x2b2f   :  { %v22131_v20 = vadd.f32 %v21816_v31, %v14433_v11  ;;  %v11668_v14 = vpop.f32.mrb[123].mxu1 }
0x2b30   :  { %v22134_v18 = vadd.f32 %v21816_v31, %v11668_v14 }
0x2b31   :  { %16645 = vtanh.f32 %v22131_v20  ;;  %v11756_v11 = vmul.f32 0.5, %v22131_v20 }
0x2b32   :  { %16647 = vtanh.f32 %v22134_v18  ;;  %v14436_v54 = vpop.f32.mrb[124].mxu1  ;;  %v11755_v14 = vmul.f32 0.5, %v22134_v18 }
0x2b33   :  { %v22139_v17 = vadd.f32 %v21816_v31, %v14436_v54  ;;  %v11678_v47 = vpop.f32.mrb[125].mxu1 }
0x2b34   :  { %v22142_v61 = vadd.f32 %v21816_v31, %v11678_v47 }
0x2b35   :  { %16649 = vtanh.f32 %v22139_v17  ;;  %v11758_v54 = vmul.f32 0.5, %v22139_v17 }
0x2b36   :  { %16651 = vtanh.f32 %v22142_v61  ;;  %v14439_v30 = vpop.f32.mrb[126].mxu1  ;;  %v11757_v47 = vmul.f32 0.5, %v22142_v61 }
0x2b37   :  { %v16642_v26 = vpop.eup %16641  ;;  %v22147_v51 = vadd.f32 %v21816_v31, %v14439_v30  ;;  %v11688_v1 = vpop.f32.mrb[127].mxu1 }
0x2b38   :  { %v16644_v19 = vpop.eup %16643  ;;  %v22150_v12 = vadd.f32 %v21816_v31, %v11688_v1  ;;  %11867 = vrot.lane.b32.xlu1 %v16642_v26, %s16744_s30 }
0x2b39   :  { %16653 = vtanh.f32 %v22147_v51  ;;  %11865 = vrot.lane.b32.xlu0 %v16644_v19, %s16744_s30  ;;  %v11760_v30 = vmul.f32 0.5, %v22147_v51 }
0x2b3a   :  { %16655 = vtanh.f32 %v22150_v12  ;;  %v14442_v28 = vpop.f32.mrb[128].mxu1  ;;  %v11759_v29 = vmul.f32 0.5, %v22150_v12 }
0x2b3b   :  { %v16646_v5 = vpop.eup %16645  ;;  %v22157_v36 = vadd.f32 %v21816_v31, %v14442_v28  ;;  %v11698_v42 = vpop.f32.mrb[129].mxu1 }
0x2b3c   :  { %v16648_v16 = vpop.eup %16647  ;;  %v22160_v10 = vadd.f32 %v21816_v31, %v11698_v42  ;;  %11871 = vrot.lane.b32.xlu1 %v16646_v5, %s16744_s30 }
0x2b3d   :  { %16657 = vtanh.f32 %v22157_v36  ;;  %11869 = vrot.lane.b32.xlu0 %v16648_v16, %s16744_s30  ;;  %v11762_v20 = vmul.f32 0.5, %v22157_v36 }
0x2b3e   :  { %16659 = vtanh.f32 %v22160_v10  ;;  %v14445_v60 = vpop.f32.mrb[130].mxu1  ;;  %v11761_v18 = vmul.f32 0.5, %v22160_v10 }
0x2b3f   :  { %v16650_v0 = vpop.eup %16649  ;;  %v22167_v55 = vadd.f32 %v21816_v31, %v14445_v60  ;;  %v11708_v46 = vpop.f32.mrb[131].mxu1 }
0x2b40   :  { %v16652_v59 = vpop.eup %16651  ;;  %v22170_v45 = vadd.f32 %v21816_v31, %v11708_v46  ;;  %11875 = vrot.lane.b32.xlu1 %v16650_v0, %s16744_s30 }
0x2b41   :  { %16661 = vtanh.f32 %v22167_v55  ;;  %11873 = vrot.lane.b32.xlu0 %v16652_v59, %s16744_s30  ;;  %v11764_v61 = vmul.f32 0.5, %v22167_v55 }
0x2b42   :  { %16663 = vtanh.f32 %v22170_v45  ;;  %v14448_v58 = vpop.f32.mrb[132].mxu1  ;;  %v11763_v51 = vmul.f32 0.5, %v22170_v45 }
0x2b43   :  { %v16654_v2 = vpop.eup %16653  ;;  %v22177_v22 = vadd.f32 %v21816_v31, %v14448_v58  ;;  %v11718_v40 = vpop.f32.mrb[133].mxu1 }
0x2b44   :  { %v16656_v52 = vpop.eup %16655  ;;  %v22180_v33 = vadd.f32 %v21816_v31, %v11718_v40  ;;  %11879 = vrot.lane.b32.xlu1 %v16654_v2, %s16744_s30 }
0x2b45   :  { %16665 = vtanh.f32 %v22177_v22  ;;  %11877 = vrot.lane.b32.xlu0 %v16656_v52, %s16744_s30  ;;  %v11766_v59 = vmul.f32 0.5, %v22177_v22 }
0x2b46   :  { %16667 = vtanh.f32 %v22180_v33  ;;  %v14451_v13 = vpop.f32.mrb[134].mxu1  ;;  %v11765_v45 = vmul.f32 0.5, %v22180_v33 }
0x2b47   :  { %v16658_v57 = vpop.eup %16657  ;;  %v22187_v63 = vadd.f32 %v21816_v31, %v14451_v13  ;;  %v11728_v32 = vpop.f32.mrb[135].mxu1 }
0x2b48   :  { %v16660_v50 = vpop.eup %16659  ;;  %v22190_v49 = vadd.f32 %v21816_v31, %v11728_v32  ;;  %11883 = vrot.lane.b32.xlu1 %v16658_v57, %s16744_s30 }
0x2b49   :  { %16669 = vtanh.f32 %v22187_v63  ;;  %11881 = vrot.lane.b32.xlu0 %v16660_v50, %s16744_s30 }
0x2b4a   :  { %16671 = vtanh.f32 %v22190_v49 }
0x2b4b   :  { %v16662_v27 = vpop.eup %16661  ;;  %16673 = vtanh.f32 %v11754_v7 }
0x2b4c   :  { %v16664_v35 = vpop.eup %16663  ;;  %11887 = vrot.lane.b32.xlu1 %v16662_v27, %s16744_s30  ;;  %16675 = vtanh.f32 %v11753_v34  ;;  %v11768_v27 = vmul.f32 0.5, %v22187_v63 }
0x2b4d   :  { %11885 = vrot.lane.b32.xlu0 %v16664_v35, %s16744_s30  ;;  %16677 = vtanh.f32 %v11756_v11  ;;  %v11767_v35 = vmul.f32 0.5, %v22190_v49 }
0x2b4e   :  { %16679 = vtanh.f32 %v11755_v14 }
0x2b4f   :  { %v16666_v25 = vpop.eup %16665  ;;  %16681 = vtanh.f32 %v11758_v54 }
0x2b50   :  { %v16668_v41 = vpop.eup %16667  ;;  %11891 = vrot.lane.b32.xlu1 %v16666_v25, %s16744_s30  ;;  %16683 = vtanh.f32 %v11757_v47 }
0x2b51   :  { %11889 = vrot.lane.b32.xlu0 %v16668_v41, %s16744_s30  ;;  %16685 = vtanh.f32 %v11760_v30 }
0x2b52   :  { %16687 = vtanh.f32 %v11759_v29 }
0x2b53   :  { %v16670_v31 = vpop.eup %16669  ;;  %16689 = vtanh.f32 %v11762_v20 }
0x2b54   :  { %v16672_v62 = vpop.eup %16671  ;;  %11895 = vrot.lane.b32.xlu1 %v16670_v31, %s16744_s30  ;;  %16691 = vtanh.f32 %v11761_v18 }
0x2b55   :  { %11893 = vrot.lane.b32.xlu0 %v16672_v62, %s16744_s30  ;;  %v16674_v26 = vpop.eup %16673  ;;  %16693 = vtanh.f32 %v11764_v61 }
0x2b56   :  { %v16676_v8 = vpop.eup %16675  ;;  %v11786_v1 = vmul.f32 0.5, %v16674_v26  ;;  %16695 = vtanh.f32 %v11763_v51 }
0x2b57   :  { %v16678_v19 = vpop.eup %16677  ;;  %v11785_v17 = vmul.f32 0.5, %v16676_v8  ;;  %16697 = vtanh.f32 %v11766_v59 }
0x2b58   :  { %v16680_v28 = vpop.eup %16679  ;;  %v22214_v5 = vadd.f32 0.5, %v11786_v1  ;;  %v11788_v12 = vmul.f32 0.5, %v16678_v19  ;;  %16699 = vtanh.f32 %v11765_v45 }
0x2b59   :  { %v16682_v42 = vpop.eup %16681  ;;  %v22216_v60 = vadd.f32 0.5, %v11785_v17  ;;  %v11787_v36 = vmul.f32 0.5, %v16680_v28  ;;  %16701 = vtanh.f32 %v11768_v27 }
0x2b5a   :  { %v16684_v0 = vpop.eup %16683  ;;  %v22223_v58 = vadd.f32 0.5, %v11788_v12  ;;  %v11790_v2 = vmul.f32 0.5, %v16682_v42  ;;  %16703 = vtanh.f32 %v11767_v35 }
0x2b5b   :  { %v16686_v40 = vpop.eup %16685  ;;  %v22226_v13 = vadd.f32 0.5, %v11787_v36  ;;  %v11789_v57 = vmul.f32 0.5, %v16684_v0 }
0x2b5c   :  { %v16688_v32 = vpop.eup %16687  ;;  %v22233_v25 = vadd.f32 0.5, %v11790_v2  ;;  %v11792_v41 = vmul.f32 0.5, %v16686_v40 }
0x2b5d   :  { %v16690_v31 = vpop.eup %16689  ;;  %v22236_v7 = vadd.f32 0.5, %v11789_v57  ;;  %v11791_v34 = vmul.f32 0.5, %v16688_v32 }
0x2b5e   :  { %v16692_v11 = vpop.eup %16691  ;;  %v22241_v49 = vadd.f32 0.5, %v11792_v41  ;;  %v11794_v47 = vmul.f32 0.5, %v16690_v31 }
0x2b5f   :  { %v16694_v30 = vpop.eup %16693  ;;  %v22244_v26 = vadd.f32 0.5, %v11791_v34  ;;  %v11793_v8 = vmul.f32 0.5, %v16692_v11 }
0x2b60   :  { %v16696_v20 = vpop.eup %16695  ;;  %v22249_v17 = vadd.f32 0.5, %v11794_v47  ;;  %v11796_v28 = vmul.f32 0.5, %v16694_v30 }
0x2b61   :  { %v16698_v61 = vpop.eup %16697  ;;  %v22252_v12 = vadd.f32 0.5, %v11793_v8  ;;  %v11795_v42 = vmul.f32 0.5, %v16696_v20  ;;  %v11833_v20 = vmul.f32 %v22216_v60, %v21984_v24 }
0x2b62   :  { %v11798_v59 = vmul.f32 0.5, %v16698_v61 }
0x2b63   :  { %v22260_v2 = vadd.f32 0.5, %v11795_v42 }
0x2baa   :  { %v11868_v16 = vpop.permute.xlu1 %11867 }
0x2bab   :  { %v11914_v10 = vmul.f32 %v11868_v16, %v22214_v5  ;;  %v11866_v46 = vpop.permute.xlu0 %11865  ;;  %v16700_v16 = vpop.eup %16699 }
0x2bac   :  { %v11913_v55 = vmul.f32 %v11866_v46, %v22216_v60  ;;  %v22257_v46 = vadd.f32 0.5, %v11796_v28  ;;  %v11797_v40 = vmul.f32 0.5, %v16700_v16  ;;  %v11836_v28 = vmul.f32 %v22223_v58, %v21992_v38 }
0x2bad   :  { %11947 = vrot.lane.b32.xlu1 %v11914_v10, %s16744_s30 }
0x2bae   :  { %v11872_v52 = vpop.permute.xlu1 %11871  ;;  %11945 = vrot.lane.b32.xlu0 %v11913_v55, %s16744_s30  ;;  %v16702_v55 = vpop.eup %16701  ;;  %v22268_v35 = vadd.f32 0.5, %v11797_v40 }
0x2baf   :  { %v11916_v22 = vmul.f32 %v11872_v52, %v22223_v58  ;;  %v11870_v50 = vpop.permute.xlu0 %11869  ;;  %v16704_v52 = vpop.eup %16703  ;;  %v11800_v27 = vmul.f32 0.5, %v16702_v55  ;;  %v11840_v55 = vmul.f32 %v22241_v49, %v22012_v3 }
0x2bb0   :  { %v11915_v33 = vmul.f32 %v11870_v50, %v22226_v13  ;;  %v22265_v50 = vadd.f32 0.5, %v11798_v59  ;;  %v11799_v41 = vmul.f32 0.5, %v16704_v52 }
0x2bb1   :  { %11951 = vrot.lane.b32.xlu1 %v11916_v22, %s16744_s30  ;;  %v22273_v11 = vadd.f32 0.5, %v11800_v27 }
0x2bb2   :  { %v11876_v62 = vpop.permute.xlu1 %11875  ;;  %11949 = vrot.lane.b32.xlu0 %v11915_v33, %s16744_s30 }
0x2bb3   :  { %v11918_v63 = vmul.f32 %v11876_v62, %v22233_v25  ;;  %v11874_v14 = vpop.permute.xlu0 %11873 }
0x2bb4   :  { %v11917_v54 = vmul.f32 %v11874_v14, %v22236_v7  ;;  %v22276_v14 = vadd.f32 0.5, %v11799_v41 }
0x2bb5   :  { %11955 = vrot.lane.b32.xlu1 %v11918_v63, %s16744_s30 }
0x2bb6   :  { %v11880_v29 = vpop.permute.xlu1 %11879  ;;  %11953 = vrot.lane.b32.xlu0 %v11917_v54, %s16744_s30 }
0x2bb7   :  { %v11920_v18 = vmul.f32 %v11880_v29, %v22241_v49  ;;  %v11878_v1 = vpop.permute.xlu0 %11877  ;;  %v11834_v29 = vmul.f32 %v22214_v5, %v21982_v15  ;;  %v11838_v15 = vmul.f32 %v22233_v25, %v22002_v37 }
0x2bb8   :  { %v11919_v19 = vmul.f32 %v11878_v1, %v22244_v26 }
0x2bb9   :  { %11959 = vrot.lane.b32.xlu1 %v11920_v18, %s16744_s30 }
0x2bba   :  { %v11884_v51 = vpop.permute.xlu1 %11883  ;;  %11957 = vrot.lane.b32.xlu0 %v11919_v19, %s16744_s30 }
0x2bbb   :  { %v11922_v36 = vmul.f32 %v11884_v51, %v22249_v17  ;;  %v11882_v0 = vpop.permute.xlu0 %11881  ;;  %v11835_v51 = vmul.f32 %v22226_v13, %v21994_v9 }
0x2bbc   :  { %v11921_v10 = vmul.f32 %v11882_v0, %v22252_v12  ;;  %v11837_v0 = vmul.f32 %v22236_v7, %v22004_v21  ;;  %v11842_v21 = vmul.f32 %v22249_v17, %v22024_v23 }
0x2bbd   :  { %11963 = vrot.lane.b32.xlu1 %v11922_v36, %s16744_s30 }
0x2bbe   :  { %v11888_v45 = vpop.permute.xlu1 %11887  ;;  %11961 = vrot.lane.b32.xlu0 %v11921_v10, %s16744_s30 }
0x2bbf   :  { %v11924_v57 = vmul.f32 %v11888_v45, %v22257_v46  ;;  %v11886_v32 = vpop.permute.xlu0 %11885  ;;  %v11839_v45 = vmul.f32 %v22244_v26, %v22014_v48 }
0x2bc0   :  { %v11923_v22 = vmul.f32 %v11886_v32, %v22260_v2 }
0x2bc1   :  { %11967 = vrot.lane.b32.xlu1 %v11924_v57, %s16744_s30 }
0x2bc2   :  { %v11892_v33 = vpop.permute.xlu1 %11891  ;;  %11965 = vrot.lane.b32.xlu0 %v11923_v22, %s16744_s30  ;;  %v11841_v22 = vmul.f32 %v22252_v12, %v22026_v53 }
0x2bc3   :  { %v11926_v31 = vmul.f32 %v11892_v33, %v22265_v50  ;;  %v11890_v62 = vpop.permute.xlu0 %11889 }
0x2bc4   :  { %v11925_v34 = vmul.f32 %v11890_v62, %v22268_v35  ;;  %v11844_v62 = vmul.f32 %v22257_v46, %v22036_v43 }
0x2bc5   :  { %11971 = vrot.lane.b32.xlu1 %v11926_v31, %s16744_s30 }
0x2bc6   :  { %v11896_v63 = vpop.permute.xlu1 %11895  ;;  %11969 = vrot.lane.b32.xlu0 %v11925_v34, %s16744_s30  ;;  %v11843_v34 = vmul.f32 %v22260_v2, %v22038_v6 }
0x2bc7   :  { %v11928_v54 = vmul.f32 %v11896_v63, %v22273_v11  ;;  %v11894_v47 = vpop.permute.xlu0 %11893 }
0x2bc8   :  { %v11927_v30 = vmul.f32 %v11894_v47, %v22276_v14 }
0x2bc9   :  { %11975 = vrot.lane.b32.xlu1 %v11928_v54, %s16744_s30 }
0x2bca   :  { %11973 = vrot.lane.b32.xlu0 %v11927_v30, %s16744_s30 }
0x2c1f   :  { %v11948_v8 = vpop.permute.xlu1 %11947 }
0x2c20   :  { %v11994_v18 = vadd.f32 %v11948_v8, %v11834_v29  ;;  %v11946_v1 = vpop.permute.xlu0 %11945  ;;  %v11846_v29 = vmul.f32 %v22265_v50, %v22048_v39  ;;  %v11845_v8 = vmul.f32 %v22268_v35, %v22050_v56 }
0x2c21   :  { %v11993_v19 = vadd.f32 %v11946_v1, %v11833_v20 }
0x2c22   :  { %16705 = vtanh.f32 %v11994_v18 }
0x2c23   :  { %16707 = vtanh.f32 %v11993_v19  ;;  %v11952_v61 = vpop.permute.xlu1 %11951 }
0x2c24   :  { %v11996_v42 = vadd.f32 %v11952_v61, %v11836_v28  ;;  %v11950_v16 = vpop.permute.xlu0 %11949  ;;  %v11848_v28 = vmul.f32 %v22273_v11, %v22060_v4  ;;  %v11847_v61 = vmul.f32 %v22276_v14, %v22062_v44  ;;  %v12105_v4 = vld [vmem:[%s22464_s7] sm:$0xff]  ;;  %v12106_v44 = vld [vmem:[%s22464_s7 + $0x8] sm:$0xff] }
0x2c25   :  { %v11995_v36 = vadd.f32 %v11950_v16, %v11835_v51 }
0x2c26   :  { %16709 = vtanh.f32 %v11996_v42 }
0x2c27   :  { %16711 = vtanh.f32 %v11995_v36  ;;  %v11956_v24 = vpop.permute.xlu1 %11955 }
0x2c28   :  { %v11998_v10 = vadd.f32 %v11956_v24, %v11838_v15  ;;  %v11954_v59 = vpop.permute.xlu0 %11953  ;;  %v12107_v24 = vld [vmem:[%s22464_s7 + $0x10] sm:$0xff] }
0x2c29   :  { %v11997_v38 = vadd.f32 %v11954_v59, %v11837_v0  ;;  %v12108_v59 = vld [vmem:[%s22464_s7 + $0x18] sm:$0xff] }
0x2c2a   :  { %16713 = vtanh.f32 %v11998_v10  ;;  %v14676_v10 = vpack.c.bf16 %v12106_v44, %v12105_v4 }
0x2c2b   :  { %16715 = vtanh.f32 %v11997_v38  ;;  %v11960_v9 = vpop.permute.xlu1 %11959  ;;  %v14680_v38 = vpack.c.bf16 %v12108_v59, %v12107_v24 }
0x2c2c   :  { %v16706_v40 = vpop.eup %16705  ;;  %v12000_v52 = vadd.f32 %v11960_v9, %v11840_v55  ;;  %v11958_v37 = vpop.permute.xlu0 %11957  ;;  %14677 = vmatprep.subr.bf16.mxu0 %v14676_v10 }
0x2c2d   :  { %v16708_v57 = vpop.eup %16707  ;;  %v11999_v32 = vadd.f32 %v11958_v37, %v11839_v45  ;;  %12043 = vrot.lane.b32.xlu1 %v16706_v40, %s16744_s30  ;;  %14679 = vmatpush3.bf16.msra.mxu0 %v14676_v10 }
0x2c2e   :  { %16717 = vtanh.f32 %v12000_v52  ;;  %12041 = vrot.lane.b32.xlu0 %v16708_v57, %s16744_s30  ;;  %14681 = vmatprep.subr.bf16.mxu0 %v14680_v38 }
0x2c2f   :  { %16719 = vtanh.f32 %v11999_v32  ;;  %v11964_v3 = vpop.permute.xlu1 %11963 }
0x2c30   :  { %v16710_v27 = vpop.eup %16709  ;;  %v12002_v48 = vadd.f32 %v11964_v3, %v11842_v21  ;;  %v11962_v33 = vpop.permute.xlu0 %11961 }
0x2c31   :  { %v16712_v41 = vpop.eup %16711  ;;  %v12001_v31 = vadd.f32 %v11962_v33, %v11841_v22  ;;  %12047 = vrot.lane.b32.xlu1 %v16710_v27, %s16744_s30  ;;  %14683 = vmatpush3.bf16.msra.mxu0 %v14680_v38 }
0x2c32   :  { %16721 = vtanh.f32 %v12002_v48  ;;  %12045 = vrot.lane.b32.xlu0 %v16712_v41, %s16744_s30 }
0x2c33   :  { %16723 = vtanh.f32 %v12001_v31  ;;  %v11968_v23 = vpop.permute.xlu1 %11967 }
0x2c34   :  { %v16714_v63 = vpop.eup %16713  ;;  %v12004_v53 = vadd.f32 %v11968_v23, %v11844_v62  ;;  %v11966_v54 = vpop.permute.xlu0 %11965 }
0x2c35   :  { %v16716_v47 = vpop.eup %16715  ;;  %v12003_v30 = vadd.f32 %v11966_v54, %v11843_v34  ;;  %12051 = vrot.lane.b32.xlu1 %v16714_v63, %s16744_s30 }
0x2c36   :  { %16725 = vtanh.f32 %v12004_v53  ;;  %12049 = vrot.lane.b32.xlu0 %v16716_v47, %s16744_s30 }
0x2c37   :  { %16727 = vtanh.f32 %v12003_v30  ;;  %v11972_v43 = vpop.permute.xlu1 %11971 }
0x2c38   :  { %v16718_v20 = vpop.eup %16717  ;;  %v12006_v6 = vadd.f32 %v11972_v43, %v11846_v29  ;;  %v11970_v18 = vpop.permute.xlu0 %11969 }
0x2c39   :  { %v16720_v1 = vpop.eup %16719  ;;  %v12005_v19 = vadd.f32 %v11970_v18, %v11845_v8  ;;  %12055 = vrot.lane.b32.xlu1 %v16718_v20, %s16744_s30 }
0x2c3a   :  { %16729 = vtanh.f32 %v12006_v6  ;;  %12053 = vrot.lane.b32.xlu0 %v16720_v1, %s16744_s30 }
0x2c3b   :  { %16731 = vtanh.f32 %v12005_v19  ;;  %v11976_v39 = vpop.permute.xlu1 %11975 }
0x2c3c   :  { %v16722_v51 = vpop.eup %16721  ;;  %v12008_v56 = vadd.f32 %v11976_v39, %v11848_v28  ;;  %v11974_v42 = vpop.permute.xlu0 %11973 }
0x2c3d   :  { %v16724_v16 = vpop.eup %16723  ;;  %v12007_v36 = vadd.f32 %v11974_v42, %v11847_v61  ;;  %12059 = vrot.lane.b32.xlu1 %v16722_v51, %s16744_s30 }
0x2c3e   :  { %16733 = vtanh.f32 %v12008_v56  ;;  %12057 = vrot.lane.b32.xlu0 %v16724_v16, %s16744_s30  ;;  %v12844_v56 = vld [vmem:[%s22465_s8] ss:$0 sm:$0xff] }
0x2c3f   :  { %16735 = vtanh.f32 %v12007_v36 }
0x2c40   :  { %v16726_v15 = vpop.eup %16725 }
0x2c41   :  { %v16728_v0 = vpop.eup %16727  ;;  %12063 = vrot.lane.b32.xlu1 %v16726_v15, %s16744_s30 }
0x2c42   :  { %12061 = vrot.lane.b32.xlu0 %v16728_v0, %s16744_s30 }
0x2c44   :  { %v16730_v55 = vpop.eup %16729 }
0x2c45   :  { %v16732_v9 = vpop.eup %16731  ;;  %12067 = vrot.lane.b32.xlu1 %v16730_v55, %s16744_s30 }
0x2c46   :  { %12065 = vrot.lane.b32.xlu0 %v16732_v9, %s16744_s30 }
0x2c48   :  { %v16734_v45 = vpop.eup %16733 }
0x2c49   :  { %v16736_v40 = vpop.eup %16735  ;;  %12071 = vrot.lane.b32.xlu1 %v16734_v45, %s16744_s30 }
0x2c4a   :  { %12069 = vrot.lane.b32.xlu0 %v16736_v40, %s16744_s30 }
0x2c9f   :  { %v12044_v52 = vpop.permute.xlu1 %12043 }
0x2ca0   :  { %v12090_v37 = vmul.f32 %v12044_v52, %v22214_v5  ;;  %v12042_v57 = vpop.permute.xlu0 %12041 }
0x2ca1   :  { %v12089_v32 = vmul.f32 %v12042_v57, %v22216_v60 }
0x2ca2   :  { %12134 = vrot.lane.b32.xlu1 %v12090_v37, %s16745_s0 }
0x2ca3   :  { %v12048_v21 = vpop.permute.xlu1 %12047  ;;  %12132 = vrot.lane.b32.xlu0 %v12089_v32, %s16745_s0 }
0x2ca4   :  { %v12092_v3 = vmul.f32 %v12048_v21, %v22223_v58  ;;  %v12046_v22 = vpop.permute.xlu0 %12045 }
0x2ca5   :  { %v12091_v27 = vmul.f32 %v12046_v22, %v22226_v13 }
0x2ca6   :  { %12138 = vrot.lane.b32.xlu1 %v12092_v3, %s16745_s0 }
0x2ca7   :  { %v12052_v48 = vpop.permute.xlu1 %12051  ;;  %12136 = vrot.lane.b32.xlu0 %v12091_v27, %s16745_s0 }
0x2ca8   :  { %v12094_v5 = vmul.f32 %v12052_v48, %v22233_v25  ;;  %v12050_v33 = vpop.permute.xlu0 %12049 }
0x2ca9   :  { %v12093_v60 = vmul.f32 %v12050_v33, %v22236_v7 }
0x2caa   :  { %12142 = vrot.lane.b32.xlu1 %v12094_v5, %s16745_s0 }
0x2cab   :  { %v12056_v41 = vpop.permute.xlu1 %12055  ;;  %12140 = vrot.lane.b32.xlu0 %v12093_v60, %s16745_s0 }
0x2cac   :  { %v12096_v58 = vmul.f32 %v12056_v41, %v22241_v49  ;;  %v12054_v31 = vpop.permute.xlu0 %12053 }
0x2cad   :  { %v12095_v13 = vmul.f32 %v12054_v31, %v22244_v26 }
0x2cae   :  { %12146 = vrot.lane.b32.xlu1 %v12096_v58, %s16745_s0 }
0x2caf   :  { %v12060_v62 = vpop.permute.xlu1 %12059  ;;  %12144 = vrot.lane.b32.xlu0 %v12095_v13, %s16745_s0 }
0x2cb0   :  { %v12098_v25 = vmul.f32 %v12060_v62, %v22249_v17  ;;  %v12058_v23 = vpop.permute.xlu0 %12057 }
0x2cb1   :  { %v12097_v7 = vmul.f32 %v12058_v23, %v22252_v12 }
0x2cb2   :  { %12150 = vrot.lane.b32.xlu1 %v12098_v25, %s16745_s0 }
0x2cb3   :  { %v12064_v34 = vpop.permute.xlu1 %12063  ;;  %12148 = vrot.lane.b32.xlu0 %v12097_v7, %s16745_s0 }
0x2cb4   :  { %v12100_v49 = vmul.f32 %v12064_v34, %v22257_v46  ;;  %v12062_v63 = vpop.permute.xlu0 %12061 }
0x2cb5   :  { %v12099_v26 = vmul.f32 %v12062_v63, %v22260_v2 }
0x2cb6   :  { %12154 = vrot.lane.b32.xlu1 %v12100_v49, %s16745_s0 }
0x2cb7   :  { %v12068_v53 = vpop.permute.xlu1 %12067  ;;  %12152 = vrot.lane.b32.xlu0 %v12099_v26, %s16745_s0 }
0x2cb8   :  { %v12102_v17 = vmul.f32 %v12068_v53, %v22265_v50  ;;  %v12066_v54 = vpop.permute.xlu0 %12065 }
0x2cb9   :  { %v12101_v12 = vmul.f32 %v12066_v54, %v22268_v35 }
0x2cba   :  { %12158 = vrot.lane.b32.xlu1 %v12102_v17, %s16745_s0 }
0x2cbb   :  { %v12072_v47 = vpop.permute.xlu1 %12071  ;;  %12156 = vrot.lane.b32.xlu0 %v12101_v12, %s16745_s0 }
0x2cbc   :  { %v12104_v46 = vmul.f32 %v12072_v47, %v22273_v11  ;;  %v12070_v30 = vpop.permute.xlu0 %12069 }
0x2cbd   :  { %v12103_v2 = vmul.f32 %v12070_v30, %v22276_v14 }
0x2cbe   :  { %12162 = vrot.lane.b32.xlu1 %v12104_v46, %s16745_s0 }
0x2cbf   :  { %12160 = vrot.lane.b32.xlu0 %v12103_v2, %s16745_s0 }
0x2d14   :  { %v12135_v29 = vpop.permute.xlu1 %12134 }
0x2d15   :  { %v12133_v43 = vpop.permute.xlu0 %12132 }
0x2d16   :  { %14460 = vmatprep.mubr.msk.f32.mxu0 %vm1267_vm1, %v12133_v43 }
0x2d17   :  { %14461 = vmatmul.mubr.msk.f32.vlgmr.msra.gmra.mrb[128].mxu0 %vm1267_vm1, %v12135_v29 }
0x2d18   :  { %v12139_v50 = vpop.permute.xlu1 %12138 }
0x2d19   :  { %v12137_v35 = vpop.permute.xlu0 %12136 }
0x2d1a   :  { %14463 = vmatprep.mubr.msk.f32.mxu0 %vm1267_vm1, %v12137_v35 }
0x2d1b   :  { %14464 = vmatmul.mubr.msk.f32.gmra.mrb[130].mxu0 %vm1267_vm1, %v12139_v50 }
0x2d1c   :  { %v12143_v11 = vpop.permute.xlu1 %12142 }
0x2d1d   :  { %v12141_v8 = vpop.permute.xlu0 %12140 }
0x2d1e   :  { %14466 = vmatprep.mubr.msk.f32.mxu0 %vm1267_vm1, %v12141_v8 }
0x2d1f   :  { %14467 = vmatmul.mubr.msk.f32.gmra.mrb[132].mxu0 %vm1267_vm1, %v12143_v11 }
0x2d20   :  { %v12147_v14 = vpop.permute.xlu1 %12146 }
0x2d21   :  { %v12145_v20 = vpop.permute.xlu0 %12144 }
0x2d22   :  { %14469 = vmatprep.mubr.msk.f32.mxu0 %vm1267_vm1, %v12145_v20 }
0x2d23   :  { %14470 = vmatmul.mubr.msk.f32.gmra.mrb[134].mxu0 %vm1267_vm1, %v12147_v14 }
0x2d24   :  { %v12151_v6 = vpop.permute.xlu1 %12150 }
0x2d25   :  { %v12149_v18 = vpop.permute.xlu0 %12148 }
0x2d26   :  { %14472 = vmatprep.mubr.msk.f32.mxu0 %vm1267_vm1, %v12149_v18 }
0x2d27   :  { %14473 = vmatmul.mubr.msk.f32.gmra.mrb[136].mxu0 %vm1267_vm1, %v12151_v6 }
0x2d28   :  { %v12155_v1 = vpop.permute.xlu1 %12154 }
0x2d29   :  { %v12153_v19 = vpop.permute.xlu0 %12152 }
0x2d2a   :  { %14475 = vmatprep.mubr.msk.f32.mxu0 %vm1267_vm1, %v12153_v19 }
0x2d2b   :  { %14476 = vmatmul.mubr.msk.f32.gmra.mrb[138].mxu0 %vm1267_vm1, %v12155_v1 }
0x2d2c   :  { %v12159_v28 = vpop.permute.xlu1 %12158 }
0x2d2d   :  { %v12157_v39 = vpop.permute.xlu0 %12156 }
0x2d2e   :  { %14478 = vmatprep.mubr.msk.f32.mxu0 %vm1267_vm1, %v12157_v39 }
0x2d2f   :  { %14479 = vmatmul.mubr.msk.f32.gmra.mrb[140].mxu0 %vm1267_vm1, %v12159_v28 }
0x2d30   :  { %v12163_v51 = vpop.permute.xlu1 %12162 }
0x2d31   :  { %v12161_v61 = vpop.permute.xlu0 %12160 }
0x2d32   :  { %14481 = vmatprep.mubr.msk.f32.mxu0 %vm1267_vm1, %v12161_v61 }
0x2d33   :  { %14482 = vmatmul.mubr.msk.f32.gmra.mrb[142].mxu0 %vm1267_vm1, %v12163_v51 }
0x2dea   :  { %v14462_v42 = vpop.f32.mrb[128].mxu0 }
0x2deb   :  { %v12268_v16 = vadd.f32 %v14462_v42, %v12844_v56  ;;  %v12262_v36 = vpop.f32.mrb[129].mxu0 }
0x2dec   :  { %v12263_v15 = vadd.f32 %v12844_v56, %v12262_v36 }
0x2ded   :  { %12343 = vst.msk [vmem:[%s22466_s9 + $0x8] sm:$0xff] %vm12341_vm2, %v12268_v16 }
0x2dee   :  { %12342 = vst.msk [vmem:[%s22466_s9] sm:$0xff] %vm12341_vm2, %v12263_v15  ;;  %v14465_v4 = vpop.f32.mrb[130].mxu0 }
0x2def   :  { %v12278_v44 = vadd.f32 %v14465_v4, %v12844_v56  ;;  %v12272_v24 = vpop.f32.mrb[131].mxu0 }
0x2df0   :  { %v12273_v0 = vadd.f32 %v12844_v56, %v12272_v24 }
0x2df1   :  { %12345 = vst.msk [vmem:[%s22466_s9 + $0x18] sm:$0xff] %vm12341_vm2, %v12278_v44 }
0x2df2   :  { %12344 = vst.msk [vmem:[%s22466_s9 + $0x10] sm:$0xff] %vm12341_vm2, %v12273_v0  ;;  %v14468_v10 = vpop.f32.mrb[132].mxu0 }
0x2df3   :  { %v12288_v59 = vadd.f32 %v14468_v10, %v12844_v56  ;;  %v12282_v38 = vpop.f32.mrb[133].mxu0 }
0x2df4   :  { %v12283_v55 = vadd.f32 %v12844_v56, %v12282_v38 }
0x2df5   :  { %12347 = vst.msk [vmem:[%s22466_s9 + $0x28] sm:$0xff] %vm12341_vm2, %v12288_v59 }
0x2df6   :  { %12346 = vst.msk [vmem:[%s22466_s9 + $0x20] sm:$0xff] %vm12341_vm2, %v12283_v55  ;;  %v14471_v9 = vpop.f32.mrb[134].mxu0 }
0x2df7   :  { %v12298_v45 = vadd.f32 %v14471_v9, %v12844_v56  ;;  %v12292_v40 = vpop.f32.mrb[135].mxu0 }
0x2df8   :  { %v12293_v52 = vadd.f32 %v12844_v56, %v12292_v40 }
0x2df9   :  { %12349 = vst.msk [vmem:[%s22466_s9 + $0x38] sm:$0xff] %vm12341_vm2, %v12298_v45 }
0x2dfa   :  { %12348 = vst.msk [vmem:[%s22466_s9 + $0x30] sm:$0xff] %vm12341_vm2, %v12293_v52  ;;  %v14474_v37 = vpop.f32.mrb[136].mxu0 }
0x2dfb   :  { %v12308_v57 = vadd.f32 %v14474_v37, %v12844_v56  ;;  %v12302_v32 = vpop.f32.mrb[137].mxu0 }
0x2dfc   :  { %v12303_v21 = vadd.f32 %v12844_v56, %v12302_v32 }
0x2dfd   :  { %12351 = vst.msk [vmem:[%s22466_s9 + $0x48] sm:$0xff] %vm12341_vm2, %v12308_v57 }
0x2dfe   :  { %12350 = vst.msk [vmem:[%s22466_s9 + $0x40] sm:$0xff] %vm12341_vm2, %v12303_v21  ;;  %v14477_v3 = vpop.f32.mrb[138].mxu0 }
0x2dff   :  { %v12318_v22 = vadd.f32 %v14477_v3, %v12844_v56  ;;  %v12312_v27 = vpop.f32.mrb[139].mxu0 }
0x2e00   :  { %v12313_v48 = vadd.f32 %v12844_v56, %v12312_v27 }
0x2e01   :  { %12353 = vst.msk [vmem:[%s22466_s9 + $0x58] sm:$0xff] %vm12341_vm2, %v12318_v22 }
0x2e02   :  { %12352 = vst.msk [vmem:[%s22466_s9 + $0x50] sm:$0xff] %vm12341_vm2, %v12313_v48  ;;  %v14480_v5 = vpop.f32.mrb[140].mxu0 }
0x2e03   :  { %v12328_v33 = vadd.f32 %v14480_v5, %v12844_v56  ;;  %v12322_v60 = vpop.f32.mrb[141].mxu0 }
0x2e04   :  { %v12323_v41 = vadd.f32 %v12844_v56, %v12322_v60 }
0x2e05   :  { %12355 = vst.msk [vmem:[%s22466_s9 + $0x68] sm:$0xff] %vm12341_vm2, %v12328_v33 }
0x2e06   :  { %12354 = vst.msk [vmem:[%s22466_s9 + $0x60] sm:$0xff] %vm12341_vm2, %v12323_v41  ;;  %v14483_v58 = vpop.f32.mrb[142].mxu0 }
0x2e07   :  { %v12338_v31 = vadd.f32 %v14483_v58, %v12844_v56  ;;  %v12332_v13 = vpop.f32.mrb[143].mxu0 }
0x2e08   :  { %v12333_v62 = vadd.f32 %v12844_v56, %v12332_v13 }
0x2e09   :  { %12357 = vst.msk [vmem:[%s22466_s9 + $0x78] sm:$0xff] %vm12341_vm2, %v12338_v31 }
0x2e0a   :  { %12356 = vst.msk [vmem:[%s22466_s9 + $0x70] sm:$0xff] %vm12341_vm2, %v12333_v62 }

</bundles_post_ra>
